<compile_context>
chip_gen: v7x
topology: tpu7x:2x2x1
jax: 0.10.0
libtpu: 0.0.40
codegen_flags: <defaults>
</compile_context>

<pallas_src>
import functools

import jax
import jax.numpy as jnp
from jax.experimental import pallas as pl
from jax.experimental.pallas import tpu as pltpu

LANE = 128
IN_FEATURES = 4      # nn.Linear(4, hidden_size)
NUM_CLASSES = 4      # nn.Linear(hidden_size, 4)

# MXU operand dtype for the large matmuls (bf16 operands + f32 accumulation).
MATMUL_DTYPE = jnp.bfloat16

# Scoped VMEM limit: safe on v7x (64 MiB physical), well inside v5e/v6e (128 MiB).
VMEM_LIMIT_BYTES = 48 * 1024 * 1024

_SQRT_HALF = 0.7071067811865476


# --------------------------------------------------------------------------
# In-kernel helpers (VPU/EUP/MXU friendly, f32 statistics)
# --------------------------------------------------------------------------
def _mm(a, w):
    """MXU matmul: operands cast to the weight dtype, f32 accumulation."""
    return jnp.dot(a.astype(w.dtype), w, preferred_element_type=jnp.float32)


def _erf(x):
    # Abramowitz & Stegun 7.1.26 (max abs err ~1.5e-7): mul/add (VPU) + exp/rcp (EUP).
    a1, a2, a3, a4, a5 = (0.254829592, -0.284496736, 1.421413741,
                          -1.453152027, 1.061405429)
    p = 0.3275911
    sgn = jnp.where(x >= 0.0, 1.0, -1.0)
    ax = jnp.abs(x)
    t = pl.reciprocal(1.0 + p * ax, approx=True)          # EUP slot
    poly = ((((a5 * t + a4) * t + a3) * t + a2) * t + a1) * t
    return sgn * (1.0 - poly * jnp.exp(-ax * ax))


def _gelu(x):
    # matches torch.nn.GELU() default (erf form)
    return 0.5 * x * (1.0 + _erf(x * _SQRT_HALF))


def _layernorm(x, w, b, eps):
    mu = jnp.mean(x, axis=-1, keepdims=True)
    xc = x - mu
    var = jnp.mean(xc * xc, axis=-1, keepdims=True)
    return xc * jax.lax.rsqrt(var + eps) * w + b


# --------------------------------------------------------------------------
# Fused kernel: embeddings + L BigBirdBlocks (in-kernel loop) + classifier + softmax
# grid = (batch_tiles,)  ["parallel"]
# --------------------------------------------------------------------------
def bigbird_fused_kernel(
        x_ref, bias_ref,
        emb_w_ref, emb_b_ref,
        ln1_w_ref, ln1_b_ref, qkv_w_ref, qkv_b_ref, out_w_ref, out_b_ref,
        ln2_w_ref, ln2_b_ref, ff1_w_ref, ff1_b_ref, ff2_w_ref, ff2_b_ref,
        cls_w_ref, cls_b_ref,
        probs_ref,
        *, num_heads, eps, tile_b, seq_len):

    H = emb_b_ref.shape[-1]
    L = ln1_w_ref.shape[0]
    Dh = H // num_heads
    N = tile_b * seq_len
    Z = num_heads * tile_b
    scale = 1.0 / (Dh ** 0.5)

    # ---- embeddings: Linear(4 -> H) as IN_FEATURES broadcast-FMAs on the VPU ----
    # (input stays [*, 4] in HBM; no zero padding, no MXU, no first-step branch)
    x_in = x_ref[...].reshape(N, IN_FEATURES).astype(jnp.float32)
    x = x_in[:, 0:1] * emb_w_ref[0:1, :]
    for j in range(1, IN_FEATURES):
        x = x + x_in[:, j:j + 1] * emb_w_ref[j:j + 1, :]
    x = x + emb_b_ref[...]                                       # [N, H] f32

    # ---- key-padding bias, broadcast across heads ONCE per batch tile (hoisted) ----
    bias = bias_ref[...]                                          # [tile_b, 1, S]
    bias_z = jnp.broadcast_to(bias[None], (num_heads, tile_b, 1, seq_len))
    bias_z = bias_z.reshape(Z, 1, seq_len)

    # ================= L BigBirdBlocks, looped inside the kernel =================
    def layer_body(l, x):
        # --- attention sublayer: res = x ; x = attn(LN1(x), mask) + res ---
        h = _layernorm(x, ln1_w_ref[l], ln1_b_ref[l], eps)
        qkv = _mm(h, qkv_w_ref[l]) + qkv_b_ref[l]                 # [N, 3H]
        qkv = qkv.reshape(tile_b, seq_len, 3 * H)

        def split_heads(base):
            # lane-aligned static slices, stacked on a leading head axis
            parts = [qkv[:, :, base + hh * Dh: base + (hh + 1) * Dh]
                     for hh in range(num_heads)]
            return jnp.stack(parts, axis=0).reshape(Z, seq_len, Dh)

        q = split_heads(0)
        k = split_heads(H)
        v = split_heads(2 * H)

        # single batched einsum over all heads; f32 operands (tiny matmuls, casts
        # dropped per review), f32 accumulation
        s = jnp.einsum('zqd,zkd->zqk', q, k,
                       preferred_element_type=jnp.float32) * scale + bias_z
        s = s - jnp.max(s, axis=-1, keepdims=True)                # safe softmax
        p = jnp.exp(s)
        p = p * pl.reciprocal(jnp.sum(p, axis=-1, keepdims=True), approx=True)

        ctx = jnp.einsum('zqk,zkd->zqd', p, v,
                         preferred_element_type=jnp.float32)      # [Z, S, Dh]
        ctx = ctx.reshape(num_heads, tile_b, seq_len, Dh)
        ctx = jnp.concatenate([ctx[hh] for hh in range(num_heads)], axis=-1)
        ctx = ctx.reshape(N, H)

        x = x + _mm(ctx, out_w_ref[l]) + out_b_ref[l]             # dropout1 = id (eval)

        # --- feed-forward sublayer: res = x ; x = FF(LN2(x)) + res ---
        h2 = _layernorm(x, ln2_w_ref[l], ln2_b_ref[l], eps)
        f = _gelu(_mm(h2, ff1_w_ref[l]) + ff1_b_ref[l])
        x = x + _mm(f, ff2_w_ref[l]) + ff2_b_ref[l]               # dropout2 = id (eval)
        return x

    x = jax.lax.fori_loop(0, L, layer_body, x, unroll=True)

    # ---- classifier Linear(H -> 4), lane-padded to 128, + exact softmax ----
    logits = _mm(x, cls_w_ref[...]) + cls_b_ref[...]              # pad cols -> -1e30
    logits = logits - jnp.max(logits, axis=-1, keepdims=True)
    e = jnp.exp(logits)                                           # pad cols -> 0
    probs = e / jnp.sum(e, axis=-1, keepdims=True)
    probs_ref[...] = probs.reshape(tile_b, seq_len, -1).astype(probs_ref.dtype)


# --------------------------------------------------------------------------
# Parameters: PyTorch-layout init + packing into the kernel layout
# --------------------------------------------------------------------------
def _round_up(n, m):
    return ((n + m - 1) // m) * m


def init_torch_params(key, cfg):
    """Parameters with the same shapes/init style as the PyTorch state_dict."""
    H, F, L = cfg['hidden_size'], cfg['feed_forward_size'], cfg['num_hidden_layers']

    def lin(k, out_d, in_d):
        kw, kb = jax.random.split(k)
        bound = 1.0 / (in_d ** 0.5)
        w = jax.random.uniform(kw, (out_d, in_d), jnp.float32, -bound, bound)
        b = jax.random.uniform(kb, (out_d,), jnp.float32, -bound, bound)
        return w, b

    keys = jax.random.split(key, L + 2)
    emb_w, emb_b = lin(keys[0], H, IN_FEATURES)

    layers = []
    for i in range(L):
        lk = jax.random.split(keys[1 + i], 6)
        q_w, q_b = lin(lk[0], H, H)
        k_w, k_b = lin(lk[1], H, H)
        v_w, v_b = lin(lk[2], H, H)
        o_w, o_b = lin(lk[3], H, H)
        f1_w, f1_b = lin(lk[4], F, H)
        f2_w, f2_b = lin(lk[5], H, F)
        layers.append(dict(
            ln1_w=jnp.ones((H,), jnp.float32), ln1_b=jnp.zeros((H,), jnp.float32),
            q_w=q_w, q_b=q_b, k_w=k_w, k_b=k_b, v_w=v_w, v_b=v_b,
            out_w=o_w, out_b=o_b,
            ln2_w=jnp.ones((H,), jnp.float32), ln2_b=jnp.zeros((H,), jnp.float32),
            ff1_w=f1_w, ff1_b=f1_b, ff2_w=f2_w, ff2_b=f2_b))

    cls_w, cls_b = lin(keys[L + 1], NUM_CLASSES, H)
    return dict(emb_w=emb_w, emb_b=emb_b, layers=layers, cls_w=cls_w, cls_b=cls_b)


def pack_params(tp, cfg):
    """Pre-transpose ([in,out]), fuse QKV, stack per-layer weights on a leading L
    axis, lane-pad the classifier output, cast big-matmul weights to bf16."""
    H, F, L = cfg['hidden_size'], cfg['feed_forward_size'], cfg['num_hidden_layers']
    Cout_pad = _round_up(NUM_CLASSES, LANE)
    f32 = jnp.float32
    mm = MATMUL_DTYPE

    emb_w = tp['emb_w'].T.astype(f32)                       # [4, H]  (VPU FMA path)
    emb_b = tp['emb_b'].reshape(1, H).astype(f32)

    def stack_vec(name, d):
        return jnp.stack([lp[name] for lp in tp['layers']]).reshape(L, 1, d).astype(f32)

    ln1_w, ln1_b = stack_vec('ln1_w', H), stack_vec('ln1_b', H)
    ln2_w, ln2_b = stack_vec('ln2_w', H), stack_vec('ln2_b', H)
    out_b = stack_vec('out_b', H)
    ff1_b = stack_vec('ff1_b', F)
    ff2_b = stack_vec('ff2_b', H)

    qkv_w = jnp.stack([jnp.concatenate([lp['q_w'].T, lp['k_w'].T, lp['v_w'].T], axis=1)
                       for lp in tp['layers']])                          # [L, H, 3H]
    qkv_b = jnp.stack([jnp.concatenate([lp['q_b'], lp['k_b'], lp['v_b']])
                       for lp in tp['layers']]).reshape(L, 1, 3 * H).astype(f32)
    out_w = jnp.stack([lp['out_w'].T for lp in tp['layers']])            # [L, H, H]
    ff1_w = jnp.stack([lp['ff1_w'].T for lp in tp['layers']])            # [L, H, F]
    ff2_w = jnp.stack([lp['ff2_w'].T for lp in tp['layers']])            # [L, F, H]

    cls_w = jnp.zeros((H, Cout_pad), f32).at[:, :NUM_CLASSES].set(tp['cls_w'].T)
    # pad-class bias = -1e30 -> exp underflows to 0 -> softmax exact over 4 classes
    cls_b = jnp.full((1, Cout_pad), -1e30, f32).at[0, :NUM_CLASSES].set(tp['cls_b'])

    return dict(
        emb_w=emb_w, emb_b=emb_b,
        ln1_w=ln1_w, ln1_b=ln1_b,
        qkv_w=qkv_w.astype(mm), qkv_b=qkv_b,
        out_w=out_w.astype(mm), out_b=out_b,
        ln2_w=ln2_w, ln2_b=ln2_b,
        ff1_w=ff1_w.astype(mm), ff1_b=ff1_b,
        ff2_w=ff2_w.astype(mm), ff2_b=ff2_b,
        cls_w=cls_w.astype(mm), cls_b=cls_b,
    )


# --------------------------------------------------------------------------
# Wrapper
# --------------------------------------------------------------------------
def _pick_tile_b(B, S, target_rows=256):
    """Pick a batch tile: fill >= target_rows MXU rows per tile when possible
    (256 for v6e/v7x, >=128 already fills v5e), but keep >= 2 parallel grid
    blocks so both v7x TensorCores get work."""
    divs = [d for d in range(1, B + 1) if B % d == 0]
    tile_b = divs[-1]
    for d in divs:
        if d * S >= target_rows:
            tile_b = d
            break
    if B // tile_b < 2:
        smaller = [d for d in divs if d < tile_b and B // d >= 2]
        if smaller:
            tile_b = smaller[-1]
    return tile_b


def bigbird_transformer_forward(x, attention_mask, packed, cfg, tile_b=None,
                                out_dtype=jnp.float32):
    # out_dtype=jnp.bfloat16 halves output writeback (harmless for post-softmax
    # probabilities) once B*S is large.
    B, S, Cin = x.shape
    assert Cin == IN_FEATURES
    H = cfg['hidden_size']
    F = cfg['feed_forward_size']
    L = cfg['num_hidden_layers']
    nh = cfg['num_heads']
    assert H % nh == 0
    Cout_pad = packed['cls_w'].shape[1]

    if tile_b is None:
        tile_b = _pick_tile_b(B, S)
    assert B % tile_b == 0

    x = x.astype(jnp.float32)

    # additive key-padding bias (True/1 = attend); None -> no masking
    if attention_mask is None:
        bias = jnp.zeros((B, 1, S), jnp.float32)
    else:
        bias = jnp.where(attention_mask[:, None, :], 0.0, -1e9).astype(jnp.float32)

    grid = (B // tile_b,)

    tile3 = lambda b: (b, 0, 0)     # per-batch-tile activations / outputs
    full3 = lambda b: (0, 0, 0)     # layer-stacked weights, resident in VMEM
    full2 = lambda b: (0, 0)

    in_specs = [
        pl.BlockSpec((tile_b, S, IN_FEATURES), tile3),   # x (no lane padding in HBM)
        pl.BlockSpec((tile_b, 1, S), tile3),             # mask bias
        pl.BlockSpec((IN_FEATURES, H), full2),           # emb_w
        pl.BlockSpec((1, H), full2),                     # emb_b
        pl.BlockSpec((L, 1, H), full3),                  # ln1_w
        pl.BlockSpec((L, 1, H), full3),                  # ln1_b
        pl.BlockSpec((L, H, 3 * H), full3),              # qkv_w (fused, [in,out])
        pl.BlockSpec((L, 1, 3 * H), full3),              # qkv_b
        pl.BlockSpec((L, H, H), full3),                  # out_w
        pl.BlockSpec((L, 1, H), full3),                  # out_b
        pl.BlockSpec((L, 1, H), full3),                  # ln2_w
        pl.BlockSpec((L, 1, H), full3),                  # ln2_b
        pl.BlockSpec((L, H, F), full3),                  # ff1_w
        pl.BlockSpec((L, 1, F), full3),                  # ff1_b
        pl.BlockSpec((L, F, H), full3),                  # ff2_w
        pl.BlockSpec((L, 1, H), full3),                  # ff2_b
        pl.BlockSpec((H, Cout_pad), full2),              # cls_w (lane-padded out)
        pl.BlockSpec((1, Cout_pad), full2),              # cls_b (-1e30 pad columns)
    ]
    out_spec = pl.BlockSpec((tile_b, S, Cout_pad), tile3)

    kernel = functools.partial(
        bigbird_fused_kernel,
        num_heads=nh, eps=cfg['layer_norm_eps'], tile_b=tile_b, seq_len=S)

    # advisory cost estimate so XLA schedules surrounding glue sensibly
    Ntok = B * S
    mm_flops = (L * (2 * Ntok * H * (4 * H + 2 * F) + 4 * Ntok * S * H)
                + 2 * Ntok * IN_FEATURES * H + 2 * Ntok * H * Cout_pad)
    transc = L * (B * nh * S * S + Ntok * F) + Ntok * Cout_pad
    weight_bytes = sum(int(v.size) * v.dtype.itemsize for v in packed.values())
    bytes_accessed = int(x.size * 4 + bias.size * 4
                         + Ntok * Cout_pad * jnp.dtype(out_dtype).itemsize
                         + weight_bytes)
    cost = pl.CostEstimate(flops=int(mm_flops), transcendentals=int(transc),
                           bytes_accessed=bytes_accessed)

    probs_pad = pl.pallas_call(
        kernel,
        out_shape=jax.ShapeDtypeStruct((B, S, Cout_pad), out_dtype),
        grid_spec=pltpu.PrefetchScalarGridSpec(
            num_scalar_prefetch=0,
            grid=grid,
            in_specs=in_specs,
            out_specs=out_spec,
        ),
        compiler_params=pltpu.CompilerParams(
            dimension_semantics=("parallel",),
            vmem_limit_bytes=VMEM_LIMIT_BYTES,
        ),
        cost_estimate=cost,
    )(x, bias,
      packed['emb_w'], packed['emb_b'],
      packed['ln1_w'], packed['ln1_b'],
      packed['qkv_w'], packed['qkv_b'],
      packed['out_w'], packed['out_b'],
      packed['ln2_w'], packed['ln2_b'],
      packed['ff1_w'], packed['ff1_b'],
      packed['ff2_w'], packed['ff2_b'],
      packed['cls_w'], packed['cls_b'])

    return probs_pad[:, :, :NUM_CLASSES].astype(jnp.float32)


# --------------------------------------------------------------------------
# Pure-JAX f32 reference (mirrors the PyTorch module; dense MHA assumption)
# --------------------------------------------------------------------------
def reference_forward(x, attention_mask, tp, cfg):
    H = cfg['hidden_size']
    nh = cfg['num_heads']
    Dh = H // nh
    eps = cfg['layer_norm_eps']
    B, S, _ = x.shape

    def ln(t, w, b):
        mu = t.mean(-1, keepdims=True)
        var = ((t - mu) ** 2).mean(-1, keepdims=True)
        return (t - mu) / jnp.sqrt(var + eps) * w + b

    if attention_mask is None:
        bias = jnp.zeros((B, 1, 1, S), jnp.float32)
    else:
        bias = jnp.where(attention_mask[:, None, None, :], 0.0, -1e9)

    h = x @ tp['emb_w'].T + tp['emb_b']
    for lp in tp['layers']:
        res = h
        y = ln(h, lp['ln1_w'], lp['ln1_b'])
        q = (y @ lp['q_w'].T + lp['q_b']).reshape(B, S, nh, Dh).transpose(0, 2, 1, 3)
        k = (y @ lp['k_w'].T + lp['k_b']).reshape(B, S, nh, Dh).transpose(0, 2, 1, 3)
        v = (y @ lp['v_w'].T + lp['v_b']).reshape(B, S, nh, Dh).transpose(0, 2, 1, 3)
        s = jnp.einsum('bhqd,bhkd->bhqk', q, k) / jnp.sqrt(float(Dh)) + bias
        p = jax.nn.softmax(s, axis=-1)
        ctx = jnp.einsum('bhqk,bhkd->bhqd', p, v).transpose(0, 2, 1, 3).reshape(B, S, H)
        h = ctx @ lp['out_w'].T + lp['out_b'] + res
        res = h
        y = ln(h, lp['ln2_w'], lp['ln2_b'])
        f = jax.nn.gelu(y @ lp['ff1_w'].T + lp['ff1_b'], approximate=False)
        h = f @ lp['ff2_w'].T + lp['ff2_b'] + res
    logits = h @ tp['cls_w'].T + tp['cls_b']
    return jax.nn.softmax(logits, axis=-1)


# --------------------------------------------------------------------------
if __name__ == "__main__":
    cfg = dict(hidden_size=128,          # lane-aligned
               num_heads=4,
               feed_forward_size=256,
               num_hidden_layers=2,
               layer_norm_eps=1e-12)

    key = jax.random.PRNGKey(0)
    k_param, k_x = jax.random.split(key)

    torch_like = init_torch_params(k_param, cfg)
    packed = pack_params(torch_like, cfg)

    B, S = 8, 16
    inputs = jax.random.normal(k_x, (B, S, IN_FEATURES), jnp.float32)
    attention_mask = jnp.ones((B, S), dtype=bool)
    attention_mask = attention_mask.at[1, 12:].set(False).at[5, 10:].set(False)

    probs = bigbird_transformer_forward(inputs, attention_mask, packed, cfg)
    probs = jax.block_until_ready(probs)

    assert probs.shape == (B, S, NUM_CLASSES)
    assert bool(jnp.all(jnp.isfinite(probs)))
    # final layer is a softmax -> every position's class distribution sums to ~1
    assert bool(jnp.all(jnp.abs(jnp.sum(probs, axis=-1) - 1.0) < 1e-3))

    # cross-check against the pure-JAX f32 reference (bf16 MXU operands + approx
    # EUP reciprocal in the kernel -> modest tolerance on post-softmax probs)
    ref = reference_forward(inputs, attention_mask, torch_like, cfg)
    assert bool(jnp.max(jnp.abs(probs - ref)) < 4e-2)

    print("KERNEL_OK")
</pallas_src>

<mosaic_0001>
module attributes {stable_mosaic.version = 11 : i64} {
  func.func @bigbird_fused_kernel(%arg0: i32, %arg1: memref<4x16x4xf32, #tpu.memory_space<vmem>>, %arg2: memref<4x1x16xf32, #tpu.memory_space<vmem>>, %arg3: memref<4x128xf32, #tpu.memory_space<vmem>>, %arg4: memref<1x128xf32, #tpu.memory_space<vmem>>, %arg5: memref<2x1x128xf32, #tpu.memory_space<vmem>>, %arg6: memref<2x1x128xf32, #tpu.memory_space<vmem>>, %arg7: memref<2x128x384xbf16, #tpu.memory_space<vmem>>, %arg8: memref<2x1x384xf32, #tpu.memory_space<vmem>>, %arg9: memref<2x128x128xbf16, #tpu.memory_space<vmem>>, %arg10: memref<2x1x128xf32, #tpu.memory_space<vmem>>, %arg11: memref<2x1x128xf32, #tpu.memory_space<vmem>>, %arg12: memref<2x1x128xf32, #tpu.memory_space<vmem>>, %arg13: memref<2x128x256xbf16, #tpu.memory_space<vmem>>, %arg14: memref<2x1x256xf32, #tpu.memory_space<vmem>>, %arg15: memref<2x256x128xbf16, #tpu.memory_space<vmem>>, %arg16: memref<2x1x128xf32, #tpu.memory_space<vmem>>, %arg17: memref<128x128xbf16, #tpu.memory_space<vmem>>, %arg18: memref<1x128xf32, #tpu.memory_space<vmem>>, %arg19: memref<4x16x128xf32, #tpu.memory_space<vmem>>) attributes {dimension_semantics = [#tpu.dimension_semantics<parallel>], iteration_bounds = array<i64: 2>, scalar_prefetch = 0 : i64, scratch_operands = 0 : i64, tpu.core_type = #tpu.core_type<tc>, window_params = [{transform_indices = @transform_0, window_bounds = array<i64: 4, 16, 4>}, {transform_indices = @transform_1, window_bounds = array<i64: 4, 1, 16>}, {pipeline_mode = #tpu.pipeline_mode<synchronous>, transform_indices = @transform_2, window_bounds = array<i64: 4, 128>}, {pipeline_mode = #tpu.pipeline_mode<synchronous>, transform_indices = @transform_3, window_bounds = array<i64: 1, 128>}, {pipeline_mode = #tpu.pipeline_mode<synchronous>, transform_indices = @transform_4, window_bounds = array<i64: 2, 1, 128>}, {pipeline_mode = #tpu.pipeline_mode<synchronous>, transform_indices = @transform_5, window_bounds = array<i64: 2, 1, 128>}, {pipeline_mode = #tpu.pipeline_mode<synchronous>, transform_indices = @transform_6, window_bounds = array<i64: 2, 128, 384>}, {pipeline_mode = #tpu.pipeline_mode<synchronous>, transform_indices = @transform_7, window_bounds = array<i64: 2, 1, 384>}, {pipeline_mode = #tpu.pipeline_mode<synchronous>, transform_indices = @transform_8, window_bounds = array<i64: 2, 128, 128>}, {pipeline_mode = #tpu.pipeline_mode<synchronous>, transform_indices = @transform_9, window_bounds = array<i64: 2, 1, 128>}, {pipeline_mode = #tpu.pipeline_mode<synchronous>, transform_indices = @transform_10, window_bounds = array<i64: 2, 1, 128>}, {pipeline_mode = #tpu.pipeline_mode<synchronous>, transform_indices = @transform_11, window_bounds = array<i64: 2, 1, 128>}, {pipeline_mode = #tpu.pipeline_mode<synchronous>, transform_indices = @transform_12, window_bounds = array<i64: 2, 128, 256>}, {pipeline_mode = #tpu.pipeline_mode<synchronous>, transform_indices = @transform_13, window_bounds = array<i64: 2, 1, 256>}, {pipeline_mode = #tpu.pipeline_mode<synchronous>, transform_indices = @transform_14, window_bounds = array<i64: 2, 256, 128>}, {pipeline_mode = #tpu.pipeline_mode<synchronous>, transform_indices = @transform_15, window_bounds = array<i64: 2, 1, 128>}, {pipeline_mode = #tpu.pipeline_mode<synchronous>, transform_indices = @transform_16, window_bounds = array<i64: 128, 128>}, {pipeline_mode = #tpu.pipeline_mode<synchronous>, transform_indices = @transform_17, window_bounds = array<i64: 1, 128>}, {transform_indices = @transform_18, window_bounds = array<i64: 4, 16, 128>}]} {
    %c0 = arith.constant 0 : index
    %c0_0 = arith.constant 0 : index
    %c0_1 = arith.constant 0 : index
    %0 = vector.load %arg1[%c0, %c0_0, %c0_1] : memref<4x16x4xf32, #tpu.memory_space<vmem>>, vector<4x16x4xf32>
    %1 = vector.shape_cast %0 : vector<4x16x4xf32> to vector<64x4xf32>
    %2 = vector.extract_strided_slice %1 {offsets = [0, 0], sizes = [64, 1], strides = [1, 1]} : vector<64x4xf32> to vector<64x1xf32>
    %c0_2 = arith.constant 0 : index
    %c0_3 = arith.constant 0 : index
    %3 = vector.load %arg3[%c0_2, %c0_3] : memref<4x128xf32, #tpu.memory_space<vmem>>, vector<1x128xf32>
    %4 = vector.broadcast %2 : vector<64x1xf32> to vector<64x128xf32>
    %5 = vector.broadcast %3 : vector<1x128xf32> to vector<64x128xf32>
    %6 = arith.mulf %4, %5 : vector<64x128xf32>
    %7 = vector.extract_strided_slice %1 {offsets = [0, 1], sizes = [64, 1], strides = [1, 1]} : vector<64x4xf32> to vector<64x1xf32>
    %c1 = arith.constant 1 : index
    %c0_4 = arith.constant 0 : index
    %8 = vector.load %arg3[%c1, %c0_4] : memref<4x128xf32, #tpu.memory_space<vmem>>, vector<1x128xf32>
    %9 = vector.broadcast %7 : vector<64x1xf32> to vector<64x128xf32>
    %10 = vector.broadcast %8 : vector<1x128xf32> to vector<64x128xf32>
    %11 = arith.mulf %9, %10 : vector<64x128xf32>
    %12 = arith.addf %6, %11 : vector<64x128xf32>
    %13 = vector.extract_strided_slice %1 {offsets = [0, 2], sizes = [64, 1], strides = [1, 1]} : vector<64x4xf32> to vector<64x1xf32>
    %c2 = arith.constant 2 : index
    %c0_5 = arith.constant 0 : index
    %14 = vector.load %arg3[%c2, %c0_5] : memref<4x128xf32, #tpu.memory_space<vmem>>, vector<1x128xf32>
    %15 = vector.broadcast %13 : vector<64x1xf32> to vector<64x128xf32>
    %16 = vector.broadcast %14 : vector<1x128xf32> to vector<64x128xf32>
    %17 = arith.mulf %15, %16 : vector<64x128xf32>
    %18 = arith.addf %12, %17 : vector<64x128xf32>
    %19 = vector.extract_strided_slice %1 {offsets = [0, 3], sizes = [64, 1], strides = [1, 1]} : vector<64x4xf32> to vector<64x1xf32>
    %c3 = arith.constant 3 : index
    %c0_6 = arith.constant 0 : index
    %20 = vector.load %arg3[%c3, %c0_6] : memref<4x128xf32, #tpu.memory_space<vmem>>, vector<1x128xf32>
    %21 = vector.broadcast %19 : vector<64x1xf32> to vector<64x128xf32>
    %22 = vector.broadcast %20 : vector<1x128xf32> to vector<64x128xf32>
    %23 = arith.mulf %21, %22 : vector<64x128xf32>
    %24 = arith.addf %18, %23 : vector<64x128xf32>
    %c0_7 = arith.constant 0 : index
    %c0_8 = arith.constant 0 : index
    %25 = vector.load %arg4[%c0_7, %c0_8] : memref<1x128xf32, #tpu.memory_space<vmem>>, vector<1x128xf32>
    %26 = vector.broadcast %25 : vector<1x128xf32> to vector<64x128xf32>
    %27 = arith.addf %24, %26 : vector<64x128xf32>
    %c0_9 = arith.constant 0 : index
    %c0_10 = arith.constant 0 : index
    %c0_11 = arith.constant 0 : index
    %28 = vector.load %arg2[%c0_9, %c0_10, %c0_11] : memref<4x1x16xf32, #tpu.memory_space<vmem>>, vector<4x1x16xf32>
    %29 = vector.shape_cast %28 : vector<4x1x16xf32> to vector<1x4x1x16xf32>
    %30 = vector.shape_cast %29 : vector<1x4x1x16xf32> to vector<1x4x1x16xf32>
    %31 = vector.broadcast %30 : vector<1x4x1x16xf32> to vector<4x4x1x16xf32>
    %32 = vector.shape_cast %31 : vector<4x4x1x16xf32> to vector<16x1x16xf32>
    %c0_i32 = arith.constant 0 : i32
    %33 = arith.index_cast %c0_i32 : i32 to index
    %c0_12 = arith.constant 0 : index
    %c0_13 = arith.constant 0 : index
    %34 = vector.load %arg5[%33, %c0_12, %c0_13] : memref<2x1x128xf32, #tpu.memory_space<vmem>>, vector<1x1x128xf32>
    %35 = vector.shape_cast %34 : vector<1x1x128xf32> to vector<1x128xf32>
    %36 = arith.index_cast %c0_i32 : i32 to index
    %c0_14 = arith.constant 0 : index
    %c0_15 = arith.constant 0 : index
    %37 = vector.load %arg6[%36, %c0_14, %c0_15] : memref<2x1x128xf32, #tpu.memory_space<vmem>>, vector<1x1x128xf32>
    %38 = vector.shape_cast %37 : vector<1x1x128xf32> to vector<1x128xf32>
    %cst = arith.constant dense<0.000000e+00> : vector<64xf32>
    %39 = vector.multi_reduction <add>, %27, %cst [1] : vector<64x128xf32> to vector<64xf32>
    %40 = vector.shape_cast %39 : vector<64xf32> to vector<64x1xf32>
    %cst_16 = arith.constant 1.280000e+02 : f32
    %41 = vector.broadcast %cst_16 : f32 to vector<64x1xf32>
    %42 = arith.divf %40, %41 : vector<64x1xf32>
    %43 = vector.broadcast %42 : vector<64x1xf32> to vector<64x128xf32>
    %44 = arith.subf %27, %43 : vector<64x128xf32>
    %45 = arith.mulf %44, %44 : vector<64x128xf32>
    %cst_17 = arith.constant dense<0.000000e+00> : vector<64xf32>
    %46 = vector.multi_reduction <add>, %45, %cst_17 [1] : vector<64x128xf32> to vector<64xf32>
    %47 = vector.shape_cast %46 : vector<64xf32> to vector<64x1xf32>
    %cst_18 = arith.constant 1.280000e+02 : f32
    %48 = vector.broadcast %cst_18 : f32 to vector<64x1xf32>
    %49 = arith.divf %47, %48 : vector<64x1xf32>
    %cst_19 = arith.constant 9.99999996E-13 : f32
    %50 = vector.broadcast %cst_19 : f32 to vector<64x1xf32>
    %51 = arith.addf %49, %50 : vector<64x1xf32>
    %52 = math.rsqrt %51 : vector<64x1xf32>
    %53 = vector.broadcast %52 : vector<64x1xf32> to vector<64x128xf32>
    %54 = arith.mulf %44, %53 : vector<64x128xf32>
    %55 = vector.broadcast %35 : vector<1x128xf32> to vector<64x128xf32>
    %56 = arith.mulf %54, %55 : vector<64x128xf32>
    %57 = vector.broadcast %38 : vector<1x128xf32> to vector<64x128xf32>
    %58 = arith.addf %56, %57 : vector<64x128xf32>
    %59 = arith.index_cast %c0_i32 : i32 to index
    %c0_20 = arith.constant 0 : index
    %c0_21 = arith.constant 0 : index
    %60 = vector.load %arg7[%59, %c0_20, %c0_21] : memref<2x128x384xbf16, #tpu.memory_space<vmem>>, vector<1x128x384xbf16>
    %61 = vector.shape_cast %60 : vector<1x128x384xbf16> to vector<128x384xbf16>
    %62 = arith.truncf %58 : vector<64x128xf32> to vector<64x128xbf16>
    %cst_22 = arith.constant dense<0.000000e+00> : vector<64x384xf32>
    %63 = tpu.matmul %62, %61, %cst_22 {dimension_numbers = #tpu.dot_dimension_numbers<[1], [0], [0], [1], [0, 0, 1, 1], [], []>} : vector<64x128xbf16>, vector<128x384xbf16>, vector<64x384xf32> -> vector<64x384xf32>
    %64 = arith.index_cast %c0_i32 : i32 to index
    %c0_23 = arith.constant 0 : index
    %c0_24 = arith.constant 0 : index
    %65 = vector.load %arg8[%64, %c0_23, %c0_24] : memref<2x1x384xf32, #tpu.memory_space<vmem>>, vector<1x1x384xf32>
    %66 = vector.shape_cast %65 : vector<1x1x384xf32> to vector<1x384xf32>
    %67 = vector.broadcast %66 : vector<1x384xf32> to vector<64x384xf32>
    %68 = arith.addf %63, %67 : vector<64x384xf32>
    %69 = vector.shape_cast %68 : vector<64x384xf32> to vector<4x16x384xf32>
    %70 = vector.extract_strided_slice %69 {offsets = [0, 0, 0], sizes = [4, 16, 32], strides = [1, 1, 1]} : vector<4x16x384xf32> to vector<4x16x32xf32>
    %71 = vector.extract_strided_slice %69 {offsets = [0, 0, 32], sizes = [4, 16, 32], strides = [1, 1, 1]} : vector<4x16x384xf32> to vector<4x16x32xf32>
    %72 = vector.extract_strided_slice %69 {offsets = [0, 0, 64], sizes = [4, 16, 32], strides = [1, 1, 1]} : vector<4x16x384xf32> to vector<4x16x32xf32>
    %73 = vector.extract_strided_slice %69 {offsets = [0, 0, 96], sizes = [4, 16, 32], strides = [1, 1, 1]} : vector<4x16x384xf32> to vector<4x16x32xf32>
    %74 = vector.shape_cast %70 : vector<4x16x32xf32> to vector<1x4x16x32xf32>
    %75 = vector.shape_cast %71 : vector<4x16x32xf32> to vector<1x4x16x32xf32>
    %76 = vector.shape_cast %72 : vector<4x16x32xf32> to vector<1x4x16x32xf32>
    %77 = vector.shape_cast %73 : vector<4x16x32xf32> to vector<1x4x16x32xf32>
    %78 = tpu.concatenate %74, %75, %76, %77 in 0 : vector<1x4x16x32xf32>, vector<1x4x16x32xf32>, vector<1x4x16x32xf32>, vector<1x4x16x32xf32> -> vector<4x4x16x32xf32>
    %79 = vector.shape_cast %78 : vector<4x4x16x32xf32> to vector<16x16x32xf32>
    %80 = vector.extract_strided_slice %69 {offsets = [0, 0, 128], sizes = [4, 16, 32], strides = [1, 1, 1]} : vector<4x16x384xf32> to vector<4x16x32xf32>
    %81 = vector.extract_strided_slice %69 {offsets = [0, 0, 160], sizes = [4, 16, 32], strides = [1, 1, 1]} : vector<4x16x384xf32> to vector<4x16x32xf32>
    %82 = vector.extract_strided_slice %69 {offsets = [0, 0, 192], sizes = [4, 16, 32], strides = [1, 1, 1]} : vector<4x16x384xf32> to vector<4x16x32xf32>
    %83 = vector.extract_strided_slice %69 {offsets = [0, 0, 224], sizes = [4, 16, 32], strides = [1, 1, 1]} : vector<4x16x384xf32> to vector<4x16x32xf32>
    %84 = vector.shape_cast %80 : vector<4x16x32xf32> to vector<1x4x16x32xf32>
    %85 = vector.shape_cast %81 : vector<4x16x32xf32> to vector<1x4x16x32xf32>
    %86 = vector.shape_cast %82 : vector<4x16x32xf32> to vector<1x4x16x32xf32>
    %87 = vector.shape_cast %83 : vector<4x16x32xf32> to vector<1x4x16x32xf32>
    %88 = tpu.concatenate %84, %85, %86, %87 in 0 : vector<1x4x16x32xf32>, vector<1x4x16x32xf32>, vector<1x4x16x32xf32>, vector<1x4x16x32xf32> -> vector<4x4x16x32xf32>
    %89 = vector.shape_cast %88 : vector<4x4x16x32xf32> to vector<16x16x32xf32>
    %90 = vector.extract_strided_slice %69 {offsets = [0, 0, 256], sizes = [4, 16, 32], strides = [1, 1, 1]} : vector<4x16x384xf32> to vector<4x16x32xf32>
    %91 = vector.extract_strided_slice %69 {offsets = [0, 0, 288], sizes = [4, 16, 32], strides = [1, 1, 1]} : vector<4x16x384xf32> to vector<4x16x32xf32>
    %92 = vector.extract_strided_slice %69 {offsets = [0, 0, 320], sizes = [4, 16, 32], strides = [1, 1, 1]} : vector<4x16x384xf32> to vector<4x16x32xf32>
    %93 = vector.extract_strided_slice %69 {offsets = [0, 0, 352], sizes = [4, 16, 32], strides = [1, 1, 1]} : vector<4x16x384xf32> to vector<4x16x32xf32>
    %94 = vector.shape_cast %90 : vector<4x16x32xf32> to vector<1x4x16x32xf32>
    %95 = vector.shape_cast %91 : vector<4x16x32xf32> to vector<1x4x16x32xf32>
    %96 = vector.shape_cast %92 : vector<4x16x32xf32> to vector<1x4x16x32xf32>
    %97 = vector.shape_cast %93 : vector<4x16x32xf32> to vector<1x4x16x32xf32>
    %98 = tpu.concatenate %94, %95, %96, %97 in 0 : vector<1x4x16x32xf32>, vector<1x4x16x32xf32>, vector<1x4x16x32xf32>, vector<1x4x16x32xf32> -> vector<4x4x16x32xf32>
    %99 = vector.shape_cast %98 : vector<4x4x16x32xf32> to vector<16x16x32xf32>
    "tpu.trace_start"() <{level = 10 : i32, message = "zqd,zkd->zqk"}> : () -> ()
    %cst_25 = arith.constant dense<0.000000e+00> : vector<16x16x16xf32>
    %100 = tpu.matmul %79, %89, %cst_25 {dimension_numbers = #tpu.dot_dimension_numbers<[2], [2], [1], [1], [0, 0, 0, 1, 1, 1], [0], [0]>} : vector<16x16x32xf32>, vector<16x16x32xf32>, vector<16x16x16xf32> -> vector<16x16x16xf32>
    "tpu.trace_stop"() : () -> ()
    %cst_26 = arith.constant 0.176776692 : f32
    %101 = vector.broadcast %cst_26 : f32 to vector<16x16x16xf32>
    %102 = arith.mulf %100, %101 : vector<16x16x16xf32>
    %103 = vector.broadcast %32 : vector<16x1x16xf32> to vector<16x16x16xf32>
    %104 = arith.addf %102, %103 : vector<16x16x16xf32>
    %cst_27 = arith.constant dense<0xFF800000> : vector<16x16xf32>
    %105 = vector.multi_reduction <maximumf>, %104, %cst_27 [2] : vector<16x16x16xf32> to vector<16x16xf32>
    %106 = vector.shape_cast %105 : vector<16x16xf32> to vector<16x16x1xf32>
    %107 = vector.broadcast %106 : vector<16x16x1xf32> to vector<16x16x16xf32>
    %108 = arith.subf %104, %107 : vector<16x16x16xf32>
    %109 = math.exp %108 : vector<16x16x16xf32>
    %cst_28 = arith.constant dense<0.000000e+00> : vector<16x16xf32>
    %110 = vector.multi_reduction <add>, %109, %cst_28 [2] : vector<16x16x16xf32> to vector<16x16xf32>
    %111 = vector.shape_cast %110 : vector<16x16xf32> to vector<16x16x1xf32>
    %112 = tpu.reciprocal %111 {approx = true} : vector<16x16x1xf32> -> vector<16x16x1xf32>
    %113 = vector.broadcast %112 : vector<16x16x1xf32> to vector<16x16x16xf32>
    %114 = arith.mulf %109, %113 : vector<16x16x16xf32>
    "tpu.trace_start"() <{level = 10 : i32, message = "zqk,zkd->zqd"}> : () -> ()
    %cst_29 = arith.constant dense<0.000000e+00> : vector<16x16x32xf32>
    %115 = tpu.matmul %114, %99, %cst_29 {dimension_numbers = #tpu.dot_dimension_numbers<[2], [1], [1], [2], [0, 0, 0, 1, 1, 2], [0], [0]>} : vector<16x16x16xf32>, vector<16x16x32xf32>, vector<16x16x32xf32> -> vector<16x16x32xf32>
    "tpu.trace_stop"() : () -> ()
    %116 = vector.shape_cast %115 : vector<16x16x32xf32> to vector<4x4x16x32xf32>
    %117 = vector.extract_strided_slice %116 {offsets = [0, 0, 0, 0], sizes = [1, 4, 16, 32], strides = [1, 1, 1, 1]} : vector<4x4x16x32xf32> to vector<1x4x16x32xf32>
    %118 = vector.shape_cast %117 : vector<1x4x16x32xf32> to vector<4x16x32xf32>
    %119 = vector.extract_strided_slice %116 {offsets = [1, 0, 0, 0], sizes = [1, 4, 16, 32], strides = [1, 1, 1, 1]} : vector<4x4x16x32xf32> to vector<1x4x16x32xf32>
    %120 = vector.shape_cast %119 : vector<1x4x16x32xf32> to vector<4x16x32xf32>
    %121 = vector.extract_strided_slice %116 {offsets = [2, 0, 0, 0], sizes = [1, 4, 16, 32], strides = [1, 1, 1, 1]} : vector<4x4x16x32xf32> to vector<1x4x16x32xf32>
    %122 = vector.shape_cast %121 : vector<1x4x16x32xf32> to vector<4x16x32xf32>
    %123 = vector.extract_strided_slice %116 {offsets = [3, 0, 0, 0], sizes = [1, 4, 16, 32], strides = [1, 1, 1, 1]} : vector<4x4x16x32xf32> to vector<1x4x16x32xf32>
    %124 = vector.shape_cast %123 : vector<1x4x16x32xf32> to vector<4x16x32xf32>
    %125 = tpu.concatenate %118, %120, %122, %124 in 2 : vector<4x16x32xf32>, vector<4x16x32xf32>, vector<4x16x32xf32>, vector<4x16x32xf32> -> vector<4x16x128xf32>
    %126 = vector.shape_cast %125 : vector<4x16x128xf32> to vector<64x128xf32>
    %127 = arith.index_cast %c0_i32 : i32 to index
    %c0_30 = arith.constant 0 : index
    %c0_31 = arith.constant 0 : index
    %128 = vector.load %arg9[%127, %c0_30, %c0_31] : memref<2x128x128xbf16, #tpu.memory_space<vmem>>, vector<1x128x128xbf16>
    %129 = vector.shape_cast %128 : vector<1x128x128xbf16> to vector<128x128xbf16>
    %130 = arith.truncf %126 : vector<64x128xf32> to vector<64x128xbf16>
    %cst_32 = arith.constant dense<0.000000e+00> : vector<64x128xf32>
    %131 = tpu.matmul %130, %129, %cst_32 {dimension_numbers = #tpu.dot_dimension_numbers<[1], [0], [0], [1], [0, 0, 1, 1], [], []>} : vector<64x128xbf16>, vector<128x128xbf16>, vector<64x128xf32> -> vector<64x128xf32>
    %132 = arith.addf %27, %131 : vector<64x128xf32>
    %133 = arith.index_cast %c0_i32 : i32 to index
    %c0_33 = arith.constant 0 : index
    %c0_34 = arith.constant 0 : index
    %134 = vector.load %arg10[%133, %c0_33, %c0_34] : memref<2x1x128xf32, #tpu.memory_space<vmem>>, vector<1x1x128xf32>
    %135 = vector.shape_cast %134 : vector<1x1x128xf32> to vector<1x128xf32>
    %136 = vector.broadcast %135 : vector<1x128xf32> to vector<64x128xf32>
    %137 = arith.addf %132, %136 : vector<64x128xf32>
    %138 = arith.index_cast %c0_i32 : i32 to index
    %c0_35 = arith.constant 0 : index
    %c0_36 = arith.constant 0 : index
    %139 = vector.load %arg11[%138, %c0_35, %c0_36] : memref<2x1x128xf32, #tpu.memory_space<vmem>>, vector<1x1x128xf32>
    %140 = vector.shape_cast %139 : vector<1x1x128xf32> to vector<1x128xf32>
    %141 = arith.index_cast %c0_i32 : i32 to index
    %c0_37 = arith.constant 0 : index
    %c0_38 = arith.constant 0 : index
    %142 = vector.load %arg12[%141, %c0_37, %c0_38] : memref<2x1x128xf32, #tpu.memory_space<vmem>>, vector<1x1x128xf32>
    %143 = vector.shape_cast %142 : vector<1x1x128xf32> to vector<1x128xf32>
    %cst_39 = arith.constant dense<0.000000e+00> : vector<64xf32>
    %144 = vector.multi_reduction <add>, %137, %cst_39 [1] : vector<64x128xf32> to vector<64xf32>
    %145 = vector.shape_cast %144 : vector<64xf32> to vector<64x1xf32>
    %cst_40 = arith.constant 1.280000e+02 : f32
    %146 = vector.broadcast %cst_40 : f32 to vector<64x1xf32>
    %147 = arith.divf %145, %146 : vector<64x1xf32>
    %148 = vector.broadcast %147 : vector<64x1xf32> to vector<64x128xf32>
    %149 = arith.subf %137, %148 : vector<64x128xf32>
    %150 = arith.mulf %149, %149 : vector<64x128xf32>
    %cst_41 = arith.constant dense<0.000000e+00> : vector<64xf32>
    %151 = vector.multi_reduction <add>, %150, %cst_41 [1] : vector<64x128xf32> to vector<64xf32>
    %152 = vector.shape_cast %151 : vector<64xf32> to vector<64x1xf32>
    %cst_42 = arith.constant 1.280000e+02 : f32
    %153 = vector.broadcast %cst_42 : f32 to vector<64x1xf32>
    %154 = arith.divf %152, %153 : vector<64x1xf32>
    %cst_43 = arith.constant 9.99999996E-13 : f32
    %155 = vector.broadcast %cst_43 : f32 to vector<64x1xf32>
    %156 = arith.addf %154, %155 : vector<64x1xf32>
    %157 = math.rsqrt %156 : vector<64x1xf32>
    %158 = vector.broadcast %157 : vector<64x1xf32> to vector<64x128xf32>
    %159 = arith.mulf %149, %158 : vector<64x128xf32>
    %160 = vector.broadcast %140 : vector<1x128xf32> to vector<64x128xf32>
    %161 = arith.mulf %159, %160 : vector<64x128xf32>
    %162 = vector.broadcast %143 : vector<1x128xf32> to vector<64x128xf32>
    %163 = arith.addf %161, %162 : vector<64x128xf32>
    %164 = arith.index_cast %c0_i32 : i32 to index
    %c0_44 = arith.constant 0 : index
    %c0_45 = arith.constant 0 : index
    %165 = vector.load %arg13[%164, %c0_44, %c0_45] : memref<2x128x256xbf16, #tpu.memory_space<vmem>>, vector<1x128x256xbf16>
    %166 = vector.shape_cast %165 : vector<1x128x256xbf16> to vector<128x256xbf16>
    %167 = arith.truncf %163 : vector<64x128xf32> to vector<64x128xbf16>
    %cst_46 = arith.constant dense<0.000000e+00> : vector<64x256xf32>
    %168 = tpu.matmul %167, %166, %cst_46 {dimension_numbers = #tpu.dot_dimension_numbers<[1], [0], [0], [1], [0, 0, 1, 1], [], []>} : vector<64x128xbf16>, vector<128x256xbf16>, vector<64x256xf32> -> vector<64x256xf32>
    %169 = arith.index_cast %c0_i32 : i32 to index
    %c0_47 = arith.constant 0 : index
    %c0_48 = arith.constant 0 : index
    %170 = vector.load %arg14[%169, %c0_47, %c0_48] : memref<2x1x256xf32, #tpu.memory_space<vmem>>, vector<1x1x256xf32>
    %171 = vector.shape_cast %170 : vector<1x1x256xf32> to vector<1x256xf32>
    %172 = vector.broadcast %171 : vector<1x256xf32> to vector<64x256xf32>
    %173 = arith.addf %168, %172 : vector<64x256xf32>
    %cst_49 = arith.constant 5.000000e-01 : f32
    %174 = vector.broadcast %cst_49 : f32 to vector<64x256xf32>
    %175 = arith.mulf %174, %173 : vector<64x256xf32>
    %cst_50 = arith.constant 0.707106769 : f32
    %176 = vector.broadcast %cst_50 : f32 to vector<64x256xf32>
    %177 = arith.mulf %173, %176 : vector<64x256xf32>
    %cst_51 = arith.constant 0.000000e+00 : f32
    %178 = vector.broadcast %cst_51 : f32 to vector<64x256xf32>
    %179 = arith.cmpf oge, %177, %178 : vector<64x256xf32>
    %cst_52 = arith.constant 1.000000e+00 : f32
    %cst_53 = arith.constant -1.000000e+00 : f32
    %180 = vector.broadcast %cst_52 : f32 to vector<64x256xf32>
    %181 = vector.broadcast %cst_53 : f32 to vector<64x256xf32>
    %182 = arith.select %179, %180, %181 : vector<64x256xi1>, vector<64x256xf32>
    %183 = math.absf %177 : vector<64x256xf32>
    %cst_54 = arith.constant 0.327591091 : f32
    %184 = vector.broadcast %cst_54 : f32 to vector<64x256xf32>
    %185 = arith.mulf %184, %183 : vector<64x256xf32>
    %cst_55 = arith.constant 1.000000e+00 : f32
    %186 = vector.broadcast %cst_55 : f32 to vector<64x256xf32>
    %187 = arith.addf %186, %185 : vector<64x256xf32>
    %188 = tpu.reciprocal %187 {approx = true} : vector<64x256xf32> -> vector<64x256xf32>
    %cst_56 = arith.constant 1.06140542 : f32
    %189 = vector.broadcast %cst_56 : f32 to vector<64x256xf32>
    %190 = arith.mulf %189, %188 : vector<64x256xf32>
    %cst_57 = arith.constant -1.45315206 : f32
    %191 = vector.broadcast %cst_57 : f32 to vector<64x256xf32>
    %192 = arith.addf %190, %191 : vector<64x256xf32>
    %193 = arith.mulf %192, %188 : vector<64x256xf32>
    %cst_58 = arith.constant 1.42141378 : f32
    %194 = vector.broadcast %cst_58 : f32 to vector<64x256xf32>
    %195 = arith.addf %193, %194 : vector<64x256xf32>
    %196 = arith.mulf %195, %188 : vector<64x256xf32>
    %cst_59 = arith.constant -0.284496725 : f32
    %197 = vector.broadcast %cst_59 : f32 to vector<64x256xf32>
    %198 = arith.addf %196, %197 : vector<64x256xf32>
    %199 = arith.mulf %198, %188 : vector<64x256xf32>
    %cst_60 = arith.constant 0.254829586 : f32
    %200 = vector.broadcast %cst_60 : f32 to vector<64x256xf32>
    %201 = arith.addf %199, %200 : vector<64x256xf32>
    %202 = arith.mulf %201, %188 : vector<64x256xf32>
    %cst_61 = arith.constant 0.000000e+00 : f32
    %203 = vector.broadcast %cst_61 : f32 to vector<64x256xf32>
    %204 = arith.subf %203, %183 : vector<64x256xf32>
    %205 = arith.mulf %204, %183 : vector<64x256xf32>
    %206 = math.exp %205 : vector<64x256xf32>
    %207 = arith.mulf %202, %206 : vector<64x256xf32>
    %cst_62 = arith.constant 1.000000e+00 : f32
    %208 = vector.broadcast %cst_62 : f32 to vector<64x256xf32>
    %209 = arith.subf %208, %207 : vector<64x256xf32>
    %210 = arith.mulf %182, %209 : vector<64x256xf32>
    %cst_63 = arith.constant 1.000000e+00 : f32
    %211 = vector.broadcast %cst_63 : f32 to vector<64x256xf32>
    %212 = arith.addf %211, %210 : vector<64x256xf32>
    %213 = arith.mulf %175, %212 : vector<64x256xf32>
    %214 = arith.index_cast %c0_i32 : i32 to index
    %c0_64 = arith.constant 0 : index
    %c0_65 = arith.constant 0 : index
    %215 = vector.load %arg15[%214, %c0_64, %c0_65] : memref<2x256x128xbf16, #tpu.memory_space<vmem>>, vector<1x256x128xbf16>
    %216 = vector.shape_cast %215 : vector<1x256x128xbf16> to vector<256x128xbf16>
    %217 = arith.truncf %213 : vector<64x256xf32> to vector<64x256xbf16>
    %cst_66 = arith.constant dense<0.000000e+00> : vector<64x128xf32>
    %218 = tpu.matmul %217, %216, %cst_66 {dimension_numbers = #tpu.dot_dimension_numbers<[1], [0], [0], [1], [0, 0, 1, 1], [], []>} : vector<64x256xbf16>, vector<256x128xbf16>, vector<64x128xf32> -> vector<64x128xf32>
    %219 = arith.addf %137, %218 : vector<64x128xf32>
    %220 = arith.index_cast %c0_i32 : i32 to index
    %c0_67 = arith.constant 0 : index
    %c0_68 = arith.constant 0 : index
    %221 = vector.load %arg16[%220, %c0_67, %c0_68] : memref<2x1x128xf32, #tpu.memory_space<vmem>>, vector<1x1x128xf32>
    %222 = vector.shape_cast %221 : vector<1x1x128xf32> to vector<1x128xf32>
    %223 = vector.broadcast %222 : vector<1x128xf32> to vector<64x128xf32>
    %224 = arith.addf %219, %223 : vector<64x128xf32>
    %c1_i32 = arith.constant 1 : i32
    %225 = arith.index_cast %c1_i32 : i32 to index
    %c0_69 = arith.constant 0 : index
    %c0_70 = arith.constant 0 : index
    %226 = vector.load %arg5[%225, %c0_69, %c0_70] : memref<2x1x128xf32, #tpu.memory_space<vmem>>, vector<1x1x128xf32>
    %227 = vector.shape_cast %226 : vector<1x1x128xf32> to vector<1x128xf32>
    %228 = arith.index_cast %c1_i32 : i32 to index
    %c0_71 = arith.constant 0 : index
    %c0_72 = arith.constant 0 : index
    %229 = vector.load %arg6[%228, %c0_71, %c0_72] : memref<2x1x128xf32, #tpu.memory_space<vmem>>, vector<1x1x128xf32>
    %230 = vector.shape_cast %229 : vector<1x1x128xf32> to vector<1x128xf32>
    %cst_73 = arith.constant dense<0.000000e+00> : vector<64xf32>
    %231 = vector.multi_reduction <add>, %224, %cst_73 [1] : vector<64x128xf32> to vector<64xf32>
    %232 = vector.shape_cast %231 : vector<64xf32> to vector<64x1xf32>
    %cst_74 = arith.constant 1.280000e+02 : f32
    %233 = vector.broadcast %cst_74 : f32 to vector<64x1xf32>
    %234 = arith.divf %232, %233 : vector<64x1xf32>
    %235 = vector.broadcast %234 : vector<64x1xf32> to vector<64x128xf32>
    %236 = arith.subf %224, %235 : vector<64x128xf32>
    %237 = arith.mulf %236, %236 : vector<64x128xf32>
    %cst_75 = arith.constant dense<0.000000e+00> : vector<64xf32>
    %238 = vector.multi_reduction <add>, %237, %cst_75 [1] : vector<64x128xf32> to vector<64xf32>
    %239 = vector.shape_cast %238 : vector<64xf32> to vector<64x1xf32>
    %cst_76 = arith.constant 1.280000e+02 : f32
    %240 = vector.broadcast %cst_76 : f32 to vector<64x1xf32>
    %241 = arith.divf %239, %240 : vector<64x1xf32>
    %cst_77 = arith.constant 9.99999996E-13 : f32
    %242 = vector.broadcast %cst_77 : f32 to vector<64x1xf32>
    %243 = arith.addf %241, %242 : vector<64x1xf32>
    %244 = math.rsqrt %243 : vector<64x1xf32>
    %245 = vector.broadcast %244 : vector<64x1xf32> to vector<64x128xf32>
    %246 = arith.mulf %236, %245 : vector<64x128xf32>
    %247 = vector.broadcast %227 : vector<1x128xf32> to vector<64x128xf32>
    %248 = arith.mulf %246, %247 : vector<64x128xf32>
    %249 = vector.broadcast %230 : vector<1x128xf32> to vector<64x128xf32>
    %250 = arith.addf %248, %249 : vector<64x128xf32>
    %251 = arith.index_cast %c1_i32 : i32 to index
    %c0_78 = arith.constant 0 : index
    %c0_79 = arith.constant 0 : index
    %252 = vector.load %arg7[%251, %c0_78, %c0_79] : memref<2x128x384xbf16, #tpu.memory_space<vmem>>, vector<1x128x384xbf16>
    %253 = vector.shape_cast %252 : vector<1x128x384xbf16> to vector<128x384xbf16>
    %254 = arith.truncf %250 : vector<64x128xf32> to vector<64x128xbf16>
    %cst_80 = arith.constant dense<0.000000e+00> : vector<64x384xf32>
    %255 = tpu.matmul %254, %253, %cst_80 {dimension_numbers = #tpu.dot_dimension_numbers<[1], [0], [0], [1], [0, 0, 1, 1], [], []>} : vector<64x128xbf16>, vector<128x384xbf16>, vector<64x384xf32> -> vector<64x384xf32>
    %256 = arith.index_cast %c1_i32 : i32 to index
    %c0_81 = arith.constant 0 : index
    %c0_82 = arith.constant 0 : index
    %257 = vector.load %arg8[%256, %c0_81, %c0_82] : memref<2x1x384xf32, #tpu.memory_space<vmem>>, vector<1x1x384xf32>
    %258 = vector.shape_cast %257 : vector<1x1x384xf32> to vector<1x384xf32>
    %259 = vector.broadcast %258 : vector<1x384xf32> to vector<64x384xf32>
    %260 = arith.addf %255, %259 : vector<64x384xf32>
    %261 = vector.shape_cast %260 : vector<64x384xf32> to vector<4x16x384xf32>
    %262 = vector.extract_strided_slice %261 {offsets = [0, 0, 0], sizes = [4, 16, 32], strides = [1, 1, 1]} : vector<4x16x384xf32> to vector<4x16x32xf32>
    %263 = vector.extract_strided_slice %261 {offsets = [0, 0, 32], sizes = [4, 16, 32], strides = [1, 1, 1]} : vector<4x16x384xf32> to vector<4x16x32xf32>
    %264 = vector.extract_strided_slice %261 {offsets = [0, 0, 64], sizes = [4, 16, 32], strides = [1, 1, 1]} : vector<4x16x384xf32> to vector<4x16x32xf32>
    %265 = vector.extract_strided_slice %261 {offsets = [0, 0, 96], sizes = [4, 16, 32], strides = [1, 1, 1]} : vector<4x16x384xf32> to vector<4x16x32xf32>
    %266 = vector.shape_cast %262 : vector<4x16x32xf32> to vector<1x4x16x32xf32>
    %267 = vector.shape_cast %263 : vector<4x16x32xf32> to vector<1x4x16x32xf32>
    %268 = vector.shape_cast %264 : vector<4x16x32xf32> to vector<1x4x16x32xf32>
    %269 = vector.shape_cast %265 : vector<4x16x32xf32> to vector<1x4x16x32xf32>
    %270 = tpu.concatenate %266, %267, %268, %269 in 0 : vector<1x4x16x32xf32>, vector<1x4x16x32xf32>, vector<1x4x16x32xf32>, vector<1x4x16x32xf32> -> vector<4x4x16x32xf32>
    %271 = vector.shape_cast %270 : vector<4x4x16x32xf32> to vector<16x16x32xf32>
    %272 = vector.extract_strided_slice %261 {offsets = [0, 0, 128], sizes = [4, 16, 32], strides = [1, 1, 1]} : vector<4x16x384xf32> to vector<4x16x32xf32>
    %273 = vector.extract_strided_slice %261 {offsets = [0, 0, 160], sizes = [4, 16, 32], strides = [1, 1, 1]} : vector<4x16x384xf32> to vector<4x16x32xf32>
    %274 = vector.extract_strided_slice %261 {offsets = [0, 0, 192], sizes = [4, 16, 32], strides = [1, 1, 1]} : vector<4x16x384xf32> to vector<4x16x32xf32>
    %275 = vector.extract_strided_slice %261 {offsets = [0, 0, 224], sizes = [4, 16, 32], strides = [1, 1, 1]} : vector<4x16x384xf32> to vector<4x16x32xf32>
    %276 = vector.shape_cast %272 : vector<4x16x32xf32> to vector<1x4x16x32xf32>
    %277 = vector.shape_cast %273 : vector<4x16x32xf32> to vector<1x4x16x32xf32>
    %278 = vector.shape_cast %274 : vector<4x16x32xf32> to vector<1x4x16x32xf32>
    %279 = vector.shape_cast %275 : vector<4x16x32xf32> to vector<1x4x16x32xf32>
    %280 = tpu.concatenate %276, %277, %278, %279 in 0 : vector<1x4x16x32xf32>, vector<1x4x16x32xf32>, vector<1x4x16x32xf32>, vector<1x4x16x32xf32> -> vector<4x4x16x32xf32>
    %281 = vector.shape_cast %280 : vector<4x4x16x32xf32> to vector<16x16x32xf32>
    %282 = vector.extract_strided_slice %261 {offsets = [0, 0, 256], sizes = [4, 16, 32], strides = [1, 1, 1]} : vector<4x16x384xf32> to vector<4x16x32xf32>
    %283 = vector.extract_strided_slice %261 {offsets = [0, 0, 288], sizes = [4, 16, 32], strides = [1, 1, 1]} : vector<4x16x384xf32> to vector<4x16x32xf32>
    %284 = vector.extract_strided_slice %261 {offsets = [0, 0, 320], sizes = [4, 16, 32], strides = [1, 1, 1]} : vector<4x16x384xf32> to vector<4x16x32xf32>
    %285 = vector.extract_strided_slice %261 {offsets = [0, 0, 352], sizes = [4, 16, 32], strides = [1, 1, 1]} : vector<4x16x384xf32> to vector<4x16x32xf32>
    %286 = vector.shape_cast %282 : vector<4x16x32xf32> to vector<1x4x16x32xf32>
    %287 = vector.shape_cast %283 : vector<4x16x32xf32> to vector<1x4x16x32xf32>
    %288 = vector.shape_cast %284 : vector<4x16x32xf32> to vector<1x4x16x32xf32>
    %289 = vector.shape_cast %285 : vector<4x16x32xf32> to vector<1x4x16x32xf32>
    %290 = tpu.concatenate %286, %287, %288, %289 in 0 : vector<1x4x16x32xf32>, vector<1x4x16x32xf32>, vector<1x4x16x32xf32>, vector<1x4x16x32xf32> -> vector<4x4x16x32xf32>
    %291 = vector.shape_cast %290 : vector<4x4x16x32xf32> to vector<16x16x32xf32>
    "tpu.trace_start"() <{level = 10 : i32, message = "zqd,zkd->zqk"}> : () -> ()
    %cst_83 = arith.constant dense<0.000000e+00> : vector<16x16x16xf32>
    %292 = tpu.matmul %271, %281, %cst_83 {dimension_numbers = #tpu.dot_dimension_numbers<[2], [2], [1], [1], [0, 0, 0, 1, 1, 1], [0], [0]>} : vector<16x16x32xf32>, vector<16x16x32xf32>, vector<16x16x16xf32> -> vector<16x16x16xf32>
    "tpu.trace_stop"() : () -> ()
    %cst_84 = arith.constant 0.176776692 : f32
    %293 = vector.broadcast %cst_84 : f32 to vector<16x16x16xf32>
    %294 = arith.mulf %292, %293 : vector<16x16x16xf32>
    %295 = vector.broadcast %32 : vector<16x1x16xf32> to vector<16x16x16xf32>
    %296 = arith.addf %294, %295 : vector<16x16x16xf32>
    %cst_85 = arith.constant dense<0xFF800000> : vector<16x16xf32>
    %297 = vector.multi_reduction <maximumf>, %296, %cst_85 [2] : vector<16x16x16xf32> to vector<16x16xf32>
    %298 = vector.shape_cast %297 : vector<16x16xf32> to vector<16x16x1xf32>
    %299 = vector.broadcast %298 : vector<16x16x1xf32> to vector<16x16x16xf32>
    %300 = arith.subf %296, %299 : vector<16x16x16xf32>
    %301 = math.exp %300 : vector<16x16x16xf32>
    %cst_86 = arith.constant dense<0.000000e+00> : vector<16x16xf32>
    %302 = vector.multi_reduction <add>, %301, %cst_86 [2] : vector<16x16x16xf32> to vector<16x16xf32>
    %303 = vector.shape_cast %302 : vector<16x16xf32> to vector<16x16x1xf32>
    %304 = tpu.reciprocal %303 {approx = true} : vector<16x16x1xf32> -> vector<16x16x1xf32>
    %305 = vector.broadcast %304 : vector<16x16x1xf32> to vector<16x16x16xf32>
    %306 = arith.mulf %301, %305 : vector<16x16x16xf32>
    "tpu.trace_start"() <{level = 10 : i32, message = "zqk,zkd->zqd"}> : () -> ()
    %cst_87 = arith.constant dense<0.000000e+00> : vector<16x16x32xf32>
    %307 = tpu.matmul %306, %291, %cst_87 {dimension_numbers = #tpu.dot_dimension_numbers<[2], [1], [1], [2], [0, 0, 0, 1, 1, 2], [0], [0]>} : vector<16x16x16xf32>, vector<16x16x32xf32>, vector<16x16x32xf32> -> vector<16x16x32xf32>
    "tpu.trace_stop"() : () -> ()
    %308 = vector.shape_cast %307 : vector<16x16x32xf32> to vector<4x4x16x32xf32>
    %309 = vector.extract_strided_slice %308 {offsets = [0, 0, 0, 0], sizes = [1, 4, 16, 32], strides = [1, 1, 1, 1]} : vector<4x4x16x32xf32> to vector<1x4x16x32xf32>
    %310 = vector.shape_cast %309 : vector<1x4x16x32xf32> to vector<4x16x32xf32>
    %311 = vector.extract_strided_slice %308 {offsets = [1, 0, 0, 0], sizes = [1, 4, 16, 32], strides = [1, 1, 1, 1]} : vector<4x4x16x32xf32> to vector<1x4x16x32xf32>
    %312 = vector.shape_cast %311 : vector<1x4x16x32xf32> to vector<4x16x32xf32>
    %313 = vector.extract_strided_slice %308 {offsets = [2, 0, 0, 0], sizes = [1, 4, 16, 32], strides = [1, 1, 1, 1]} : vector<4x4x16x32xf32> to vector<1x4x16x32xf32>
    %314 = vector.shape_cast %313 : vector<1x4x16x32xf32> to vector<4x16x32xf32>
    %315 = vector.extract_strided_slice %308 {offsets = [3, 0, 0, 0], sizes = [1, 4, 16, 32], strides = [1, 1, 1, 1]} : vector<4x4x16x32xf32> to vector<1x4x16x32xf32>
    %316 = vector.shape_cast %315 : vector<1x4x16x32xf32> to vector<4x16x32xf32>
    %317 = tpu.concatenate %310, %312, %314, %316 in 2 : vector<4x16x32xf32>, vector<4x16x32xf32>, vector<4x16x32xf32>, vector<4x16x32xf32> -> vector<4x16x128xf32>
    %318 = vector.shape_cast %317 : vector<4x16x128xf32> to vector<64x128xf32>
    %319 = arith.index_cast %c1_i32 : i32 to index
    %c0_88 = arith.constant 0 : index
    %c0_89 = arith.constant 0 : index
    %320 = vector.load %arg9[%319, %c0_88, %c0_89] : memref<2x128x128xbf16, #tpu.memory_space<vmem>>, vector<1x128x128xbf16>
    %321 = vector.shape_cast %320 : vector<1x128x128xbf16> to vector<128x128xbf16>
    %322 = arith.truncf %318 : vector<64x128xf32> to vector<64x128xbf16>
    %cst_90 = arith.constant dense<0.000000e+00> : vector<64x128xf32>
    %323 = tpu.matmul %322, %321, %cst_90 {dimension_numbers = #tpu.dot_dimension_numbers<[1], [0], [0], [1], [0, 0, 1, 1], [], []>} : vector<64x128xbf16>, vector<128x128xbf16>, vector<64x128xf32> -> vector<64x128xf32>
    %324 = arith.addf %224, %323 : vector<64x128xf32>
    %325 = arith.index_cast %c1_i32 : i32 to index
    %c0_91 = arith.constant 0 : index
    %c0_92 = arith.constant 0 : index
    %326 = vector.load %arg10[%325, %c0_91, %c0_92] : memref<2x1x128xf32, #tpu.memory_space<vmem>>, vector<1x1x128xf32>
    %327 = vector.shape_cast %326 : vector<1x1x128xf32> to vector<1x128xf32>
    %328 = vector.broadcast %327 : vector<1x128xf32> to vector<64x128xf32>
    %329 = arith.addf %324, %328 : vector<64x128xf32>
    %330 = arith.index_cast %c1_i32 : i32 to index
    %c0_93 = arith.constant 0 : index
    %c0_94 = arith.constant 0 : index
    %331 = vector.load %arg11[%330, %c0_93, %c0_94] : memref<2x1x128xf32, #tpu.memory_space<vmem>>, vector<1x1x128xf32>
    %332 = vector.shape_cast %331 : vector<1x1x128xf32> to vector<1x128xf32>
    %333 = arith.index_cast %c1_i32 : i32 to index
    %c0_95 = arith.constant 0 : index
    %c0_96 = arith.constant 0 : index
    %334 = vector.load %arg12[%333, %c0_95, %c0_96] : memref<2x1x128xf32, #tpu.memory_space<vmem>>, vector<1x1x128xf32>
    %335 = vector.shape_cast %334 : vector<1x1x128xf32> to vector<1x128xf32>
    %cst_97 = arith.constant dense<0.000000e+00> : vector<64xf32>
    %336 = vector.multi_reduction <add>, %329, %cst_97 [1] : vector<64x128xf32> to vector<64xf32>
    %337 = vector.shape_cast %336 : vector<64xf32> to vector<64x1xf32>
    %cst_98 = arith.constant 1.280000e+02 : f32
    %338 = vector.broadcast %cst_98 : f32 to vector<64x1xf32>
    %339 = arith.divf %337, %338 : vector<64x1xf32>
    %340 = vector.broadcast %339 : vector<64x1xf32> to vector<64x128xf32>
    %341 = arith.subf %329, %340 : vector<64x128xf32>
    %342 = arith.mulf %341, %341 : vector<64x128xf32>
    %cst_99 = arith.constant dense<0.000000e+00> : vector<64xf32>
    %343 = vector.multi_reduction <add>, %342, %cst_99 [1] : vector<64x128xf32> to vector<64xf32>
    %344 = vector.shape_cast %343 : vector<64xf32> to vector<64x1xf32>
    %cst_100 = arith.constant 1.280000e+02 : f32
    %345 = vector.broadcast %cst_100 : f32 to vector<64x1xf32>
    %346 = arith.divf %344, %345 : vector<64x1xf32>
    %cst_101 = arith.constant 9.99999996E-13 : f32
    %347 = vector.broadcast %cst_101 : f32 to vector<64x1xf32>
    %348 = arith.addf %346, %347 : vector<64x1xf32>
    %349 = math.rsqrt %348 : vector<64x1xf32>
    %350 = vector.broadcast %349 : vector<64x1xf32> to vector<64x128xf32>
    %351 = arith.mulf %341, %350 : vector<64x128xf32>
    %352 = vector.broadcast %332 : vector<1x128xf32> to vector<64x128xf32>
    %353 = arith.mulf %351, %352 : vector<64x128xf32>
    %354 = vector.broadcast %335 : vector<1x128xf32> to vector<64x128xf32>
    %355 = arith.addf %353, %354 : vector<64x128xf32>
    %356 = arith.index_cast %c1_i32 : i32 to index
    %c0_102 = arith.constant 0 : index
    %c0_103 = arith.constant 0 : index
    %357 = vector.load %arg13[%356, %c0_102, %c0_103] : memref<2x128x256xbf16, #tpu.memory_space<vmem>>, vector<1x128x256xbf16>
    %358 = vector.shape_cast %357 : vector<1x128x256xbf16> to vector<128x256xbf16>
    %359 = arith.truncf %355 : vector<64x128xf32> to vector<64x128xbf16>
    %cst_104 = arith.constant dense<0.000000e+00> : vector<64x256xf32>
    %360 = tpu.matmul %359, %358, %cst_104 {dimension_numbers = #tpu.dot_dimension_numbers<[1], [0], [0], [1], [0, 0, 1, 1], [], []>} : vector<64x128xbf16>, vector<128x256xbf16>, vector<64x256xf32> -> vector<64x256xf32>
    %361 = arith.index_cast %c1_i32 : i32 to index
    %c0_105 = arith.constant 0 : index
    %c0_106 = arith.constant 0 : index
    %362 = vector.load %arg14[%361, %c0_105, %c0_106] : memref<2x1x256xf32, #tpu.memory_space<vmem>>, vector<1x1x256xf32>
    %363 = vector.shape_cast %362 : vector<1x1x256xf32> to vector<1x256xf32>
    %364 = vector.broadcast %363 : vector<1x256xf32> to vector<64x256xf32>
    %365 = arith.addf %360, %364 : vector<64x256xf32>
    %cst_107 = arith.constant 5.000000e-01 : f32
    %366 = vector.broadcast %cst_107 : f32 to vector<64x256xf32>
    %367 = arith.mulf %366, %365 : vector<64x256xf32>
    %cst_108 = arith.constant 0.707106769 : f32
    %368 = vector.broadcast %cst_108 : f32 to vector<64x256xf32>
    %369 = arith.mulf %365, %368 : vector<64x256xf32>
    %cst_109 = arith.constant 0.000000e+00 : f32
    %370 = vector.broadcast %cst_109 : f32 to vector<64x256xf32>
    %371 = arith.cmpf oge, %369, %370 : vector<64x256xf32>
    %cst_110 = arith.constant 1.000000e+00 : f32
    %cst_111 = arith.constant -1.000000e+00 : f32
    %372 = vector.broadcast %cst_110 : f32 to vector<64x256xf32>
    %373 = vector.broadcast %cst_111 : f32 to vector<64x256xf32>
    %374 = arith.select %371, %372, %373 : vector<64x256xi1>, vector<64x256xf32>
    %375 = math.absf %369 : vector<64x256xf32>
    %cst_112 = arith.constant 0.327591091 : f32
    %376 = vector.broadcast %cst_112 : f32 to vector<64x256xf32>
    %377 = arith.mulf %376, %375 : vector<64x256xf32>
    %cst_113 = arith.constant 1.000000e+00 : f32
    %378 = vector.broadcast %cst_113 : f32 to vector<64x256xf32>
    %379 = arith.addf %378, %377 : vector<64x256xf32>
    %380 = tpu.reciprocal %379 {approx = true} : vector<64x256xf32> -> vector<64x256xf32>
    %cst_114 = arith.constant 1.06140542 : f32
    %381 = vector.broadcast %cst_114 : f32 to vector<64x256xf32>
    %382 = arith.mulf %381, %380 : vector<64x256xf32>
    %cst_115 = arith.constant -1.45315206 : f32
    %383 = vector.broadcast %cst_115 : f32 to vector<64x256xf32>
    %384 = arith.addf %382, %383 : vector<64x256xf32>
    %385 = arith.mulf %384, %380 : vector<64x256xf32>
    %cst_116 = arith.constant 1.42141378 : f32
    %386 = vector.broadcast %cst_116 : f32 to vector<64x256xf32>
    %387 = arith.addf %385, %386 : vector<64x256xf32>
    %388 = arith.mulf %387, %380 : vector<64x256xf32>
    %cst_117 = arith.constant -0.284496725 : f32
    %389 = vector.broadcast %cst_117 : f32 to vector<64x256xf32>
    %390 = arith.addf %388, %389 : vector<64x256xf32>
    %391 = arith.mulf %390, %380 : vector<64x256xf32>
    %cst_118 = arith.constant 0.254829586 : f32
    %392 = vector.broadcast %cst_118 : f32 to vector<64x256xf32>
    %393 = arith.addf %391, %392 : vector<64x256xf32>
    %394 = arith.mulf %393, %380 : vector<64x256xf32>
    %cst_119 = arith.constant 0.000000e+00 : f32
    %395 = vector.broadcast %cst_119 : f32 to vector<64x256xf32>
    %396 = arith.subf %395, %375 : vector<64x256xf32>
    %397 = arith.mulf %396, %375 : vector<64x256xf32>
    %398 = math.exp %397 : vector<64x256xf32>
    %399 = arith.mulf %394, %398 : vector<64x256xf32>
    %cst_120 = arith.constant 1.000000e+00 : f32
    %400 = vector.broadcast %cst_120 : f32 to vector<64x256xf32>
    %401 = arith.subf %400, %399 : vector<64x256xf32>
    %402 = arith.mulf %374, %401 : vector<64x256xf32>
    %cst_121 = arith.constant 1.000000e+00 : f32
    %403 = vector.broadcast %cst_121 : f32 to vector<64x256xf32>
    %404 = arith.addf %403, %402 : vector<64x256xf32>
    %405 = arith.mulf %367, %404 : vector<64x256xf32>
    %406 = arith.index_cast %c1_i32 : i32 to index
    %c0_122 = arith.constant 0 : index
    %c0_123 = arith.constant 0 : index
    %407 = vector.load %arg15[%406, %c0_122, %c0_123] : memref<2x256x128xbf16, #tpu.memory_space<vmem>>, vector<1x256x128xbf16>
    %408 = vector.shape_cast %407 : vector<1x256x128xbf16> to vector<256x128xbf16>
    %409 = arith.truncf %405 : vector<64x256xf32> to vector<64x256xbf16>
    %cst_124 = arith.constant dense<0.000000e+00> : vector<64x128xf32>
    %410 = tpu.matmul %409, %408, %cst_124 {dimension_numbers = #tpu.dot_dimension_numbers<[1], [0], [0], [1], [0, 0, 1, 1], [], []>} : vector<64x256xbf16>, vector<256x128xbf16>, vector<64x128xf32> -> vector<64x128xf32>
    %411 = arith.addf %329, %410 : vector<64x128xf32>
    %412 = arith.index_cast %c1_i32 : i32 to index
    %c0_125 = arith.constant 0 : index
    %c0_126 = arith.constant 0 : index
    %413 = vector.load %arg16[%412, %c0_125, %c0_126] : memref<2x1x128xf32, #tpu.memory_space<vmem>>, vector<1x1x128xf32>
    %414 = vector.shape_cast %413 : vector<1x1x128xf32> to vector<1x128xf32>
    %415 = vector.broadcast %414 : vector<1x128xf32> to vector<64x128xf32>
    %416 = arith.addf %411, %415 : vector<64x128xf32>
    %c2_i32 = arith.constant 2 : i32
    %c0_127 = arith.constant 0 : index
    %c0_128 = arith.constant 0 : index
    %417 = vector.load %arg17[%c0_127, %c0_128] : memref<128x128xbf16, #tpu.memory_space<vmem>>, vector<128x128xbf16>
    %418 = arith.truncf %416 : vector<64x128xf32> to vector<64x128xbf16>
    %cst_129 = arith.constant dense<0.000000e+00> : vector<64x128xf32>
    %419 = tpu.matmul %418, %417, %cst_129 {dimension_numbers = #tpu.dot_dimension_numbers<[1], [0], [0], [1], [0, 0, 1, 1], [], []>} : vector<64x128xbf16>, vector<128x128xbf16>, vector<64x128xf32> -> vector<64x128xf32>
    %c0_130 = arith.constant 0 : index
    %c0_131 = arith.constant 0 : index
    %420 = vector.load %arg18[%c0_130, %c0_131] : memref<1x128xf32, #tpu.memory_space<vmem>>, vector<1x128xf32>
    %421 = vector.broadcast %420 : vector<1x128xf32> to vector<64x128xf32>
    %422 = arith.addf %419, %421 : vector<64x128xf32>
    %cst_132 = arith.constant dense<0xFF800000> : vector<64xf32>
    %423 = vector.multi_reduction <maximumf>, %422, %cst_132 [1] : vector<64x128xf32> to vector<64xf32>
    %424 = vector.shape_cast %423 : vector<64xf32> to vector<64x1xf32>
    %425 = vector.broadcast %424 : vector<64x1xf32> to vector<64x128xf32>
    %426 = arith.subf %422, %425 : vector<64x128xf32>
    %427 = math.exp %426 : vector<64x128xf32>
    %cst_133 = arith.constant dense<0.000000e+00> : vector<64xf32>
    %428 = vector.multi_reduction <add>, %427, %cst_133 [1] : vector<64x128xf32> to vector<64xf32>
    %429 = vector.shape_cast %428 : vector<64xf32> to vector<64x1xf32>
    %430 = vector.broadcast %429 : vector<64x1xf32> to vector<64x128xf32>
    %431 = arith.divf %427, %430 : vector<64x128xf32>
    %432 = vector.shape_cast %431 : vector<64x128xf32> to vector<4x16x128xf32>
    %c0_134 = arith.constant 0 : index
    %c0_135 = arith.constant 0 : index
    %c0_136 = arith.constant 0 : index
    %433 = vector.load %arg19[%c0_134, %c0_135, %c0_136] : memref<4x16x128xf32, #tpu.memory_space<vmem>>, vector<4x16x128xf32>
    tpu.vector_store %arg19[%c0_134, %c0_135, %c0_136], %432 {strides = array<i32>} : memref<4x16x128xf32, #tpu.memory_space<vmem>>, vector<4x16x128xf32>,
    return
  }
  func.func @transform_0(%arg0: i32) -> (i32, i32, i32) {
    %c0_i32 = arith.constant 0 : i32
    %c0_i32_0 = arith.constant 0 : i32
    %c0_i32_1 = arith.constant 0 : i32
    return %arg0, %c0_i32, %c0_i32_0 : i32, i32, i32
  }
  func.func @transform_1(%arg0: i32) -> (i32, i32, i32) {
    %c0_i32 = arith.constant 0 : i32
    %c0_i32_0 = arith.constant 0 : i32
    %c0_i32_1 = arith.constant 0 : i32
    return %arg0, %c0_i32, %c0_i32_0 : i32, i32, i32
  }
  func.func @transform_2(%arg0: i32) -> (i32, i32) {
    %c0_i32 = arith.constant 0 : i32
    %c0_i32_0 = arith.constant 0 : i32
    %c0_i32_1 = arith.constant 0 : i32
    return %c0_i32, %c0_i32_0 : i32, i32
  }
  func.func @transform_3(%arg0: i32) -> (i32, i32) {
    %c0_i32 = arith.constant 0 : i32
    %c0_i32_0 = arith.constant 0 : i32
    %c0_i32_1 = arith.constant 0 : i32
    return %c0_i32, %c0_i32_0 : i32, i32
  }
  func.func @transform_4(%arg0: i32) -> (i32, i32, i32) {
    %c0_i32 = arith.constant 0 : i32
    %c0_i32_0 = arith.constant 0 : i32
    %c0_i32_1 = arith.constant 0 : i32
    %c0_i32_2 = arith.constant 0 : i32
    return %c0_i32, %c0_i32_0, %c0_i32_1 : i32, i32, i32
  }
  func.func @transform_5(%arg0: i32) -> (i32, i32, i32) {
    %c0_i32 = arith.constant 0 : i32
    %c0_i32_0 = arith.constant 0 : i32
    %c0_i32_1 = arith.constant 0 : i32
    %c0_i32_2 = arith.constant 0 : i32
    return %c0_i32, %c0_i32_0, %c0_i32_1 : i32, i32, i32
  }
  func.func @transform_6(%arg0: i32) -> (i32, i32, i32) {
    %c0_i32 = arith.constant 0 : i32
    %c0_i32_0 = arith.constant 0 : i32
    %c0_i32_1 = arith.constant 0 : i32
    %c0_i32_2 = arith.constant 0 : i32
    return %c0_i32, %c0_i32_0, %c0_i32_1 : i32, i32, i32
  }
  func.func @transform_7(%arg0: i32) -> (i32, i32, i32) {
    %c0_i32 = arith.constant 0 : i32
    %c0_i32_0 = arith.constant 0 : i32
    %c0_i32_1 = arith.constant 0 : i32
    %c0_i32_2 = arith.constant 0 : i32
    return %c0_i32, %c0_i32_0, %c0_i32_1 : i32, i32, i32
  }
  func.func @transform_8(%arg0: i32) -> (i32, i32, i32) {
    %c0_i32 = arith.constant 0 : i32
    %c0_i32_0 = arith.constant 0 : i32
    %c0_i32_1 = arith.constant 0 : i32
    %c0_i32_2 = arith.constant 0 : i32
    return %c0_i32, %c0_i32_0, %c0_i32_1 : i32, i32, i32
  }
  func.func @transform_9(%arg0: i32) -> (i32, i32, i32) {
    %c0_i32 = arith.constant 0 : i32
    %c0_i32_0 = arith.constant 0 : i32
    %c0_i32_1 = arith.constant 0 : i32
    %c0_i32_2 = arith.constant 0 : i32
    return %c0_i32, %c0_i32_0, %c0_i32_1 : i32, i32, i32
  }
  func.func @transform_10(%arg0: i32) -> (i32, i32, i32) {
    %c0_i32 = arith.constant 0 : i32
    %c0_i32_0 = arith.constant 0 : i32
    %c0_i32_1 = arith.constant 0 : i32
    %c0_i32_2 = arith.constant 0 : i32
    return %c0_i32, %c0_i32_0, %c0_i32_1 : i32, i32, i32
  }
  func.func @transform_11(%arg0: i32) -> (i32, i32, i32) {
    %c0_i32 = arith.constant 0 : i32
    %c0_i32_0 = arith.constant 0 : i32
    %c0_i32_1 = arith.constant 0 : i32
    %c0_i32_2 = arith.constant 0 : i32
    return %c0_i32, %c0_i32_0, %c0_i32_1 : i32, i32, i32
  }
  func.func @transform_12(%arg0: i32) -> (i32, i32, i32) {
    %c0_i32 = arith.constant 0 : i32
    %c0_i32_0 = arith.constant 0 : i32
    %c0_i32_1 = arith.constant 0 : i32
    %c0_i32_2 = arith.constant 0 : i32
    return %c0_i32, %c0_i32_0, %c0_i32_1 : i32, i32, i32
  }
  func.func @transform_13(%arg0: i32) -> (i32, i32, i32) {
    %c0_i32 = arith.constant 0 : i32
    %c0_i32_0 = arith.constant 0 : i32
    %c0_i32_1 = arith.constant 0 : i32
    %c0_i32_2 = arith.constant 0 : i32
    return %c0_i32, %c0_i32_0, %c0_i32_1 : i32, i32, i32
  }
  func.func @transform_14(%arg0: i32) -> (i32, i32, i32) {
    %c0_i32 = arith.constant 0 : i32
    %c0_i32_0 = arith.constant 0 : i32
    %c0_i32_1 = arith.constant 0 : i32
    %c0_i32_2 = arith.constant 0 : i32
    return %c0_i32, %c0_i32_0, %c0_i32_1 : i32, i32, i32
  }
  func.func @transform_15(%arg0: i32) -> (i32, i32, i32) {
    %c0_i32 = arith.constant 0 : i32
    %c0_i32_0 = arith.constant 0 : i32
    %c0_i32_1 = arith.constant 0 : i32
    %c0_i32_2 = arith.constant 0 : i32
    return %c0_i32, %c0_i32_0, %c0_i32_1 : i32, i32, i32
  }
  func.func @transform_16(%arg0: i32) -> (i32, i32) {
    %c0_i32 = arith.constant 0 : i32
    %c0_i32_0 = arith.constant 0 : i32
    %c0_i32_1 = arith.constant 0 : i32
    return %c0_i32, %c0_i32_0 : i32, i32
  }
  func.func @transform_17(%arg0: i32) -> (i32, i32) {
    %c0_i32 = arith.constant 0 : i32
    %c0_i32_0 = arith.constant 0 : i32
    %c0_i32_1 = arith.constant 0 : i32
    return %c0_i32, %c0_i32_0 : i32, i32
  }
  func.func @transform_18(%arg0: i32) -> (i32, i32, i32) {
    %c0_i32 = arith.constant 0 : i32
    %c0_i32_0 = arith.constant 0 : i32
    %c0_i32_1 = arith.constant 0 : i32
    return %arg0, %c0_i32, %c0_i32_0 : i32, i32, i32
  }
}

</mosaic_0001>

<bundles_post_ra>
// kernel: tpu_custom_call.1
= control target key start
LH: loop header
LB: loop body
LE: loop exit
PB: predicated region body
PF: predicated region fallthrough
CT: control target
= control target key end

     0   :  { %s17876_s0 = inlined_call_operand.vmem [shape: f32[8,16,4], index: 0, kind: input, shape index: {}]   ;;  %s17877_s1 = inlined_call_operand.hbm [shape: f32[8,1,16], index: 1, kind: input, shape index: {}]   ;;  %s17878_s2 = inlined_call_operand.hbm [shape: f32[4,128], index: 2, kind: input, shape index: {}]   ;;  %s17879_s3 = inlined_call_operand.vmem [shape: f32[1,128], index: 3, kind: input, shape index: {}]   ;;  %s17880_s4 = inlined_call_operand.hbm [shape: f32[2,1,128], index: 4, kind: input, shape index: {}]   ;;  %s17881_s5 = inlined_call_operand.hbm [shape: f32[2,1,128], index: 5, kind: input, shape index: {}]   ;;  %s17882_s6 = inlined_call_operand.hbm [shape: bf16[2,128,384], index: 6, kind: input, shape index: {}]   ;;  %s17883_s7 = inlined_call_operand.hbm [shape: f32[2,1,384], index: 7, kind: input, shape index: {}]   ;;  %s17884_s8 = inlined_call_operand.vmem [shape: bf16[2,128,128], index: 8, kind: input, shape index: {}]   ;;  %s17885_s9 = inlined_call_operand.hbm [shape: f32[2,1,128], index: 9, kind: input, shape index: {}]   ;;  %s17886_s10 = inlined_call_operand.hbm [shape: f32[2,1,128], index: 10, kind: input, shape index: {}]   ;;  %s17887_s11 = inlined_call_operand.vmem [shape: f32[2,1,128], index: 11, kind: input, shape index: {}]   ;;  %s17888_s12 = inlined_call_operand.hbm [shape: bf16[2,128,256], index: 12, kind: input, shape index: {}]   ;;  %s17889_s13 = inlined_call_operand.vmem [shape: f32[2,1,256], index: 13, kind: input, shape index: {}]   ;;  %s17890_s14 = inlined_call_operand.hbm [shape: bf16[2,256,128], index: 14, kind: input, shape index: {}]   ;;  %s17891_s15 = inlined_call_operand.vmem [shape: f32[2,1,128], index: 15, kind: input, shape index: {}]   ;;  %s17892_s16 = inlined_call_operand.vmem [shape: bf16[128,128], index: 16, kind: input, shape index: {}]   ;;  %s17893_s17 = inlined_call_operand.vmem [shape: f32[1,128], index: 17, kind: input, shape index: {}]   ;;  %s17894_s18 = inlined_call_operand.hbm [shape: f32[8,16,128], index: 18, kind: output, shape index: {}]  }
   0x1   :  { %17950 = sst [smem:[#allocation39_spill]] %s17876_s0 }
   0x2   :  { %17951 = sst [smem:[#allocation40_spill]] %s17877_s1 }
   0x3   :  { %17952 = sst [smem:[#allocation41_spill]] %s17878_s2 }
   0x4   :  { %17953 = sst [smem:[#allocation42_spill]] %s17879_s3 }
   0x5   :  { %17954 = sst [smem:[#allocation43_spill]] %s17880_s4 }
   0x6   :  { %17955 = sst [smem:[#allocation44_spill]] %s17881_s5 }
   0x7   :  { %17956 = sst [smem:[#allocation45_spill]] %s17884_s8 }
   0x8   :  { %17957 = sst [smem:[#allocation46_spill]] %s17887_s11 }
   0x9   :  { %17958 = sst [smem:[#allocation47_spill]] %s17889_s13 }
   0xa   :  { %17959 = sst [smem:[#allocation48_spill]] %s17891_s15 }
   0xb   :  { %17960 = sst [smem:[#allocation49_spill]] %s17892_s16 }
   0xc   :  { %17961 = sst [smem:[#allocation50_spill]] %s17893_s17 }
   0xd   :  { %17962 = sst [smem:[#allocation51_spill]] %s17894_s18 }
   0xe   :  { %23 = vsyncpa [#allocation3], 0 }
   0xf   :  { %25 = vsyncpa [#allocation3 + $0x1], 0 }
  0x10   :  { %26 = vsyncpa [#allocation6], 0 }
  0x11   :  { %27 = vsyncpa [#allocation9], 0 }
  0x12   :  { %28 = vsyncpa [#allocation12], 0 }
  0x13   :  { %29 = vsyncpa [#allocation15], 0 }
  0x14   :  { %30 = vsyncpa [#allocation18], 0 }
  0x15   :  { %31 = vsyncpa [#allocation4], 0 }
  0x16   :  { %33 = vsyncpa [#allocation4 + $0x1], 0  ;;  %s14593_s27 = smov 0   ;;  %s14595_s28 = smov 0  }
  0x17   :  { %s14597_s29 = smov 0   ;;  %s14599_s30 = smov 0  }
  0x18 LB: > { %s14467_s0 = smov [#allocation5]   ;;  %s14614_s1 = sadd.s32 4294967295, %s14465_s30   ;;  %s14465_s30 = sphi %s14599_s30, %s18069_s30   ;;  %s14461_s29 = sphi %s14597_s29, %s18068_s29   ;;  %s14457_s28 = sphi %s14595_s28, %s18067_s28   ;;  %s14453_s27 = sphi %s14593_s27, %s18066_s27  }
  0x19   : > { %s471_s19 = sshll.u32 %s14467_s0, 4  ;;  %p11214_p0 = scmp.ge.s32.totalorder %s14465_s30, 1  ;;  %s472_s19 = int_to_ptr.vmem [resolvable:$true] %s471_s19 }
  0x1a   : > { %p17900_p1 = scmp.eq.s32.totalorder %s14614_s1, 0  ;;  %p458_p2 = scmp.lt.s32.totalorder %s14465_s30, 3 }
  0x1b   : > { %s14468_s21 = smov [#allocation8]   ;;  %s14469_s23 = smov [#allocation11]  }
  0x1c   : > { %p14619_p3 = pnand %p11214_p0, %p458_p2  ;;  %s497_s22 = sshll.u32 %s14468_s21, 4  ;;  %s14632_s22 = int_to_ptr.vmem [resolvable:$true] %s497_s22 }
  0x1d   : > { %s523_s24 = sshll.u32 %s14469_s23, 4  ;;  %s17965_s0 = sld [smem:[#allocation41_spill]]  ;;  %s14634_s24 = int_to_ptr.vmem [resolvable:$true] %s523_s24 }
  0x1e   : > { %s17963_s20 = scalar_select %p14619_p3, 1, 0 }
  0x1f   : > { %p12946_p5 = pneg %p14619_p3 }
  0x21   : > { %p14628_p6 = pnand %p12946_p5, %p17900_p1 }
  0x23   : > { %s14097_s18 = scalar_lea.hbm %s17965_s0, 64  ;;  %p14644_p8 = pneg %p14628_p6 }
  0x24   : > { %p14098_p7 = scmp.ne.s32.totalorder %s17965_s0, %s14097_s18  ;;  %p14104_p11 = scmp.lt.u32.totalorder %s14097_s18, %s17965_s0 }
  0x26   : > { %p14100_p9 = pnand %p14644_p8, %p14098_p7 }
  0x28   : > { %p14101_p10 = pneg %p14100_p9 }
  0x2a   : > { %p14106_p12 = pnand %p14104_p11, %p14101_p10 }
  0x2c   : > { %14109 = shalt.err (!%p14106_p12)
}
  0x2d   : > { %s14110_s25 = scalar_lea.vmem %s472_s19, 64  ;;  %p14118_p5 = scmp.lt.s32.totalorder %s472_s19, %s472_s19 }
  0x2e   : > { %p14111_p13 = scmp.ne.s32.totalorder %s472_s19, %s14110_s25  ;;  %p14119_p4 = scmp.lt.s32.totalorder %s14110_s25, %s14110_s25 }
  0x30   : > { %p14113_p0 = pnand %p14111_p13, %p14644_p8  ;;  %p14120_p1 = por %p14119_p4, %p14118_p5 }
  0x32   : > { %p14114_p2 = pneg %p14113_p0 }
  0x34   : > { %p14121_p3 = pnand %p14120_p1, %p14114_p2 }
  0x36   : > { %14124 = shalt.err (!%p14121_p3)
}
  0x37   : > { %12949 = dma.hbm_to_vmem [thread:$0]  (!%p14628_p6), %s17965_s0, 64, %s472_s19, [#allocation6]  }
  0x38   : > { %s17967_s5 = sld [smem:[#allocation44_spill]] }
  0x3e   : > { %s14125_s26 = scalar_lea.hbm %s17967_s5, 32 }
  0x3f   : > { %p14126_p7 = scmp.ne.s32.totalorder %s17967_s5, %s14125_s26  ;;  %p14132_p1 = scmp.lt.u32.totalorder %s14125_s26, %s17967_s5 }
  0x41   : > { %p14128_p9 = pnand %p14126_p7, %p14644_p8 }
  0x43   : > { %p14129_p4 = pneg %p14128_p9 }
  0x45   : > { %p14134_p3 = pnand %p14132_p1, %p14129_p4 }
  0x47   : > { %14137 = shalt.err (!%p14134_p3)
}
  0x48   : > { %s14138_s19 = scalar_lea.vmem %s14632_s22, 32  ;;  %p14146_p13 = scmp.lt.s32.totalorder %s14632_s22, %s14632_s22 }
  0x49   : > { %p14139_p10 = scmp.ne.s32.totalorder %s14632_s22, %s14138_s19  ;;  %p14147_p0 = scmp.lt.s32.totalorder %s14138_s19, %s14138_s19 }
  0x4b   : > { %p14141_p11 = pnand %p14139_p10, %p14644_p8  ;;  %p14148_p2 = por %p14147_p0, %p14146_p13 }
  0x4d   : > { %p14142_p12 = pneg %p14141_p11 }
  0x4f   : > { %p14149_p5 = pnand %p14148_p2, %p14142_p12 }
  0x51   : > { %14152 = shalt.err (!%p14149_p5)
}
  0x52   : > { %s17905_s13 = smov 16   ;;  %s17907_s11 = smov 1  }
  0x53   : > { %12955 = dma.hbm_to_vmem [thread:$0]  (!%p14628_p6), %s17967_s5, 32, %s14632_s22, [#allocation9], %s17905_s13, %s17905_s13, %s17907_s11  }
  0x54   : > { %s14153_s26 = scalar_lea.hbm %s17883_s7, 96 }
  0x55   : > { %p14154_p7 = scmp.ne.s32.totalorder %s17883_s7, %s14153_s26  ;;  %p14160_p1 = scmp.lt.u32.totalorder %s14153_s26, %s17883_s7 }
  0x57   : > { %p14156_p9 = pnand %p14154_p7, %p14644_p8 }
  0x59   : > { %p14157_p4 = pneg %p14156_p9 }
  0x5b   : > { %p14162_p3 = pnand %p14160_p1, %p14157_p4 }
  0x5d   : > { %14165 = shalt.err (!%p14162_p3)
}
  0x5e   : > { %s14166_s22 = scalar_lea.vmem %s14634_s24, 96  ;;  %p14174_p13 = scmp.lt.s32.totalorder %s14634_s24, %s14634_s24 }
  0x5f   : > { %p14167_p10 = scmp.ne.s32.totalorder %s14634_s24, %s14166_s22  ;;  %p14175_p0 = scmp.lt.s32.totalorder %s14166_s22, %s14166_s22 }
  0x61   : > { %p14169_p11 = pnand %p14167_p10, %p14644_p8  ;;  %p14176_p2 = por %p14175_p0, %p14174_p13 }
  0x63   : > { %p14170_p12 = pneg %p14169_p11 }
  0x65   : > { %p14177_p5 = pnand %p14176_p2, %p14170_p12 }
  0x67   : > { %14180 = shalt.err (!%p14177_p5)
}
  0x68   : > { %s14472_s16 = smov 48   ;;  %s14473_s0 = smov 3  }
  0x69   : > { %12961 = dma.hbm_to_vmem [thread:$0]  (!%p14628_p6), %s17883_s7, 96, %s14634_s24, [#allocation12], %s14472_s16, %s14472_s16, %s14473_s0  }
  0x6a   : > { %s14474_s18 = smov [#allocation14]   ;;  %s14475_s23 = smov [#allocation7]  }
  0x6b   : > { %s552_s26 = sshll.u32 %s14474_s18, 4  ;;  %s484_s25 = sshll.u32 %s14475_s23, 4  ;;  %s553_s26 = int_to_ptr.vmem [resolvable:$true] %s552_s26  ;;  %s485_s25 = int_to_ptr.vmem [resolvable:$true] %s484_s25 }
  0x6c   : > { %s14181_s13 = scalar_lea.hbm %s17886_s10, 32 }
  0x6d   : > { %p14182_p7 = scmp.ne.s32.totalorder %s17886_s10, %s14181_s13  ;;  %p14188_p1 = scmp.lt.u32.totalorder %s14181_s13, %s17886_s10 }
  0x6f   : > { %p14184_p9 = pnand %p14182_p7, %p14644_p8 }
  0x71   : > { %p14185_p4 = pneg %p14184_p9 }
  0x73   : > { %p14190_p3 = pnand %p14188_p1, %p14185_p4 }
  0x75   : > { %14193 = shalt.err (!%p14190_p3)
}
  0x76   : > { %s14194_s24 = scalar_lea.vmem %s553_s26, 32  ;;  %p14202_p13 = scmp.lt.s32.totalorder %s553_s26, %s553_s26 }
  0x77   : > { %p14195_p10 = scmp.ne.s32.totalorder %s553_s26, %s14194_s24  ;;  %p14203_p0 = scmp.lt.s32.totalorder %s14194_s24, %s14194_s24 }
  0x79   : > { %p14197_p11 = pnand %p14195_p10, %p14644_p8  ;;  %p14204_p2 = por %p14203_p0, %p14202_p13 }
  0x7b   : > { %p14198_p12 = pneg %p14197_p11 }
  0x7d   : > { %p14205_p5 = pnand %p14204_p2, %p14198_p12 }
  0x7f   : > { %14208 = shalt.err (!%p14205_p5)
}
  0x80   : > { %s17968_s5 = smov 1   ;;  %s17969_s11 = smov 16  }
  0x81   : > { %12967 = dma.hbm_to_vmem [thread:$0]  (!%p14628_p6), %s17886_s10, 32, %s553_s26, [#allocation15], %s17969_s11, %s17969_s11, %s17968_s5  }
  0x82   : > { %s17970_s4 = sld [smem:[#allocation43_spill]] }
  0x88   : > { %s14209_s0 = scalar_lea.hbm %s17970_s4, 32 }
  0x89   : > { %p14210_p7 = scmp.ne.s32.totalorder %s17970_s4, %s14209_s0  ;;  %p14216_p1 = scmp.lt.u32.totalorder %s14209_s0, %s17970_s4 }
  0x8b   : > { %p14212_p9 = pnand %p14210_p7, %p14644_p8 }
  0x8d   : > { %p14213_p4 = pneg %p14212_p9 }
  0x8f   : > { %p14218_p3 = pnand %p14216_p1, %p14213_p4 }
  0x91   : > { %14221 = shalt.err (!%p14218_p3)
}
  0x92   : > { %s14222_s19 = scalar_lea.vmem %s485_s25, 32  ;;  %p14230_p13 = scmp.lt.s32.totalorder %s485_s25, %s485_s25 }
  0x93   : > { %p14223_p10 = scmp.ne.s32.totalorder %s485_s25, %s14222_s19  ;;  %p14231_p0 = scmp.lt.s32.totalorder %s14222_s19, %s14222_s19 }
  0x95   : > { %p14225_p11 = pnand %p14223_p10, %p14644_p8  ;;  %p14232_p2 = por %p14231_p0, %p14230_p13 }
  0x97   : > { %p14226_p12 = pneg %p14225_p11 }
  0x99   : > { %p14233_p5 = pnand %p14232_p2, %p14226_p12 }
  0x9b   : > { %14236 = shalt.err (!%p14233_p5)
}
  0x9c   : > { %12952 = dma.hbm_to_vmem [thread:$0]  (!%p14628_p6), %s17970_s4, 32, %s485_s25, [#allocation6], %s17969_s11, %s17969_s11, %s17968_s5  }
  0x9d   : > { %s14476_s24 = smov [#allocation10]   ;;  %s14237_s16 = scalar_lea.hbm %s17882_s6, 6144 }
  0x9e   : > { %s510_s3 = sshll.u32 %s14476_s24, 4  ;;  %p14238_p7 = scmp.ne.s32.totalorder %s17882_s6, %s14237_s16  ;;  %s511_s3 = int_to_ptr.vmem [resolvable:$true] %s510_s3 }
  0x9f   : > { %p14244_p1 = scmp.lt.u32.totalorder %s14237_s16, %s17882_s6 }
  0xa0   : > { %p14240_p9 = pnand %p14238_p7, %p14644_p8 }
  0xa2   : > { %p14241_p4 = pneg %p14240_p9 }
  0xa4   : > { %p14246_p3 = pnand %p14244_p1, %p14241_p4 }
  0xa6   : > { %14249 = shalt.err (!%p14246_p3)
}
  0xa7   : > { %s14250_s25 = scalar_lea.vmem %s511_s3, 6144  ;;  %p14258_p13 = scmp.lt.s32.totalorder %s511_s3, %s511_s3 }
  0xa8   : > { %p14251_p10 = scmp.ne.s32.totalorder %s511_s3, %s14250_s25  ;;  %p14259_p0 = scmp.lt.s32.totalorder %s14250_s25, %s14250_s25 }
  0xaa   : > { %p14253_p11 = pnand %p14251_p10, %p14644_p8  ;;  %p14260_p2 = por %p14259_p0, %p14258_p13 }
  0xac   : > { %p14254_p12 = pneg %p14253_p11 }
  0xae   : > { %p14261_p5 = pnand %p14260_p2, %p14254_p12 }
  0xb0   : > { %14264 = shalt.err (!%p14261_p5)
}
  0xb1   : > { %s14477_s23 = smov 192   ;;  %s14478_s19 = smov 12  }
  0xb2   : > { %12958 = dma.hbm_to_vmem [thread:$0]  (!%p14628_p6), %s17882_s6, 6144, %s511_s3, [#allocation9], %s14477_s23, %s14477_s23, %s14478_s19  }
  0xb3   : > { %s14479_s24 = smov [#allocation13]   ;;  %s14480_s13 = smov [#allocation16]  }
  0xb4   : > { %s539_s8 = sshll.u32 %s14479_s24, 4  ;;  %s568_s16 = sshll.u32 %s14480_s13, 4  ;;  %s540_s8 = int_to_ptr.vmem [resolvable:$true] %s539_s8  ;;  %s14769_s16 = int_to_ptr.vmem [resolvable:$true] %s568_s16 }
  0xb5   : > { %s14265_s15 = scalar_lea.hbm %s17885_s9, 32 }
  0xb6   : > { %p14266_p7 = scmp.ne.s32.totalorder %s17885_s9, %s14265_s15  ;;  %p14272_p1 = scmp.lt.u32.totalorder %s14265_s15, %s17885_s9 }
  0xb8   : > { %p14268_p9 = pnand %p14266_p7, %p14644_p8 }
  0xba   : > { %p14269_p4 = pneg %p14268_p9 }
  0xbc   : > { %p14274_p3 = pnand %p14272_p1, %p14269_p4 }
  0xbe   : > { %14277 = shalt.err (!%p14274_p3)
}
  0xbf   : > { %s14278_s23 = scalar_lea.vmem %s540_s8, 32  ;;  %p14286_p13 = scmp.lt.s32.totalorder %s540_s8, %s540_s8 }
  0xc0   : > { %p14279_p10 = scmp.ne.s32.totalorder %s540_s8, %s14278_s23  ;;  %p14287_p0 = scmp.lt.s32.totalorder %s14278_s23, %s14278_s23 }
  0xc2   : > { %p14281_p11 = pnand %p14279_p10, %p14644_p8  ;;  %p14288_p2 = por %p14287_p0, %p14286_p13 }
  0xc4   : > { %p14282_p12 = pneg %p14281_p11 }
  0xc6   : > { %p14289_p5 = pnand %p14288_p2, %p14282_p12 }
  0xc8   : > { %14292 = shalt.err (!%p14289_p5)
}
  0xc9   : > { %12964 = dma.hbm_to_vmem [thread:$0]  (!%p14628_p6), %s17885_s9, 32, %s540_s8, [#allocation12], %s17969_s11, %s17969_s11, %s17968_s5  }
  0xca   : > { %s14293_s0 = scalar_lea.hbm %s17888_s12, 4096 }
  0xcb   : > { %p14294_p7 = scmp.ne.s32.totalorder %s17888_s12, %s14293_s0  ;;  %p14300_p1 = scmp.lt.u32.totalorder %s14293_s0, %s17888_s12 }
  0xcd   : > { %p14296_p9 = pnand %p14294_p7, %p14644_p8 }
  0xcf   : > { %p14297_p4 = pneg %p14296_p9 }
  0xd1   : > { %p14302_p3 = pnand %p14300_p1, %p14297_p4 }
  0xd3   : > { %14305 = shalt.err (!%p14302_p3)
}
  0xd4   : > { %s14306_s8 = scalar_lea.vmem %s14769_s16, 4096  ;;  %p14314_p13 = scmp.lt.s32.totalorder %s14769_s16, %s14769_s16 }
  0xd5   : > { %p14307_p10 = scmp.ne.s32.totalorder %s14769_s16, %s14306_s8  ;;  %p14315_p0 = scmp.lt.s32.totalorder %s14306_s8, %s14306_s8 }
  0xd7   : > { %p14309_p11 = pnand %p14307_p10, %p14644_p8  ;;  %p14316_p2 = por %p14315_p0, %p14314_p13 }
  0xd9   : > { %p14310_p12 = pneg %p14309_p11 }
  0xdb   : > { %p14317_p5 = pnand %p14316_p2, %p14310_p12 }
  0xdd   : > { %14320 = shalt.err (!%p14317_p5)
}
  0xde   : > { %s14481_s26 = smov 128   ;;  %s14482_s3 = smov 8  }
  0xdf   : > { %12970 = dma.hbm_to_vmem [thread:$0]  (!%p14628_p6), %s17888_s12, 4096, %s14769_s16, [#allocation15], %s14481_s26, %s14481_s26, %s14482_s3  }
  0xe0   : > { %s14483_s22 = smov [#allocation17]   ;;  %s14321_s17 = scalar_lea.hbm %s17890_s14, 4096 }
  0xe1   : > { %s584_s24 = sshll.u32 %s14483_s22, 4  ;;  %p14322_p7 = scmp.ne.s32.totalorder %s17890_s14, %s14321_s17  ;;  %s585_s24 = int_to_ptr.vmem [resolvable:$true] %s584_s24 }
  0xe2   : > { %p14328_p1 = scmp.lt.u32.totalorder %s14321_s17, %s17890_s14 }
  0xe3   : > { %p14324_p9 = pnand %p14322_p7, %p14644_p8 }
  0xe5   : > { %p14325_p4 = pneg %p14324_p9 }
  0xe7   : > { %p14330_p3 = pnand %p14328_p1, %p14325_p4 }
  0xe9   : > { %14333 = shalt.err (!%p14330_p3)
}
  0xea   : > { %s14334_s16 = scalar_lea.vmem %s585_s24, 4096  ;;  %p14342_p13 = scmp.lt.s32.totalorder %s585_s24, %s585_s24 }
  0xeb   : > { %p14335_p10 = scmp.ne.s32.totalorder %s585_s24, %s14334_s16  ;;  %p14343_p0 = scmp.lt.s32.totalorder %s14334_s16, %s14334_s16 }
  0xed   : > { %p14337_p11 = pnand %p14335_p10, %p14644_p8  ;;  %p14344_p2 = por %p14343_p0, %p14342_p13 }
  0xef   : > { %p14338_p12 = pneg %p14337_p11 }
  0xf1   : > { %p14345_p5 = pnand %p14344_p2, %p14338_p12 }
  0xf3   : > { %14348 = shalt.err (!%p14345_p5)
}
  0xf4   : > { %s14484_s26 = smov 64   ;;  %s14485_s21 = smov 4  }
  0xf5   : > { %12973 = dma.hbm_to_vmem [thread:$0]  (!%p14628_p6), %s17890_s14, 4096, %s585_s24, [#allocation18], %s14484_s26, %s14484_s26, %s14485_s21  }
  0xf6   : > { %s11213_s19 = sadd.s32 4294967294, %s14465_s30   ;;  %s14835_s22 = sadd.s32 1, %s14465_s30  }
  0xf7   : > { %s72_s13 = sadd.s32 1, %s14461_s29  ;;  %s69_s0 = ssub.s32 %s14465_s30, %s14835_s22 }
  0xf8   : > { %p79_p8 = scmp.ne.s32.totalorder %s14461_s29, %s14457_s28  ;;  %p70_p7 = scmp.eq.s32.totalorder %s69_s0, 0 }
  0xf9   : > { %p80_p9 = scmp.eq.s32.totalorder %s14465_s30, 0  ;;  %p85_p4 = scmp.ne.s32.totalorder %s14457_s28, %s14453_s27 }
  0xfa   : > { %p445_p1 = scmp.eq.s32.totalorder %s14614_s1, 1  ;;  %p17971_p10 = scmp.eq.s32.totalorder %s14614_s1, 0 }
  0xfb   : > { %s14847_s17 = scalar_select %p70_p7, %s14461_s29, %s72_s13  }
  0xfc   : > { %p81_p3 = por %p80_p9, %p79_p8  ;;  %p14851_p11 = por %p17971_p10, %p85_p4 }
  0xfd   : > { %p14855_p6 = por %p445_p1, %p79_p8  ;;  %p451_p12 = scmp.eq.s32.totalorder %s11213_s19, 1 }
  0xfe   : > { %p12991_p13 = scmp.lt.s32.totalorder %s14465_s30, 2  ;;  %s617_s15 = sand.u32 1, %s14461_s29  }
  0xff   : > { %s17973_s24 = scalar_select %p14855_p6, 1, 0 }
 0x100   : > { %p14861_p0 = por %p451_p12, %p85_p4  ;;  %s11225_s25 = sshll.u32 %s617_s15, 2 }
 0x101   : > { %s11618_s8 = sshll.u32 %s14465_s30, 6  ;;  %s17975_s21 = sld [smem:[#allocation40_spill]] }
 0x102   : > { %s17974_s18 = scalar_select %p14861_p0, 1, 0 }
 0x103   : > { %s621_s23 = scalar_lea.vmem [#allocation2], %s11225_s25  ;;  %p14871_p2 = pnand %p12991_p13, %p81_p3 }
 0x104   : > { %s628_s13 = sshll.u32 %s621_s23, 4  ;;  %s14877_s0 = scalar_lea.sflag [#allocation3], %s617_s15  ;;  %s14875_s13 = int_to_ptr.vmem [resolvable:$true] %s628_s13 }
 0x105   : > { %p14351_p8 = pneg %p14871_p2 }
 0x107   : > { %s14869_s3 = scalar_lea.hbm %s17975_s21, %s11618_s8  ;;  %s14354_s16 = scalar_lea.hbm %s17975_s21, 128 }
 0x108   : > { %s14349_s4 = scalar_lea.hbm %s14869_s3, 64  ;;  %p14355_p4 = scmp.lt.u32.totalorder %s14869_s3, %s17975_s21 }
 0x109   : > { %p14350_p5 = scmp.ne.s32.totalorder %s14869_s3, %s14349_s4  ;;  %p14356_p1 = scmp.lt.u32.totalorder %s14354_s16, %s14349_s4 }
 0x10a   : > { %p14358_p10 = scmp.lt.u32.totalorder %s14349_s4, %s14869_s3 }
 0x10b   : > { %p14352_p7 = pnand %p14351_p8, %p14350_p5  ;;  %p14357_p3 = por %p14356_p1, %p14355_p4 }
 0x10d   : > { %p14353_p9 = pneg %p14352_p7  ;;  %p14359_p12 = por %p14358_p10, %p14357_p3 }
 0x10f   : > { %p14360_p13 = pnand %p14359_p12, %p14353_p9 }
 0x111   : > { %14363 = shalt.err (!%p14360_p13)
}
 0x112   : > { %s14364_s15 = scalar_lea.vmem %s14875_s13, 64  ;;  %s14486_s25 = smov [#allocation2]  }
 0x113   : > { %p14365_p5 = scmp.ne.s32.totalorder %s14875_s13, %s14364_s15  ;;  %s14369_s8 = sshll.u32 %s14486_s25, 4  ;;  %s14370_s8 = int_to_ptr.vmem [resolvable:$false] %s14369_s8 }
 0x114   : > { %s14371_s26 = scalar_lea.vmem %s14370_s8, 128  ;;  %p14372_p6 = scmp.lt.s32.totalorder %s14875_s13, %s14370_s8 }
 0x115   : > { %p14367_p7 = pnand %p14365_p5, %p14351_p8  ;;  %p14373_p4 = scmp.lt.s32.totalorder %s14371_s26, %s14364_s15 }
 0x117   : > { %p14368_p0 = pneg %p14367_p7  ;;  %p14374_p1 = por %p14373_p4, %p14372_p6 }
 0x119   : > { %p14375_p3 = pnand %p14374_p1, %p14368_p0 }
 0x11b   : > { %14378 = shalt.err (!%p14375_p3)
}
 0x11c   : > { %12977 = dma.hbm_to_vmem [thread:$0]  (!%p14871_p2), %s14869_s3, 64, %s14875_s13, %s14877_s0, %s17969_s11, %s17969_s11, %s17968_s5  }
 0x11d   : > { %p17977_p8 = scmp.ne.s32.totalorder %s17963_s20, 0 }
 0x11f   : > { %640 = sbr.rel (%p17977_p8) target bundleno = 6412 (0x190c), region = 92 }
 0x126   : > { %s14911_s4 = sand.u32 1, %s14457_s28  }
 0x127   : > { %s11229_s16 = sshll.u32 %s14911_s4, 2  ;;  %s643_s23 = scalar_lea.sflag [#allocation3], %s14911_s4 }
 0x128   : > { %s14915_s15 = scalar_lea.vmem [#allocation2], %s11229_s16 }
 0x129   : > { %14424 = dma.done.wait (%p14851_p11), %s643_s23, 64  }
 0x12a   : > { %14426 = vsyncadd (%p14851_p11), %s643_s23, 4294967232  ;;  %p17978_p6 = scmp.eq.s32.totalorder %s14614_s1, 0 }
 0x12c   : > { %14428 = dma.done.wait (%p17978_p6), [#allocation6], 96   ;;  %p17979_p0 = pmov %p17978_p6 }
 0x12e   : > { %14430 = vsyncadd (%p17979_p0), [#allocation6], 4294967200  ;;  %p17980_p2 = pmov %p17979_p0 }
 0x12f   : > { %p17981_p9 = pmov %p17979_p0 }
 0x130   : > { %14432 = dma.done.wait (%p17980_p2), [#allocation9], 6176  }
 0x131   : > { %14434 = vsyncadd (%p17981_p9), [#allocation9], 4294961120  ;;  %p17982_p10 = pmov %p17979_p0 }
 0x132   : > { %p17983_p12 = pmov %p17979_p0 }
 0x133   : > { %14436 = dma.done.wait (%p17982_p10), [#allocation12], 128  }
 0x134   : > { %14438 = vsyncadd (%p17983_p12), [#allocation12], 4294967168  ;;  %p17984_p11 = pmov %p17979_p0 }
 0x135   : > { %p17985_p13 = pmov %p17979_p0 }
 0x136   : > { %14440 = dma.done.wait (%p17984_p11), [#allocation15], 4128  }
 0x137   : > { %14442 = vsyncadd (%p17985_p13), [#allocation15], 4294963168  ;;  %p17986_p5 = pmov %p17979_p0 }
 0x138   : > { %p17987_p7 = pmov %p17979_p0 }
 0x139   : > { %14444 = dma.done.wait (%p17986_p5), [#allocation18], 4096  }
 0x13a   : > { %14446 = vsyncadd (%p17987_p7), [#allocation18], 4294963200  ;;  %s11240_s20 = sshll.u32 %s14614_s1, 2  ;;  %v14487_v0 = vmov 1   ;;  %v17912_v1 = vmov 0   ;;  %s17988_s3 = sld [smem:[#allocation39_spill]] }
 0x13b   : > { %13064 = vset.pattern.permute.xlu1 %v14487_v0  ;;  %13063 = vset.pattern.permute.xlu0 %v17912_v1  ;;  %p742_p4 = scmp.lt.s32.totalorder %s11240_s20, 7  ;;  %v14489_v4 = vmov 2   ;;  %v14490_v6 = vmov 3   ;;  %v14966_v16 = vld [vmem:[#allocation5 + $0x1] ss:$0 sm:$0xff]  ;;  %s17989_s25 = sld [smem:[#allocation42_spill]] }
 0x13c   : > { %1322 = vmatprep.mubr.bf16.mxu0 %v17912_v1  ;;  %v14968_v17 = vld [vmem:[#allocation5] ss:$0 sm:$0xff]  ;;  %v14970_v18 = vld [vmem:[#allocation5 + $0x2] ss:$0 sm:$0xff]  ;;  %v14975_v24 = vld [vmem:[#allocation5 + $0x3] ss:$0 sm:$0xff] }
 0x13d   : > { %s18071_s20 = smov (!%p742_p4, %s11240_s20), 7  ;;  %vm1620_vm0 = vcmask 261120   ;;  %s14491_s8 = smov 96   ;;  %vm3037_vm2 = vcmask 130048   ;;  %vm4790_vm3 = vcmask 523264   ;;  %vm4799_vm4 = vcmask 785408  }
 0x13e   : > { %s11619_s5 = sshll.u32 %s18071_s20, 4  ;;  %vm15134_vm1 = vmpackc.low %vm1620_vm0, %vm1620_vm0  ;;  %s14492_s26 = smov 64  }
 0x13f   : > { %s14493_s16 = smov 32   ;;  %s18012_s23 = sld [smem:[#allocation46_spill]] }
 0x140   : > { %s14948_s13 = scalar_lea.vmem %s17988_s3, %s11619_s5  ;;  %s18000_s5 = sld [smem:[#allocation45_spill]] }
 0x141   : > { %v751_v2 = vld [vmem:[%s14948_s13] sm:$0xff]  ;;  %v752_v3 = vld [vmem:[%s14948_s13 + $0x8] sm:$0xff]  ;;  %v754_v5 = vld [vmem:[%s14948_s13 + $0x18] sm:$0xff]  ;;  %s18013_s2 = sld [smem:[#allocation47_spill]]  ;;  %s18017_s19 = sld [smem:[#allocation48_spill]] }
 0x142   : > { %814 = vperm.xlu1 %13064, %v751_v2   ;;  %762 = vperm.xlu0 %13063, %v751_v2   ;;  %v753_v7 = vld [vmem:[%s14948_s13 + $0x10] sm:$0xff]  ;;  %v756_v8 = vld [vmem:[%s14948_s13 + $0x28] sm:$0xff]  ;;  %v755_v9 = vld [vmem:[%s14948_s13 + $0x20] sm:$0xff]  ;;  %s18048_s3 = sld [smem:[#allocation49_spill]]  ;;  %s18061_s20 = sld [smem:[#allocation51_spill]] }
 0x143   : > { %v758_v10 = vld [vmem:[%s14948_s13 + $0x38] sm:$0xff]  ;;  %v757_v11 = vld [vmem:[%s14948_s13 + $0x30] sm:$0xff]  ;;  %v14981_v30 = vld [vmem:[%s17989_s25] ss:$0 sm:$0xff]  ;;  %s18060_s13 = sld [smem:[#allocation50_spill]]  ;;  %p18062_p3 = scmp.ne.s32.totalorder %s17973_s24, 0 }
 0x146   : > { %818 = vperm.xlu1 %13064, %v752_v3   ;;  %767 = vperm.xlu0 %13063, %v752_v3  }
 0x14a   : > { %13066 = vset.pattern.permute.xlu1 %v14489_v4  ;;  %13065 = vset.pattern.permute.xlu0 %v14489_v4 }
 0x14b   : > { %871 = vperm.xlu1 %13066, %v752_v3   ;;  %867 = vperm.xlu0 %13065, %v751_v2  }
 0x14f   : > { %13067 = vset.pattern.permute.xlu1 %v14490_v6  ;;  %879 = vperm.xlu0 %13065, %v754_v5  }
 0x150   : > { %920 = vperm.xlu1 %13067, %v751_v2  }
 0x153   : > { %13071 = vset.pattern.permute.xlu0 %v14487_v0 }
 0x154   : > { %13068 = vset.pattern.permute.xlu1 %v17912_v1  ;;  %822 = vperm.xlu0 %13071, %v753_v7  }
 0x155   : > { %772 = vperm.xlu1 %13068, %v753_v7  }
 0x158   : > { %834 = vperm.xlu0 %13071, %v756_v8  }
 0x159   : > { %777 = vperm.xlu1 %13068, %v754_v5  }
 0x15c   : > { %13075 = vset.pattern.permute.xlu0 %v14490_v6 }
 0x15d   : > { %13069 = vset.pattern.permute.xlu1 %v14487_v0  ;;  %924 = vperm.xlu0 %13075, %v752_v3  }
 0x15e   : > { %826 = vperm.xlu1 %13069, %v754_v5  }
 0x161   : > { %936 = vperm.xlu0 %13075, %v755_v9  }
 0x162   : > { %13070 = vset.pattern.permute.xlu1 %v14489_v4 }
 0x163   : > { %875 = vperm.xlu1 %13070, %v753_v7  }
 0x165   : > { %13077 = vset.pattern.permute.xlu0 %v17912_v1 }
 0x166   : > { %782 = vperm.xlu0 %13077, %v755_v9  }
 0x167   : > { %13072 = vset.pattern.permute.xlu1 %v14490_v6 }
 0x168   : > { %928 = vperm.xlu1 %13072, %v753_v7  }
 0x16a   : > { %797 = vperm.xlu0 %13077, %v758_v10  }
 0x16c   : > { %932 = vperm.xlu1 %13072, %v754_v5  }
 0x16e   : > { %13081 = vset.pattern.permute.xlu0 %v14489_v4 }
 0x16f   : > { %891 = vperm.xlu0 %13081, %v757_v11  }
 0x170   : > { %13073 = vset.pattern.permute.xlu1 %v17912_v1 }
 0x171   : > { %787 = vperm.xlu1 %13073, %v756_v8  }
 0x173   : > { %13084 = vset.pattern.permute.xlu0 %v14490_v6 }
 0x174   : > { %948 = vperm.xlu0 %13084, %v758_v10  }
 0x175   : > { %13074 = vset.pattern.permute.xlu1 %v14487_v0 }
 0x176   : > { %830 = vperm.xlu1 %13074, %v755_v9  }
 0x17a   : > { %13076 = vset.pattern.permute.xlu1 %v14489_v4 }
 0x17b   : > { %883 = vperm.xlu1 %13076, %v755_v9  }
 0x17f   : > { %887 = vperm.xlu1 %13076, %v756_v8  }
 0x183   : > { %13078 = vset.pattern.permute.xlu1 %v14490_v6 }
 0x184   : > { %940 = vperm.xlu1 %13078, %v756_v8  }
 0x188   : > { %13079 = vset.pattern.permute.xlu1 %v17912_v1 }
 0x189   : > { %792 = vperm.xlu1 %13079, %v757_v11  }
 0x18d   : > { %13080 = vset.pattern.permute.xlu1 %v14487_v0 }
 0x18e   : > { %838 = vperm.xlu1 %13080, %v757_v11  }
 0x192   : > { %842 = vperm.xlu1 %13080, %v758_v10  }
 0x196   : > { %13082 = vset.pattern.permute.xlu1 %v14489_v4 }
 0x197   : > { %895 = vperm.xlu1 %13082, %v758_v10  }
 0x19b   : > { %13083 = vset.pattern.permute.xlu1 %v14490_v6 }
 0x19c   : > { %944 = vperm.xlu1 %13083, %v757_v11  }
 0x1c1   : > { %v815_v12 = vpop.permute.xlu1 %814  ;;  %v763_v13 = vpop.permute.xlu0 %762 }
 0x1c2   : > { %v849_v19 = vmul.f32 %v14966_v16, %v815_v12  ;;  %v804_v20 = vmul.f32 %v14968_v17, %v763_v13 }
 0x1c4   : > { %v857_v25 = vadd.f32 %v849_v19, %v804_v20 }
 0x1c5   : > { %v819_v14 = vpop.permute.xlu1 %818  ;;  %v768_v15 = vpop.permute.xlu0 %767 }
 0x1c6   : > { %v850_v35 = vmul.f32 %v14966_v16, %v819_v14  ;;  %v805_v36 = vmul.f32 %v14968_v17, %v768_v15 }
 0x1c8   : > { %v858_v40 = vadd.f32 %v850_v35, %v805_v36 }
 0x1ca   : > { %v872_v21 = vpop.permute.xlu1 %871  ;;  %v868_v22 = vpop.permute.xlu0 %867 }
 0x1cb   : > { %v902_v23 = vmul.f32 %v14970_v18, %v868_v22  ;;  %v903_v39 = vmul.f32 %v14970_v18, %v872_v21 }
 0x1cd   : > { %v910_v28 = vadd.f32 %v902_v23, %v857_v25  ;;  %v911_v42 = vadd.f32 %v903_v39, %v858_v40 }
 0x1ce   : > { %v880_v26 = vpop.permute.xlu0 %879 }
 0x1cf   : > { %v921_v27 = vpop.permute.xlu1 %920  ;;  %v905_v55 = vmul.f32 %v14970_v18, %v880_v26 }
 0x1d0   : > { %v955_v29 = vmul.f32 %v14975_v24, %v921_v27 }
 0x1d2   : > { %v963_v31 = vadd.f32 %v955_v29, %v910_v28 }
 0x1d3   : > { %v823_v32 = vpop.permute.xlu0 %822 }
 0x1d4   : > { %v773_v33 = vpop.permute.xlu1 %772  ;;  %v14984_v34 = vadd.f32 %v14981_v30, %v963_v31  ;;  %v851_v48 = vmul.f32 %v14966_v16, %v823_v32 }
 0x1d5   : > { %v806_v47 = vmul.f32 %v14968_v17, %v773_v33 }
 0x1d6   : > { %992 = vadd.xlane.f32.xlu1 %v14984_v34 }
 0x1d7   : > { %v835_v37 = vpop.permute.xlu0 %834  ;;  %v859_v52 = vadd.f32 %v851_v48, %v806_v47 }
 0x1d8   : > { %v778_v38 = vpop.permute.xlu1 %777  ;;  %v854_v14 = vmul.f32 %v14966_v16, %v835_v37 }
 0x1d9   : > { %v807_v53 = vmul.f32 %v14968_v17, %v778_v38 }
 0x1dc   : > { %v925_v41 = vpop.permute.xlu0 %924 }
 0x1dd   : > { %v956_v43 = vmul.f32 %v14975_v24, %v925_v41  ;;  %v827_v44 = vpop.permute.xlu1 %826 }
 0x1de   : > { %v852_v50 = vmul.f32 %v14966_v16, %v827_v44 }
 0x1df   : > { %v964_v45 = vadd.f32 %v956_v43, %v911_v42 }
 0x1e0   : > { %v860_v56 = vadd.f32 %v852_v50, %v807_v53  ;;  %v937_v2 = vpop.permute.xlu0 %936 }
 0x1e1   : > { %v14992_v46 = vadd.f32 %v14981_v30, %v964_v45  ;;  %v959_v10 = vmul.f32 %v14975_v24, %v937_v2  ;;  %v13448_v2 = vld [vmem:[#allocation10 + $0x1c] ss:$12 sps:$4 sm:$0xff]  }
 0x1e2   : > { %v876_v49 = vpop.permute.xlu1 %875  ;;  %v913_v61 = vadd.f32 %v905_v55, %v860_v56 }
 0x1e3   : > { %994 = vadd.xlane.f32.xlu0 %v14992_v46  ;;  %v904_v51 = vmul.f32 %v14970_v18, %v876_v49 }
 0x1e5   : > { %v912_v57 = vadd.f32 %v904_v51, %v859_v52  ;;  %v783_v5 = vpop.permute.xlu0 %782 }
 0x1e6   : > { %v808_v8 = vmul.f32 %v14968_v17, %v783_v5 }
 0x1e7   : > { %v929_v54 = vpop.permute.xlu1 %928 }
 0x1e8   : > { %v957_v58 = vmul.f32 %v14975_v24, %v929_v54 }
 0x1e9   : > { %v798_v32 = vpop.permute.xlu0 %797 }
 0x1ea   : > { %v965_v59 = vadd.f32 %v957_v58, %v912_v57  ;;  %v811_v40 = vmul.f32 %v14968_v17, %v798_v32 }
 0x1eb   : > { %v933_v60 = vpop.permute.xlu1 %932 }
 0x1ec   : > { %v958_v62 = vmul.f32 %v14975_v24, %v933_v60  ;;  %v15004_v63 = vadd.f32 %v14981_v30, %v965_v59  ;;  %v13445_v60 = vld [vmem:[#allocation10 + $0x4] ss:$12 sps:$4 sm:$0xff]  }
 0x1ed   : > { %1290 = vmatprep.subr.bf16.mxu0 %v13445_v60 }
 0x1ee   : > { %v966_v0 = vadd.f32 %v958_v62, %v913_v61  ;;  %996 = vadd.xlane.f32.xlu1 %v15004_v63  ;;  %v892_v35 = vpop.permute.xlu0 %891  ;;  %v13447_v62 = vld [vmem:[#allocation10] ss:$12 sps:$4 sm:$0xff]  }
 0x1ef   : > { %v908_v48 = vmul.f32 %v14970_v18, %v892_v35  ;;  %1291 = vmatpush1.bf16.msra.mxu0 %v13447_v62 }
 0x1f0   : > { %v788_v3 = vpop.permute.xlu1 %787  ;;  %v15008_v4 = vadd.f32 %v14981_v30, %v966_v0  ;;  %1292 = vmatprep.subr.bf16.mxu0 %v13448_v2 }
 0x1f1   : > { %v809_v15 = vmul.f32 %v14968_v17, %v788_v3  ;;  %v13450_v3 = vld [vmem:[#allocation10 + $0x18] ss:$12 sps:$4 sm:$0xff]  }
 0x1f2   : > { %998 = vadd.xlane.f32.xlu0 %v15008_v4 }
 0x1f3   : > { %v862_v23 = vadd.f32 %v854_v14, %v809_v15  ;;  %v949_v39 = vpop.permute.xlu0 %948  ;;  %1293 = vmatpush1.bf16.msra.mxu0 %v13450_v3  ;;  %v13456_v14 = vld [vmem:[#allocation10 + $0x48] ss:$12 sps:$4 sm:$0xff]   ;;  %v15084_v3 = vld [vmem:[#allocation7] ss:$0 sm:$0xff] }
 0x1f4   : > { %v962_v45 = vmul.f32 %v14975_v24, %v949_v39  ;;  %v13457_v15 = vld [vmem:[#allocation10 + $0x8] ss:$12 sps:$4 sm:$0xff]  }
 0x1f5   : > { %v831_v6 = vpop.permute.xlu1 %830  ;;  %12018 = vmatprep.subr.bf16.mxu1 %v13457_v15  ;;  %v13472_v39 = vld [vmem:[#allocation10 + $0xa8] ss:$12 sps:$4 sm:$0xff]  }
 0x1f6   : > { %v853_v7 = vmul.f32 %v14966_v16, %v831_v6  ;;  %v13451_v6 = vld [vmem:[#allocation10 + $0x34] ss:$12 sps:$4 sm:$0xff]   ;;  %12019 = vmatpush3.bf16.msra.mxu1 %v13457_v15 }
 0x1f7   : > { %1294 = vmatprep.subr.bf16.mxu0 %v13451_v6 }
 0x1f8   : > { %v861_v11 = vadd.f32 %v853_v7, %v808_v8 }
 0x1fa   : > { %v884_v9 = vpop.permute.xlu1 %883 }
 0x1fb   : > { %v906_v12 = vmul.f32 %v14970_v18, %v884_v9 }
 0x1fd   : > { %v914_v13 = vadd.f32 %v906_v12, %v861_v11  ;;  %v13453_v11 = vld [vmem:[#allocation10 + $0x30] ss:$12 sps:$4 sm:$0xff]  }
 0x1fe   : > { %v888_v19 = vpop.permute.xlu1 %887  ;;  %1295 = vmatpush1.bf16.msra.mxu0 %v13453_v11 }
 0x1ff   : > { %v967_v20 = vadd.f32 %v959_v10, %v914_v13  ;;  %v907_v21 = vmul.f32 %v14970_v18, %v888_v19  ;;  %v13454_v13 = vld [vmem:[#allocation10 + $0x4c] ss:$12 sps:$4 sm:$0xff]   ;;  %v13458_v19 = vld [vmem:[#allocation10 + $0x64] ss:$12 sps:$4 sm:$0xff]  }
 0x200   : > { %1296 = vmatprep.subr.bf16.mxu0 %v13454_v13  ;;  %v11249_v13 = vld [vmem:[#allocation8] ss:$0 sm:$0xff] }
 0x201   : > { %v15019_v22 = vadd.f32 %v14981_v30, %v967_v20  ;;  %v915_v26 = vadd.f32 %v907_v21, %v862_v23  ;;  %v13460_v20 = vld [vmem:[#allocation10 + $0x60] ss:$12 sps:$4 sm:$0xff]   ;;  %v13462_v23 = vld [vmem:[#allocation10 + $0x7c] ss:$12 sps:$4 sm:$0xff]  }
 0x202   : > { %1297 = vmatpush1.bf16.msra.mxu0 %v13456_v14  ;;  %v13461_v21 = vld [vmem:[#allocation10 + $0x20] ss:$12 sps:$4 sm:$0xff]  }
 0x203   : > { %v941_v25 = vpop.permute.xlu1 %940  ;;  %1000 = vadd.xlane.f32.xlu1 %v15019_v22  ;;  %1298 = vmatprep.subr.bf16.mxu0 %v13458_v19 }
 0x204   : > { %v960_v27 = vmul.f32 %v14975_v24, %v941_v25  ;;  %12020 = vmatprep.subr.bf16.mxu1 %v13461_v21  ;;  %v13464_v25 = vld [vmem:[#allocation10 + $0x78] ss:$12 sps:$4 sm:$0xff]  }
 0x205   : > { %12021 = vmatpush3.bf16.msra.mxu1 %v13461_v21 }
 0x206   : > { %v968_v28 = vadd.f32 %v960_v27, %v915_v26  ;;  %1299 = vmatpush1.bf16.msra.mxu0 %v13460_v20 }
 0x207   : > { %1300 = vmatprep.subr.bf16.mxu0 %v13462_v23 }
 0x208   : > { %v793_v29 = vpop.permute.xlu1 %792  ;;  %v15024_v31 = vadd.f32 %v14981_v30, %v968_v28  ;;  %v13465_v28 = vld [vmem:[#allocation10 + $0x38] ss:$12 sps:$4 sm:$0xff]  }
 0x209   : > { %v810_v41 = vmul.f32 %v14968_v17, %v793_v29  ;;  %v13466_v29 = vld [vmem:[#allocation10 + $0x94] ss:$12 sps:$4 sm:$0xff]   ;;  %12022 = vmatprep.subr.bf16.mxu1 %v13465_v28 }
 0x20a   : > { %17990 = vst [vmem:[#allocation27_spill] sm:$0xff] %v15024_v31  ;;  %1002 = vadd.xlane.f32.xlu0 %v15024_v31  ;;  %1301 = vmatpush1.bf16.msra.mxu0 %v13464_v25 }
 0x20b   : > { %1302 = vmatprep.subr.bf16.mxu0 %v13466_v29  ;;  %12023 = vmatpush3.bf16.msra.mxu1 %v13465_v28 }
 0x20d   : > { %v839_v33 = vpop.permute.xlu1 %838 }
 0x20e   : > { %v855_v38 = vmul.f32 %v14966_v16, %v839_v33  ;;  %v13468_v33 = vld [vmem:[#allocation10 + $0x90] ss:$12 sps:$4 sm:$0xff]  }
 0x20f   : > { %1303 = vmatpush1.bf16.msra.mxu0 %v13468_v33 }
 0x210   : > { %v863_v47 = vadd.f32 %v855_v38, %v810_v41  ;;  %v13473_v41 = vld [vmem:[#allocation10 + $0x68] ss:$12 sps:$4 sm:$0xff]  }
 0x211   : > { %v843_v36 = vpop.permute.xlu1 %842 }
 0x212   : > { %v856_v37 = vmul.f32 %v14966_v16, %v843_v36  ;;  %v916_v52 = vadd.f32 %v908_v48, %v863_v47  ;;  %v13469_v36 = vld [vmem:[#allocation10 + $0x50] ss:$12 sps:$4 sm:$0xff]  }
 0x213   : > { %12024 = vmatprep.subr.bf16.mxu1 %v13469_v36  ;;  %v13476_v47 = vld [vmem:[#allocation10 + $0xb0] ss:$12 sps:$4 sm:$0xff]  }
 0x214   : > { %v864_v43 = vadd.f32 %v856_v37, %v811_v40  ;;  %v13470_v37 = vld [vmem:[#allocation10 + $0xac] ss:$12 sps:$4 sm:$0xff]   ;;  %12025 = vmatpush3.bf16.msra.mxu1 %v13469_v36 }
 0x215   : > { %1304 = vmatprep.subr.bf16.mxu0 %v13470_v37  ;;  %12026 = vmatprep.subr.bf16.mxu1 %v13473_v41 }
 0x216   : > { %v896_v42 = vpop.permute.xlu1 %895  ;;  %1305 = vmatpush1.bf16.msra.mxu0 %v13472_v39 }
 0x217   : > { %v909_v44 = vmul.f32 %v14970_v18, %v896_v42 }
 0x218   : > { %12027 = vmatpush3.bf16.msra.mxu1 %v13473_v41 }
 0x219   : > { %v917_v49 = vadd.f32 %v909_v44, %v864_v43  ;;  %v13474_v44 = vld [vmem:[#allocation10 + $0x80] ss:$12 sps:$4 sm:$0xff]  }
 0x21a   : > { %12028 = vmatprep.subr.bf16.mxu1 %v13474_v44 }
 0x21b   : > { %v970_v50 = vadd.f32 %v962_v45, %v917_v49  ;;  %v945_v51 = vpop.permute.xlu1 %944  ;;  %v13475_v45 = vld [vmem:[#allocation10 + $0x98] ss:$12 sps:$4 sm:$0xff]  }
 0x21c   : > { %v961_v16 = vmul.f32 %v14975_v24, %v945_v51  ;;  %12029 = vmatpush3.bf16.msra.mxu1 %v13474_v44 }
 0x21d   : > { %v15036_v53 = vadd.f32 %v14981_v30, %v970_v50  ;;  %12030 = vmatprep.subr.bf16.mxu1 %v13475_v45 }
 0x21e   : > { %v969_v54 = vadd.f32 %v961_v16, %v916_v52 }
 0x21f   : > { %17991 = vst [vmem:[#allocation28_spill] sm:$0xff] %v15036_v53  ;;  %1006 = vadd.xlane.f32.xlu0 %v15036_v53 }
 0x220   : > { %v15040_v17 = vadd.f32 %v14981_v30, %v969_v54  ;;  %12031 = vmatpush3.bf16.msra.mxu1 %v13475_v45 }
 0x221   : > { %12032 = vmatprep.subr.bf16.mxu1 %v13476_v47 }
 0x222   : > { %17992 = vst [vmem:[#allocation29_spill] sm:$0xff] %v15040_v17  ;;  %1004 = vadd.xlane.f32.xlu1 %v15040_v17 }
 0x224   : > { %12033 = vmatpush3.bf16.msra.mxu1 %v13476_v47 }
 0x263   : > { %v993_v55 = vpop.xlane.xlu1 %992 }
 0x264   : > { %v1009_v56 = vmul.f32 0.0078125, %v993_v55 }
 0x266   : > { %v15044_v18 = vsub.f32 %v14984_v34, %v1009_v56 }
 0x268   : > { %v1025_v57 = vmul.f32 %v15044_v18, %v15044_v18 }
 0x26a   : > { %1033 = vadd.xlane.f32.xlu1 %v1025_v57 }
 0x270   : > { %v995_v24 = vpop.xlane.xlu0 %994 }
 0x271   : > { %v1010_v58 = vmul.f32 0.0078125, %v995_v24 }
 0x273   : > { %v15049_v59 = vsub.f32 %v14992_v46, %v1010_v58 }
 0x275   : > { %v1026_v30 = vmul.f32 %v15049_v59, %v15049_v59 }
 0x277   : > { %1035 = vadd.xlane.f32.xlu0 %v1026_v30 }
 0x27b   : > { %v997_v61 = vpop.xlane.xlu1 %996 }
 0x27c   : > { %v1011_v0 = vmul.f32 0.0078125, %v997_v61 }
 0x27e   : > { %v15054_v5 = vsub.f32 %v15004_v63, %v1011_v0 }
 0x27f   : > { %v999_v7 = vpop.xlane.xlu0 %998 }
 0x280   : > { %v1012_v8 = vmul.f32 0.0078125, %v999_v7  ;;  %v1027_v9 = vmul.f32 %v15054_v5, %v15054_v5 }
 0x282   : > { %1037 = vadd.xlane.f32.xlu1 %v1027_v9  ;;  %v15059_v10 = vsub.f32 %v15008_v4, %v1012_v8 }
 0x284   : > { %v1028_v12 = vmul.f32 %v15059_v10, %v15059_v10 }
 0x286   : > { %1039 = vadd.xlane.f32.xlu0 %v1028_v12 }
 0x290   : > { %v1001_v26 = vpop.xlane.xlu1 %1000 }
 0x291   : > { %v1013_v27 = vmul.f32 0.0078125, %v1001_v26 }
 0x293   : > { %v15064_v32 = vsub.f32 %v15019_v22, %v1013_v27 }
 0x295   : > { %v1029_v35 = vmul.f32 %v15064_v32, %v15064_v32 }
 0x297   : > { %1041 = vadd.xlane.f32.xlu1 %v1029_v35  ;;  %v1003_v38 = vpop.xlane.xlu0 %1002 }
 0x298   : > { %v1014_v40 = vmul.f32 0.0078125, %v1003_v38 }
 0x29a   : > { %v15069_v42 = vsub.f32 %v15024_v31, %v1014_v40 }
 0x29c   : > { %v1030_v43 = vmul.f32 %v15069_v42, %v15069_v42 }
 0x29e   : > { %1043 = vadd.xlane.f32.xlu0 %v1030_v43 }
 0x2ac   : > { %v1007_v48 = vpop.xlane.xlu0 %1006 }
 0x2ad   : > { %v1016_v49 = vmul.f32 0.0078125, %v1007_v48 }
 0x2af   : > { %v1005_v50 = vpop.xlane.xlu1 %1004  ;;  %v15074_v51 = vsub.f32 %v15036_v53, %v1016_v49 }
 0x2b0   : > { %v1015_v52 = vmul.f32 0.0078125, %v1005_v50 }
 0x2b1   : > { %v1032_v16 = vmul.f32 %v15074_v51, %v15074_v51 }
 0x2b2   : > { %v15079_v54 = vsub.f32 %v15040_v17, %v1015_v52 }
 0x2b3   : > { %1047 = vadd.xlane.f32.xlu0 %v1032_v16 }
 0x2b4   : > { %v1031_v55 = vmul.f32 %v15079_v54, %v15079_v54 }
 0x2b6   : > { %1045 = vadd.xlane.f32.xlu1 %v1031_v55 }
 0x2f7   : > { %v1034_v56 = vpop.xlane.xlu1 %1033 }
 0x2f8   : > { %v1049_v57 = vmul.f32 0.0078125, %v1034_v56 }
 0x2fa   : > { %v1057_v24 = vadd.f32 1e-12, %v1049_v57 }
 0x2fc   : > { %13613 = vrsqrt.f32 %v1057_v24 }
 0x304   : > { %v1036_v58 = vpop.xlane.xlu0 %1035 }
 0x305   : > { %v1050_v30 = vmul.f32 0.0078125, %v1036_v58 }
 0x306   : > { %v13614_v61 = vpop.eup %13613 }
 0x307   : > { %v1058_v60 = vadd.f32 1e-12, %v1050_v30  ;;  %v1073_v2 = vmul.f32 %v13614_v61, %v15044_v18 }
 0x309   : > { %13615 = vrsqrt.f32 %v1058_v60  ;;  %v1087_v12 = vmul.f32 %v15084_v3, %v1073_v2  ;;  %v1147_v2 = vlaneseq }
 0x30b   : > { %v1101_v19 = vadd.f32 %v11249_v13, %v1087_v12 }
 0x30f   : > { %v1038_v62 = vpop.xlane.xlu1 %1037 }
 0x310   : > { %v1051_v0 = vmul.f32 0.0078125, %v1038_v62 }
 0x312   : > { %v1059_v6 = vadd.f32 1e-12, %v1051_v0 }
 0x313   : > { %v13616_v7 = vpop.eup %13615  ;;  %v1040_v8 = vpop.xlane.xlu0 %1039 }
 0x314   : > { %13617 = vrsqrt.f32 %v1059_v6  ;;  %v1052_v9 = vmul.f32 0.0078125, %v1040_v8  ;;  %v1074_v11 = vmul.f32 %v13616_v7, %v15049_v59  ;;  %v15104_v6 = vshrl.u32 %v1147_v2, 7  ;;  %v1145_v8 = vld [vmem:[#allocation11] sm:$0x7] }
 0x316   : > { %v1060_v14 = vadd.f32 1e-12, %v1052_v9  ;;  %v1088_v15 = vmul.f32 %v15084_v3, %v1074_v11  ;;  %17993 = vst [vmem:[#allocation30_spill] sm:$0xff] %v15104_v6  ;;  %v15107_v7 = vsub.s32 0, %v15104_v6 }
 0x318   : > { %13619 = vrsqrt.f32 %v1060_v14  ;;  %v1102_v20 = vadd.f32 %v11249_v13, %v1088_v15  ;;  %17994 = vst [vmem:[#allocation31_spill] sm:$0xff] %v15107_v7 }
 0x31a   : > { %v1141_v21 = vpack.c.bf16 %v1102_v20, %v1101_v19 }
 0x31c   : > { %1323 = vmatmul.mubr.bf16.vlgmr.msra.gmra.mrb[0].mxu0 %v1141_v21  ;;  %12034 = vmatprep.mubr.bf16.mxu1 %v1141_v21  ;;  %v17996_v21 = vmov 0 }
 0x31d   : > { %1332 = vmatprep.mubr.bf16.mxu0 %v17912_v1  ;;  %v17997_v21 = vsel %vm15134_vm1, 4294967295, %v17996_v21 }
 0x31e   : > { %v13618_v18 = vpop.eup %13617  ;;  %17998 = vst [vmem:[#allocation33_spill] sm:$0xff] %v17997_v21 }
 0x31f   : > { %v1075_v23 = vmul.f32 %v13618_v18, %v15054_v5 }
 0x321   : > { %v1089_v26 = vmul.f32 %v15084_v3, %v1075_v23 }
 0x322   : > { %v13620_v25 = vpop.eup %13619 }
 0x323   : > { %v1076_v59 = vmul.f32 %v13620_v25, %v15059_v10  ;;  %v1103_v35 = vadd.f32 %v11249_v13, %v1089_v26  ;;  %v17911_v25 = vsub.s32 2, %v15104_v6 }
 0x324   : > { %v1042_v27 = vpop.xlane.xlu1 %1041 }
 0x325   : > { %v1053_v28 = vmul.f32 0.0078125, %v1042_v27  ;;  %v1090_v29 = vmul.f32 %v15084_v3, %v1076_v59  ;;  %v15149_v59 = vrot.slane %v1145_v8, %v17911_v25 }
 0x327   : > { %v1061_v33 = vadd.f32 1e-12, %v1053_v28  ;;  %v1104_v36 = vadd.f32 %v11249_v13, %v1090_v29 }
 0x329   : > { %v1142_v37 = vpack.c.bf16 %v1104_v36, %v1103_v35  ;;  %13621 = vrsqrt.f32 %v1061_v33 }
 0x32b   : > { %1333 = vmatmul.mubr.bf16.gmra.mrb[4].mxu0 %v1142_v37  ;;  %12035 = vmatmul.mubr.bf16.vlgmr.msra.gmra.mrb[0].mxu1 %v1142_v37  ;;  %v1044_v38 = vpop.xlane.xlu0 %1043 }
 0x32c   : > { %v1054_v39 = vmul.f32 0.0078125, %v1044_v38  ;;  %1342 = vmatprep.mubr.bf16.mxu0 %v17912_v1 }
 0x32e   : > { %v1062_v5 = vadd.f32 1e-12, %v1054_v39 }
 0x330   : > { %13623 = vrsqrt.f32 %v1062_v5 }
 0x333   : > { %v13622_v10 = vpop.eup %13621 }
 0x334   : > { %v1077_v40 = vmul.f32 %v13622_v10, %v15064_v32 }
 0x336   : > { %v1091_v44 = vmul.f32 %v15084_v3, %v1077_v40 }
 0x338   : > { %v1105_v47 = vadd.f32 %v11249_v13, %v1091_v44 }
 0x33a   : > { %v13624_v41 = vpop.eup %13623 }
 0x33b   : > { %v1078_v43 = vmul.f32 %v13624_v41, %v15069_v42 }
 0x33d   : > { %v1092_v45 = vmul.f32 %v15084_v3, %v1078_v43 }
 0x33f   : > { %v1106_v48 = vadd.f32 %v11249_v13, %v1092_v45 }
 0x340   : > { %v1048_v49 = vpop.xlane.xlu0 %1047 }
 0x341   : > { %v1056_v50 = vmul.f32 0.0078125, %v1048_v49  ;;  %v1143_v52 = vpack.c.bf16 %v1106_v48, %v1105_v47 }
 0x343   : > { %v1064_v16 = vadd.f32 1e-12, %v1056_v50  ;;  %v1046_v55 = vpop.xlane.xlu1 %1045  ;;  %1343 = vmatmul.mubr.bf16.gmra.mrb[8].mxu0 %v1143_v52  ;;  %12038 = vmatprep.mubr.bf16.mxu1 %v1143_v52 }
 0x344   : > { %v1055_v56 = vmul.f32 0.0078125, %v1046_v55  ;;  %1352 = vmatprep.mubr.bf16.mxu0 %v17912_v1 }
 0x345   : > { %13625 = vrsqrt.f32 %v1064_v16 }
 0x346   : > { %v1063_v32 = vadd.f32 1e-12, %v1055_v56 }
 0x348   : > { %13627 = vrsqrt.f32 %v1063_v32 }
 0x34f   : > { %v13626_v42 = vpop.eup %13625 }
 0x350   : > { %v1080_v57 = vmul.f32 %v13626_v42, %v15074_v51  ;;  %v15110_v51 = vsub.s32 1, %v15104_v6 }
 0x352   : > { %v13628_v24 = vpop.eup %13627  ;;  %v1094_v30 = vmul.f32 %v15084_v3, %v1080_v57  ;;  %17995 = vst [vmem:[#allocation32_spill] sm:$0xff] %v15110_v51 }
 0x353   : > { %v1079_v58 = vmul.f32 %v13628_v24, %v15079_v54  ;;  %v15113_v54 = vrot.slane %v1145_v8, %v15107_v7 }
 0x354   : > { %v1108_v62 = vadd.f32 %v11249_v13, %v1094_v30 }
 0x355   : > { %v1093_v60 = vmul.f32 %v15084_v3, %v1079_v58  ;;  %v15116_v3 = vrot.slane %v1145_v8, %v15110_v51 }
 0x357   : > { %v1107_v61 = vadd.f32 %v11249_v13, %v1093_v60 }
 0x359   : > { %v1144_v0 = vpack.c.bf16 %v1108_v62, %v1107_v61 }
 0x35b   : > { %1353 = vmatmul.mubr.bf16.gmra.mrb[12].mxu0 %v1144_v0  ;;  %12039 = vmatmul.mubr.bf16.gmra.mrb[4].mxu1 %v1144_v0 }
 0x3ef   : > { %v1324_v9 = vpop.f32.mrb[0].mxu0 }
 0x3f0   : > { %v15119_v11 = vadd.f32 %v1324_v9, %v15113_v54  ;;  %v1326_v12 = vpop.f32.mrb[1].mxu0 }
 0x3f1   : > { %v1328_v13 = vpop.f32.mrb[2].mxu0  ;;  %v1327_v19 = vadd.f32 %v1326_v12, %v15116_v3 }
 0x3f2   : > { %v15122_v14 = vadd.f32 %v1328_v13, %v15113_v54  ;;  %v1330_v15 = vpop.f32.mrb[3].mxu0  ;;  %1436 = vrot.lane.b32.xlu0 %v15119_v11, %s14491_s8  ;;  %12046 = vmatprep.mubr.msk.f32.mxu1 %vm1620_vm0, %v15119_v11 }
 0x3f3   : > { %v1331_v20 = vadd.f32 %v1330_v15, %v15116_v3 }
 0x3f4   : > { %1438 = vrot.lane.b32.xlu1 %v15122_v14, %s14491_s8 }
 0x3f5   : > { %v12586_v18 = vpack.c.bf16 %v1331_v20, %v1327_v19  ;;  %v15138_v23 = vpack.i.bf16 %v1331_v20, %v1327_v19 }
 0x3f7   : > { %12588 = vmatprep.subr.msk.bf16.mxu1 %vm15134_vm1, %v12586_v18 }
 0x3f8   : > { %13086 = vrot.lane.b32.xlu1 %v15138_v23, %s14491_s8  ;;  %12591 = vmatpush3.bf16.xpose.msk.msra.mxu1 %vm15134_vm1, %v12586_v18 }
 0x3fe   : > { %v1334_v26 = vpop.f32.mrb[4].mxu0  ;;  %v12036_v27 = vpop.f32.mrb[0].mxu1 }
 0x3ff   : > { %v15152_v28 = vadd.f32 %v1334_v26, %v15113_v54  ;;  %v1336_v29 = vpop.f32.mrb[5].mxu0  ;;  %v1397_v33 = vpop.f32.mrb[1].mxu1  ;;  %12047 = vmatmul.mubr.msk.f32.vlgmr.msra.gmra.mrb[8].mxu1 %vm1620_vm0, %v15122_v14  ;;  %v1406_v37 = vadd.f32 %v12036_v27, %v15149_v59 }
 0x400   : > { %v1338_v35 = vpop.f32.mrb[6].mxu0  ;;  %v12037_v36 = vpop.f32.mrb[2].mxu1  ;;  %v1337_v40 = vadd.f32 %v1336_v29, %v15116_v3  ;;  %v1398_v41 = vadd.f32 %v1397_v33, %v15149_v59 }
 0x401   : > { %v15158_v38 = vadd.f32 %v1338_v35, %v15113_v54  ;;  %v1409_v39 = vadd.f32 %v12037_v36, %v15149_v59  ;;  %v1340_v5 = vpop.f32.mrb[7].mxu0  ;;  %v1400_v10 = vpop.f32.mrb[3].mxu1  ;;  %1440 = vrot.lane.b32.xlu0 %v15152_v28, %s14491_s8  ;;  %12053 = vmatprep.mubr.msk.f32.mxu1 %vm1620_vm0, %v15152_v28 }
 0x402   : > { %v1341_v43 = vadd.f32 %v1340_v5, %v15116_v3  ;;  %v1401_v44 = vadd.f32 %v1400_v10, %v15149_v59 }
 0x403   : > { %1442 = vrot.lane.b32.xlu1 %v15158_v38, %s14491_s8  ;;  %v15171_v45 = vpack.i.bf16 %v1409_v39, %v1406_v37  ;;  %v15173_v47 = vpack.c.bf16 %v1409_v39, %v1406_v37 }
 0x404   : > { %v12592_v48 = vpack.c.bf16 %v1341_v43, %v1337_v40  ;;  %v15175_v49 = vpack.i.bf16 %v1341_v43, %v1337_v40  ;;  %v15177_v50 = vpack.i.bf16 %v1401_v44, %v1398_v41  ;;  %v15179_v52 = vpack.c.bf16 %v1401_v44, %v1398_v41 }
 0x406   : > { %12594 = vmatprep.subr.msk.bf16.mxu1 %vm15134_vm1, %v12592_v48  ;;  %13091 = vrot.lane.b32.xlu0 %v15175_v49, %s14491_s8 }
 0x407   : > { %13101 = vrot.lane.b32.xlu1 %v15175_v49, %s14492_s26  ;;  %12597 = vmatpush3.bf16.xpose.msk.msra.mxu1 %vm15134_vm1, %v12592_v48 }
 0x40a   : > { %13096 = vrot.lane.b32.xlu0 %v15138_v23, %s14492_s26 }
 0x40e   : > { %12054 = vmatmul.mubr.msk.f32.vlgmr.msra.gmra.mrb[10].mxu1 %vm1620_vm0, %v15158_v38 }
 0x416   : > { %v1344_v16 = vpop.f32.mrb[8].mxu0 }
 0x417   : > { %v1345_v55 = vadd.f32 %v1344_v16, %v15113_v54  ;;  %v1346_v56 = vpop.f32.mrb[9].mxu0 }
 0x418   : > { %v1348_v32 = vpop.f32.mrb[10].mxu0  ;;  %v1347_v24 = vadd.f32 %v1346_v56, %v15116_v3 }
 0x419   : > { %v15195_v42 = vadd.f32 %v1348_v32, %v15113_v54  ;;  %v1350_v57 = vpop.f32.mrb[11].mxu0  ;;  %1444 = vrot.lane.b32.xlu0 %v1345_v55, %s14491_s8  ;;  %12060 = vmatprep.mubr.msk.f32.mxu1 %vm1620_vm0, %v1345_v55 }
 0x41a   : > { %v1351_v58 = vadd.f32 %v1350_v57, %v15116_v3 }
 0x41b   : > { %1446 = vrot.lane.b32.xlu1 %v15195_v42, %s14491_s8 }
 0x41c   : > { %v12598_v30 = vpack.c.bf16 %v1351_v58, %v1347_v24  ;;  %v13105_v60 = vpack.i.bf16 %v1351_v58, %v1347_v24 }
 0x41e   : > { %12600 = vmatprep.subr.msk.bf16.mxu1 %vm15134_vm1, %v12598_v30 }
 0x41f   : > { %13106 = vrot.lane.b32.xlu1 %v13105_v60, %s14491_s8  ;;  %12603 = vmatpush3.bf16.xpose.msk.msra.mxu1 %vm15134_vm1, %v12598_v30 }
 0x426   : > { %12061 = vmatmul.mubr.msk.f32.vlgmr.msra.gmra.mrb[12].mxu1 %vm1620_vm0, %v15195_v42 }
 0x42e   : > { %v1354_v61 = vpop.f32.mrb[12].mxu0  ;;  %v12040_v62 = vpop.f32.mrb[4].mxu1 }
 0x42f   : > { %v1355_v0 = vadd.f32 %v1354_v61, %v15113_v54  ;;  %v1356_v2 = vpop.f32.mrb[13].mxu0  ;;  %v1413_v8 = vpop.f32.mrb[5].mxu1  ;;  %v1422_v15 = vadd.f32 %v12040_v62, %v15149_v59 }
 0x430   : > { %v1357_v9 = vadd.f32 %v1356_v2, %v15116_v3  ;;  %v1358_v12 = vpop.f32.mrb[14].mxu0  ;;  %v12041_v13 = vpop.f32.mrb[6].mxu1  ;;  %v1414_v26 = vadd.f32 %v1413_v8, %v15149_v59 }
 0x431   : > { %v1425_v19 = vadd.f32 %v12041_v13, %v15149_v59  ;;  %v1360_v20 = vpop.f32.mrb[15].mxu0  ;;  %v1416_v18 = vpop.f32.mrb[7].mxu1  ;;  %1448 = vrot.lane.b32.xlu0 %v1355_v0, %s14491_s8  ;;  %12067 = vmatprep.mubr.msk.f32.mxu1 %vm1620_vm0, %v1355_v0 }
 0x432   : > { %v1361_v27 = vadd.f32 %v1360_v20, %v15116_v3  ;;  %v1417_v29 = vadd.f32 %v1416_v18, %v15149_v59  ;;  %v1359_v3 = vadd.f32 %v1358_v12, %v15113_v54 }
 0x433   : > { %v15219_v33 = vpack.i.bf16 %v1425_v19, %v1422_v15  ;;  %v15221_v35 = vpack.c.bf16 %v1425_v19, %v1422_v15 }
 0x434   : > { %v13110_v36 = vpack.i.bf16 %v1361_v27, %v1357_v9  ;;  %v12604_v37 = vpack.c.bf16 %v1361_v27, %v1357_v9  ;;  %v15224_v39 = vpack.i.bf16 %v1417_v29, %v1414_v26  ;;  %v15226_v5 = vpack.c.bf16 %v1417_v29, %v1414_v26 }
 0x435   : > { %13116 = vrot.lane.b32.xlu0 %v13105_v60, %s14492_s26 }
 0x436   : > { %13111 = vrot.lane.b32.xlu1 %v13110_v36, %s14491_s8  ;;  %12606 = vmatprep.subr.msk.bf16.mxu1 %vm15134_vm1, %v12604_v37 }
 0x437   : > { %12609 = vmatpush3.bf16.xpose.msk.msra.mxu1 %vm15134_vm1, %v12604_v37 }
 0x439   : > { %1452 = vrot.lane.b32.xlu0 %v15119_v11, %s14492_s26 }
 0x43a   : > { %1450 = vrot.lane.b32.xlu1 %v1359_v3, %s14491_s8 }
 0x43d   : > { %1456 = vrot.lane.b32.xlu0 %v15152_v28, %s14492_s26 }
 0x43e   : > { %1454 = vrot.lane.b32.xlu1 %v15122_v14, %s14492_s26  ;;  %12068 = vmatmul.mubr.msk.f32.vlgmr.msra.gmra.mrb[14].mxu1 %vm1620_vm0, %v1359_v3 }
 0x441   : > { %13121 = vrot.lane.b32.xlu0 %v15138_v23, %s14493_s16 }
 0x442   : > { %1458 = vrot.lane.b32.xlu1 %v15158_v38, %s14492_s26 }
 0x445   : > { %1460 = vrot.lane.b32.xlu0 %v1345_v55, %s14492_s26 }
 0x446   : > { %13126 = vrot.lane.b32.xlu1 %v13110_v36, %s14492_s26 }
 0x449   : > { %1464 = vrot.lane.b32.xlu0 %v1355_v0, %s14492_s26 }
 0x44a   : > { %13131 = vrot.lane.b32.xlu1 %v15175_v49, %s14493_s16 }
 0x44d   : > { %1468 = vrot.lane.b32.xlu0 %v15119_v11, %s14493_s16 }
 0x44e   : > { %1462 = vrot.lane.b32.xlu1 %v15195_v42, %s14492_s26 }
 0x451   : > { %1472 = vrot.lane.b32.xlu0 %v15152_v28, %s14493_s16 }
 0x452   : > { %1466 = vrot.lane.b32.xlu1 %v1359_v3, %s14492_s26 }
 0x455   : > { %13136 = vrot.lane.b32.xlu0 %v13105_v60, %s14493_s16 }
 0x456   : > { %1470 = vrot.lane.b32.xlu1 %v15122_v14, %s14493_s16 }
 0x459   : > { %1476 = vrot.lane.b32.xlu0 %v1345_v55, %s14493_s16 }
 0x45a   : > { %1474 = vrot.lane.b32.xlu1 %v15158_v38, %s14493_s16 }
 0x45d   : > { %1480 = vrot.lane.b32.xlu0 %v1355_v0, %s14493_s16 }
 0x45e   : > { %13141 = vrot.lane.b32.xlu1 %v13110_v36, %s14493_s16 }
 0x461   : > { %13151 = vrot.lane.b32.xlu0 %v15171_v45, %s14491_s8 }
 0x462   : > { %1478 = vrot.lane.b32.xlu1 %v15195_v42, %s14493_s16 }
 0x464   : > { %v1437_v54 = vpop.permute.xlu0 %1436 }
 0x465   : > { %13166 = vrot.lane.b32.xlu0 %v15177_v50, %s14492_s26  ;;  %12074 = vmatprep.mubr.msk.f32.mxu0 %vm1620_vm0, %v1437_v54 }
 0x466   : > { %v1439_v11 = vpop.permute.xlu1 %1438  ;;  %1482 = vrot.lane.b32.xlu1 %v1359_v3, %s14493_s16 }
 0x469   : > { %13176 = vrot.lane.b32.xlu0 %v15224_v39, %s14492_s26 }
 0x46a   : > { %v13087_v14 = vpop.permute.xlu1 %13086  ;;  %13146 = vrot.lane.b32.xlu1 %v15177_v50, %s14491_s8 }
 0x46b   : > { %v13089_v23 = vunpack.i.h.bf16 %v13087_v14  ;;  %v13088_v59 = vunpack.i.l.bf16 %v13087_v14 }
 0x46d   : > { %v12610_v28 = vpack.c.bf16 %v13089_v23, %v13088_v59 }
 0x46e   : > { %13156 = vrot.lane.b32.xlu1 %v15224_v39, %s14491_s8 }
 0x46f   : > { %12612 = vmatprep.subr.msk.bf16.mxu0 %vm15134_vm1, %v12610_v28 }
 0x470   : > { %12615 = vmatpush3.bf16.xpose.msk.msra.mxu0 %vm15134_vm1, %v12610_v28 }
 0x472   : > { %13161 = vrot.lane.b32.xlu1 %v15219_v33, %s14491_s8 }
 0x473   : > { %v1441_v38 = vpop.permute.xlu0 %1440 }
 0x474   : > { %12081 = vmatprep.mubr.msk.f32.mxu1 %vm1620_vm0, %v1441_v38 }
 0x475   : > { %v1443_v44 = vpop.permute.xlu1 %1442 }
 0x476   : > { %13171 = vrot.lane.b32.xlu1 %v15171_v45, %s14492_s26 }
 0x477   : > { %12075 = vmatmul.mubr.msk.f32.vlgmr.msra.gmra.mrb[16].mxu0 %vm1620_vm0, %v1439_v11 }
 0x478   : > { %v13092_v10 = vpop.permute.xlu0 %13091 }
 0x479   : > { %v13094_v40 = vunpack.i.h.bf16 %v13092_v10  ;;  %v13093_v41 = vunpack.i.l.bf16 %v13092_v10  ;;  %v13102_v49 = vpop.permute.xlu1 %13101 }
 0x47a   : > { %13181 = vrot.lane.b32.xlu1 %v15219_v33, %s14492_s26  ;;  %v13104_v8 = vunpack.i.h.bf16 %v13102_v49  ;;  %v13103_v9 = vunpack.i.l.bf16 %v13102_v49 }
 0x47b   : > { %v12616_v43 = vpack.c.bf16 %v13094_v40, %v13093_v41 }
 0x47c   : > { %v13097_v48 = vpop.permute.xlu0 %13096  ;;  %v12640_v26 = vpack.c.bf16 %v13104_v8, %v13103_v9 }
 0x47d   : > { %12618 = vmatprep.subr.msk.bf16.mxu1 %vm15134_vm1, %v12616_v43  ;;  %v13099_v32 = vunpack.i.h.bf16 %v13097_v48  ;;  %v13098_v42 = vunpack.i.l.bf16 %v13097_v48 }
 0x47e   : > { %12621 = vmatpush3.bf16.xpose.msk.msra.mxu1 %vm15134_vm1, %v12616_v43 }
 0x47f   : > { %v12634_v30 = vpack.c.bf16 %v13099_v32, %v13098_v42 }
 0x485   : > { %12082 = vmatmul.mubr.msk.f32.vlgmr.msra.gmra.mrb[16].mxu1 %vm1620_vm0, %v1443_v44 }
 0x48b   : > { %v1445_v16 = vpop.permute.xlu0 %1444 }
 0x48c   : > { %12088 = vmatprep.mubr.msk.f32.mxu0 %vm1620_vm0, %v1445_v16 }
 0x48d   : > { %v1447_v55 = vpop.permute.xlu1 %1446 }
 0x491   : > { %v13107_v56 = vpop.permute.xlu1 %13106 }
 0x492   : > { %v13109_v57 = vunpack.i.h.bf16 %v13107_v56  ;;  %v13108_v24 = vunpack.i.l.bf16 %v13107_v56 }
 0x494   : > { %v12622_v58 = vpack.c.bf16 %v13109_v57, %v13108_v24 }
 0x496   : > { %12624 = vmatprep.subr.msk.bf16.mxu0 %vm15134_vm1, %v12622_v58 }
 0x497   : > { %12627 = vmatpush3.bf16.xpose.msk.msra.mxu0 %vm15134_vm1, %v12622_v58 }
 0x498   : > { %12636 = vmatprep.subr.msk.bf16.mxu0 %vm15134_vm1, %v12634_v30 }
 0x49e   : > { %12089 = vmatmul.mubr.msk.f32.vlgmr.msra.gmra.mrb[18].mxu0 %vm1620_vm0, %v1447_v55 }
 0x49f   : > { %12639 = vmatpush3.bf16.xpose.msk.msra.mxu0 %vm15134_vm1, %v12634_v30 }
 0x4a3   : > { %v1449_v60 = vpop.permute.xlu0 %1448 }
 0x4a4   : > { %12095 = vmatprep.mubr.msk.f32.mxu1 %vm1620_vm0, %v1449_v60 }
 0x4a7   : > { %v13117_v61 = vpop.permute.xlu0 %13116 }
 0x4a8   : > { %v13119_v62 = vunpack.i.h.bf16 %v13117_v61  ;;  %v13118_v0 = vunpack.i.l.bf16 %v13117_v61  ;;  %v13112_v2 = vpop.permute.xlu1 %13111 }
 0x4a9   : > { %v13114_v12 = vunpack.i.h.bf16 %v13112_v2  ;;  %v13113_v13 = vunpack.i.l.bf16 %v13112_v2  ;;  %v15353_v2 = vld [vmem:[%s14915_s15] ss:$0 sm:$0xff] }
 0x4aa   : > { %v12646_v15 = vpack.c.bf16 %v13119_v62, %v13118_v0 }
 0x4ab   : > { %v12628_v19 = vpack.c.bf16 %v13114_v12, %v13113_v13  ;;  %v1453_v20 = vpop.permute.xlu0 %1452 }
 0x4ac   : > { %v1451_v18 = vpop.permute.xlu1 %1450  ;;  %12102 = vmatprep.mubr.msk.f32.mxu0 %vm1620_vm0, %v1453_v20  ;;  %12648 = vmatprep.subr.msk.bf16.mxu0 %vm15134_vm1, %v12646_v15 }
 0x4ad   : > { %12630 = vmatprep.subr.msk.bf16.mxu1 %vm15134_vm1, %v12628_v19 }
 0x4ae   : > { %12633 = vmatpush3.bf16.xpose.msk.msra.mxu1 %vm15134_vm1, %v12628_v19 }
 0x4af   : > { %v1457_v27 = vpop.permute.xlu0 %1456  ;;  %12642 = vmatprep.subr.msk.bf16.mxu1 %vm15134_vm1, %v12640_v26 }
 0x4b0   : > { %v1455_v29 = vpop.permute.xlu1 %1454 }
 0x4b1   : > { %12103 = vmatmul.mubr.msk.f32.vlgmr.msra.gmra.mrb[20].mxu0 %vm1620_vm0, %v1455_v29 }
 0x4b2   : > { %12651 = vmatpush3.bf16.xpose.msk.msra.mxu0 %vm15134_vm1, %v12646_v15 }
 0x4b3   : > { %v13122_v36 = vpop.permute.xlu0 %13121 }
 0x4b4   : > { %v13124_v37 = vunpack.i.h.bf16 %v13122_v36  ;;  %v13123_v3 = vunpack.i.l.bf16 %v13122_v36  ;;  %v1459_v54 = vpop.permute.xlu1 %1458  ;;  %v15377_v36 = vld [vmem:[%s14915_s15 + $0x1] ss:$0 sm:$0xff] }
 0x4b5   : > { %12096 = vmatmul.mubr.msk.f32.vlgmr.msra.gmra.mrb[18].mxu1 %vm1620_vm0, %v1451_v18 }
 0x4b6   : > { %v12658_v11 = vpack.c.bf16 %v13124_v37, %v13123_v3  ;;  %12645 = vmatpush3.bf16.xpose.msk.msra.mxu1 %vm15134_vm1, %v12640_v26  ;;  %12109 = vmatprep.mubr.msk.f32.mxu1 %vm1620_vm0, %v1457_v27 }
 0x4b7   : > { %v1461_v14 = vpop.permute.xlu0 %1460 }
 0x4b8   : > { %v13127_v23 = vpop.permute.xlu1 %13126  ;;  %12116 = vmatprep.mubr.msk.f32.mxu0 %vm1620_vm0, %v1461_v14  ;;  %12660 = vmatprep.subr.msk.bf16.mxu0 %vm15134_vm1, %v12658_v11 }
 0x4b9   : > { %v13129_v59 = vunpack.i.h.bf16 %v13127_v23  ;;  %v13128_v28 = vunpack.i.l.bf16 %v13127_v23 }
 0x4bb   : > { %v12652_v38 = vpack.c.bf16 %v13129_v59, %v13128_v28  ;;  %v1465_v10 = vpop.permute.xlu0 %1464  ;;  %v15390_v28 = vld [vmem:[%s14915_s15 + $0x2] ss:$0 sm:$0xff] }
 0x4bc   : > { %v13132_v40 = vpop.permute.xlu1 %13131 }
 0x4bd   : > { %v13134_v41 = vunpack.i.h.bf16 %v13132_v40  ;;  %v13133_v43 = vunpack.i.l.bf16 %v13132_v40  ;;  %12110 = vmatmul.mubr.msk.f32.vlgmr.msra.gmra.mrb[20].mxu1 %vm1620_vm0, %v1459_v54  ;;  %12654 = vmatprep.subr.msk.bf16.mxu1 %vm15134_vm1, %v12652_v38 }
 0x4be   : > { %12657 = vmatpush3.bf16.xpose.msk.msra.mxu1 %vm15134_vm1, %v12652_v38  ;;  %12123 = vmatprep.mubr.msk.f32.mxu1 %vm1620_vm0, %v1465_v10 }
 0x4bf   : > { %v12664_v44 = vpack.c.bf16 %v13134_v41, %v13133_v43  ;;  %v1469_v48 = vpop.permute.xlu0 %1468 }
 0x4c0   : > { %v1463_v49 = vpop.permute.xlu1 %1462 }
 0x4c1   : > { %12117 = vmatmul.mubr.msk.f32.vlgmr.msra.gmra.mrb[22].mxu0 %vm1620_vm0, %v1463_v49  ;;  %12666 = vmatprep.subr.msk.bf16.mxu1 %vm15134_vm1, %v12664_v44 }
 0x4c2   : > { %12663 = vmatpush3.bf16.xpose.msk.msra.mxu0 %vm15134_vm1, %v12658_v11  ;;  %12130 = vmatprep.mubr.msk.f32.mxu0 %vm1620_vm0, %v1469_v48 }
 0x4c3   : > { %v1473_v16 = vpop.permute.xlu0 %1472 }
 0x4c4   : > { %v1467_v55 = vpop.permute.xlu1 %1466 }
 0x4c5   : > { %12124 = vmatmul.mubr.msk.f32.vlgmr.msra.gmra.mrb[22].mxu1 %vm1620_vm0, %v1467_v55 }
 0x4c6   : > { %12669 = vmatpush3.bf16.xpose.msk.msra.mxu1 %vm15134_vm1, %v12664_v44  ;;  %12137 = vmatprep.mubr.msk.f32.mxu1 %vm1620_vm0, %v1473_v16  ;;  %v15403_v16 = vld [vmem:[%s14915_s15 + $0x3] ss:$0 sm:$0xff] }
 0x4c7   : > { %v13137_v56 = vpop.permute.xlu0 %13136 }
 0x4c8   : > { %v13139_v32 = vunpack.i.h.bf16 %v13137_v56  ;;  %v13138_v42 = vunpack.i.l.bf16 %v13137_v56  ;;  %v1471_v57 = vpop.permute.xlu1 %1470 }
 0x4c9   : > { %12131 = vmatmul.mubr.msk.f32.vlgmr.msra.gmra.mrb[24].mxu0 %vm1620_vm0, %v1471_v57 }
 0x4ca   : > { %v12670_v24 = vpack.c.bf16 %v13139_v32, %v13138_v42 }
 0x4cb   : > { %v1477_v58 = vpop.permute.xlu0 %1476 }
 0x4cc   : > { %v1475_v30 = vpop.permute.xlu1 %1474  ;;  %12672 = vmatprep.subr.msk.bf16.mxu0 %vm15134_vm1, %v12670_v24  ;;  %12144 = vmatprep.mubr.msk.f32.mxu0 %vm1620_vm0, %v1477_v58 }
 0x4cd   : > { %12138 = vmatmul.mubr.msk.f32.vlgmr.msra.gmra.mrb[24].mxu1 %vm1620_vm0, %v1475_v30  ;;  %12675 = vmatpush3.bf16.xpose.msk.msra.mxu0 %vm15134_vm1, %v12670_v24 }
 0x4ce   : > { %12683 = vmatprep.subr.bf16.mxu0 %v15179_v52 }
 0x4cf   : > { %v1481_v60 = vpop.permute.xlu0 %1480 }
 0x4d0   : > { %v13142_v61 = vpop.permute.xlu1 %13141  ;;  %12151 = vmatprep.mubr.msk.f32.mxu1 %vm1620_vm0, %v1481_v60 }
 0x4d1   : > { %v13144_v62 = vunpack.i.h.bf16 %v13142_v61  ;;  %v13143_v0 = vunpack.i.l.bf16 %v13142_v61 }
 0x4d2   : > { %v12048_v8 = vpop.f32.mrb[8].mxu1 }
 0x4d3   : > { %v12676_v9 = vpack.c.bf16 %v13144_v62, %v13143_v0  ;;  %v2950_v12 = vmul.f32 0.17677669, %v12048_v8  ;;  %v1695_v13 = vpop.f32.mrb[9].mxu1 }
 0x4d4   : > { %v2949_v15 = vmul.f32 0.17677669, %v1695_v13  ;;  %v1479_v19 = vpop.permute.xlu1 %1478 }
 0x4d5   : > { %v15356_v20 = vadd.f32 %v15353_v2, %v2950_v12  ;;  %12145 = vmatmul.mubr.msk.f32.vlgmr.msra.gmra.mrb[26].mxu0 %vm1620_vm0, %v1479_v19  ;;  %12678 = vmatprep.subr.msk.bf16.mxu1 %vm15134_vm1, %v12676_v9 }
 0x4d6   : > { %12685 = vmatpush3.bf16.msra.mxu0 %v15179_v52  ;;  %12681 = vmatpush3.bf16.xpose.msk.msra.mxu1 %vm15134_vm1, %v12676_v9  ;;  %v15365_v18 = vadd.f32 %v15353_v2, %v2949_v15 }
 0x4d7   : > { %12691 = vmatprep.subr.bf16.mxu0 %v15226_v5  ;;  %12687 = vmatprep.subr.bf16.mxu1 %v15173_v47  ;;  %v3041_v26 = vsel %vm3037_vm2, %v15356_v20, -inf }
 0x4d8   : > { %3042 = vmax.xlane.f32.xlu1 %v3041_v26  ;;  %v3038_v27 = vsel %vm3037_vm2, %v15365_v18, -inf  ;;  %v1483_v29 = vpop.permute.xlu1 %1482 }
 0x4d9   : > { %3039 = vmax.xlane.f32.xlu0 %v3038_v27 }
 0x4dd   : > { %12152 = vmatmul.mubr.msk.f32.vlgmr.msra.gmra.mrb[26].mxu1 %vm1620_vm0, %v1483_v29 }
 0x4de   : > { %12689 = vmatpush3.bf16.msra.mxu1 %v15173_v47 }
 0x4df   : > { %12695 = vmatprep.subr.bf16.mxu1 %v15221_v35 }
 0x4e1   : > { %v12055_v52 = vpop.f32.mrb[10].mxu1 }
 0x4e2   : > { %v2952_v37 = vmul.f32 0.17677669, %v12055_v52  ;;  %v1778_v3 = vpop.f32.mrb[11].mxu1 }
 0x4e3   : > { %v2951_v54 = vmul.f32 0.17677669, %v1778_v3  ;;  %v15435_v3 = vpop.permute.xlu1 %13146 }
 0x4e4   : > { %v15380_v11 = vadd.f32 %v15377_v36, %v2952_v37 }
 0x4e5   : > { %v15385_v23 = vadd.f32 %v15377_v36, %v2951_v54 }
 0x4e6   : > { %v3047_v14 = vsel %vm3037_vm2, %v15380_v11, -inf }
 0x4e7   : > { %3048 = vmax.xlane.f32.xlu0 %v3047_v14  ;;  %v3044_v47 = vsel %vm3037_vm2, %v15385_v23, -inf }
 0x4eb   : > { %3045 = vmax.xlane.f32.xlu0 %v3044_v47 }
 0x4f9   : > { %v12062_v59 = vpop.f32.mrb[12].mxu1 }
 0x4fa   : > { %v2954_v38 = vmul.f32 0.17677669, %v12062_v59  ;;  %v1861_v10 = vpop.f32.mrb[13].mxu1 }
 0x4fb   : > { %v2953_v40 = vmul.f32 0.17677669, %v1861_v10 }
 0x4fc   : > { %v15393_v41 = vadd.f32 %v15390_v28, %v2954_v38 }
 0x4fd   : > { %v15396_v43 = vadd.f32 %v15390_v28, %v2953_v40 }
 0x4fe   : > { %v3053_v44 = vsel %vm3037_vm2, %v15393_v41, -inf }
 0x4ff   : > { %3054 = vmax.xlane.f32.xlu0 %v3053_v44  ;;  %v3050_v48 = vsel %vm3037_vm2, %v15396_v43, -inf  ;;  %v15445_v44 = vpop.permute.xlu1 %13156 }
 0x500   : > { %3051 = vmax.xlane.f32.xlu1 %v3050_v48 }
 0x511   : > { %v12069_v49 = vpop.f32.mrb[14].mxu1 }
 0x512   : > { %v2956_v55 = vmul.f32 0.17677669, %v12069_v49  ;;  %v1944_v56 = vpop.f32.mrb[15].mxu1  ;;  %v15449_v49 = vpop.permute.xlu1 %13161 }
 0x513   : > { %v2955_v32 = vmul.f32 0.17677669, %v1944_v56 }
 0x514   : > { %v15406_v42 = vadd.f32 %v15403_v16, %v2956_v55  ;;  %v15451_v55 = vpop.permute.xlu0 %13151 }
 0x515   : > { %v15409_v57 = vadd.f32 %v15403_v16, %v2955_v32 }
 0x516   : > { %v3059_v24 = vsel %vm3037_vm2, %v15406_v42, -inf  ;;  %v15453_v56 = vpop.permute.xlu1 %13171 }
 0x517   : > { %3060 = vmax.xlane.f32.xlu0 %v3059_v24  ;;  %v3056_v58 = vsel %vm3037_vm2, %v15409_v57, -inf }
 0x518   : > { %3057 = vmax.xlane.f32.xlu1 %v3056_v58  ;;  %v15455_v32 = vpop.permute.xlu0 %13166 }
 0x54a   : > { %v12076_v30 = vpop.f32.mrb[16].mxu0 }
 0x54b   : > { %v2958_v60 = vmul.f32 0.17677669, %v12076_v30  ;;  %v2027_v61 = vpop.f32.mrb[17].mxu0 }
 0x54c   : > { %v2957_v62 = vmul.f32 0.17677669, %v2027_v61 }
 0x54d   : > { %v15416_v0 = vadd.f32 %v15353_v2, %v2958_v60  ;;  %v15457_v60 = vpop.permute.xlu1 %13181 }
 0x54e   : > { %v15419_v8 = vadd.f32 %v15353_v2, %v2957_v62 }
 0x54f   : > { %v3065_v9 = vsel %vm3037_vm2, %v15416_v0, -inf }
 0x550   : > { %3066 = vmax.xlane.f32.xlu0 %v3065_v9  ;;  %v3062_v12 = vsel %vm3037_vm2, %v15419_v8, -inf }
 0x551   : > { %3063 = vmax.xlane.f32.xlu1 %v3062_v12  ;;  %v15459_v12 = vpop.permute.xlu0 %13176 }
 0x558   : > { %v12083_v13 = vpop.f32.mrb[16].mxu1 }
 0x559   : > { %v2960_v15 = vmul.f32 0.17677669, %v12083_v13  ;;  %v2110_v19 = vpop.f32.mrb[17].mxu1 }
 0x55a   : > { %v2959_v26 = vmul.f32 0.17677669, %v2110_v19 }
 0x55b   : > { %v15426_v27 = vadd.f32 %v15377_v36, %v2960_v15 }
 0x55c   : > { %v15429_v29 = vadd.f32 %v15377_v36, %v2959_v26 }
 0x55d   : > { %v3071_v52 = vsel %vm3037_vm2, %v15426_v27, -inf }
 0x55e   : > { %3072 = vmax.xlane.f32.xlu0 %v3071_v52  ;;  %v3068_v37 = vsel %vm3037_vm2, %v15429_v29, -inf }
 0x55f   : > { %3069 = vmax.xlane.f32.xlu1 %v3068_v37 }
 0x565   : > { %v3043_v52 = vpop.xlane.xlu1 %3042 }
 0x571   : > { %v12090_v54 = vpop.f32.mrb[18].mxu0 }
 0x572   : > { %v2962_v14 = vmul.f32 0.17677669, %v12090_v54  ;;  %v2193_v47 = vpop.f32.mrb[19].mxu0 }
 0x573   : > { %v2961_v59 = vmul.f32 0.17677669, %v2193_v47 }
 0x574   : > { %v15438_v38 = vadd.f32 %v15390_v28, %v2962_v14  ;;  %v3040_v14 = vpop.xlane.xlu0 %3039 }
 0x575   : > { %v15441_v10 = vadd.f32 %v15390_v28, %v2961_v59 }
 0x576   : > { %v3077_v40 = vsel %vm3037_vm2, %v15438_v38, -inf }
 0x577   : > { %3078 = vmax.xlane.f32.xlu0 %v3077_v40  ;;  %v3074_v48 = vsel %vm3037_vm2, %v15441_v10, -inf  ;;  %v3135_v40 = vsub.f32 %v15356_v20, %v3043_v52 }
 0x578   : > { %3075 = vmax.xlane.f32.xlu1 %v3074_v48 }
 0x584   : > { %v12104_v24 = vpop.f32.mrb[20].mxu0 }
 0x585   : > { %v2359_v58 = vpop.f32.mrb[21].mxu0  ;;  %v2966_v61 = vmul.f32 0.17677669, %v12104_v24  ;;  %v3134_v24 = vsub.f32 %v15365_v18, %v3040_v14 }
 0x586   : > { %v2965_v13 = vmul.f32 0.17677669, %v2359_v58 }
 0x587   : > { %v15468_v37 = vadd.f32 %v15353_v2, %v2966_v61  ;;  %v3166_v52 = vmul.f32 1.442695, %v3134_v24 }
 0x588   : > { %v12097_v30 = vpop.f32.mrb[18].mxu1  ;;  %v15473_v47 = vadd.f32 %v15353_v2, %v2965_v13 }
 0x589   : > { %v2964_v62 = vmul.f32 0.17677669, %v12097_v30  ;;  %v2276_v9 = vpop.f32.mrb[19].mxu1  ;;  %v3089_v61 = vsel %vm3037_vm2, %v15468_v37, -inf }
 0x58a   : > { %v2963_v15 = vmul.f32 0.17677669, %v2276_v9  ;;  %v3086_v9 = vsel %vm3037_vm2, %v15473_v47, -inf }
 0x58b   : > { %v15462_v19 = vadd.f32 %v15403_v16, %v2964_v62 }
 0x58c   : > { %v15465_v26 = vadd.f32 %v15403_v16, %v2963_v15  ;;  %v3168_v15 = vmul.f32 1.442695, %v3135_v40 }
 0x58d   : > { %v3083_v54 = vsel %vm3037_vm2, %v15462_v19, -inf }
 0x58e   : > { %3084 = vmax.xlane.f32.xlu0 %v3083_v54  ;;  %v3080_v59 = vsel %vm3037_vm2, %v15465_v26, -inf  ;;  %v3049_v54 = vpop.xlane.xlu0 %3048  ;;  %13629 = vpow2.f32 %v3168_v15 }
 0x58f   : > { %3081 = vmax.xlane.f32.xlu1 %v3080_v59  ;;  %13631 = vpow2.f32 %v3166_v52  ;;  %v3137_v15 = vsub.f32 %v15380_v11, %v3049_v54 }
 0x590   : > { %v12111_v48 = vpop.f32.mrb[20].mxu1 }
 0x591   : > { %v2968_v58 = vmul.f32 0.17677669, %v12111_v48  ;;  %v2442_v30 = vpop.f32.mrb[21].mxu1  ;;  %v3172_v11 = vmul.f32 1.442695, %v3137_v15 }
 0x592   : > { %v2967_v62 = vmul.f32 0.17677669, %v2442_v30  ;;  %3090 = vmax.xlane.f32.xlu0 %v3089_v61 }
 0x593   : > { %v15484_v13 = vadd.f32 %v15377_v36, %v2968_v58  ;;  %3087 = vmax.xlane.f32.xlu1 %v3086_v9  ;;  %13633 = vpow2.f32 %v3172_v11 }
 0x594   : > { %v15487_v20 = vadd.f32 %v15377_v36, %v2967_v62  ;;  %v12118_v18 = vpop.f32.mrb[22].mxu0 }
 0x595   : > { %v2970_v14 = vmul.f32 0.17677669, %v12118_v18  ;;  %v2525_v59 = vpop.f32.mrb[23].mxu0  ;;  %v3095_v48 = vsel %vm3037_vm2, %v15484_v13, -inf }
 0x596   : > { %v2969_v30 = vmul.f32 0.17677669, %v2525_v59  ;;  %3096 = vmax.xlane.f32.xlu0 %v3095_v48  ;;  %v3092_v61 = vsel %vm3037_vm2, %v15487_v20, -inf  ;;  %v3046_v59 = vpop.xlane.xlu0 %3045 }
 0x597   : > { %v15494_v58 = vadd.f32 %v15390_v28, %v2970_v14  ;;  %3093 = vmax.xlane.f32.xlu1 %v3092_v61  ;;  %v3136_v61 = vsub.f32 %v15385_v23, %v3046_v59 }
 0x598   : > { %v15497_v40 = vadd.f32 %v15390_v28, %v2969_v30  ;;  %v12125_v62 = vpop.f32.mrb[22].mxu1 }
 0x599   : > { %v2972_v24 = vmul.f32 0.17677669, %v12125_v62  ;;  %v2608_v9 = vpop.f32.mrb[23].mxu1  ;;  %v3101_v18 = vsel %vm3037_vm2, %v15494_v58, -inf  ;;  %v3170_v23 = vmul.f32 1.442695, %v3136_v61 }
 0x59a   : > { %v2971_v48 = vmul.f32 0.17677669, %v2608_v9  ;;  %3102 = vmax.xlane.f32.xlu0 %v3101_v18  ;;  %v3098_v25 = vsel %vm3037_vm2, %v15497_v40, -inf }
 0x59b   : > { %v15504_v14 = vadd.f32 %v15403_v16, %v2972_v24  ;;  %3099 = vmax.xlane.f32.xlu1 %v3098_v25  ;;  %13635 = vpow2.f32 %v3170_v23 }
 0x59c   : > { %v15508_v30 = vadd.f32 %v15403_v16, %v2971_v48  ;;  %v12132_v52 = vpop.f32.mrb[24].mxu0 }
 0x59d   : > { %v2974_v62 = vmul.f32 0.17677669, %v12132_v52  ;;  %v2691_v1 = vpop.f32.mrb[25].mxu0  ;;  %v3107_v9 = vsel %vm3037_vm2, %v15504_v14, -inf }
 0x59e   : > { %v2973_v18 = vmul.f32 0.17677669, %v2691_v1  ;;  %3108 = vmax.xlane.f32.xlu0 %v3107_v9  ;;  %v3104_v24 = vsel %vm3037_vm2, %v15508_v30, -inf  ;;  %v15523_v1 = vpop.eup %13629 }
 0x59f   : > { %v15516_v25 = vadd.f32 %v15353_v2, %v2974_v62  ;;  %3105 = vmax.xlane.f32.xlu1 %v3104_v24  ;;  %v15527_v6 = vpop.eup %13631  ;;  %v3233_v15 = vsel %vm3037_vm2, %v15523_v1, 0.0 }
 0x5a0   : > { %v15519_v54 = vadd.f32 %v15353_v2, %v2973_v18  ;;  %v12139_v48 = vpop.f32.mrb[24].mxu1 }
 0x5a1   : > { %v2976_v59 = vmul.f32 0.17677669, %v12139_v48  ;;  %v2774_v52 = vpop.f32.mrb[25].mxu1  ;;  %v3113_v21 = vsel %vm3037_vm2, %v15516_v25, -inf }
 0x5a2   : > { %v2975_v9 = vmul.f32 0.17677669, %v2774_v52  ;;  %3114 = vmax.xlane.f32.xlu0 %v3113_v21  ;;  %v3110_v62 = vsel %vm3037_vm2, %v15519_v54, -inf  ;;  %v3230_v21 = vsel %vm3037_vm2, %v15527_v6, 0.0 }
 0x5a3   : > { %3111 = vmax.xlane.f32.xlu1 %v3110_v62  ;;  %v15530_v2 = vadd.f32 %v15377_v36, %v2976_v59  ;;  %v15551_v62 = vpop.eup %13633 }
 0x5a4   : > { %v15535_v61 = vadd.f32 %v15377_v36, %v2975_v9 }
 0x5a5   : > { %v3119_v11 = vsel %vm3037_vm2, %v15530_v2, -inf }
 0x5a6   : > { %3234 = vadd.xlane.f32.xlu0 %v3233_v15  ;;  %v3116_v59 = vsel %vm3037_vm2, %v15535_v61, -inf }
 0x5a7   : > { %3231 = vadd.xlane.f32.xlu1 %v3230_v21  ;;  %v15555_v21 = vpop.eup %13635 }
 0x5a8   : > { %v12146_v18 = vpop.f32.mrb[26].mxu0 }
 0x5a9   : > { %v2978_v24 = vmul.f32 0.17677669, %v12146_v18  ;;  %v2857_v48 = vpop.f32.mrb[27].mxu0 }
 0x5aa   : > { %v2977_v23 = vmul.f32 0.17677669, %v2857_v48  ;;  %3120 = vmax.xlane.f32.xlu0 %v3119_v11  ;;  %v3239_v11 = vsel %vm3037_vm2, %v15551_v62, 0.0 }
 0x5ab   : > { %v15544_v52 = vadd.f32 %v15390_v28, %v2978_v24  ;;  %3117 = vmax.xlane.f32.xlu1 %v3116_v59 }
 0x5ac   : > { %v15547_v36 = vadd.f32 %v15390_v28, %v2977_v23  ;;  %v3236_v23 = vsel %vm3037_vm2, %v15555_v21, 0.0 }
 0x5ad   : > { %v3125_v9 = vsel %vm3037_vm2, %v15544_v52, -inf }
 0x5ae   : > { %3126 = vmax.xlane.f32.xlu0 %v3125_v9  ;;  %v3122_v15 = vsel %vm3037_vm2, %v15547_v36, -inf }
 0x5af   : > { %3123 = vmax.xlane.f32.xlu1 %v3122_v15 }
 0x5b0   : > { %v12153_v18 = vpop.f32.mrb[26].mxu1 }
 0x5b1   : > { %v2980_v48 = vmul.f32 0.17677669, %v12153_v18  ;;  %v2940_v24 = vpop.f32.mrb[27].mxu1 }
 0x5b2   : > { %v2979_v28 = vmul.f32 0.17677669, %v2940_v24  ;;  %3240 = vadd.xlane.f32.xlu0 %v3239_v11  ;;  %v3052_v24 = vpop.xlane.xlu1 %3051 }
 0x5b3   : > { %v15562_v59 = vadd.f32 %v15403_v16, %v2980_v48  ;;  %3237 = vadd.xlane.f32.xlu1 %v3236_v23  ;;  %v3055_v48 = vpop.xlane.xlu0 %3054 }
 0x5b4   : > { %v15565_v9 = vadd.f32 %v15403_v16, %v2979_v28  ;;  %v3139_v11 = vsub.f32 %v15393_v41, %v3055_v48  ;;  %v3138_v16 = vsub.f32 %v15396_v43, %v3052_v24 }
 0x5b5   : > { %v3131_v15 = vsel %vm3037_vm2, %v15562_v59, -inf }
 0x5b6   : > { %3132 = vmax.xlane.f32.xlu0 %v3131_v15  ;;  %v3128_v18 = vsel %vm3037_vm2, %v15565_v9, -inf  ;;  %v3058_v23 = vpop.xlane.xlu1 %3057  ;;  %v3176_v51 = vmul.f32 1.442695, %v3139_v11  ;;  %v3174_v7 = vmul.f32 1.442695, %v3138_v16 }
 0x5b7   : > { %3129 = vmax.xlane.f32.xlu1 %v3128_v18  ;;  %v3061_v28 = vpop.xlane.xlu0 %3060  ;;  %v3140_v18 = vsub.f32 %v15409_v57, %v3058_v23 }
 0x5b8   : > { %v3141_v15 = vsub.f32 %v15406_v42, %v3061_v28  ;;  %13637 = vpow2.f32 %v3176_v51 }
 0x5b9   : > { %13639 = vpow2.f32 %v3174_v7  ;;  %v3178_v31 = vmul.f32 1.442695, %v3140_v18 }
 0x5ba   : > { %v3180_v53 = vmul.f32 1.442695, %v3141_v15 }
 0x5bc   : > { %13641 = vpow2.f32 %v3180_v53 }
 0x5bd   : > { %13643 = vpow2.f32 %v3178_v31 }
 0x5c2   : > { %v15581_v42 = vpop.eup %13637 }
 0x5c3   : > { %v15583_v24 = vpop.eup %13639  ;;  %v3245_v51 = vsel %vm3037_vm2, %v15581_v42, 0.0 }
 0x5c6   : > { %v15587_v7 = vpop.eup %13641 }
 0x5c7   : > { %v15591_v53 = vpop.eup %13643  ;;  %v3251_v16 = vsel %vm3037_vm2, %v15587_v7, 0.0 }
 0x5c8   : > { %13191 = vrot.lane.b32.xlu1 %v15171_v45, %s14493_s16  ;;  %v3248_v15 = vsel %vm3037_vm2, %v15591_v53, 0.0 }
 0x5cc   : > { %13186 = vrot.lane.b32.xlu0 %v15177_v50, %s14493_s16 }
 0x5dd   : > { %v3067_v45 = vpop.xlane.xlu0 %3066 }
 0x5de   : > { %v3143_v50 = vsub.f32 %v15416_v0, %v3067_v45  ;;  %v3064_v17 = vpop.xlane.xlu1 %3063 }
 0x5df   : > { %v3142_v41 = vsub.f32 %v15419_v8, %v3064_v17  ;;  %v3242_v17 = vsel %vm3037_vm2, %v15583_v24, 0.0 }
 0x5e0   : > { %v3184_v43 = vmul.f32 1.442695, %v3143_v50 }
 0x5e1   : > { %v3182_v48 = vmul.f32 1.442695, %v3142_v41 }
 0x5e2   : > { %13645 = vpow2.f32 %v3184_v43 }
 0x5e3   : > { %13647 = vpow2.f32 %v3182_v48 }
 0x5eb   : > { %v3073_v57 = vpop.xlane.xlu0 %3072  ;;  %3246 = vadd.xlane.f32.xlu0 %v3245_v51 }
 0x5ec   : > { %v3145_v31 = vsub.f32 %v15426_v27, %v3073_v57  ;;  %v3070_v0 = vpop.xlane.xlu1 %3069  ;;  %3243 = vadd.xlane.f32.xlu1 %v3242_v17  ;;  %v15597_v28 = vpop.eup %13645 }
 0x5ed   : > { %v3144_v8 = vsub.f32 %v15429_v29, %v3070_v0  ;;  %v15601_v18 = vpop.eup %13647  ;;  %v3257_v27 = vsel %vm3037_vm2, %v15597_v28, 0.0 }
 0x5ee   : > { %v3188_v11 = vmul.f32 1.442695, %v3145_v31  ;;  %v3254_v29 = vsel %vm3037_vm2, %v15601_v18, 0.0 }
 0x5ef   : > { %v3186_v23 = vmul.f32 1.442695, %v3144_v8  ;;  %3252 = vadd.xlane.f32.xlu0 %v3251_v16 }
 0x5f0   : > { %13649 = vpow2.f32 %v3188_v11  ;;  %3249 = vadd.xlane.f32.xlu1 %v3248_v15 }
 0x5f1   : > { %13651 = vpow2.f32 %v3186_v23 }
 0x5f3   : > { %3258 = vadd.xlane.f32.xlu0 %v3257_v27 }
 0x5f4   : > { %3255 = vadd.xlane.f32.xlu1 %v3254_v29 }
 0x5fa   : > { %v15607_v45 = vpop.eup %13649 }
 0x5fb   : > { %v15609_v50 = vpop.eup %13651  ;;  %v3263_v41 = vsel %vm3037_vm2, %v15607_v45, 0.0 }
 0x5fc   : > { %3264 = vadd.xlane.f32.xlu0 %v3263_v41  ;;  %v3260_v43 = vsel %vm3037_vm2, %v15609_v50, 0.0 }
 0x5fd   : > { %3261 = vadd.xlane.f32.xlu1 %v3260_v43 }
 0x604   : > { %v3079_v48 = vpop.xlane.xlu0 %3078 }
 0x605   : > { %v3147_v51 = vsub.f32 %v15438_v38, %v3079_v48  ;;  %v3076_v57 = vpop.xlane.xlu1 %3075 }
 0x606   : > { %v3146_v17 = vsub.f32 %v15441_v10, %v3076_v57 }
 0x607   : > { %v3192_v31 = vmul.f32 1.442695, %v3147_v51 }
 0x608   : > { %v3190_v0 = vmul.f32 1.442695, %v3146_v17 }
 0x609   : > { %13653 = vpow2.f32 %v3192_v31 }
 0x60a   : > { %13655 = vpow2.f32 %v3190_v0 }
 0x613   : > { %v15617_v8 = vpop.eup %13653 }
 0x614   : > { %v15619_v11 = vpop.eup %13655  ;;  %v3269_v16 = vsel %vm3037_vm2, %v15617_v8, 0.0 }
 0x615   : > { %3270 = vadd.xlane.f32.xlu0 %v3269_v16  ;;  %v3266_v23 = vsel %vm3037_vm2, %v15619_v11, 0.0 }
 0x616   : > { %3267 = vadd.xlane.f32.xlu1 %v3266_v23 }
 0x61b   : > { %v3085_v38 = vpop.xlane.xlu0 %3084 }
 0x61c   : > { %v3149_v15 = vsub.f32 %v15462_v19, %v3085_v38  ;;  %v3082_v10 = vpop.xlane.xlu1 %3081 }
 0x61d   : > { %v3148_v27 = vsub.f32 %v15465_v26, %v3082_v10 }
 0x61e   : > { %v3196_v29 = vmul.f32 1.442695, %v3149_v15 }
 0x61f   : > { %v3194_v41 = vmul.f32 1.442695, %v3148_v27  ;;  %v3091_v43 = vpop.xlane.xlu0 %3090 }
 0x620   : > { %13657 = vpow2.f32 %v3196_v29  ;;  %v3151_v48 = vsub.f32 %v15468_v37, %v3091_v43  ;;  %v3088_v51 = vpop.xlane.xlu1 %3087 }
 0x621   : > { %13659 = vpow2.f32 %v3194_v41  ;;  %v3150_v57 = vsub.f32 %v15473_v47, %v3088_v51 }
 0x622   : > { %v3200_v17 = vmul.f32 1.442695, %v3151_v48 }
 0x623   : > { %v3198_v31 = vmul.f32 1.442695, %v3150_v57  ;;  %v3097_v0 = vpop.xlane.xlu0 %3096 }
 0x624   : > { %13661 = vpow2.f32 %v3200_v17  ;;  %v3153_v16 = vsub.f32 %v15484_v13, %v3097_v0  ;;  %v3094_v19 = vpop.xlane.xlu1 %3093 }
 0x625   : > { %13663 = vpow2.f32 %v3198_v31  ;;  %v3152_v26 = vsub.f32 %v15487_v20, %v3094_v19 }
 0x626   : > { %v3204_v23 = vmul.f32 1.442695, %v3153_v16 }
 0x627   : > { %v3202_v38 = vmul.f32 1.442695, %v3152_v26  ;;  %v3103_v15 = vpop.xlane.xlu0 %3102 }
 0x628   : > { %13665 = vpow2.f32 %v3204_v23  ;;  %v3155_v37 = vsub.f32 %v15494_v58, %v3103_v15  ;;  %v3100_v10 = vpop.xlane.xlu1 %3099 }
 0x629   : > { %13667 = vpow2.f32 %v3202_v38  ;;  %v3154_v47 = vsub.f32 %v15497_v40, %v3100_v10 }
 0x62a   : > { %v15633_v27 = vpop.eup %13657  ;;  %v3208_v29 = vmul.f32 1.442695, %v3155_v37 }
 0x62b   : > { %v15635_v41 = vpop.eup %13659  ;;  %v3206_v13 = vmul.f32 1.442695, %v3154_v47  ;;  %v3109_v43 = vpop.xlane.xlu0 %3108  ;;  %v3275_v20 = vsel %vm3037_vm2, %v15633_v27, 0.0 }
 0x62c   : > { %13669 = vpow2.f32 %v3208_v29  ;;  %v3157_v48 = vsub.f32 %v15504_v14, %v3109_v43  ;;  %v3106_v51 = vpop.xlane.xlu1 %3105  ;;  %3276 = vadd.xlane.f32.xlu0 %v3275_v20  ;;  %v3272_v58 = vsel %vm3037_vm2, %v15635_v41, 0.0 }
 0x62d   : > { %13671 = vpow2.f32 %v3206_v13  ;;  %v3156_v40 = vsub.f32 %v15508_v30, %v3106_v51  ;;  %3273 = vadd.xlane.f32.xlu1 %v3272_v58 }
 0x62e   : > { %v15643_v57 = vpop.eup %13661  ;;  %v3212_v17 = vmul.f32 1.442695, %v3157_v48 }
 0x62f   : > { %v15645_v31 = vpop.eup %13663  ;;  %v3210_v0 = vmul.f32 1.442695, %v3156_v40  ;;  %v3115_v16 = vpop.xlane.xlu0 %3114  ;;  %v3281_v19 = vsel %vm3037_vm2, %v15643_v57, 0.0 }
 0x630   : > { %13673 = vpow2.f32 %v3212_v17  ;;  %v3159_v14 = vsub.f32 %v15516_v25, %v3115_v16  ;;  %v3112_v26 = vpop.xlane.xlu1 %3111  ;;  %3282 = vadd.xlane.f32.xlu0 %v3281_v19  ;;  %v3278_v23 = vsel %vm3037_vm2, %v15645_v31, 0.0 }
 0x631   : > { %13675 = vpow2.f32 %v3210_v0  ;;  %v3158_v30 = vsub.f32 %v15519_v54, %v3112_v26  ;;  %3279 = vadd.xlane.f32.xlu1 %v3278_v23 }
 0x632   : > { %v15653_v38 = vpop.eup %13665  ;;  %v3216_v15 = vmul.f32 1.442695, %v3159_v14 }
 0x633   : > { %v15655_v37 = vpop.eup %13667  ;;  %v3214_v10 = vmul.f32 1.442695, %v3158_v30  ;;  %v3235_v47 = vpop.xlane.xlu0 %3234  ;;  %v3287_v29 = vsel %vm3037_vm2, %v15653_v38, 0.0 }
 0x634   : > { %13677 = vpow2.f32 %v3216_v15  ;;  %v3232_v25 = vpop.xlane.xlu1 %3231  ;;  %3288 = vadd.xlane.f32.xlu0 %v3287_v29  ;;  %v3284_v13 = vsel %vm3037_vm2, %v15655_v37, 0.0 }
 0x635   : > { %13679 = vpow2.f32 %v3214_v10  ;;  %3285 = vadd.xlane.f32.xlu1 %v3284_v13 }
 0x636   : > { %v15661_v54 = vpop.eup %13669  ;;  %13681 = vrcp.f32 %v3235_v47 }
 0x637   : > { %v15663_v43 = vpop.eup %13671  ;;  %13683 = vrcp.f32 %v3232_v25  ;;  %v3121_v20 = vpop.xlane.xlu0 %3120  ;;  %v3293_v48 = vsel %vm3037_vm2, %v15661_v54, 0.0 }
 0x638   : > { %v3161_v51 = vsub.f32 %v15530_v2, %v3121_v20  ;;  %v3118_v58 = vpop.xlane.xlu1 %3117  ;;  %3294 = vadd.xlane.f32.xlu0 %v3293_v48  ;;  %v3290_v40 = vsel %vm3037_vm2, %v15663_v43, 0.0 }
 0x639   : > { %v3160_v17 = vsub.f32 %v15535_v61, %v3118_v58  ;;  %3291 = vadd.xlane.f32.xlu1 %v3290_v40  ;;  %v13149_v58 = vunpack.i.h.bf16 %v15435_v3  ;;  %v13148_v40 = vunpack.i.l.bf16 %v15435_v3 }
 0x63a   : > { %v15671_v0 = vpop.eup %13673  ;;  %v3220_v16 = vmul.f32 1.442695, %v3161_v51 }
 0x63b   : > { %v15673_v19 = vpop.eup %13675  ;;  %v3218_v14 = vmul.f32 1.442695, %v3160_v17  ;;  %v3127_v26 = vpop.xlane.xlu0 %3126  ;;  %v3299_v23 = vsel %vm3037_vm2, %v15671_v0, 0.0 }
 0x63c   : > { %13685 = vpow2.f32 %v3220_v16  ;;  %v3163_v2 = vsub.f32 %v15544_v52, %v3127_v26  ;;  %v3124_v30 = vpop.xlane.xlu1 %3123  ;;  %3300 = vadd.xlane.f32.xlu0 %v3299_v23  ;;  %v3296_v15 = vsel %vm3037_vm2, %v15673_v19, 0.0 }
 0x63d   : > { %v3162_v61 = vsub.f32 %v15547_v36, %v3124_v30  ;;  %3297 = vadd.xlane.f32.xlu1 %v3296_v15  ;;  %13687 = vpow2.f32 %v3218_v14 }
 0x63e   : > { %v15681_v10 = vpop.eup %13677  ;;  %v3224_v47 = vmul.f32 1.442695, %v3163_v2  ;;  %v15696_v2 = vpack.c.bf16 %v13149_v58, %v13148_v40 }
 0x63f   : > { %v15683_v29 = vpop.eup %13679  ;;  %v3222_v25 = vmul.f32 1.442695, %v3162_v61  ;;  %v3241_v13 = vpop.xlane.xlu0 %3240  ;;  %v3305_v20 = vsel %vm3037_vm2, %v15681_v10, 0.0 }
 0x640   : > { %v13682_v52 = vpop.eup %13681  ;;  %13689 = vpow2.f32 %v3224_v47  ;;  %v3238_v48 = vpop.xlane.xlu1 %3237  ;;  %3306 = vadd.xlane.f32.xlu0 %v3305_v20  ;;  %v3302_v51 = vsel %vm3037_vm2, %v15683_v29, 0.0  ;;  %v13154_v20 = vunpack.i.h.bf16 %v15451_v55 }
 0x641   : > { %v13684_v36 = vpop.eup %13683  ;;  %13691 = vpow2.f32 %v3222_v25  ;;  %3303 = vadd.xlane.f32.xlu1 %v3302_v51  ;;  %v3359_v16 = vmul.f32 %v13682_v52, %v15523_v1  ;;  %v13153_v52 = vunpack.i.l.bf16 %v15451_v55 }
 0x642   : > { %13693 = vrcp.f32 %v3241_v13  ;;  %v3358_v17 = vmul.f32 %v13684_v36, %v15527_v6 }
 0x643   : > { %13695 = vrcp.f32 %v3238_v48  ;;  %v3133_v14 = vpop.xlane.xlu0 %3132  ;;  %v12702_v58 = vpack.c.bf16 %v13154_v20, %v13153_v52  ;;  %v13164_v20 = vunpack.i.h.bf16 %v15449_v49  ;;  %v13163_v52 = vunpack.i.l.bf16 %v15449_v49 }
 0x644   : > { %12158 = vmatprep.mubr.msk.f32.mxu0 %vm3037_vm2, %v3358_v17  ;;  %v3165_v26 = vsub.f32 %v15562_v59, %v3133_v14  ;;  %v3130_v23 = vpop.xlane.xlu1 %3129  ;;  %v13169_v49 = vunpack.i.h.bf16 %v15455_v32 }
 0x645   : > { %12159 = vmatmul.mubr.msk.f32.vlgmr.msra.gmra.mrb[28].mxu0 %vm3037_vm2, %v3359_v16  ;;  %v3164_v3 = vsub.f32 %v15565_v9, %v3130_v23 }
 0x646   : > { %v15699_v30 = vpop.eup %13685  ;;  %12693 = vmatpush3.bf16.msra.mxu0 %v15226_v5  ;;  %v3228_v6 = vmul.f32 1.442695, %v3165_v26 }
 0x647   : > { %12699 = vmatprep.subr.bf16.mxu0 %v15696_v2  ;;  %v3226_v1 = vmul.f32 1.442695, %v3164_v3  ;;  %v3311_v15 = vsel %vm3037_vm2, %v15699_v30, 0.0  ;;  %v15705_v59 = vpop.eup %13687 }
 0x648   : > { %13697 = vpow2.f32 %v3228_v6  ;;  %3312 = vadd.xlane.f32.xlu0 %v3311_v15  ;;  %v3308_v36 = vsel %vm3037_vm2, %v15705_v59, 0.0  ;;  %v13158_v15 = vunpack.i.l.bf16 %v15445_v44 }
 0x649   : > { %13699 = vpow2.f32 %v3226_v1 }
 0x64a   : > { %v15707_v61 = vpop.eup %13689 }
 0x64b   : > { %v15709_v47 = vpop.eup %13691  ;;  %v3317_v9 = vsel %vm3037_vm2, %v15707_v61, 0.0 }
 0x64c   : > { %v13694_v5 = vpop.eup %13693  ;;  %3318 = vadd.xlane.f32.xlu1 %v3317_v9  ;;  %v3314_v25 = vsel %vm3037_vm2, %v15709_v47, 0.0 }
 0x64d   : > { %v13696_v13 = vpop.eup %13695  ;;  %3315 = vadd.xlane.f32.xlu0 %v3314_v25  ;;  %v3361_v51 = vmul.f32 %v13694_v5, %v15551_v62 }
 0x64e   : > { %v3360_v48 = vmul.f32 %v13696_v13, %v15555_v21  ;;  %v15736_v21 = vpop.permute.xlu0 %13186 }
 0x650   : > { %12165 = vmatprep.mubr.msk.f32.mxu1 %vm3037_vm2, %v3360_v48  ;;  %3309 = vadd.xlane.f32.xlu1 %v3308_v36 }
 0x651   : > { %12166 = vmatmul.mubr.msk.f32.vlgmr.msra.gmra.mrb[28].mxu1 %vm3037_vm2, %v3361_v51 }
 0x652   : > { %v15723_v40 = vpop.eup %13697  ;;  %12697 = vmatpush3.bf16.msra.mxu1 %v15221_v35  ;;  %v15738_v35 = vpop.permute.xlu1 %13191 }
 0x653   : > { %v15726_v17 = vpop.eup %13699  ;;  %12703 = vmatprep.subr.bf16.mxu1 %v12702_v58  ;;  %v3323_v55 = vsel %vm3037_vm2, %v15723_v40, 0.0 }
 0x654   : > { %3324 = vadd.xlane.f32.xlu1 %v3323_v55  ;;  %v3320_v62 = vsel %vm3037_vm2, %v15726_v17, 0.0 }
 0x655   : > { %3321 = vadd.xlane.f32.xlu0 %v3320_v62  ;;  %v13168_v62 = vunpack.i.l.bf16 %v15455_v32  ;;  %v13174_v32 = vunpack.i.h.bf16 %v15453_v56 }
 0x665   : > { %13201 = vrot.lane.b32.xlu1 %v15219_v33, %s14493_s16 }
 0x66b   : > { %13196 = vrot.lane.b32.xlu0 %v15224_v39, %s14493_s16  ;;  %v13159_v39 = vunpack.i.h.bf16 %v15445_v44 }
 0x66d   : > { %v12706_v48 = vpack.c.bf16 %v13159_v39, %v13158_v15  ;;  %v13179_v39 = vunpack.i.h.bf16 %v15459_v12 }
 0x678   : > { %v3247_v16 = vpop.xlane.xlu0 %3246 }
 0x679   : > { %13701 = vrcp.f32 %v3247_v16  ;;  %v3244_v14 = vpop.xlane.xlu1 %3243 }
 0x67a   : > { %13703 = vrcp.f32 %v3244_v14 }
 0x67c   : > { %v3253_v26 = vpop.xlane.xlu0 %3252 }
 0x67d   : > { %13705 = vrcp.f32 %v3253_v26  ;;  %v3250_v23 = vpop.xlane.xlu1 %3249 }
 0x67e   : > { %13707 = vrcp.f32 %v3250_v23  ;;  %v13173_v23 = vunpack.i.l.bf16 %v15453_v56  ;;  %v13178_v56 = vunpack.i.l.bf16 %v15459_v12 }
 0x680   : > { %v3259_v3 = vpop.xlane.xlu0 %3258  ;;  %v12722_v15 = vpack.c.bf16 %v13179_v39, %v13178_v56 }
 0x681   : > { %13709 = vrcp.f32 %v3259_v3  ;;  %v3256_v6 = vpop.xlane.xlu1 %3255 }
 0x682   : > { %13711 = vrcp.f32 %v3256_v6 }
 0x683   : > { %v13702_v33 = vpop.eup %13701 }
 0x684   : > { %v13704_v1 = vpop.eup %13703  ;;  %v3363_v5 = vmul.f32 %v13702_v33, %v15581_v42 }
 0x685   : > { %v3362_v9 = vmul.f32 %v13704_v1, %v15583_v24 }
 0x687   : > { %v13706_v25 = vpop.eup %13705  ;;  %12172 = vmatprep.mubr.msk.f32.mxu0 %vm3037_vm2, %v3362_v9 }
 0x688   : > { %v13708_v13 = vpop.eup %13707  ;;  %12173 = vmatmul.mubr.msk.f32.vlgmr.msra.gmra.mrb[30].mxu0 %vm3037_vm2, %v3363_v5  ;;  %v3365_v42 = vmul.f32 %v13706_v25, %v15587_v7  ;;  %v12714_v7 = vpack.c.bf16 %v13169_v49, %v13168_v62  ;;  %v13189_v49 = vunpack.i.h.bf16 %v15736_v21  ;;  %v13188_v62 = vunpack.i.l.bf16 %v15736_v21 }
 0x689   : > { %12701 = vmatpush3.bf16.msra.mxu0 %v15696_v2  ;;  %v3265_v51 = vpop.xlane.xlu0 %3264  ;;  %v3364_v44 = vmul.f32 %v13708_v13, %v15591_v53  ;;  %v12710_v2 = vpack.c.bf16 %v13164_v20, %v13163_v52  ;;  %v13184_v52 = vunpack.i.h.bf16 %v15457_v60  ;;  %v13193_v21 = vunpack.i.l.bf16 %v15738_v35 }
 0x68a   : > { %13713 = vrcp.f32 %v3265_v51  ;;  %12707 = vmatprep.subr.bf16.mxu0 %v12706_v48  ;;  %v3262_v24 = vpop.xlane.xlu1 %3261 }
 0x68b   : > { %v13710_v36 = vpop.eup %13709  ;;  %13715 = vrcp.f32 %v3262_v24  ;;  %12179 = vmatprep.mubr.msk.f32.mxu1 %vm3037_vm2, %v3364_v44 }
 0x68c   : > { %v13712_v55 = vpop.eup %13711  ;;  %12180 = vmatmul.mubr.msk.f32.vlgmr.msra.gmra.mrb[30].mxu1 %vm3037_vm2, %v3365_v42  ;;  %v3367_v16 = vmul.f32 %v13710_v36, %v15597_v28  ;;  %v12718_v28 = vpack.c.bf16 %v13174_v32, %v13173_v23  ;;  %v12730_v32 = vpack.c.bf16 %v13189_v49, %v13188_v62 }
 0x68d   : > { %12705 = vmatpush3.bf16.msra.mxu1 %v12702_v58  ;;  %v3366_v53 = vmul.f32 %v13712_v55, %v15601_v18 }
 0x68e   : > { %12711 = vmatprep.subr.bf16.mxu1 %v12710_v2 }
 0x68f   : > { %12186 = vmatprep.mubr.msk.f32.mxu0 %vm3037_vm2, %v3366_v53 }
 0x690   : > { %12187 = vmatmul.mubr.msk.f32.vlgmr.msra.gmra.mrb[32].mxu0 %vm3037_vm2, %v3367_v16 }
 0x691   : > { %12709 = vmatpush3.bf16.msra.mxu0 %v12706_v48  ;;  %v13183_v48 = vunpack.i.l.bf16 %v15457_v60 }
 0x692   : > { %12715 = vmatprep.subr.bf16.mxu0 %v12714_v7 }
 0x693   : > { %v12726_v60 = vpack.c.bf16 %v13184_v52, %v13183_v48 }
 0x694   : > { %v13714_v14 = vpop.eup %13713 }
 0x695   : > { %v13716_v26 = vpop.eup %13715  ;;  %v3369_v18 = vmul.f32 %v13714_v14, %v15607_v45  ;;  %v13194_v14 = vunpack.i.h.bf16 %v15738_v35 }
 0x696   : > { %v3368_v58 = vmul.f32 %v13716_v26, %v15609_v50 }
 0x697   : > { %v12734_v35 = vpack.c.bf16 %v13194_v14, %v13193_v21 }
 0x698   : > { %12193 = vmatprep.mubr.msk.f32.mxu1 %vm3037_vm2, %v3368_v58 }
 0x699   : > { %12194 = vmatmul.mubr.msk.f32.vlgmr.msra.gmra.mrb[32].mxu1 %vm3037_vm2, %v3369_v18 }
 0x69a   : > { %12713 = vmatpush3.bf16.msra.mxu1 %v12710_v2 }
 0x69b   : > { %12719 = vmatprep.subr.bf16.mxu1 %v12718_v28 }
 0x6a2   : > { %v3271_v3 = vpop.xlane.xlu0 %3270 }
 0x6a3   : > { %13717 = vrcp.f32 %v3271_v3  ;;  %v3268_v6 = vpop.xlane.xlu1 %3267 }
 0x6a4   : > { %13719 = vrcp.f32 %v3268_v6 }
 0x6ad   : > { %v13718_v33 = vpop.eup %13717 }
 0x6ae   : > { %v13720_v1 = vpop.eup %13719  ;;  %v3371_v45 = vmul.f32 %v13718_v33, %v15617_v8 }
 0x6af   : > { %v3370_v50 = vmul.f32 %v13720_v1, %v15619_v11 }
 0x6b1   : > { %12200 = vmatprep.mubr.msk.f32.mxu0 %vm3037_vm2, %v3370_v50 }
 0x6b2   : > { %12201 = vmatmul.mubr.msk.f32.vlgmr.msra.gmra.mrb[34].mxu0 %vm3037_vm2, %v3371_v45 }
 0x6b3   : > { %12717 = vmatpush3.bf16.msra.mxu0 %v12714_v7 }
 0x6b4   : > { %12723 = vmatprep.subr.bf16.mxu0 %v12722_v15 }
 0x6b9   : > { %v3277_v9 = vpop.xlane.xlu0 %3276 }
 0x6ba   : > { %13721 = vrcp.f32 %v3277_v9  ;;  %v3274_v5 = vpop.xlane.xlu1 %3273 }
 0x6bb   : > { %13723 = vrcp.f32 %v3274_v5 }
 0x6bd   : > { %v3283_v25 = vpop.xlane.xlu0 %3282 }
 0x6be   : > { %13725 = vrcp.f32 %v3283_v25  ;;  %v3280_v13 = vpop.xlane.xlu1 %3279 }
 0x6bf   : > { %13727 = vrcp.f32 %v3280_v13 }
 0x6c1   : > { %v3289_v12 = vpop.xlane.xlu0 %3288 }
 0x6c2   : > { %13729 = vrcp.f32 %v3289_v12  ;;  %v3286_v11 = vpop.xlane.xlu1 %3285 }
 0x6c3   : > { %13731 = vrcp.f32 %v3286_v11 }
 0x6c4   : > { %v13722_v8 = vpop.eup %13721 }
 0x6c5   : > { %v13724_v20 = vpop.eup %13723  ;;  %v3295_v51 = vpop.xlane.xlu0 %3294  ;;  %v3373_v42 = vmul.f32 %v13722_v8, %v15633_v27 }
 0x6c6   : > { %13733 = vrcp.f32 %v3295_v51  ;;  %v3292_v44 = vpop.xlane.xlu1 %3291  ;;  %v3372_v24 = vmul.f32 %v13724_v20, %v15635_v41 }
 0x6c7   : > { %13735 = vrcp.f32 %v3292_v44 }
 0x6c8   : > { %v13726_v36 = vpop.eup %13725  ;;  %12207 = vmatprep.mubr.msk.f32.mxu1 %vm3037_vm2, %v3372_v24 }
 0x6c9   : > { %v13728_v55 = vpop.eup %13727  ;;  %v3301_v2 = vpop.xlane.xlu0 %3300  ;;  %12208 = vmatmul.mubr.msk.f32.vlgmr.msra.gmra.mrb[34].mxu1 %vm3037_vm2, %v3373_v42  ;;  %v3375_v27 = vmul.f32 %v13726_v36, %v15643_v57 }
 0x6ca   : > { %13737 = vrcp.f32 %v3301_v2  ;;  %12721 = vmatpush3.bf16.msra.mxu1 %v12718_v28  ;;  %v3298_v53 = vpop.xlane.xlu1 %3297  ;;  %v3374_v41 = vmul.f32 %v13728_v55, %v15645_v31 }
 0x6cb   : > { %12727 = vmatprep.subr.bf16.mxu1 %v12726_v60  ;;  %13739 = vrcp.f32 %v3298_v53 }
 0x6cc   : > { %v13730_v16 = vpop.eup %13729  ;;  %12214 = vmatprep.mubr.msk.f32.mxu0 %vm3037_vm2, %v3374_v41 }
 0x6cd   : > { %v13732_v7 = vpop.eup %13731  ;;  %v3307_v26 = vpop.xlane.xlu0 %3306  ;;  %12215 = vmatmul.mubr.msk.f32.vlgmr.msra.gmra.mrb[36].mxu0 %vm3037_vm2, %v3375_v27  ;;  %v3377_v57 = vmul.f32 %v13730_v16, %v15653_v38 }
 0x6ce   : > { %13741 = vrcp.f32 %v3307_v26  ;;  %12725 = vmatpush3.bf16.msra.mxu0 %v12722_v15  ;;  %v3304_v23 = vpop.xlane.xlu1 %3303  ;;  %v3376_v31 = vmul.f32 %v13732_v7, %v15655_v37 }
 0x6cf   : > { %12731 = vmatprep.subr.bf16.mxu0 %v12730_v32  ;;  %13743 = vrcp.f32 %v3304_v23 }
 0x6d0   : > { %v13734_v58 = vpop.eup %13733  ;;  %12221 = vmatprep.mubr.msk.f32.mxu1 %vm3037_vm2, %v3376_v31 }
 0x6d1   : > { %v13736_v18 = vpop.eup %13735  ;;  %12222 = vmatmul.mubr.msk.f32.vlgmr.msra.gmra.mrb[36].mxu1 %vm3037_vm2, %v3377_v57  ;;  %v3379_v3 = vmul.f32 %v13734_v58, %v15661_v54  ;;  %v13477_v57 = vld [vmem:[%s18000_s5] sm:$0xff]  }
 0x6d2   : > { %12729 = vmatpush3.bf16.msra.mxu1 %v12726_v60  ;;  %v3378_v28 = vmul.f32 %v13736_v18, %v15663_v43  ;;  %v13478_v18 = vld [vmem:[%s18000_s5 + $0x8] sm:$0xff]  }
 0x6d3   : > { %12735 = vmatprep.subr.bf16.mxu1 %v12734_v35 }
 0x6d4   : > { %v13738_v6 = vpop.eup %13737  ;;  %12228 = vmatprep.mubr.msk.f32.mxu0 %vm3037_vm2, %v3378_v28 }
 0x6d5   : > { %v13740_v37 = vpop.eup %13739  ;;  %v3313_v33 = vpop.xlane.xlu0 %3312  ;;  %12229 = vmatmul.mubr.msk.f32.vlgmr.msra.gmra.mrb[38].mxu0 %vm3037_vm2, %v3379_v3  ;;  %v3381_v1 = vmul.f32 %v13738_v6, %v15671_v0  ;;  %v13479_v3 = vld [vmem:[%s18000_s5 + $0x10] sm:$0xff]  }
 0x6d6   : > { %12733 = vmatpush3.bf16.msra.mxu0 %v12730_v32  ;;  %v3380_v38 = vmul.f32 %v13740_v37, %v15673_v19 }
 0x6d8   : > { %v13742_v39 = vpop.eup %13741  ;;  %12235 = vmatprep.mubr.msk.f32.mxu1 %vm3037_vm2, %v3380_v38 }
 0x6d9   : > { %v13744_v56 = vpop.eup %13743  ;;  %12236 = vmatmul.mubr.msk.f32.vlgmr.msra.gmra.mrb[38].mxu1 %vm3037_vm2, %v3381_v1  ;;  %v3319_v43 = vpop.xlane.xlu1 %3318  ;;  %v3383_v45 = vmul.f32 %v13742_v39, %v15681_v10  ;;  %v13480_v39 = vld [vmem:[%s18000_s5 + $0x18] sm:$0xff]  }
 0x6da   : > { %12737 = vmatpush3.bf16.msra.mxu1 %v12734_v35  ;;  %v3316_v54 = vpop.xlane.xlu0 %3315  ;;  %v3382_v50 = vmul.f32 %v13744_v56, %v15683_v29 }
 0x6db   : > { %13745 = vrcp.f32 %v3316_v54 }
 0x6dc   : > { %12242 = vmatprep.mubr.msk.f32.mxu0 %vm3037_vm2, %v3382_v50  ;;  %13747 = vrcp.f32 %v3313_v33 }
 0x6dd   : > { %12243 = vmatmul.mubr.msk.f32.vlgmr.msra.gmra.mrb[40].mxu0 %vm3037_vm2, %v3383_v45  ;;  %v3310_v0 = vpop.xlane.xlu1 %3309  ;;  %v13481_v45 = vld [vmem:[%s18000_s5 + $0x20] sm:$0xff]  }
 0x6de   : > { %13749 = vrcp.f32 %v3310_v0 }
 0x6df   : > { %13751 = vrcp.f32 %v3319_v43 }
 0x6e1   : > { %v3325_v19 = vpop.xlane.xlu1 %3324 }
 0x6e2   : > { %13753 = vrcp.f32 %v3325_v19  ;;  %v3322_v15 = vpop.xlane.xlu0 %3321 }
 0x6e3   : > { %13755 = vrcp.f32 %v3322_v15  ;;  %v13482_v15 = vld [vmem:[%s18000_s5 + $0x28] sm:$0xff]  }
 0x6e5   : > { %v13746_v9 = vpop.eup %13745  ;;  %v13202_v5 = vpop.permute.xlu1 %13201 }
 0x6e6   : > { %v13204_v25 = vunpack.i.h.bf16 %v13202_v5  ;;  %v13203_v13 = vunpack.i.l.bf16 %v13202_v5  ;;  %v13197_v29 = vpop.permute.xlu0 %13196  ;;  %v3386_v12 = vmul.f32 %v13746_v9, %v15709_v47  ;;  %v13748_v10 = vpop.eup %13747  ;;  %v13483_v5 = vld [vmem:[%s18000_s5 + $0x30] sm:$0xff]  }
 0x6e7   : > { %v13199_v11 = vunpack.i.h.bf16 %v13197_v29  ;;  %v13198_v8 = vunpack.i.l.bf16 %v13197_v29  ;;  %v3385_v24 = vmul.f32 %v13748_v10, %v15699_v30  ;;  %v17999_v30 = vmov 0   ;;  %v13484_v29 = vld [vmem:[%s18000_s5 + $0x38] sm:$0xff]  }
 0x6e8   : > { %v13750_v20 = vpop.eup %13749  ;;  %12256 = vmatprep.mubr.msk.f32.mxu0 %vm3037_vm2, %v3386_v12  ;;  %v12742_v52 = vpack.c.bf16 %v13204_v25, %v13203_v13 }
 0x6e9   : > { %v3384_v48 = vmul.f32 %v13750_v20, %v15705_v59  ;;  %v12738_v51 = vpack.c.bf16 %v13199_v11, %v13198_v8  ;;  %v13752_v44 = vpop.eup %13751 }
 0x6ea   : > { %12743 = vmatprep.subr.bf16.mxu1 %v12742_v52  ;;  %v3387_v36 = vmul.f32 %v13752_v44, %v15707_v61 }
 0x6eb   : > { %12249 = vmatprep.mubr.msk.f32.mxu1 %vm3037_vm2, %v3384_v48  ;;  %12739 = vmatprep.subr.bf16.mxu0 %v12738_v51 }
 0x6ec   : > { %v13754_v42 = vpop.eup %13753  ;;  %12250 = vmatmul.mubr.msk.f32.vlgmr.msra.gmra.mrb[40].mxu1 %vm3037_vm2, %v3385_v24  ;;  %12741 = vmatpush3.bf16.msra.mxu0 %v12738_v51 }
 0x6ed   : > { %v13756_v47 = vpop.eup %13755  ;;  %12745 = vmatpush3.bf16.msra.mxu1 %v12742_v52  ;;  %v3389_v59 = vmul.f32 %v13754_v42, %v15723_v40  ;;  %12266 = vmatprep.subr.bf16.mxu0 %v13477_v57 }
 0x6ee   : > { %v3388_v55 = vmul.f32 %v13756_v47, %v15726_v17 }
 0x6ef   : > { %12257 = vmatmul.mubr.msk.f32.vlgmr.msra.gmra.mrb[42].mxu0 %vm3037_vm2, %v3387_v36 }
 0x6f0   : > { %12263 = vmatprep.mubr.msk.f32.mxu1 %vm3037_vm2, %v3388_v55  ;;  %12267 = vmatpush3.bf16.msra.mxu0 %v13477_v57 }
 0x6f1   : > { %12264 = vmatmul.mubr.msk.f32.vlgmr.msra.gmra.mrb[42].mxu1 %vm3037_vm2, %v3389_v59  ;;  %12268 = vmatprep.subr.bf16.mxu0 %v13478_v18 }
 0x6f2   : > { %5226 = vmatprep.mubr.bf16.mxu1 %v17999_v30 }
 0x6f4   : > { %12269 = vmatpush3.bf16.msra.mxu0 %v13478_v18 }
 0x6f5   : > { %12270 = vmatprep.subr.bf16.mxu0 %v13479_v3 }
 0x6f8   : > { %12271 = vmatpush3.bf16.msra.mxu0 %v13479_v3 }
 0x6f9   : > { %12272 = vmatprep.subr.bf16.mxu0 %v13480_v39 }
 0x6fc   : > { %12273 = vmatpush3.bf16.msra.mxu0 %v13480_v39 }
 0x6fd   : > { %12274 = vmatprep.subr.bf16.mxu0 %v13481_v45 }
 0x700   : > { %12275 = vmatpush3.bf16.msra.mxu0 %v13481_v45 }
 0x701   : > { %12276 = vmatprep.subr.bf16.mxu0 %v13482_v15 }
 0x704   : > { %12277 = vmatpush3.bf16.msra.mxu0 %v13482_v15 }
 0x705   : > { %12278 = vmatprep.subr.bf16.mxu0 %v13483_v5 }
 0x708   : > { %12279 = vmatpush3.bf16.msra.mxu0 %v13483_v5 }
 0x709   : > { %12280 = vmatprep.subr.bf16.mxu0 %v13484_v29 }
 0x70c   : > { %12281 = vmatpush3.bf16.msra.mxu0 %v13484_v29 }
 0x718   : > { %v15814_v49 = vpop.f32.mrb[28].mxu0 }
 0x719   : > { %v15816_v62 = vpop.f32.mrb[29].mxu0 }
 0x724   : > { %v15818_v2 = vpop.f32.mrb[28].mxu1 }
 0x725   : > { %v15820_v60 = vpop.f32.mrb[29].mxu1 }
 0x75b   : > { %v15822_v61 = vpop.f32.mrb[30].mxu0 }
 0x75c   : > { %v15824_v17 = vpop.f32.mrb[31].mxu0 }
 0x75f   : > { %v15826_v53 = vpop.f32.mrb[30].mxu1 }
 0x760   : > { %v15828_v40 = vpop.f32.mrb[31].mxu1 }
 0x763   : > { %v12188_v41 = vpop.f32.mrb[32].mxu0 }
 0x764   : > { %v3786_v27 = vpop.f32.mrb[33].mxu0 }
 0x765   : > { %v13205_v16 = vpack.i.bf16 %v12188_v41, %v3786_v27 }
 0x767   : > { %13206 = vrot.lane.b32.xlu0 %v13205_v16, %s14493_s16 }
 0x76c   : > { %v12195_v7 = vpop.f32.mrb[32].mxu1 }
 0x76d   : > { %v3867_v14 = vpop.f32.mrb[33].mxu1 }
 0x76e   : > { %v13210_v21 = vpack.i.bf16 %v12195_v7, %v3867_v14 }
 0x770   : > { %13211 = vrot.lane.b32.xlu1 %v13210_v21, %s14493_s16 }
 0x785   : > { %v12202_v26 = vpop.f32.mrb[34].mxu0 }
 0x786   : > { %v3948_v32 = vpop.f32.mrb[35].mxu0 }
 0x787   : > { %v13235_v23 = vpack.i.bf16 %v12202_v26, %v3948_v32 }
 0x79c   : > { %v12209_v31 = vpop.f32.mrb[34].mxu1 }
 0x79d   : > { %v4029_v58 = vpop.f32.mrb[35].mxu1 }
 0x79e   : > { %v13240_v35 = vpack.i.bf16 %v12209_v31, %v4029_v58 }
 0x7a0   : > { %v12216_v28 = vpop.f32.mrb[36].mxu0 }
 0x7a1   : > { %v4110_v6 = vpop.f32.mrb[37].mxu0 }
 0x7a2   : > { %v13215_v37 = vpack.i.bf16 %v12216_v28, %v4110_v6 }
 0x7a4   : > { %13216 = vrot.lane.b32.xlu0 %v13215_v37, %s14492_s26  ;;  %v12223_v33 = vpop.f32.mrb[36].mxu1 }
 0x7a5   : > { %v4191_v38 = vpop.f32.mrb[37].mxu1 }
 0x7a6   : > { %v13220_v1 = vpack.i.bf16 %v12223_v33, %v4191_v38 }
 0x7a8   : > { %13221 = vrot.lane.b32.xlu1 %v13220_v1, %s14492_s26  ;;  %v12230_v56 = vpop.f32.mrb[38].mxu0 }
 0x7a9   : > { %v4272_v43 = vpop.f32.mrb[39].mxu0 }
 0x7aa   : > { %v13245_v54 = vpack.i.bf16 %v12230_v56, %v4272_v43 }
 0x7ac   : > { %v12237_v50 = vpop.f32.mrb[38].mxu1 }
 0x7ad   : > { %v4353_v0 = vpop.f32.mrb[39].mxu1 }
 0x7ae   : > { %v13250_v19 = vpack.i.bf16 %v12237_v50, %v4353_v0 }
 0x7b0   : > { %v12244_v9 = vpop.f32.mrb[40].mxu0 }
 0x7b1   : > { %v4434_v25 = vpop.f32.mrb[41].mxu0 }
 0x7b2   : > { %v13225_v13 = vpack.i.bf16 %v12244_v9, %v4434_v25 }
 0x7b4   : > { %13226 = vrot.lane.b32.xlu0 %v13225_v13, %s14491_s8 }
 0x7b8   : > { %13236 = vrot.lane.b32.xlu0 %v13235_v23, %s14493_s16 }
 0x7bc   : > { %13246 = vrot.lane.b32.xlu0 %v13245_v54, %s14492_s26 }
 0x7bf   : > { %v12251_v12 = vpop.f32.mrb[40].mxu1 }
 0x7c0   : > { %v4515_v10 = vpop.f32.mrb[41].mxu1 }
 0x7c1   : > { %v13230_v11 = vpack.i.bf16 %v12251_v12, %v4515_v10 }
 0x7c2   : > { %v12258_v8 = vpop.f32.mrb[42].mxu0 }
 0x7c3   : > { %v4596_v20 = vpop.f32.mrb[43].mxu0  ;;  %13231 = vrot.lane.b32.xlu1 %v13230_v11, %s14491_s8 }
 0x7c4   : > { %v13255_v52 = vpack.i.bf16 %v12258_v8, %v4596_v20  ;;  %v12265_v48 = vpop.f32.mrb[42].mxu1 }
 0x7c5   : > { %v4677_v51 = vpop.f32.mrb[43].mxu1 }
 0x7c6   : > { %v13260_v44 = vpack.i.bf16 %v12265_v48, %v4677_v51  ;;  %13256 = vrot.lane.b32.xlu0 %v13255_v52, %s14491_s8 }
 0x7c7   : > { %13241 = vrot.lane.b32.xlu1 %v13240_v35, %s14493_s16 }
 0x7cb   : > { %13251 = vrot.lane.b32.xlu1 %v13250_v19, %s14492_s26 }
 0x7cf   : > { %13261 = vrot.lane.b32.xlu1 %v13260_v44, %s14491_s8 }
 0x7d9   : > { %v13207_v24 = vpop.permute.xlu0 %13206 }
 0x7da   : > { %v13209_v47 = vunpack.i.h.bf16 %v13207_v24  ;;  %v13208_v36 = vunpack.i.l.bf16 %v13207_v24 }
 0x7dc   : > { %v4783_v27 = vsel %vm1620_vm0, %v15814_v49, %v13209_v47  ;;  %v4782_v16 = vsel %vm1620_vm0, %v15816_v62, %v13208_v36 }
 0x7e2   : > { %v13212_v57 = vpop.permute.xlu1 %13211 }
 0x7e3   : > { %v13214_v35 = vunpack.i.h.bf16 %v13212_v57  ;;  %v13213_v49 = vunpack.i.l.bf16 %v13212_v57 }
 0x7e5   : > { %v4785_v37 = vsel %vm1620_vm0, %v15818_v2, %v13214_v35  ;;  %v4784_v33 = vsel %vm1620_vm0, %v15820_v60, %v13213_v49 }
 0x816   : > { %v13217_v42 = vpop.permute.xlu0 %13216 }
 0x817   : > { %v13219_v55 = vunpack.i.h.bf16 %v13217_v42  ;;  %v13218_v59 = vunpack.i.l.bf16 %v13217_v42 }
 0x819   : > { %v4791_v21 = vsel %vm4790_vm3, %v4782_v16, %v13218_v59  ;;  %v4792_v26 = vsel %vm4790_vm3, %v4783_v27, %v13219_v55 }
 0x81a   : > { %v13222_v18 = vpop.permute.xlu1 %13221 }
 0x81b   : > { %v13224_v28 = vunpack.i.h.bf16 %v13222_v18  ;;  %v13223_v3 = vunpack.i.l.bf16 %v13222_v18 }
 0x81d   : > { %v4793_v50 = vsel %vm4790_vm3, %v4784_v33, %v13223_v3  ;;  %v4794_v45 = vsel %vm4790_vm3, %v4785_v37, %v13224_v28  ;;  %v18005_v28 = vld [vmem:[#allocation29_spill] sm:$0xff]  ;;  %v18008_v37 = vld [vmem:[#allocation28_spill] sm:$0xff] }
 0x826   : > { %v13227_v41 = vpop.permute.xlu0 %13226 }
 0x827   : > { %v13229_v7 = vunpack.i.h.bf16 %v13227_v41  ;;  %v13228_v14 = vunpack.i.l.bf16 %v13227_v41 }
 0x829   : > { %v4800_v32 = vsel %vm4799_vm4, %v4791_v21, %v13228_v14  ;;  %v4801_v23 = vsel %vm4799_vm4, %v4792_v26, %v13229_v7  ;;  %v11382_v7 = vld [vmem:[#allocation13] ss:$0 sm:$0xff] }
 0x82a   : > { %v4824_v31 = vpack.c.bf16 %v4801_v23, %v4800_v32  ;;  %v13237_v58 = vpop.permute.xlu0 %13236 }
 0x82b   : > { %v13239_v6 = vunpack.i.h.bf16 %v13237_v58  ;;  %v13238_v38 = vunpack.i.l.bf16 %v13237_v58 }
 0x82c   : > { %12282 = vmatprep.mubr.bf16.mxu0 %v4824_v31 }
 0x82d   : > { %v4787_v0 = vsel %vm1620_vm0, %v15822_v61, %v13239_v6  ;;  %v4786_v60 = vsel %vm1620_vm0, %v15824_v17, %v13238_v38  ;;  %v18007_v6 = vld [vmem:[#allocation27_spill] sm:$0xff] }
 0x82e   : > { %v13247_v62 = vpop.permute.xlu0 %13246 }
 0x82f   : > { %v13249_v39 = vunpack.i.h.bf16 %v13247_v62  ;;  %v13248_v56 = vunpack.i.l.bf16 %v13247_v62 }
 0x831   : > { %v4795_v29 = vsel %vm4790_vm3, %v4786_v60, %v13248_v56  ;;  %v4796_v12 = vsel %vm4790_vm3, %v4787_v0, %v13249_v39  ;;  %v13485_v39 = vld [vmem:[#allocation16] ss:$8 sps:$4 sm:$0xff]   ;;  %v13487_v56 = vld [vmem:[#allocation16 + $0x4] ss:$8 sps:$4 sm:$0xff]  }
 0x832   : > { %5194 = vmatprep.subr.bf16.mxu1 %v13487_v56 }
 0x833   : > { %5195 = vmatpush1.bf16.msra.mxu1 %v13485_v39 }
 0x835   : > { %v13232_v1 = vpop.permute.xlu1 %13231 }
 0x836   : > { %v13234_v43 = vunpack.i.h.bf16 %v13232_v1  ;;  %v13233_v54 = vunpack.i.l.bf16 %v13232_v1 }
 0x838   : > { %v4803_v19 = vsel %vm4799_vm4, %v4794_v45, %v13234_v43  ;;  %v4802_v2 = vsel %vm4799_vm4, %v4793_v50, %v13233_v54  ;;  %v13257_v15 = vpop.permute.xlu0 %13256  ;;  %v13490_v43 = vld [vmem:[#allocation16 + $0x14] ss:$8 sps:$4 sm:$0xff]   ;;  %v13488_v54 = vld [vmem:[#allocation16 + $0x10] ss:$8 sps:$4 sm:$0xff]  }
 0x839   : > { %v13259_v9 = vunpack.i.h.bf16 %v13257_v15  ;;  %v13258_v5 = vunpack.i.l.bf16 %v13257_v15  ;;  %v13242_v25 = vpop.permute.xlu1 %13241  ;;  %v4825_v13 = vpack.c.bf16 %v4803_v19, %v4802_v2  ;;  %5196 = vmatprep.subr.bf16.mxu1 %v13490_v43 }
 0x83a   : > { %v13244_v20 = vunpack.i.h.bf16 %v13242_v25  ;;  %v13243_v52 = vunpack.i.l.bf16 %v13242_v25  ;;  %5197 = vmatpush1.bf16.msra.mxu1 %v13488_v54 }
 0x83b   : > { %12283 = vmatmul.mubr.bf16.vlgmr.msra.gmra.mrb[44].mxu0 %v4825_v13  ;;  %v4804_v10 = vsel %vm4799_vm4, %v4795_v29, %v13258_v5  ;;  %v4805_v61 = vsel %vm4799_vm4, %v4796_v12, %v13259_v9 }
 0x83c   : > { %v4826_v11 = vpack.c.bf16 %v4805_v61, %v4804_v10  ;;  %v4789_v44 = vsel %vm1620_vm0, %v15826_v53, %v13244_v20  ;;  %v4788_v24 = vsel %vm1620_vm0, %v15828_v40, %v13243_v52 }
 0x83d   : > { %v13252_v8 = vpop.permute.xlu1 %13251 }
 0x83e   : > { %12286 = vmatprep.mubr.bf16.mxu0 %v4826_v11  ;;  %v13254_v48 = vunpack.i.h.bf16 %v13252_v8  ;;  %v13253_v17 = vunpack.i.l.bf16 %v13252_v8 }
 0x840   : > { %v4797_v36 = vsel %vm4790_vm3, %v4788_v24, %v13253_v17  ;;  %v4798_v55 = vsel %vm4790_vm3, %v4789_v44, %v13254_v48 }
 0x841   : > { %v13262_v51 = vpop.permute.xlu1 %13261 }
 0x842   : > { %v13264_v42 = vunpack.i.h.bf16 %v13262_v51  ;;  %v13263_v47 = vunpack.i.l.bf16 %v13262_v51 }
 0x844   : > { %v4806_v59 = vsel %vm4799_vm4, %v4797_v36, %v13263_v47  ;;  %v4807_v41 = vsel %vm4799_vm4, %v4798_v55, %v13264_v42 }
 0x845   : > { %v4827_v27 = vpack.c.bf16 %v4807_v41, %v4806_v59 }
 0x847   : > { %12287 = vmatmul.mubr.bf16.gmra.mrb[48].mxu0 %v4827_v27 }
 0x90e   : > { %v12284_v16 = vpop.f32.mrb[44].mxu0 }
 0x90f   : > { %v4910_v14 = vpop.f32.mrb[45].mxu0  ;;  %v4943_v40 = vadd.f32 %v12284_v16, %v15004_v63 }
 0x910   : > { %v4941_v53 = vadd.f32 %v4910_v14, %v14984_v34  ;;  %v12285_v21 = vpop.f32.mrb[46].mxu0  ;;  %v13491_v14 = vld [vmem:[#allocation16 + $0x20] ss:$8 sps:$4 sm:$0xff]  }
 0x911   : > { %v4913_v26 = vpop.f32.mrb[47].mxu0  ;;  %v15906_v57 = vadd.f32 %v11382_v7, %v4943_v40  ;;  %v4944_v58 = vadd.f32 %v12285_v21, %v15008_v4  ;;  %v13494_v21 = vld [vmem:[#allocation16 + $0x30] ss:$8 sps:$4 sm:$0xff]   ;;  %v13497_v40 = vld [vmem:[#allocation16 + $0x40] ss:$8 sps:$4 sm:$0xff]  }
 0x912   : > { %v15900_v32 = vadd.f32 %v11382_v7, %v4941_v53  ;;  %v4942_v23 = vadd.f32 %v4913_v26, %v14992_v46  ;;  %v13496_v53 = vld [vmem:[#allocation16 + $0x34] ss:$8 sps:$4 sm:$0xff]   ;;  %v13499_v26 = vld [vmem:[#allocation16 + $0x44] ss:$8 sps:$4 sm:$0xff]  }
 0x913   : > { %18003 = vst [vmem:[#allocation36_spill] sm:$0xff] %v15906_v57  ;;  %v15911_v34 = vadd.f32 %v11382_v7, %v4944_v58  ;;  %v13500_v58 = vld [vmem:[#allocation16 + $0x50] ss:$8 sps:$4 sm:$0xff]  }
 0x914   : > { %18001 = vst [vmem:[#allocation34_spill] sm:$0xff] %v15900_v32  ;;  %v15903_v31 = vadd.f32 %v11382_v7, %v4942_v23  ;;  %4966 = vadd.xlane.f32.xlu0 %v15900_v32  ;;  %v13502_v23 = vld [vmem:[#allocation16 + $0x54] ss:$8 sps:$4 sm:$0xff]  }
 0x915   : > { %18004 = vst [vmem:[#allocation37_spill] sm:$0xff] %v15911_v34 }
 0x916   : > { %18002 = vst [vmem:[#allocation35_spill] sm:$0xff] %v15903_v31  ;;  %4968 = vadd.xlane.f32.xlu1 %v15903_v31 }
 0x918   : > { %4970 = vadd.xlane.f32.xlu0 %v15906_v57 }
 0x91a   : > { %v12288_v18 = vpop.f32.mrb[48].mxu0 }
 0x91b   : > { %v4926_v63 = vpop.f32.mrb[49].mxu0  ;;  %v4947_v3 = vadd.f32 %v12288_v18, %v18005_v28  ;;  %v13505_v18 = vld [vmem:[#allocation16 + $0x64] ss:$8 sps:$4 sm:$0xff]  }
 0x91c   : > { %v4945_v35 = vadd.f32 %v4926_v63, %v15019_v22  ;;  %4972 = vadd.xlane.f32.xlu0 %v15911_v34  ;;  %v12289_v46 = vpop.f32.mrb[50].mxu0  ;;  %v13503_v63 = vld [vmem:[#allocation16 + $0x60] ss:$8 sps:$4 sm:$0xff]  }
 0x91d   : > { %v4929_v49 = vpop.f32.mrb[51].mxu0  ;;  %v4948_v33 = vadd.f32 %v12289_v46, %v18008_v37  ;;  %v15923_v1 = vadd.f32 %v11382_v7, %v4947_v3  ;;  %v13508_v46 = vld [vmem:[#allocation16 + $0x74] ss:$8 sps:$4 sm:$0xff]  }
 0x91e   : > { %v15916_v62 = vadd.f32 %v11382_v7, %v4945_v35  ;;  %v4946_v4 = vadd.f32 %v4929_v49, %v18007_v6  ;;  %v13506_v35 = vld [vmem:[#allocation16 + $0x70] ss:$8 sps:$4 sm:$0xff]  }
 0x91f   : > { %18010 = vst [vmem:[#allocation28_spill] sm:$0xff] %v15923_v1  ;;  %v15926_v22 = vadd.f32 %v11382_v7, %v4948_v33 }
 0x920   : > { %18006 = vst [vmem:[#allocation29_spill] sm:$0xff] %v15916_v62  ;;  %v15920_v38 = vadd.f32 %v11382_v7, %v4946_v4  ;;  %4974 = vadd.xlane.f32.xlu1 %v15916_v62  ;;  %v13493_v7 = vld [vmem:[#allocation16 + $0x24] ss:$8 sps:$4 sm:$0xff]  }
 0x921   : > { %18011 = vst [vmem:[#allocation38_spill] sm:$0xff] %v15926_v22  ;;  %5198 = vmatprep.subr.bf16.mxu1 %v13493_v7 }
 0x922   : > { %18009 = vst [vmem:[#allocation27_spill] sm:$0xff] %v15920_v38  ;;  %4976 = vadd.xlane.f32.xlu0 %v15920_v38  ;;  %5199 = vmatpush1.bf16.msra.mxu1 %v13491_v14 }
 0x923   : > { %5200 = vmatprep.subr.bf16.mxu1 %v13496_v53 }
 0x924   : > { %4978 = vadd.xlane.f32.xlu1 %v15923_v1 }
 0x926   : > { %4980 = vadd.xlane.f32.xlu0 %v15926_v22  ;;  %5201 = vmatpush1.bf16.msra.mxu1 %v13494_v21 }
 0x927   : > { %5202 = vmatprep.subr.bf16.mxu1 %v13499_v26 }
 0x92a   : > { %5203 = vmatpush1.bf16.msra.mxu1 %v13497_v40 }
 0x92b   : > { %5204 = vmatprep.subr.bf16.mxu1 %v13502_v23 }
 0x92e   : > { %5205 = vmatpush1.bf16.msra.mxu1 %v13500_v58 }
 0x92f   : > { %5206 = vmatprep.subr.bf16.mxu1 %v13505_v18 }
 0x932   : > { %5207 = vmatpush1.bf16.msra.mxu1 %v13503_v63 }
 0x933   : > { %5208 = vmatprep.subr.bf16.mxu1 %v13508_v46 }
 0x936   : > { %5209 = vmatpush1.bf16.msra.mxu1 %v13506_v35 }
 0x9a1   : > { %v4967_v50 = vpop.xlane.xlu0 %4966 }
 0x9a2   : > { %v4982_v45 = vmul.f32 0.0078125, %v4967_v50 }
 0x9a3   : > { %v4969_v0 = vpop.xlane.xlu1 %4968 }
 0x9a4   : > { %v15931_v19 = vsub.f32 %v15900_v32, %v4982_v45  ;;  %v4983_v2 = vmul.f32 0.0078125, %v4969_v0 }
 0x9a5   : > { %v4971_v15 = vpop.xlane.xlu0 %4970 }
 0x9a6   : > { %v15934_v60 = vsub.f32 %v15903_v31, %v4983_v2  ;;  %v4984_v9 = vmul.f32 0.0078125, %v4971_v15  ;;  %v4998_v5 = vmul.f32 %v15931_v19, %v15931_v19 }
 0x9a8   : > { %v15939_v25 = vsub.f32 %v15906_v57, %v4984_v9  ;;  %5006 = vadd.xlane.f32.xlu1 %v4998_v5  ;;  %v4999_v13 = vmul.f32 %v15934_v60, %v15934_v60 }
 0x9a9   : > { %v4973_v29 = vpop.xlane.xlu0 %4972 }
 0x9aa   : > { %v4985_v12 = vmul.f32 0.0078125, %v4973_v29  ;;  %5008 = vadd.xlane.f32.xlu0 %v4999_v13  ;;  %v5000_v10 = vmul.f32 %v15939_v25, %v15939_v25  ;;  %v11383_v13 = vld [vmem:[#allocation14] ss:$0 sm:$0xff] }
 0x9ac   : > { %v15946_v61 = vsub.f32 %v15911_v34, %v4985_v12  ;;  %5010 = vadd.xlane.f32.xlu1 %v5000_v10 }
 0x9ad   : > { %v4975_v11 = vpop.xlane.xlu1 %4974 }
 0x9ae   : > { %v4986_v8 = vmul.f32 0.0078125, %v4975_v11  ;;  %v5001_v20 = vmul.f32 %v15946_v61, %v15946_v61 }
 0x9af   : > { %v4977_v52 = vpop.xlane.xlu0 %4976 }
 0x9b0   : > { %v15951_v48 = vsub.f32 %v15916_v62, %v4986_v8  ;;  %v4987_v17 = vmul.f32 0.0078125, %v4977_v52  ;;  %5012 = vadd.xlane.f32.xlu0 %v5001_v20 }
 0x9b1   : > { %v4979_v51 = vpop.xlane.xlu1 %4978 }
 0x9b2   : > { %v15954_v44 = vsub.f32 %v15920_v38, %v4987_v17  ;;  %v4988_v24 = vmul.f32 0.0078125, %v4979_v51  ;;  %v5002_v42 = vmul.f32 %v15951_v48, %v15951_v48 }
 0x9b3   : > { %v4981_v47 = vpop.xlane.xlu0 %4980 }
 0x9b4   : > { %v15959_v36 = vsub.f32 %v15923_v1, %v4988_v24  ;;  %v4989_v55 = vmul.f32 0.0078125, %v4981_v47  ;;  %5014 = vadd.xlane.f32.xlu1 %v5002_v42  ;;  %v5003_v59 = vmul.f32 %v15954_v44, %v15954_v44  ;;  %v11384_v42 = vld [vmem:[%s18012_s23] ss:$0 sm:$0xff] }
 0x9b6   : > { %v15964_v41 = vsub.f32 %v15926_v22, %v4989_v55  ;;  %5016 = vadd.xlane.f32.xlu0 %v5003_v59  ;;  %v5004_v27 = vmul.f32 %v15959_v36, %v15959_v36 }
 0x9b8   : > { %5018 = vadd.xlane.f32.xlu1 %v5004_v27  ;;  %v5005_v16 = vmul.f32 %v15964_v41, %v15964_v41 }
 0x9ba   : > { %5020 = vadd.xlane.f32.xlu0 %v5005_v16 }
 0xa35   : > { %v5007_v49 = vpop.xlane.xlu1 %5006 }
 0xa36   : > { %v5022_v28 = vmul.f32 0.0078125, %v5007_v49 }
 0xa37   : > { %v5009_v3 = vpop.xlane.xlu0 %5008 }
 0xa38   : > { %v5030_v6 = vadd.f32 1e-12, %v5022_v28  ;;  %v5023_v4 = vmul.f32 0.0078125, %v5009_v3 }
 0xa39   : > { %v5011_v37 = vpop.xlane.xlu1 %5010 }
 0xa3a   : > { %13757 = vrsqrt.f32 %v5030_v6  ;;  %v5031_v33 = vadd.f32 1e-12, %v5023_v4  ;;  %v5024_v39 = vmul.f32 0.0078125, %v5011_v37 }
 0xa3c   : > { %13759 = vrsqrt.f32 %v5031_v33  ;;  %v5032_v56 = vadd.f32 1e-12, %v5024_v39 }
 0xa3d   : > { %v5013_v43 = vpop.xlane.xlu0 %5012 }
 0xa3e   : > { %13761 = vrsqrt.f32 %v5032_v56  ;;  %v5025_v54 = vmul.f32 0.0078125, %v5013_v43  ;;  %v13509_v43 = vld [vmem:[#allocation17 + $0x40] sm:$0xff]  }
 0xa3f   : > { %11774 = vmatprep.subr.bf16.mxu0 %v13509_v43 }
 0xa40   : > { %v5033_v50 = vadd.f32 1e-12, %v5025_v54  ;;  %v13510_v54 = vld [vmem:[#allocation17] sm:$0xff]  }
 0xa41   : > { %v5015_v45 = vpop.xlane.xlu1 %5014  ;;  %11775 = vmatpush3.bf16.msra.mxu0 %v13510_v54 }
 0xa42   : > { %13763 = vrsqrt.f32 %v5033_v50  ;;  %v5026_v0 = vmul.f32 0.0078125, %v5015_v45  ;;  %v13512_v50 = vld [vmem:[#allocation17 + $0x8] sm:$0xff]   ;;  %v13514_v45 = vld [vmem:[#allocation17 + $0x10] sm:$0xff]  }
 0xa43   : > { %v5017_v2 = vpop.xlane.xlu0 %5016 }
 0xa44   : > { %v13758_v15 = vpop.eup %13757  ;;  %v5034_v9 = vadd.f32 1e-12, %v5026_v0  ;;  %v5027_v5 = vmul.f32 0.0078125, %v5017_v2  ;;  %v13515_v0 = vld [vmem:[#allocation17 + $0x58] sm:$0xff]  }
 0xa45   : > { %v5019_v29 = vpop.xlane.xlu1 %5018  ;;  %v5046_v12 = vmul.f32 %v13758_v15, %v15931_v19  ;;  %v13516_v2 = vld [vmem:[#allocation17 + $0x18] sm:$0xff]   ;;  %v13517_v15 = vld [vmem:[#allocation17 + $0x60] sm:$0xff]  }
 0xa46   : > { %v13760_v10 = vpop.eup %13759  ;;  %13765 = vrsqrt.f32 %v5034_v9  ;;  %v5035_v11 = vadd.f32 1e-12, %v5027_v5  ;;  %v5028_v8 = vmul.f32 0.0078125, %v5019_v29  ;;  %v13518_v9 = vld [vmem:[#allocation17 + $0x20] sm:$0xff]   ;;  %v13519_v5 = vld [vmem:[#allocation17 + $0x68] sm:$0xff]   ;;  %v13521_v29 = vld [vmem:[#allocation17 + $0x70] sm:$0xff]  }
 0xa47   : > { %v5021_v20 = vpop.xlane.xlu0 %5020  ;;  %v5047_v52 = vmul.f32 %v13760_v10, %v15934_v60  ;;  %v5060_v17 = vmul.f32 %v11383_v13, %v5046_v12  ;;  %v13522_v12 = vld [vmem:[#allocation17 + $0x30] sm:$0xff]   ;;  %v13523_v10 = vld [vmem:[#allocation17 + $0x78] sm:$0xff]  }
 0xa48   : > { %v13762_v51 = vpop.eup %13761  ;;  %13767 = vrsqrt.f32 %v5035_v11  ;;  %v5029_v24 = vmul.f32 0.0078125, %v5021_v20  ;;  %v5036_v55 = vadd.f32 1e-12, %v5028_v8  ;;  %v13524_v11 = vld [vmem:[#allocation17 + $0x38] sm:$0xff]   ;;  %v5102_v8 = vld [vmem:[%s18013_s2] sm:$0x3] }
 0xa49   : > { %v5061_v47 = vmul.f32 %v11383_v13, %v5047_v52  ;;  %v5074_v27 = vadd.f32 %v11384_v42, %v5060_v17  ;;  %v5048_v16 = vmul.f32 %v13762_v51, %v15939_v25  ;;  %v18014_v20 = vld [vmem:[#allocation31_spill] sm:$0xff]  ;;  %v18015_v17 = vld [vmem:[#allocation32_spill] sm:$0xff] }
 0xa4a   : > { %v5037_v59 = vadd.f32 1e-12, %v5029_v24  ;;  %v15989_v52 = vrot.slane %v5102_v8, %v18014_v20  ;;  %v15992_v51 = vrot.slane %v5102_v8, %v18015_v17 }
 0xa4b   : > { %v5075_v19 = vadd.f32 %v11384_v42, %v5061_v47  ;;  %v5062_v53 = vmul.f32 %v11383_v13, %v5048_v16 }
 0xa4c   : > { %v13764_v7 = vpop.eup %13763  ;;  %13769 = vrsqrt.f32 %v5037_v59 }
 0xa4d   : > { %v5098_v14 = vpack.c.bf16 %v5075_v19, %v5074_v27  ;;  %v5049_v60 = vmul.f32 %v13764_v7, %v15946_v61  ;;  %13771 = vrsqrt.f32 %v5036_v55  ;;  %v5076_v58 = vadd.f32 %v11384_v42, %v5062_v53 }
 0xa4f   : > { %5227 = vmatmul.mubr.bf16.vlgmr.msra.gmra.mrb[44].mxu1 %v5098_v14  ;;  %v5063_v21 = vmul.f32 %v11383_v13, %v5049_v60 }
 0xa50   : > { %v13766_v26 = vpop.eup %13765  ;;  %5236 = vmatprep.mubr.bf16.mxu1 %v17999_v30 }
 0xa51   : > { %v5077_v40 = vadd.f32 %v11384_v42, %v5063_v21  ;;  %v5050_v18 = vmul.f32 %v13766_v26, %v15951_v48 }
 0xa52   : > { %v13768_v23 = vpop.eup %13767 }
 0xa53   : > { %v5051_v63 = vmul.f32 %v13768_v23, %v15954_v44  ;;  %v5099_v25 = vpack.c.bf16 %v5077_v40, %v5076_v58  ;;  %v5064_v49 = vmul.f32 %v11383_v13, %v5050_v18 }
 0xa55   : > { %v5065_v35 = vmul.f32 %v11383_v13, %v5051_v63  ;;  %v5078_v6 = vadd.f32 %v11384_v42, %v5064_v49 }
 0xa56   : > { %v13770_v46 = vpop.eup %13769 }
 0xa57   : > { %5237 = vmatmul.mubr.bf16.gmra.mrb[48].mxu1 %v5099_v25  ;;  %v13772_v61 = vpop.eup %13771  ;;  %v5079_v28 = vadd.f32 %v11384_v42, %v5065_v35  ;;  %v5053_v3 = vmul.f32 %v13770_v46, %v15964_v41  ;;  %v13511_v41 = vld [vmem:[#allocation17 + $0x48] sm:$0xff]  }
 0xa58   : > { %5246 = vmatprep.mubr.bf16.mxu1 %v17999_v30  ;;  %v5052_v4 = vmul.f32 %v13772_v61, %v15959_v36  ;;  %11776 = vmatprep.subr.bf16.mxu0 %v13511_v41  ;;  %v13513_v36 = vld [vmem:[#allocation17 + $0x50] sm:$0xff]  }
 0xa59   : > { %v5100_v37 = vpack.c.bf16 %v5079_v28, %v5078_v6  ;;  %v5067_v33 = vmul.f32 %v11383_v13, %v5053_v3  ;;  %11777 = vmatpush3.bf16.msra.mxu0 %v13512_v50 }
 0xa5a   : > { %v5066_v48 = vmul.f32 %v11383_v13, %v5052_v4  ;;  %11778 = vmatprep.subr.bf16.mxu0 %v13513_v36  ;;  %v13520_v13 = vld [vmem:[#allocation17 + $0x28] sm:$0xff]  }
 0xa5b   : > { %v5081_v44 = vadd.f32 %v11384_v42, %v5067_v33 }
 0xa5c   : > { %v5080_v39 = vadd.f32 %v11384_v42, %v5066_v48 }
 0xa5d   : > { %11779 = vmatpush3.bf16.msra.mxu0 %v13514_v45 }
 0xa5e   : > { %v5101_v56 = vpack.c.bf16 %v5081_v44, %v5080_v39  ;;  %11780 = vmatprep.subr.bf16.mxu0 %v13515_v0 }
 0xa5f   : > { %5247 = vmatmul.mubr.bf16.gmra.mrb[52].mxu1 %v5100_v37 }
 0xa60   : > { %5256 = vmatprep.mubr.bf16.mxu1 %v17999_v30 }
 0xa61   : > { %11781 = vmatpush3.bf16.msra.mxu0 %v13516_v2 }
 0xa62   : > { %11782 = vmatprep.subr.bf16.mxu0 %v13517_v15 }
 0xa65   : > { %11783 = vmatpush3.bf16.msra.mxu0 %v13518_v9 }
 0xa66   : > { %11784 = vmatprep.subr.bf16.mxu0 %v13519_v5 }
 0xa67   : > { %5257 = vmatmul.mubr.bf16.gmra.mrb[56].mxu1 %v5101_v56 }
 0xa68   : > { %6242 = vmatprep.mubr.bf16.mxu1 %v17999_v30 }
 0xa69   : > { %11785 = vmatpush3.bf16.msra.mxu0 %v13520_v13 }
 0xa6a   : > { %11786 = vmatprep.subr.bf16.mxu0 %v13521_v29 }
 0xa6d   : > { %11787 = vmatpush3.bf16.msra.mxu0 %v13522_v12 }
 0xa6e   : > { %11788 = vmatprep.subr.bf16.mxu0 %v13523_v10 }
 0xa71   : > { %11789 = vmatpush3.bf16.msra.mxu0 %v13524_v11 }
 0xb22   : > { %v5228_v24 = vpop.f32.mrb[44].mxu1 }
 0xb23   : > { %v15995_v42 = vadd.f32 %v5228_v24, %v15989_v52  ;;  %v5230_v47 = vpop.f32.mrb[45].mxu1 }
 0xb24   : > { %v15998_v55 = vadd.f32 %v5230_v47, %v15992_v51  ;;  %v5232_v59 = vpop.f32.mrb[46].mxu1 }
 0xb25   : > { %v16001_v27 = vmul.f32 0.70710677, %v15995_v42  ;;  %v16004_v19 = vadd.f32 %v5232_v59, %v15989_v52  ;;  %v5234_v16 = vpop.f32.mrb[47].mxu1 }
 0xb26   : > { %v16007_v7 = vmul.f32 0.70710677, %v15998_v55  ;;  %v16014_v53 = vadd.f32 %v5234_v16, %v15992_v51 }
 0xb27   : > { %v5331_v14 = vand.u32 2147483647, %v16001_v27  ;;  %v16011_v60 = vmul.f32 0.70710677, %v16004_v19  ;;  %vm5299_vm5 = vcmp.ge.f32.partialorder %v16001_v27, 0.0 }
 0xb28   : > { %v5332_v21 = vand.u32 2147483647, %v16007_v7  ;;  %v16019_v18 = vmul.f32 0.70710677, %v16014_v53  ;;  %vm5300_vm7 = vcmp.ge.f32.partialorder %v16007_v7, 0.0 }
 0xb29   : > { %v5347_v26 = vmul.f32 0.3275911, %v5331_v14  ;;  %v5333_v23 = vand.u32 2147483647, %v16011_v60  ;;  %v5539_v44 = vsub.f32 0.0, %v5331_v14  ;;  %vm5301_vm6 = vcmp.ge.f32.partialorder %v16011_v60, 0.0 }
 0xb2a   : > { %v5348_v40 = vmul.f32 0.3275911, %v5332_v21  ;;  %v5238_v63 = vpop.f32.mrb[48].mxu1  ;;  %v16022_v49 = vand.u32 2147483647, %v16019_v18  ;;  %v5540_v15 = vsub.f32 0.0, %v5332_v21 }
 0xb2b   : > { %v5363_v58 = vadd.f32 1.0, %v5347_v26  ;;  %v5349_v35 = vmul.f32 0.3275911, %v5333_v23  ;;  %v5240_v46 = vpop.f32.mrb[49].mxu1  ;;  %v16026_v4 = vadd.f32 %v5238_v63, %v15989_v52  ;;  %v5555_v2 = vmul.f32 %v5539_v44, %v5331_v14 }
 0xb2c   : > { %v5364_v25 = vadd.f32 1.0, %v5348_v40  ;;  %v5242_v61 = vpop.f32.mrb[50].mxu1  ;;  %v5350_v6 = vmul.f32 0.3275911, %v16022_v49  ;;  %v16029_v37 = vadd.f32 %v5240_v46, %v15992_v51  ;;  %v5541_v13 = vsub.f32 0.0, %v5333_v23 }
 0xb2d   : > { %13773 = vrcp.f32 %v5363_v58  ;;  %v5365_v28 = vadd.f32 1.0, %v5349_v35  ;;  %v5244_v3 = vpop.f32.mrb[51].mxu1  ;;  %v16032_v48 = vadd.f32 %v5242_v61, %v15989_v52  ;;  %v16035_v39 = vmul.f32 0.70710677, %v16026_v4 }
 0xb2e   : > { %13775 = vrcp.f32 %v5364_v25  ;;  %v5366_v33 = vadd.f32 1.0, %v5350_v6  ;;  %v16040_v43 = vmul.f32 0.70710677, %v16029_v37  ;;  %v16070_v16 = vadd.f32 %v5244_v3, %v15992_v51 }
 0xb2f   : > { %13777 = vrcp.f32 %v5365_v28  ;;  %v16045_v41 = vand.u32 2147483647, %v16035_v39  ;;  %v16048_v50 = vmul.f32 0.70710677, %v16032_v48  ;;  %v5571_v26 = vmul.f32 1.442695, %v5555_v2 }
 0xb30   : > { %13779 = vrcp.f32 %v5366_v33  ;;  %v16053_v45 = vand.u32 2147483647, %v16040_v43  ;;  %v5556_v40 = vmul.f32 %v5540_v15, %v5332_v21  ;;  %v5557_v35 = vmul.f32 %v5541_v13, %v5333_v23 }
 0xb31   : > { %v5351_v9 = vmul.f32 0.3275911, %v16045_v41  ;;  %v16062_v12 = vand.u32 2147483647, %v16048_v50  ;;  %v16079_v28 = vmul.f32 0.5, %v15995_v42  ;;  %v16083_v6 = vmul.f32 0.5, %v15998_v55 }
 0xb32   : > { %v16037_v56 = vpop.f32.mrb[52].mxu1  ;;  %v5352_v29 = vmul.f32 0.3275911, %v16053_v45  ;;  %v16094_v42 = vmul.f32 0.70710677, %v16070_v16  ;;  %vm5302_vm8 = vcmp.ge.f32.partialorder %v16019_v18, 0.0 }
 0xb33   : > { %v16042_v54 = vpop.f32.mrb[53].mxu1  ;;  %v5367_v8 = vadd.f32 1.0, %v5351_v9  ;;  %v5353_v59 = vmul.f32 0.3275911, %v16062_v12  ;;  %v5573_v13 = vmul.f32 1.442695, %v5556_v40 }
 0xb34   : > { %v16050_v36 = vpop.f32.mrb[54].mxu1  ;;  %v5368_v47 = vadd.f32 1.0, %v5352_v29  ;;  %v16100_v29 = vmul.f32 0.5, %v16004_v19  ;;  %v16114_v19 = vmul.f32 0.5, %v16014_v53  ;;  %v16117_v40 = vand.u32 2147483647, %v16094_v42 }
 0xb35   : > { %v16055_v0 = vpop.f32.mrb[55].mxu1  ;;  %13781 = vrcp.f32 %v5367_v8  ;;  %v5369_v46 = vadd.f32 1.0, %v5353_v59  ;;  %v5542_v59 = vsub.f32 0.0, %v16022_v49  ;;  %vm5303_vm9 = vcmp.ge.f32.partialorder %v16035_v39, 0.0 }
 0xb36   : > { %13783 = vrcp.f32 %v5368_v47  ;;  %v5354_v27 = vmul.f32 0.3275911, %v16117_v40  ;;  %vm5304_vm10 = vcmp.ge.f32.partialorder %v16040_v43, 0.0  ;;  %vm5305_vm11 = vcmp.ge.f32.partialorder %v16048_v50, 0.0 }
 0xb37   : > { %v16058_v5 = vpop.eup %13773  ;;  %13785 = vrcp.f32 %v5369_v46  ;;  %vm5306_vm12 = vcmp.ge.f32.partialorder %v16094_v42, 0.0 }
 0xb38   : > { %v16064_v10 = vpop.eup %13775  ;;  %v5395_v11 = vmul.f32 1.0614054, %v16058_v5  ;;  %13787 = vpow2.f32 %v5571_v26 }
 0xb39   : > { %v5396_v24 = vmul.f32 1.0614054, %v16064_v10  ;;  %v16074_v63 = vpop.eup %13777 }
 0xb3a   : > { %v5411_v14 = vadd.f32 -1.4531521, %v5395_v11  ;;  %v16072_v58 = vpop.f32.mrb[56].mxu1  ;;  %v5397_v21 = vmul.f32 1.0614054, %v16074_v63  ;;  %v16088_v44 = vpop.eup %13779 }
 0xb3b   : > { %v5412_v25 = vadd.f32 -1.4531521, %v5396_v24  ;;  %v16076_v61 = vpop.f32.mrb[57].mxu1  ;;  %v5398_v9 = vmul.f32 1.0614054, %v16088_v44 }
 0xb3c   : > { %v5427_v3 = vmul.f32 %v16058_v5, %v5411_v14  ;;  %v16086_v33 = vpop.f32.mrb[58].mxu1  ;;  %v5413_v55 = vadd.f32 -1.4531521, %v5397_v21  ;;  %v5575_v11 = vmul.f32 1.442695, %v5557_v35  ;;  %v17924_v14 = vmov -1.0  }
 0xb3d   : > { %v5428_v23 = vmul.f32 %v16064_v10, %v5412_v25  ;;  %v16096_v2 = vpop.f32.mrb[59].mxu1  ;;  %v5414_v47 = vadd.f32 -1.4531521, %v5398_v9  ;;  %v5315_v25 = vsel %vm5299_vm5, 1.0, %v17924_v14  ;;  %v16111_v26 = vsel %vm5301_vm6, 1.0, %v17924_v14 }
 0xb3e   : > { %v5443_v15 = vadd.f32 1.4214138, %v5427_v3  ;;  %v5429_v24 = vmul.f32 %v16074_v63, %v5413_v55  ;;  %13789 = vpow2.f32 %v5575_v11  ;;  %v5558_v9 = vmul.f32 %v5542_v59, %v16022_v49 }
 0xb3f   : > { %v5444_v46 = vadd.f32 1.4214138, %v5428_v23  ;;  %v5430_v21 = vmul.f32 %v16088_v44, %v5414_v47  ;;  %v16125_v60 = vpop.eup %13781  ;;  %13791 = vpow2.f32 %v5573_v13  ;;  %v5370_v47 = vadd.f32 1.0, %v5354_v27 }
 0xb40   : > { %v5459_v8 = vmul.f32 %v16058_v5, %v5443_v15  ;;  %v5445_v3 = vadd.f32 1.4214138, %v5429_v24  ;;  %v16123_v15 = vadd.f32 %v16037_v56, %v15989_v52  ;;  %v16130_v23 = vpop.eup %13783  ;;  %v5399_v11 = vmul.f32 1.0614054, %v16125_v60 }
 0xb41   : > { %v5544_v24 = vsub.f32 0.0, %v16053_v45  ;;  %v5460_v14 = vmul.f32 %v16064_v10, %v5444_v46  ;;  %v5446_v13 = vadd.f32 1.4214138, %v5430_v21  ;;  %13793 = vrcp.f32 %v5370_v47  ;;  %v16140_v59 = vpop.eup %13785 }
 0xb42   : > { %v5475_v35 = vadd.f32 -0.28449672, %v5459_v8  ;;  %v5461_v55 = vmul.f32 %v16074_v63, %v5445_v3  ;;  %v5543_v8 = vsub.f32 0.0, %v16045_v41  ;;  %v5415_v20 = vadd.f32 -1.4531521, %v5399_v11 }
 0xb43   : > { %v16138_v49 = vmul.f32 0.70710677, %v16123_v15  ;;  %v5577_v22 = vmul.f32 1.442695, %v5558_v9  ;;  %v5560_v21 = vmul.f32 %v5544_v24, %v16053_v45  ;;  %v5401_v11 = vmul.f32 1.0614054, %v16140_v59 }
 0xb44   : > { %v5491_v53 = vmul.f32 %v16058_v5, %v5475_v35  ;;  %v5477_v17 = vadd.f32 -0.28449672, %v5461_v55  ;;  %v5400_v35 = vmul.f32 1.0614054, %v16130_v23  ;;  %v5431_v46 = vmul.f32 %v16125_v60, %v5415_v20 }
 0xb45   : > { %v5559_v55 = vmul.f32 %v5543_v8, %v16045_v41  ;;  %v5476_v1 = vadd.f32 -0.28449672, %v5460_v14  ;;  %v16151_v9 = vand.u32 2147483647, %v16138_v49  ;;  %v5545_v45 = vsub.f32 0.0, %v16062_v12 }
 0xb46   : > { %v5507_v56 = vadd.f32 0.2548296, %v5491_v53  ;;  %v5493_v30 = vmul.f32 %v16074_v63, %v5477_v17  ;;  %v5416_v27 = vadd.f32 -1.4531521, %v5400_v35  ;;  %v13788_v53 = vpop.eup %13787  ;;  %v5417_v17 = vadd.f32 -1.4531521, %v5401_v11 }
 0xb47   : > { %v5546_v24 = vsub.f32 0.0, %v16117_v40  ;;  %13795 = vpow2.f32 %v5577_v22  ;;  %v5581_v31 = vmul.f32 1.442695, %v5560_v21  ;;  %vm5307_vm13 = vcmp.ge.f32.partialorder %v16138_v49, 0.0 }
 0xb48   : > { %v5523_v3 = vmul.f32 %v16058_v5, %v5507_v56  ;;  %v5509_v38 = vadd.f32 0.2548296, %v5493_v30  ;;  %v5432_v62 = vmul.f32 %v16130_v23, %v5416_v27  ;;  %v5462_v5 = vmul.f32 %v16088_v44, %v5446_v13  ;;  %v13790_v8 = vpop.eup %13789 }
 0xb49   : > { %v5447_v56 = vadd.f32 1.4214138, %v5431_v46  ;;  %v5433_v14 = vmul.f32 %v16140_v59, %v5417_v17  ;;  %v5355_v13 = vmul.f32 0.3275911, %v16151_v9  ;;  %v5561_v17 = vmul.f32 %v5545_v45, %v16062_v12 }
 0xb4a   : > { %v5603_v47 = vmul.f32 %v13788_v53, %v5523_v3  ;;  %v5525_v20 = vmul.f32 %v16074_v63, %v5509_v38  ;;  %v5448_v41 = vadd.f32 1.4214138, %v5432_v62  ;;  %v13792_v3 = vpop.eup %13791  ;;  %v5492_v53 = vmul.f32 %v16064_v10, %v5476_v1 }
 0xb4b   : > { %v5463_v30 = vmul.f32 %v16125_v60, %v5447_v56  ;;  %v5478_v38 = vadd.f32 -0.28449672, %v5462_v5  ;;  %v5449_v63 = vadd.f32 1.4214138, %v5433_v14  ;;  %v5371_v11 = vadd.f32 1.0, %v5355_v13  ;;  %v16163_v57 = vpop.eup %13793 }
 0xb4c   : > { %v5619_v35 = vsub.f32 1.0, %v5603_v47  ;;  %v5605_v46 = vmul.f32 %v13790_v8, %v5525_v20  ;;  %v5464_v62 = vmul.f32 %v16130_v23, %v5448_v41  ;;  %v5579_v56 = vmul.f32 1.442695, %v5559_v55 }
 0xb4d   : > { %v5479_v34 = vadd.f32 -0.28449672, %v5463_v30  ;;  %v5465_v32 = vmul.f32 %v16140_v59, %v5449_v63  ;;  %13797 = vrcp.f32 %v5371_v11  ;;  %v5494_v20 = vmul.f32 %v16088_v44, %v5478_v38 }
 0xb4e   : > { %v5635_v27 = vmul.f32 %v5619_v35, %v5315_v25  ;;  %v5621_v47 = vsub.f32 1.0, %v5605_v46  ;;  %v5562_v25 = vmul.f32 %v5546_v24, %v16117_v40  ;;  %v5508_v35 = vadd.f32 0.2548296, %v5492_v53 }
 0xb4f   : > { %v5480_v22 = vadd.f32 -0.28449672, %v5464_v62  ;;  %v5481_v41 = vadd.f32 -0.28449672, %v5465_v32  ;;  %v5402_v55 = vmul.f32 1.0614054, %v16163_v57  ;;  %v16172_v12 = vadd.f32 %v16042_v54, %v15992_v51 }
 0xb50   : > { %v5651_v1 = vadd.f32 1.0, %v5635_v27  ;;  %v5637_v5 = vmul.f32 %v5621_v47, %v16111_v26  ;;  %v5495_v45 = vmul.f32 %v16125_v60, %v5479_v34  ;;  %13799 = vpow2.f32 %v5579_v56 }
 0xb51   : > { %v5583_v40 = vmul.f32 1.442695, %v5561_v17  ;;  %13801 = vpow2.f32 %v5581_v31  ;;  %v5418_v8 = vadd.f32 -1.4531521, %v5402_v55  ;;  %v5585_v26 = vmul.f32 1.442695, %v5562_v25 }
 0xb52   : > { %v5653_v21 = vadd.f32 1.0, %v5637_v5  ;;  %v16177_v30 = vmul.f32 %v5651_v1, %v16079_v28  ;;  %v5524_v32 = vmul.f32 %v16064_v10, %v5508_v35  ;;  %v5496_v54 = vmul.f32 %v16130_v23, %v5480_v22 }
 0xb53   : > { %v5510_v24 = vadd.f32 0.2548296, %v5494_v20  ;;  %v5497_v34 = vmul.f32 %v16140_v59, %v5481_v41  ;;  %v5434_v13 = vmul.f32 %v16163_v57, %v5418_v8  ;;  %v16187_v27 = vmul.f32 0.70710677, %v16172_v12 }
 0xb54   : > { %v16181_v14 = vmul.f32 %v5653_v21, %v16100_v29  ;;  %v18016_v31 = vmov -1.0   ;;  %v5511_v53 = vadd.f32 0.2548296, %v5495_v45  ;;  %13803 = vpow2.f32 %v5583_v40  ;;  %v13796_v29 = vpop.eup %13795 }
 0xb55   : > { %v5316_v28 = vsel %vm5300_vm7, 1.0, %v18016_v31  ;;  %v5318_v46 = vsel %vm5302_vm8, 1.0, %v18016_v31  ;;  %v16198_v62 = vmul.f32 0.5, %v16026_v4  ;;  %v5450_v38 = vadd.f32 1.4214138, %v5434_v13 }
 0xb56   : > { %v5715_v10 = vpack.c.bf16 %v16181_v14, %v16177_v30  ;;  %v5604_v63 = vmul.f32 %v13792_v3, %v5524_v32  ;;  %v5512_v11 = vadd.f32 0.2548296, %v5496_v54  ;;  %13805 = vpow2.f32 %v5585_v26 }
 0xb57   : > { %v16202_v7 = vand.u32 2147483647, %v16187_v27  ;;  %v16204_v47 = vpop.eup %13797  ;;  %v5526_v56 = vmul.f32 %v16088_v44, %v5510_v24  ;;  %v5513_v17 = vadd.f32 0.2548296, %v5497_v34  ;;  %v5466_v18 = vmul.f32 %v16163_v57, %v5450_v38 }
 0xb58   : > { %v16210_v4 = vadd.f32 %v16050_v36, %v15989_v52  ;;  %v5527_v39 = vmul.f32 %v16125_v60, %v5511_v53  ;;  %v16214_v3 = vmul.f32 0.5, %v16029_v37  ;;  %v5403_v25 = vmul.f32 1.0614054, %v16204_v47 }
 0xb59   : > { %v5356_v1 = vmul.f32 0.3275911, %v16202_v7  ;;  %v5319_v35 = vsel %vm5303_vm9, 1.0, %v18016_v31  ;;  %v16221_v44 = vmul.f32 0.5, %v16032_v48  ;;  %v5482_v5 = vadd.f32 -0.28449672, %v5466_v18 }
 0xb5a   : > { %v13800_v22 = vpop.eup %13799  ;;  %v5620_v36 = vsub.f32 1.0, %v5604_v63  ;;  %v5528_v20 = vmul.f32 %v16130_v23, %v5512_v11  ;;  %v5419_v60 = vadd.f32 -1.4531521, %v5403_v25  ;;  %v5606_v55 = vmul.f32 %v13796_v29, %v5526_v56 }
 0xb5b   : > { %v5372_v41 = vadd.f32 1.0, %v5356_v1  ;;  %v13802_v37 = vpop.eup %13801  ;;  %v5529_v21 = vmul.f32 %v16140_v59, %v5513_v17  ;;  %v5498_v45 = vmul.f32 %v16163_v57, %v5482_v5  ;;  %v16227_v40 = vmul.f32 0.70710677, %v16210_v4 }
 0xb5c   : > { %v5607_v43 = vmul.f32 %v13800_v22, %v5527_v39  ;;  %v5320_v48 = vsel %vm5304_vm10, 1.0, %v18016_v31  ;;  %v5435_v8 = vmul.f32 %v16204_v47, %v5419_v60  ;;  %v5547_v26 = vsub.f32 0.0, %v16151_v9 }
 0xb5d   : > { %13807 = vrcp.f32 %v5372_v41  ;;  %v5514_v23 = vadd.f32 0.2548296, %v5498_v45  ;;  %v16234_v32 = vand.u32 2147483647, %v16227_v40  ;;  %v5636_v54 = vmul.f32 %v5620_v36, %v5316_v28 }
 0xb5e   : > { %v13804_v59 = vpop.eup %13803  ;;  %v5608_v24 = vmul.f32 %v13802_v37, %v5528_v20  ;;  %v5451_v34 = vadd.f32 1.4214138, %v5435_v8  ;;  %v16238_v13 = vadd.f32 %v16055_v0, %v15992_v51  ;;  %v5622_v53 = vsub.f32 1.0, %v5606_v55 }
 0xb5f   : > { %v5609_v29 = vmul.f32 %v13804_v59, %v5529_v21  ;;  %v5530_v38 = vmul.f32 %v16163_v57, %v5514_v23  ;;  %v5357_v50 = vmul.f32 0.3275911, %v16234_v32  ;;  %v5623_v11 = vsub.f32 1.0, %v5607_v43 }
 0xb60   : > { %v13806_v63 = vpop.eup %13805  ;;  %v5321_v56 = vsel %vm5305_vm11, 1.0, %v18016_v31  ;;  %v16244_v17 = vmul.f32 0.70710677, %v16238_v13  ;;  %v16248_v28 = vadd.f32 %v16072_v58, %v15989_v52  ;;  %v5563_v18 = vmul.f32 %v5547_v26, %v16151_v9 }
 0xb61   : > { %v5610_v0 = vmul.f32 %v13806_v63, %v5530_v38  ;;  %v5373_v39 = vadd.f32 1.0, %v5357_v50  ;;  %v5624_v57 = vsub.f32 1.0, %v5608_v24  ;;  %v5467_v25 = vmul.f32 %v16204_v47, %v5451_v34 }
 0xb62   : > { %v16254_v1 = vand.u32 2147483647, %v16244_v17  ;;  %v16258_v5 = vadd.f32 %v16076_v61, %v15992_v51  ;;  %v5652_v22 = vadd.f32 1.0, %v5636_v54  ;;  %v5638_v36 = vmul.f32 %v5622_v53, %v5318_v46 }
 0xb63   : > { %v5625_v58 = vsub.f32 1.0, %v5609_v29  ;;  %13809 = vrcp.f32 %v5373_v39  ;;  %v5639_v20 = vmul.f32 %v5623_v11, %v5319_v35  ;;  %v5626_v60 = vsub.f32 1.0, %v5610_v0 }
 0xb64   : > { %v5358_v41 = vmul.f32 0.3275911, %v16254_v1  ;;  %v16262_v9 = vmul.f32 0.70710677, %v16248_v28  ;;  %v5274_v37 = vmul.f32 0.5, %v16070_v16  ;;  %v5322_v55 = vsel %vm5306_vm12, 1.0, %v18016_v31 }
 0xb65   : > { %v5587_v21 = vmul.f32 1.442695, %v5563_v18  ;;  %v5548_v61 = vsub.f32 0.0, %v16202_v7  ;;  %v5640_v46 = vmul.f32 %v5624_v57, %v5320_v48  ;;  %v5483_v43 = vadd.f32 -0.28449672, %v5467_v25 }
 0xb66   : > { %v5374_v35 = vadd.f32 1.0, %v5358_v41  ;;  %v16272_v8 = vmul.f32 0.70710677, %v16258_v5  ;;  %v5668_v23 = vmul.f32 %v5652_v22, %v16083_v6  ;;  %v5641_v26 = vmul.f32 %v5625_v58, %v5321_v56 }
 0xb67   : > { %v16269_v45 = vpop.eup %13807  ;;  %v16277_v59 = vand.u32 2147483647, %v16262_v9  ;;  %v5654_v42 = vadd.f32 1.0, %v5638_v36  ;;  %v5655_v54 = vadd.f32 1.0, %v5639_v20  ;;  %v5642_v24 = vmul.f32 %v5626_v60, %v5322_v55 }
 0xb68   : > { %v5404_v16 = vmul.f32 1.0614054, %v16269_v45  ;;  %13811 = vrcp.f32 %v5374_v35  ;;  %v5564_v48 = vmul.f32 %v5548_v61, %v16202_v7  ;;  %v5549_v53 = vsub.f32 0.0, %v16234_v32 }
 0xb69   : > { %v5359_v29 = vmul.f32 0.3275911, %v16277_v59  ;;  %v5656_v38 = vadd.f32 1.0, %v5640_v46  ;;  %v5499_v6 = vmul.f32 %v16204_v47, %v5483_v43  ;;  %13813 = vpow2.f32 %v5587_v21 }
 0xb6a   : > { %v5420_v34 = vadd.f32 -1.4531521, %v5404_v16  ;;  %v16284_v50 = vand.u32 2147483647, %v16272_v8  ;;  %v5657_v63 = vadd.f32 1.0, %v5641_v26  ;;  %v16289_v0 = vadd.f32 %v16086_v33, %v15989_v52 }
 0xb6b   : > { %v5375_v56 = vadd.f32 1.0, %v5359_v29  ;;  %v5670_v7 = vmul.f32 %v5654_v42, %v16114_v19  ;;  %v16293_v18 = vmul.f32 %v5655_v54, %v16198_v62  ;;  %v5658_v39 = vadd.f32 1.0, %v5642_v24 }
 0xb6c   : > { %v5436_v11 = vmul.f32 %v16269_v45, %v5420_v34  ;;  %v5360_v57 = vmul.f32 0.3275911, %v16284_v50  ;;  %vm5308_vm14 = vcmp.ge.f32.partialorder %v16187_v27, 0.0  ;;  %v5589_v36 = vmul.f32 1.442695, %v5564_v48 }
 0xb6d   : > { %v16297_v25 = vpop.eup %13809  ;;  %v5565_v58 = vmul.f32 %v5549_v53, %v16234_v32  ;;  %13815 = vrcp.f32 %v5375_v56  ;;  %v5515_v52 = vadd.f32 0.2548296, %v5499_v6  ;;  %v5550_v19 = vsub.f32 0.0, %v16254_v1 }
 0xb6e   : > { %v5452_v22 = vadd.f32 1.4214138, %v5436_v11  ;;  %v5405_v33 = vmul.f32 1.0614054, %v16297_v25  ;;  %v5376_v62 = vadd.f32 1.0, %v5360_v57  ;;  %v5672_v20 = vmul.f32 %v5656_v38, %v16214_v3 }
 0xb6f   : > { %v16305_v60 = vmul.f32 %v5657_v63, %v16221_v44  ;;  %v16309_v55 = vmul.f32 0.70710677, %v16289_v0  ;;  %v5674_v21 = vmul.f32 %v5658_v39, %v5274_v37  ;;  %v16313_v32 = vadd.f32 %v16096_v2, %v15992_v51 }
 0xb70   : > { %v5468_v41 = vmul.f32 %v16269_v45, %v5452_v22  ;;  %v5421_v61 = vadd.f32 -1.4531521, %v5405_v33  ;;  %13817 = vrcp.f32 %v5376_v62  ;;  %v5591_v43 = vmul.f32 1.442695, %v5565_v58 }
 0xb71   : > { %v16316_v35 = vand.u32 2147483647, %v16309_v55  ;;  %v5716_v3 = vpack.c.bf16 %v5670_v7, %v5668_v23  ;;  %v5531_v26 = vmul.f32 %v16204_v47, %v5515_v52  ;;  %13819 = vpow2.f32 %v5589_v36 }
 0xb72   : > { %v5484_v46 = vadd.f32 -0.28449672, %v5468_v41  ;;  %v16318_v44 = vpop.eup %13811  ;;  %v5437_v16 = vmul.f32 %v16297_v25, %v5421_v61  ;;  %v5566_v37 = vmul.f32 %v5550_v19, %v16254_v1  ;;  %v5551_v2 = vsub.f32 0.0, %v16277_v59 }
 0xb73   : > { %v5406_v51 = vmul.f32 1.0614054, %v16318_v44  ;;  %v5361_v54 = vmul.f32 0.3275911, %v16316_v35  ;;  %5851 = vmatprep.mubr.bf16.mxu0 %v5716_v3  ;;  %v13814_v24 = vpop.eup %13813  ;;  %v16328_v34 = vmul.f32 0.70710677, %v16313_v32  ;;  %v5718_v47 = vpack.c.bf16 %v5674_v21, %v5672_v20 }
 0xb74   : > { %v5500_v42 = vmul.f32 %v16269_v45, %v5484_v46  ;;  %v5453_v23 = vadd.f32 1.4214138, %v5437_v16  ;;  %5852 = vmatmul.mubr.bf16.vlgmr.msra.gmra.mrb[52].mxu0 %v5715_v10  ;;  %v5717_v1 = vpack.c.bf16 %v16305_v60, %v16293_v18  ;;  %13821 = vpow2.f32 %v5591_v43 }
 0xb75   : > { %v5422_v53 = vadd.f32 -1.4531521, %v5406_v51  ;;  %v5377_v29 = vadd.f32 1.0, %v5361_v54  ;;  %v5611_v38 = vmul.f32 %v13814_v24, %v5531_v26  ;;  %v5593_v63 = vmul.f32 1.442695, %v5566_v37  ;;  %5859 = vmatprep.mubr.bf16.mxu0 %v5718_v47 }
 0xb76   : > { %v5516_v48 = vadd.f32 0.2548296, %v5500_v42  ;;  %v5469_v6 = vmul.f32 %v16297_v25, %v5453_v23  ;;  %v16337_v11 = vand.u32 2147483647, %v16328_v34  ;;  %v16342_v30 = vmul.f32 0.5, %v16123_v15 }
 0xb77   : > { %v16339_v56 = vpop.eup %13815  ;;  %v5323_v14 = vsel %vm5307_vm13, 1.0, %v18016_v31  ;;  %v5438_v10 = vmul.f32 %v16318_v44, %v5422_v53  ;;  %13823 = vrcp.f32 %v5377_v29  ;;  %v5324_v7 = vsel %vm5308_vm14, 1.0, %v18016_v31 }
 0xb78   : > { %v5485_v18 = vadd.f32 -0.28449672, %v5469_v6  ;;  %v5407_v39 = vmul.f32 1.0614054, %v16339_v56  ;;  %v5567_v57 = vmul.f32 %v5551_v2, %v16277_v59  ;;  %v5532_v22 = vmul.f32 %v16269_v45, %v5516_v48 }
 0xb79   : > { %vm5309_vm15 = vcmp.ge.f32.partialorder %v16227_v40, 0.0  ;;  %v5454_v15 = vadd.f32 1.4214138, %v5438_v10  ;;  %v5362_v49 = vmul.f32 0.3275911, %v16337_v11  ;;  %v5627_v58 = vsub.f32 1.0, %v5611_v38 }
 0xb7a   : > { %v16356_v36 = vpop.eup %13817  ;;  %v5501_v52 = vmul.f32 %v16297_v25, %v5485_v18  ;;  %13825 = vpow2.f32 %v5593_v63  ;;  %v5423_v27 = vadd.f32 -1.4531521, %v5407_v39  ;;  %v5552_v59 = vsub.f32 0.0, %v16284_v50 }
 0xb7b   : > { %v5470_v33 = vmul.f32 %v16318_v44, %v5454_v15  ;;  %v5408_v19 = vmul.f32 1.0614054, %v16356_v36  ;;  %v5378_v62 = vadd.f32 1.0, %v5362_v49  ;;  %v13820_v45 = vpop.eup %13819  ;;  %v5595_v41 = vmul.f32 1.442695, %v5567_v57 }
 0xb7c   : > { %v5517_v20 = vadd.f32 0.2548296, %v5501_v52  ;;  %v5439_v60 = vmul.f32 %v16339_v56, %v5423_v27  ;;  %v5553_v21 = vsub.f32 0.0, %v16316_v35  ;;  %5860 = vmatmul.mubr.bf16.gmra.mrb[56].mxu0 %v5717_v1  ;;  %v5612_v61 = vmul.f32 %v13820_v45, %v5532_v22 }
 0xb7d   : > { %v5486_v46 = vadd.f32 -0.28449672, %v5470_v33  ;;  %v5424_v43 = vadd.f32 -1.4531521, %v5408_v19  ;;  %13827 = vrcp.f32 %v5378_v62  ;;  %v5643_v3 = vmul.f32 %v5627_v58, %v5323_v14 }
 0xb7e   : > { %v5277_v26 = vmul.f32 0.5, %v16210_v4  ;;  %v5533_v16 = vmul.f32 %v16297_v25, %v5517_v20  ;;  %v5455_v37 = vadd.f32 1.4214138, %v5439_v60  ;;  %v13822_v42 = vpop.eup %13821  ;;  %v5325_v51 = vsel %vm5309_vm15, 1.0, %v18016_v31 }
 0xb7f   : > { %v5502_v2 = vmul.f32 %v16318_v44, %v5486_v46  ;;  %v5440_v54 = vmul.f32 %v16356_v36, %v5424_v43  ;;  %v5568_v24 = vmul.f32 %v5552_v59, %v16284_v50  ;;  %vm5310_vm5 = vcmp.ge.f32.partialorder %v16244_v17, 0.0 }
 0xb80   : > { %v5613_v23 = vmul.f32 %v13822_v42, %v5533_v16  ;;  %v5471_v47 = vmul.f32 %v16339_v56, %v5455_v37  ;;  %13829 = vpow2.f32 %v5595_v41  ;;  %v5628_v25 = vsub.f32 1.0, %v5612_v61 }
 0xb81   : > { %v16374_v4 = vpop.eup %13823  ;;  %v5518_v1 = vadd.f32 0.2548296, %v5502_v2  ;;  %v5456_v48 = vadd.f32 1.4214138, %v5440_v54  ;;  %v5569_v40 = vmul.f32 %v5553_v21, %v16316_v35  ;;  %v5659_v53 = vadd.f32 1.0, %v5643_v3 }
 0xb82   : > { %v5629_v29 = vsub.f32 1.0, %v5613_v23  ;;  %v5487_v38 = vadd.f32 -0.28449672, %v5471_v47  ;;  %v5409_v6 = vmul.f32 1.0614054, %v16374_v4  ;;  %v5554_v10 = vsub.f32 0.0, %v16337_v11 }
 0xb83   : > { %v5534_v50 = vmul.f32 %v16318_v44, %v5518_v1  ;;  %v5472_v63 = vmul.f32 %v16356_v36, %v5456_v48  ;;  %v5597_v14 = vmul.f32 1.442695, %v5568_v24  ;;  %v5326_v57 = vsel %vm5310_vm5, 1.0, %v18016_v31 }
 0xb84   : > { %v13826_v18 = vpop.eup %13825  ;;  %v5645_v39 = vmul.f32 %v5629_v29, %v5325_v51  ;;  %v5503_v35 = vmul.f32 %v16339_v56, %v5487_v38  ;;  %v5425_v22 = vadd.f32 -1.4531521, %v5409_v6  ;;  %v5644_v15 = vmul.f32 %v5628_v25, %v5324_v7 }
 0xb85   : > { %v5614_v49 = vmul.f32 %v13826_v18, %v5534_v50  ;;  %v5488_v58 = vadd.f32 -0.28449672, %v5472_v63  ;;  %v5599_v52 = vmul.f32 1.442695, %v5569_v40  ;;  %v5675_v44 = vmul.f32 %v5659_v53, %v16342_v30 }
 0xb86   : > { %v5661_v27 = vadd.f32 1.0, %v5645_v39  ;;  %v5519_v33 = vadd.f32 0.2548296, %v5503_v35  ;;  %v5441_v19 = vmul.f32 %v16374_v4, %v5425_v22  ;;  %13831 = vpow2.f32 %v5597_v14 }
 0xb87   : > { %v13828_v59 = vpop.eup %13827  ;;  %v5630_v62 = vsub.f32 1.0, %v5614_v49  ;;  %v5504_v45 = vmul.f32 %v16356_v36, %v5488_v58  ;;  %v5570_v17 = vmul.f32 %v5554_v10, %v16337_v11  ;;  %v5660_v21 = vadd.f32 1.0, %v5644_v15 }
 0xb88   : > { %v5677_v20 = vmul.f32 %v5661_v27, %v5277_v26  ;;  %v5535_v60 = vmul.f32 %v16339_v56, %v5519_v33  ;;  %v5457_v7 = vadd.f32 1.4214138, %v5441_v19  ;;  %v5410_v41 = vmul.f32 1.0614054, %v13828_v59 }
 0xb89   : > { %v5646_v61 = vmul.f32 %v5630_v62, %v5326_v57  ;;  %13833 = vpow2.f32 %v5599_v52  ;;  %v5520_v46 = vadd.f32 0.2548296, %v5504_v45  ;;  %v5276_v37 = vmul.f32 0.5, %v16172_v12 }
 0xb8a   : > { %v13830_v30 = vpop.eup %13829  ;;  %v5473_v43 = vmul.f32 %v16374_v4, %v5457_v7  ;;  %v5426_v3 = vadd.f32 -1.4531521, %v5410_v41  ;;  %v5719_v16 = vpack.c.bf16 %v5677_v20, %v5675_v44  ;;  %v5278_v42 = vmul.f32 0.5, %v16238_v13 }
 0xb8b   : > { %v5662_v51 = vadd.f32 1.0, %v5646_v61  ;;  %v5601_v11 = vmul.f32 1.442695, %v5570_v17  ;;  %v5615_v26 = vmul.f32 %v13830_v30, %v5535_v60  ;;  %v5676_v54 = vmul.f32 %v5660_v21, %v5276_v37 }
 0xb8c   : > { %v5489_v2 = vadd.f32 -0.28449672, %v5473_v43  ;;  %v5442_v56 = vmul.f32 %v13828_v59, %v5426_v3  ;;  %v5536_v23 = vmul.f32 %v16356_v36, %v5520_v46  ;;  %vm5311_vm6 = vcmp.ge.f32.partialorder %v16262_v9, 0.0  ;;  %v11417_v46 = vld [vmem:[%s18017_s19] ss:$0 sm:$0xff]  ;;  %v18018_v43 = vld [vmem:[#allocation34_spill] sm:$0xff] }
 0xb8d   : > { %v5678_v24 = vmul.f32 %v5662_v51, %v5278_v42  ;;  %13835 = vpow2.f32 %v5601_v11  ;;  %v5631_v48 = vsub.f32 1.0, %v5615_v26  ;;  %v5327_v36 = vsel %vm5311_vm6, 1.0, %v18016_v31 }
 0xb8e   : > { %v5505_v47 = vmul.f32 %v16374_v4, %v5489_v2  ;;  %v5458_v25 = vadd.f32 1.4214138, %v5442_v56  ;;  %vm5313_vm7 = vcmp.ge.f32.partialorder %v16309_v55, 0.0  ;;  %vm5312_vm8 = vcmp.ge.f32.partialorder %v16272_v8, 0.0 }
 0xb8f   : > { %v5720_v1 = vpack.c.bf16 %v5678_v24, %v5676_v54  ;;  %v5647_v50 = vmul.f32 %v5631_v48, %v5327_v36  ;;  %v5329_v39 = vsel %vm5313_vm7, 1.0, %v18016_v31  ;;  %v5279_v15 = vmul.f32 0.5, %v16248_v28  ;;  %v18020_v54 = vld [vmem:[#allocation36_spill] sm:$0xff] }
 0xb90   : > { %v5521_v12 = vadd.f32 0.2548296, %v5505_v47  ;;  %v5474_v40 = vmul.f32 %v13828_v59, %v5458_v25  ;;  %v13832_v13 = vpop.eup %13831  ;;  %v5328_v49 = vsel %vm5312_vm8, 1.0, %v18016_v31  ;;  %v5281_v58 = vmul.f32 0.5, %v16289_v0  ;;  %v18021_v47 = vld [vmem:[#allocation37_spill] sm:$0xff] }
 0xb91   : > { %5867 = vmatprep.mubr.bf16.mxu0 %v5720_v1  ;;  %v5616_v53 = vmul.f32 %v13832_v13, %v5536_v23  ;;  %v5663_v57 = vadd.f32 1.0, %v5647_v50  ;;  %vm5314_vm9 = vcmp.ge.f32.partialorder %v16328_v34, 0.0  ;;  %v5280_v17 = vmul.f32 0.5, %v16258_v5  ;;  %v18023_v50 = vld [vmem:[#allocation27_spill] sm:$0xff] }
 0xb92   : > { %v5537_v29 = vmul.f32 %v16374_v4, %v5521_v12  ;;  %v5490_v38 = vadd.f32 -0.28449672, %v5474_v40  ;;  %5868 = vmatmul.mubr.bf16.gmra.mrb[60].mxu0 %v5719_v16  ;;  %v5330_v19 = vsel %vm5314_vm9, 1.0, %v18016_v31  ;;  %v5282_v28 = vmul.f32 0.5, %v16313_v32  ;;  %v18019_v16 = vld [vmem:[#allocation35_spill] sm:$0xff] }
 0xb93   : > { %v13834_v6 = vpop.eup %13833  ;;  %v5632_v9 = vsub.f32 1.0, %v5616_v53  ;;  %v5679_v44 = vmul.f32 %v5663_v57, %v5279_v15 }
 0xb94   : > { %v5617_v63 = vmul.f32 %v13834_v6, %v5537_v29  ;;  %v5506_v14 = vmul.f32 %v13828_v59, %v5490_v38  ;;  %v18022_v38 = vld [vmem:[#allocation29_spill] sm:$0xff] }
 0xb95   : > { %v5648_v55 = vmul.f32 %v5632_v9, %v5328_v49  ;;  %v18026_v49 = vld [vmem:[#allocation38_spill] sm:$0xff] }
 0xb96   : > { %v5633_v10 = vsub.f32 1.0, %v5617_v63  ;;  %v5522_v18 = vadd.f32 0.2548296, %v5506_v14 }
 0xb97   : > { %v13836_v22 = vpop.eup %13835  ;;  %v5664_v62 = vadd.f32 1.0, %v5648_v55 }
 0xb98   : > { %v5649_v35 = vmul.f32 %v5633_v10, %v5329_v39  ;;  %v5538_v4 = vmul.f32 %v13828_v59, %v5522_v18 }
 0xb99   : > { %v5680_v60 = vmul.f32 %v5664_v62, %v5280_v17 }
 0xb9a   : > { %v5665_v52 = vadd.f32 1.0, %v5649_v35  ;;  %v5618_v8 = vmul.f32 %v13836_v22, %v5538_v4  ;;  %v18025_v4 = vld [vmem:[#allocation28_spill] sm:$0xff] }
 0xb9c   : > { %v5681_v27 = vmul.f32 %v5665_v52, %v5281_v58  ;;  %v5634_v33 = vsub.f32 1.0, %v5618_v8  ;;  %v13525_v8 = vld [vmem:[#allocation10 + $0xc0] ss:$12 sps:$4 sm:$0xff]  }
 0xb9e   : > { %v5650_v45 = vmul.f32 %v5634_v33, %v5330_v19  ;;  %v5721_v59 = vpack.c.bf16 %v5681_v27, %v5679_v44  ;;  %v13527_v44 = vld [vmem:[#allocation10 + $0xc4] ss:$12 sps:$4 sm:$0xff]   ;;  %v13530_v27 = vld [vmem:[#allocation10 + $0xdc] ss:$12 sps:$4 sm:$0xff]  }
 0xb9f   : > { %6210 = vmatprep.subr.bf16.mxu1 %v13527_v44  ;;  %v13528_v33 = vld [vmem:[#allocation10 + $0xd8] ss:$12 sps:$4 sm:$0xff]  }
 0xba0   : > { %v5666_v20 = vadd.f32 1.0, %v5650_v45  ;;  %6211 = vmatpush1.bf16.msra.mxu1 %v13525_v8  ;;  %v13556_v8 = vld [vmem:[#allocation10 + $0x170] ss:$12 sps:$4 sm:$0xff]  }
 0xba1   : > { %6212 = vmatprep.subr.bf16.mxu1 %v13530_v27 }
 0xba2   : > { %v5682_v0 = vmul.f32 %v5666_v20, %v5282_v28 }
 0xba4   : > { %v5722_v7 = vpack.c.bf16 %v5682_v0, %v5680_v60  ;;  %6213 = vmatpush1.bf16.msra.mxu1 %v13528_v33 }
 0xba6   : > { %5875 = vmatprep.mubr.bf16.mxu0 %v5722_v7 }
 0xba7   : > { %5876 = vmatmul.mubr.bf16.gmra.mrb[64].mxu0 %v5721_v59 }
 0xc47   : > { %v11790_v34 = vpop.f32.mrb[52].mxu0 }
 0xc48   : > { %v11791_v41 = vpop.f32.mrb[53].mxu0 }
 0xc49   : > { %v11792_v21 = vadd.f32 %v11791_v41, %v11790_v34  ;;  %v11793_v61 = vpop.f32.mrb[54].mxu0 }
 0xc4a   : > { %v11794_v30 = vpop.f32.mrb[55].mxu0 }
 0xc4b   : > { %v5884_v3 = vadd.f32 %v11792_v21, %v18018_v43  ;;  %v11795_v5 = vadd.f32 %v11794_v30, %v11793_v61 }
 0xc4d   : > { %v5885_v32 = vadd.f32 %v11795_v5, %v18019_v16  ;;  %v16413_v37 = vadd.f32 %v11417_v46, %v5884_v3 }
 0xc4f   : > { %5911 = vadd.xlane.f32.xlu1 %v16413_v37  ;;  %v11796_v42 = vpop.f32.mrb[56].mxu0  ;;  %v16416_v51 = vadd.f32 %v11417_v46, %v5885_v32 }
 0xc50   : > { %v11797_v11 = vpop.f32.mrb[57].mxu0 }
 0xc51   : > { %v11798_v26 = vadd.f32 %v11797_v11, %v11796_v42  ;;  %5913 = vadd.xlane.f32.xlu0 %v16416_v51  ;;  %v11799_v2 = vpop.f32.mrb[58].mxu0 }
 0xc52   : > { %v11800_v56 = vpop.f32.mrb[59].mxu0 }
 0xc53   : > { %v5886_v24 = vadd.f32 %v11798_v26, %v18020_v54  ;;  %v11801_v23 = vadd.f32 %v11800_v56, %v11799_v2  ;;  %v13531_v2 = vld [vmem:[#allocation10 + $0xf0] ss:$12 sps:$4 sm:$0xff]   ;;  %v13533_v56 = vld [vmem:[#allocation10 + $0xf4] ss:$12 sps:$4 sm:$0xff]  }
 0xc54   : > { %v13534_v54 = vld [vmem:[#allocation10 + $0xc8] ss:$12 sps:$4 sm:$0xff]   ;;  %6214 = vmatprep.subr.bf16.mxu1 %v13533_v56 }
 0xc55   : > { %v5887_v25 = vadd.f32 %v11801_v23, %v18021_v47  ;;  %v16421_v1 = vadd.f32 %v11417_v46, %v5886_v24  ;;  %12290 = vmatprep.subr.bf16.mxu0 %v13534_v54  ;;  %v13537_v24 = vld [vmem:[#allocation10 + $0x10c] ss:$12 sps:$4 sm:$0xff]   ;;  %6215 = vmatpush1.bf16.msra.mxu1 %v13531_v2  ;;  %v13535_v47 = vld [vmem:[#allocation10 + $0x108] ss:$12 sps:$4 sm:$0xff]  }
 0xc56   : > { %v13538_v23 = vld [vmem:[#allocation10 + $0xe0] ss:$12 sps:$4 sm:$0xff]   ;;  %12291 = vmatpush3.bf16.msra.mxu0 %v13534_v54  ;;  %6216 = vmatprep.subr.bf16.mxu1 %v13537_v24 }
 0xc57   : > { %5915 = vadd.xlane.f32.xlu1 %v16421_v1  ;;  %v16424_v48 = vadd.f32 %v11417_v46, %v5887_v25  ;;  %12292 = vmatprep.subr.bf16.mxu0 %v13538_v23  ;;  %v13541_v25 = vld [vmem:[#allocation10 + $0x124] ss:$12 sps:$4 sm:$0xff]  }
 0xc59   : > { %5917 = vadd.xlane.f32.xlu0 %v16424_v48  ;;  %6217 = vmatpush1.bf16.msra.mxu1 %v13535_v47 }
 0xc5a   : > { %12293 = vmatpush3.bf16.msra.mxu0 %v13538_v23  ;;  %6218 = vmatprep.subr.bf16.mxu1 %v13541_v25 }
 0xc65   : > { %v11802_v12 = vpop.f32.mrb[60].mxu0 }
 0xc66   : > { %v11803_v40 = vpop.f32.mrb[61].mxu0 }
 0xc67   : > { %v11804_v13 = vadd.f32 %v11803_v40, %v11802_v12  ;;  %v11805_v53 = vpop.f32.mrb[62].mxu0  ;;  %v13542_v12 = vld [vmem:[#allocation10 + $0xf8] ss:$12 sps:$4 sm:$0xff]   ;;  %v13539_v40 = vld [vmem:[#allocation10 + $0x120] ss:$12 sps:$4 sm:$0xff]  }
 0xc68   : > { %v11806_v29 = vpop.f32.mrb[63].mxu0  ;;  %12294 = vmatprep.subr.bf16.mxu0 %v13542_v12  ;;  %6219 = vmatpush1.bf16.msra.mxu1 %v13539_v40 }
 0xc69   : > { %v5888_v6 = vadd.f32 %v11804_v13, %v18022_v38  ;;  %v11807_v36 = vadd.f32 %v11806_v29, %v11805_v53  ;;  %v13545_v13 = vld [vmem:[#allocation10 + $0x13c] ss:$12 sps:$4 sm:$0xff]   ;;  %12295 = vmatpush3.bf16.msra.mxu0 %v13542_v12  ;;  %v13543_v29 = vld [vmem:[#allocation10 + $0x138] ss:$12 sps:$4 sm:$0xff]   ;;  %v18029_v12 = vmov 0  }
 0xc6a   : > { %v13546_v53 = vld [vmem:[#allocation10 + $0x110] ss:$12 sps:$4 sm:$0xff]   ;;  %6220 = vmatprep.subr.bf16.mxu1 %v13545_v13 }
 0xc6b   : > { %v5889_v63 = vadd.f32 %v11807_v36, %v18023_v50  ;;  %v16429_v14 = vadd.f32 %v11417_v46, %v5888_v6  ;;  %12296 = vmatprep.subr.bf16.mxu0 %v13546_v53 }
 0xc6c   : > { %6221 = vmatpush1.bf16.msra.mxu1 %v13543_v29 }
 0xc6d   : > { %5919 = vadd.xlane.f32.xlu1 %v16429_v14  ;;  %v16432_v9 = vadd.f32 %v11417_v46, %v5889_v63  ;;  %12297 = vmatpush3.bf16.msra.mxu0 %v13546_v53 }
 0xc6f   : > { %18024 = vst [vmem:[#allocation34_spill] sm:$0xff] %v16432_v9  ;;  %5921 = vadd.xlane.f32.xlu0 %v16432_v9 }
 0xc7a   : > { %v11808_v10 = vpop.f32.mrb[64].mxu0 }
 0xc7b   : > { %v11809_v18 = vpop.f32.mrb[65].mxu0 }
 0xc7c   : > { %v11810_v39 = vadd.f32 %v11809_v18, %v11808_v10  ;;  %v11811_v57 = vpop.f32.mrb[66].mxu0  ;;  %v13547_v10 = vld [vmem:[#allocation10 + $0x150] ss:$12 sps:$4 sm:$0xff]   ;;  %v13549_v18 = vld [vmem:[#allocation10 + $0x154] ss:$12 sps:$4 sm:$0xff]  }
 0xc7d   : > { %v11812_v35 = vpop.f32.mrb[67].mxu0  ;;  %6222 = vmatprep.subr.bf16.mxu1 %v13549_v18 }
 0xc7e   : > { %v5890_v22 = vadd.f32 %v11810_v39, %v18025_v4  ;;  %v11813_v15 = vadd.f32 %v11812_v35, %v11811_v57  ;;  %v13550_v39 = vld [vmem:[#allocation10 + $0x128] ss:$12 sps:$4 sm:$0xff]   ;;  %v13553_v4 = vld [vmem:[#allocation10 + $0x16c] ss:$12 sps:$4 sm:$0xff]   ;;  %6223 = vmatpush1.bf16.msra.mxu1 %v13547_v10 }
 0xc7f   : > { %12298 = vmatprep.subr.bf16.mxu0 %v13550_v39  ;;  %6224 = vmatprep.subr.bf16.mxu1 %v13553_v4 }
 0xc80   : > { %v5891_v58 = vadd.f32 %v11813_v15, %v18026_v49  ;;  %v16437_v55 = vadd.f32 %v11417_v46, %v5890_v22  ;;  %v13554_v22 = vld [vmem:[#allocation10 + $0x140] ss:$12 sps:$4 sm:$0xff]   ;;  %v13551_v49 = vld [vmem:[#allocation10 + $0x168] ss:$12 sps:$4 sm:$0xff]   ;;  %12299 = vmatpush3.bf16.msra.mxu0 %v13550_v39 }
 0xc81   : > { %12300 = vmatprep.subr.bf16.mxu0 %v13554_v22 }
 0xc82   : > { %18027 = vst [vmem:[#allocation35_spill] sm:$0xff] %v16437_v55  ;;  %5923 = vadd.xlane.f32.xlu1 %v16437_v55  ;;  %v16440_v52 = vadd.f32 %v11417_v46, %v5891_v58  ;;  %6225 = vmatpush1.bf16.msra.mxu1 %v13551_v49  ;;  %v13555_v58 = vld [vmem:[#allocation10 + $0x158] ss:$12 sps:$4 sm:$0xff]  }
 0xc84   : > { %18028 = vst [vmem:[#allocation36_spill] sm:$0xff] %v16440_v52  ;;  %5925 = vadd.xlane.f32.xlu0 %v16440_v52  ;;  %12301 = vmatpush3.bf16.msra.mxu0 %v13554_v22 }
 0xc85   : > { %12302 = vmatprep.subr.bf16.mxu0 %v13555_v58 }
 0xc88   : > { %12303 = vmatpush3.bf16.msra.mxu0 %v13555_v58 }
 0xc89   : > { %12304 = vmatprep.subr.bf16.mxu0 %v13556_v8 }
 0xc8c   : > { %12305 = vmatpush3.bf16.msra.mxu0 %v13556_v8 }
 0xcdc   : > { %v5912_v19 = vpop.xlane.xlu1 %5911 }
 0xcdd   : > { %v5927_v62 = vmul.f32 0.0078125, %v5912_v19 }
 0xcde   : > { %v5914_v45 = vpop.xlane.xlu0 %5913 }
 0xcdf   : > { %v16444_v59 = vsub.f32 %v16413_v37, %v5927_v62  ;;  %v5928_v17 = vmul.f32 0.0078125, %v5914_v45 }
 0xce1   : > { %v16447_v28 = vsub.f32 %v16416_v51, %v5928_v17  ;;  %v5943_v20 = vmul.f32 %v16444_v59, %v16444_v59 }
 0xce3   : > { %5951 = vadd.xlane.f32.xlu1 %v5943_v20  ;;  %v5944_v60 = vmul.f32 %v16447_v28, %v16447_v28 }
 0xce4   : > { %v5916_v0 = vpop.xlane.xlu1 %5915 }
 0xce5   : > { %v5929_v7 = vmul.f32 0.0078125, %v5916_v0  ;;  %5953 = vadd.xlane.f32.xlu0 %v5944_v60 }
 0xce6   : > { %v5918_v34 = vpop.xlane.xlu0 %5917 }
 0xce7   : > { %v16454_v41 = vsub.f32 %v16421_v1, %v5929_v7  ;;  %v5930_v21 = vmul.f32 0.0078125, %v5918_v34 }
 0xce9   : > { %v16457_v61 = vsub.f32 %v16424_v48, %v5930_v21  ;;  %v5945_v30 = vmul.f32 %v16454_v41, %v16454_v41 }
 0xceb   : > { %5955 = vadd.xlane.f32.xlu1 %v5945_v30  ;;  %v5946_v46 = vmul.f32 %v16457_v61, %v16457_v61  ;;  %v11418_v30 = vld [vmem:[#allocation7 + $0x1] ss:$0 sm:$0xff] }
 0xced   : > { %5957 = vadd.xlane.f32.xlu0 %v5946_v46 }
 0xcfa   : > { %v5920_v43 = vpop.xlane.xlu1 %5919 }
 0xcfb   : > { %v5931_v3 = vmul.f32 0.0078125, %v5920_v43 }
 0xcfc   : > { %v5922_v5 = vpop.xlane.xlu0 %5921 }
 0xcfd   : > { %v16464_v16 = vsub.f32 %v16429_v14, %v5931_v3  ;;  %v5932_v32 = vmul.f32 0.0078125, %v5922_v5 }
 0xcff   : > { %v16467_v42 = vsub.f32 %v16432_v9, %v5932_v32  ;;  %v5947_v11 = vmul.f32 %v16464_v16, %v16464_v16  ;;  %v11419_v32 = vld [vmem:[#allocation8 + $0x1] ss:$0 sm:$0xff] }
 0xd01   : > { %5959 = vadd.xlane.f32.xlu1 %v5947_v11  ;;  %v5948_v26 = vmul.f32 %v16467_v42, %v16467_v42 }
 0xd03   : > { %5961 = vadd.xlane.f32.xlu0 %v5948_v26 }
 0xd0f   : > { %v5924_v38 = vpop.xlane.xlu1 %5923 }
 0xd10   : > { %v5933_v6 = vmul.f32 0.0078125, %v5924_v38 }
 0xd11   : > { %v5926_v36 = vpop.xlane.xlu0 %5925 }
 0xd12   : > { %v16474_v50 = vsub.f32 %v16437_v55, %v5933_v6  ;;  %v5934_v63 = vmul.f32 0.0078125, %v5926_v36 }
 0xd14   : > { %v16477_v57 = vsub.f32 %v16440_v52, %v5934_v63  ;;  %v5949_v35 = vmul.f32 %v16474_v50, %v16474_v50 }
 0xd16   : > { %5963 = vadd.xlane.f32.xlu1 %v5949_v35  ;;  %v5950_v15 = vmul.f32 %v16477_v57, %v16477_v57 }
 0xd18   : > { %5965 = vadd.xlane.f32.xlu0 %v5950_v15 }
 0xd70   : > { %v5952_v44 = vpop.xlane.xlu1 %5951 }
 0xd71   : > { %v5967_v27 = vmul.f32 0.0078125, %v5952_v44 }
 0xd72   : > { %v5954_v33 = vpop.xlane.xlu0 %5953 }
 0xd73   : > { %v5975_v19 = vadd.f32 1e-12, %v5967_v27  ;;  %v5968_v62 = vmul.f32 0.0078125, %v5954_v33 }
 0xd75   : > { %13837 = vrsqrt.f32 %v5975_v19  ;;  %v5976_v45 = vadd.f32 1e-12, %v5968_v62 }
 0xd77   : > { %13839 = vrsqrt.f32 %v5976_v45 }
 0xd78   : > { %v5956_v17 = vpop.xlane.xlu1 %5955 }
 0xd79   : > { %v5969_v20 = vmul.f32 0.0078125, %v5956_v17 }
 0xd7a   : > { %v5958_v60 = vpop.xlane.xlu0 %5957 }
 0xd7b   : > { %v5977_v0 = vadd.f32 1e-12, %v5969_v20  ;;  %v5970_v7 = vmul.f32 0.0078125, %v5958_v60 }
 0xd7d   : > { %13841 = vrsqrt.f32 %v5977_v0  ;;  %v5978_v34 = vadd.f32 1e-12, %v5970_v7  ;;  %v6065_v7 = vld [vmem:[#allocation11 + $0x3] sm:$0x7] }
 0xd7f   : > { %v13838_v21 = vpop.eup %13837  ;;  %13843 = vrsqrt.f32 %v5978_v34  ;;  %v18030_v34 = vld [vmem:[#allocation31_spill] sm:$0xff] }
 0xd80   : > { %v5991_v46 = vmul.f32 %v13838_v21, %v16444_v59  ;;  %v16495_v21 = vrot.slane %v6065_v7, %v18030_v34 }
 0xd81   : > { %v13840_v43 = vpop.eup %13839 }
 0xd82   : > { %v6005_v3 = vmul.f32 %v11418_v30, %v5991_v46  ;;  %v5992_v5 = vmul.f32 %v13840_v43, %v16447_v28  ;;  %v18031_v43 = vld [vmem:[#allocation32_spill] sm:$0xff] }
 0xd84   : > { %v6006_v11 = vmul.f32 %v11418_v30, %v5992_v5  ;;  %v6019_v26 = vadd.f32 %v11419_v32, %v6005_v3  ;;  %v16498_v3 = vrot.slane %v6065_v7, %v18031_v43 }
 0xd86   : > { %v6020_v2 = vadd.f32 %v11419_v32, %v6006_v11 }
 0xd87   : > { %v13842_v56 = vpop.eup %13841 }
 0xd88   : > { %v6060_v54 = vpack.c.bf16 %v6020_v2, %v6019_v26  ;;  %v5993_v24 = vmul.f32 %v13842_v56, %v16454_v41 }
 0xd89   : > { %v13844_v23 = vpop.eup %13843 }
 0xd8a   : > { %6243 = vmatmul.mubr.bf16.vlgmr.msra.gmra.mrb[60].mxu1 %v6060_v54  ;;  %12306 = vmatprep.mubr.bf16.mxu0 %v6060_v54  ;;  %v5994_v47 = vmul.f32 %v13844_v23, %v16457_v61  ;;  %v6007_v25 = vmul.f32 %v11418_v30, %v5993_v24  ;;  %v18032_v54 = vld [vmem:[#allocation30_spill] sm:$0xff] }
 0xd8b   : > { %6252 = vmatprep.mubr.bf16.mxu1 %v18029_v12  ;;  %v18033_v24 = vsub.s32 2, %v18032_v54 }
 0xd8c   : > { %v6008_v59 = vmul.f32 %v11418_v30, %v5994_v47  ;;  %v6021_v13 = vadd.f32 %v11419_v32, %v6007_v25 }
 0xd8d   : > { %v16518_v23 = vrot.slane %v6065_v7, %v18033_v24 }
 0xd8e   : > { %v5960_v40 = vpop.xlane.xlu1 %5959  ;;  %v6022_v28 = vadd.f32 %v11419_v32, %v6008_v59  ;;  %v16733_v59 = vld [vmem:[%s14915_s15] ss:$0 sm:$0xff] }
 0xd8f   : > { %v5971_v53 = vmul.f32 0.0078125, %v5960_v40 }
 0xd90   : > { %v5962_v29 = vpop.xlane.xlu0 %5961  ;;  %v6061_v38 = vpack.c.bf16 %v6022_v28, %v6021_v13 }
 0xd91   : > { %v5979_v6 = vadd.f32 1e-12, %v5971_v53  ;;  %v5972_v36 = vmul.f32 0.0078125, %v5962_v29 }
 0xd92   : > { %6253 = vmatmul.mubr.bf16.gmra.mrb[64].mxu1 %v6061_v38  ;;  %12307 = vmatmul.mubr.bf16.vlgmr.msra.gmra.mrb[68].mxu0 %v6061_v38 }
 0xd93   : > { %13845 = vrsqrt.f32 %v5979_v6  ;;  %v5980_v41 = vadd.f32 1e-12, %v5972_v36  ;;  %6262 = vmatprep.mubr.bf16.mxu1 %v18029_v12 }
 0xd95   : > { %13847 = vrsqrt.f32 %v5980_v41 }
 0xd9d   : > { %v13846_v61 = vpop.eup %13845 }
 0xd9e   : > { %v5995_v63 = vmul.f32 %v13846_v61, %v16464_v16 }
 0xd9f   : > { %v13848_v10 = vpop.eup %13847 }
 0xda0   : > { %v5996_v18 = vmul.f32 %v13848_v10, %v16467_v42  ;;  %v6009_v39 = vmul.f32 %v11418_v30, %v5995_v63 }
 0xda2   : > { %v6010_v35 = vmul.f32 %v11418_v30, %v5996_v18  ;;  %v6023_v15 = vadd.f32 %v11419_v32, %v6009_v39 }
 0xda3   : > { %v5964_v4 = vpop.xlane.xlu1 %5963 }
 0xda4   : > { %v5973_v22 = vmul.f32 0.0078125, %v5964_v4  ;;  %v6024_v49 = vadd.f32 %v11419_v32, %v6010_v35 }
 0xda5   : > { %v5966_v58 = vpop.xlane.xlu0 %5965 }
 0xda6   : > { %v5981_v8 = vadd.f32 1e-12, %v5973_v22  ;;  %v5974_v44 = vmul.f32 0.0078125, %v5966_v58  ;;  %v6062_v27 = vpack.c.bf16 %v6024_v49, %v6023_v15 }
 0xda8   : > { %13849 = vrsqrt.f32 %v5981_v8  ;;  %v5982_v33 = vadd.f32 1e-12, %v5974_v44  ;;  %6263 = vmatmul.mubr.bf16.gmra.mrb[68].mxu1 %v6062_v27  ;;  %12310 = vmatprep.mubr.bf16.mxu0 %v6062_v27 }
 0xda9   : > { %6272 = vmatprep.mubr.bf16.mxu1 %v18029_v12 }
 0xdaa   : > { %13851 = vrsqrt.f32 %v5982_v33 }
 0xdb2   : > { %v13850_v16 = vpop.eup %13849 }
 0xdb3   : > { %v5997_v42 = vmul.f32 %v13850_v16, %v16474_v50 }
 0xdb4   : > { %v13852_v19 = vpop.eup %13851 }
 0xdb5   : > { %v5998_v62 = vmul.f32 %v13852_v19, %v16477_v57  ;;  %v6011_v45 = vmul.f32 %v11418_v30, %v5997_v42 }
 0xdb7   : > { %v6012_v17 = vmul.f32 %v11418_v30, %v5998_v62  ;;  %v6025_v20 = vadd.f32 %v11419_v32, %v6011_v45 }
 0xdb9   : > { %v6026_v60 = vadd.f32 %v11419_v32, %v6012_v17 }
 0xdbb   : > { %v6063_v0 = vpack.c.bf16 %v6026_v60, %v6025_v20 }
 0xdbd   : > { %6273 = vmatmul.mubr.bf16.gmra.mrb[72].mxu1 %v6063_v0  ;;  %12311 = vmatmul.mubr.bf16.gmra.mrb[72].mxu0 %v6063_v0 }
 0xe5d   : > { %v6244_v46 = vpop.f32.mrb[60].mxu1 }
 0xe5e   : > { %v16501_v50 = vadd.f32 %v6244_v46, %v16495_v21  ;;  %v6246_v5 = vpop.f32.mrb[61].mxu1 }
 0xe5f   : > { %v6248_v57 = vpop.f32.mrb[62].mxu1  ;;  %v6247_v11 = vadd.f32 %v6246_v5, %v16498_v3 }
 0xe60   : > { %v16504_v30 = vadd.f32 %v6248_v57, %v16495_v21  ;;  %v6250_v32 = vpop.f32.mrb[63].mxu1  ;;  %6356 = vrot.lane.b32.xlu0 %v16501_v50, %s14491_s8  ;;  %12318 = vmatprep.mubr.msk.f32.mxu1 %vm1620_vm0, %v16501_v50 }
 0xe61   : > { %v6251_v26 = vadd.f32 %v6250_v32, %v16498_v3 }
 0xe62   : > { %6358 = vrot.lane.b32.xlu1 %v16504_v30, %s14491_s8 }
 0xe63   : > { %v12746_v2 = vpack.c.bf16 %v6251_v26, %v6247_v11  ;;  %v16514_v56 = vpack.i.bf16 %v6251_v26, %v6247_v11 }
 0xe65   : > { %v6254_v47 = vpop.f32.mrb[64].mxu1  ;;  %v12308_v25 = vpop.f32.mrb[68].mxu0  ;;  %12748 = vmatprep.subr.msk.bf16.mxu1 %vm15134_vm1, %v12746_v2 }
 0xe66   : > { %v16523_v40 = vadd.f32 %v6254_v47, %v16495_v21  ;;  %13266 = vrot.lane.b32.xlu1 %v16514_v56, %s14491_s8  ;;  %v6256_v13 = vpop.f32.mrb[65].mxu1  ;;  %v6317_v28 = vpop.f32.mrb[69].mxu0  ;;  %12751 = vmatpush3.bf16.xpose.msk.msra.mxu1 %vm15134_vm1, %v12746_v2  ;;  %v6326_v38 = vadd.f32 %v12308_v25, %v16518_v23 }
 0xe67   : > { %v6258_v53 = vpop.f32.mrb[66].mxu1  ;;  %v12309_v29 = vpop.f32.mrb[70].mxu0  ;;  %v6257_v63 = vadd.f32 %v6256_v13, %v16498_v3  ;;  %v6318_v10 = vadd.f32 %v6317_v28, %v16518_v23 }
 0xe68   : > { %v16531_v6 = vadd.f32 %v6258_v53, %v16495_v21  ;;  %v6329_v36 = vadd.f32 %v12309_v29, %v16518_v23  ;;  %v6260_v41 = vpop.f32.mrb[67].mxu1  ;;  %v6320_v61 = vpop.f32.mrb[71].mxu0  ;;  %6360 = vrot.lane.b32.xlu0 %v16523_v40, %s14491_s8 }
 0xe69   : > { %v6261_v18 = vadd.f32 %v6260_v41, %v16498_v3  ;;  %v6321_v39 = vadd.f32 %v6320_v61, %v16518_v23 }
 0xe6a   : > { %6362 = vrot.lane.b32.xlu1 %v16531_v6, %s14491_s8  ;;  %v16542_v35 = vpack.i.bf16 %v6329_v36, %v6326_v38  ;;  %v16544_v4 = vpack.c.bf16 %v6329_v36, %v6326_v38 }
 0xe6b   : > { %v12752_v22 = vpack.c.bf16 %v6261_v18, %v6257_v63  ;;  %v16546_v15 = vpack.i.bf16 %v6261_v18, %v6257_v63  ;;  %v16548_v49 = vpack.i.bf16 %v6321_v39, %v6318_v10  ;;  %v16550_v58 = vpack.c.bf16 %v6321_v39, %v6318_v10 }
 0xe6d   : > { %12754 = vmatprep.subr.msk.bf16.mxu1 %vm15134_vm1, %v12752_v22  ;;  %13271 = vrot.lane.b32.xlu0 %v16546_v15, %s14491_s8 }
 0xe6e   : > { %12319 = vmatmul.mubr.msk.f32.vlgmr.msra.gmra.mrb[76].mxu1 %vm1620_vm0, %v16504_v30  ;;  %13281 = vrot.lane.b32.xlu1 %v16546_v15, %s14492_s26 }
 0xe6f   : > { %12757 = vmatpush3.bf16.xpose.msk.msra.mxu1 %vm15134_vm1, %v12752_v22  ;;  %12325 = vmatprep.mubr.msk.f32.mxu1 %vm1620_vm0, %v16523_v40 }
 0xe71   : > { %13276 = vrot.lane.b32.xlu0 %v16514_v56, %s14492_s26 }
 0xe76   : > { %12326 = vmatmul.mubr.msk.f32.vlgmr.msra.gmra.mrb[78].mxu1 %vm1620_vm0, %v16531_v6 }
 0xe7b   : > { %v6264_v8 = vpop.f32.mrb[68].mxu1 }
 0xe7c   : > { %v6265_v44 = vadd.f32 %v6264_v8, %v16495_v21  ;;  %v6266_v27 = vpop.f32.mrb[69].mxu1 }
 0xe7d   : > { %v6268_v33 = vpop.f32.mrb[70].mxu1  ;;  %v6267_v19 = vadd.f32 %v6266_v27, %v16498_v3 }
 0xe7e   : > { %v6269_v16 = vadd.f32 %v6268_v33, %v16495_v21  ;;  %v6270_v42 = vpop.f32.mrb[71].mxu1  ;;  %12332 = vmatprep.mubr.msk.f32.mxu0 %vm1620_vm0, %v6265_v44  ;;  %6364 = vrot.lane.b32.xlu0 %v6265_v44, %s14491_s8 }
 0xe7f   : > { %v6271_v62 = vadd.f32 %v6270_v42, %v16498_v3 }
 0xe80   : > { %6366 = vrot.lane.b32.xlu1 %v6269_v16, %s14491_s8 }
 0xe81   : > { %v12758_v45 = vpack.c.bf16 %v6271_v62, %v6267_v19  ;;  %v13285_v17 = vpack.i.bf16 %v6271_v62, %v6267_v19 }
 0xe83   : > { %12760 = vmatprep.subr.msk.bf16.mxu0 %vm15134_vm1, %v12758_v45 }
 0xe84   : > { %13286 = vrot.lane.b32.xlu1 %v13285_v17, %s14491_s8  ;;  %12763 = vmatpush3.bf16.xpose.msk.msra.mxu0 %vm15134_vm1, %v12758_v45 }
 0xe8b   : > { %12333 = vmatmul.mubr.msk.f32.vlgmr.msra.gmra.mrb[76].mxu0 %vm1620_vm0, %v6269_v16 }
 0xe90   : > { %v6274_v20 = vpop.f32.mrb[72].mxu1  ;;  %v12312_v60 = vpop.f32.mrb[72].mxu0 }
 0xe91   : > { %v6275_v0 = vadd.f32 %v6274_v20, %v16495_v21  ;;  %v6276_v7 = vpop.f32.mrb[73].mxu1  ;;  %v6333_v46 = vpop.f32.mrb[73].mxu0  ;;  %v6342_v32 = vadd.f32 %v12312_v60, %v16518_v23 }
 0xe92   : > { %v6278_v5 = vpop.f32.mrb[74].mxu1  ;;  %v12313_v57 = vpop.f32.mrb[74].mxu0  ;;  %v6277_v54 = vadd.f32 %v6276_v7, %v16498_v3  ;;  %v6334_v24 = vadd.f32 %v6333_v46, %v16518_v23 }
 0xe93   : > { %v6345_v11 = vadd.f32 %v12313_v57, %v16518_v23  ;;  %v6280_v26 = vpop.f32.mrb[75].mxu1  ;;  %v6336_v2 = vpop.f32.mrb[75].mxu0  ;;  %12339 = vmatprep.mubr.msk.f32.mxu1 %vm1620_vm0, %v6275_v0  ;;  %6368 = vrot.lane.b32.xlu0 %v6275_v0, %s14491_s8 }
 0xe94   : > { %v6281_v47 = vadd.f32 %v6280_v26, %v16498_v3  ;;  %v6337_v25 = vadd.f32 %v6336_v2, %v16518_v23  ;;  %v6279_v3 = vadd.f32 %v6278_v5, %v16495_v21 }
 0xe95   : > { %v16590_v13 = vpack.i.bf16 %v6345_v11, %v6342_v32  ;;  %v16592_v28 = vpack.c.bf16 %v6345_v11, %v6342_v32 }
 0xe96   : > { %v13290_v53 = vpack.i.bf16 %v6281_v47, %v6277_v54  ;;  %v12764_v29 = vpack.c.bf16 %v6281_v47, %v6277_v54  ;;  %v16595_v38 = vpack.i.bf16 %v6337_v25, %v6334_v24  ;;  %v16597_v36 = vpack.c.bf16 %v6337_v25, %v6334_v24 }
 0xe97   : > { %13296 = vrot.lane.b32.xlu0 %v13285_v17, %s14492_s26 }
 0xe98   : > { %13291 = vrot.lane.b32.xlu1 %v13290_v53, %s14491_s8  ;;  %12766 = vmatprep.subr.msk.bf16.mxu1 %vm15134_vm1, %v12764_v29 }
 0xe99   : > { %12769 = vmatpush3.bf16.xpose.msk.msra.mxu1 %vm15134_vm1, %v12764_v29 }
 0xe9b   : > { %6372 = vrot.lane.b32.xlu0 %v16501_v50, %s14492_s26 }
 0xe9c   : > { %6370 = vrot.lane.b32.xlu1 %v6279_v3, %s14491_s8 }
 0xe9f   : > { %6376 = vrot.lane.b32.xlu0 %v16523_v40, %s14492_s26 }
 0xea0   : > { %6374 = vrot.lane.b32.xlu1 %v16504_v30, %s14492_s26  ;;  %12340 = vmatmul.mubr.msk.f32.vlgmr.msra.gmra.mrb[80].mxu1 %vm1620_vm0, %v6279_v3 }
 0xea3   : > { %13301 = vrot.lane.b32.xlu0 %v16514_v56, %s14493_s16 }
 0xea4   : > { %6378 = vrot.lane.b32.xlu1 %v16531_v6, %s14492_s26 }
 0xea7   : > { %6380 = vrot.lane.b32.xlu0 %v6265_v44, %s14492_s26 }
 0xea8   : > { %13306 = vrot.lane.b32.xlu1 %v13290_v53, %s14492_s26 }
 0xeab   : > { %6384 = vrot.lane.b32.xlu0 %v6275_v0, %s14492_s26 }
 0xeac   : > { %13311 = vrot.lane.b32.xlu1 %v16546_v15, %s14493_s16 }
 0xeaf   : > { %6388 = vrot.lane.b32.xlu0 %v16501_v50, %s14493_s16 }
 0xeb0   : > { %6382 = vrot.lane.b32.xlu1 %v6269_v16, %s14492_s26 }
 0xeb3   : > { %6392 = vrot.lane.b32.xlu0 %v16523_v40, %s14493_s16 }
 0xeb4   : > { %6386 = vrot.lane.b32.xlu1 %v6279_v3, %s14492_s26 }
 0xeb7   : > { %13316 = vrot.lane.b32.xlu0 %v13285_v17, %s14493_s16 }
 0xeb8   : > { %6390 = vrot.lane.b32.xlu1 %v16504_v30, %s14493_s16 }
 0xebb   : > { %6396 = vrot.lane.b32.xlu0 %v6265_v44, %s14493_s16 }
 0xebc   : > { %6394 = vrot.lane.b32.xlu1 %v16531_v6, %s14493_s16 }
 0xebf   : > { %6400 = vrot.lane.b32.xlu0 %v6275_v0, %s14493_s16 }
 0xec0   : > { %13321 = vrot.lane.b32.xlu1 %v13290_v53, %s14493_s16 }
 0xec3   : > { %13331 = vrot.lane.b32.xlu0 %v16542_v35, %s14491_s8 }
 0xec4   : > { %6398 = vrot.lane.b32.xlu1 %v6269_v16, %s14493_s16 }
 0xec7   : > { %13341 = vrot.lane.b32.xlu0 %v16548_v49, %s14492_s26 }
 0xec8   : > { %6402 = vrot.lane.b32.xlu1 %v6279_v3, %s14493_s16 }
 0xecb   : > { %13361 = vrot.lane.b32.xlu0 %v16595_v38, %s14492_s26 }
 0xecc   : > { %13326 = vrot.lane.b32.xlu1 %v16548_v49, %s14491_s8 }
 0xed0   : > { %13336 = vrot.lane.b32.xlu1 %v16590_v13, %s14491_s8 }
 0xed2   : > { %v6357_v21 = vpop.permute.xlu0 %6356 }
 0xed3   : > { %12346 = vmatprep.mubr.msk.f32.mxu0 %vm1620_vm0, %v6357_v21 }
 0xed4   : > { %13346 = vrot.lane.b32.xlu1 %v16542_v35, %s14492_s26  ;;  %v6359_v50 = vpop.permute.xlu1 %6358 }
 0xed8   : > { %13351 = vrot.lane.b32.xlu1 %v16590_v13, %s14492_s26  ;;  %v13267_v30 = vpop.permute.xlu1 %13266 }
 0xed9   : > { %v13269_v56 = vunpack.i.h.bf16 %v13267_v30  ;;  %v13268_v23 = vunpack.i.l.bf16 %v13267_v30 }
 0xeda   : > { %v6361_v40 = vpop.permute.xlu0 %6360 }
 0xedb   : > { %v12770_v6 = vpack.c.bf16 %v13269_v56, %v13268_v23  ;;  %12353 = vmatprep.mubr.msk.f32.mxu1 %vm1620_vm0, %v6361_v40 }
 0xedc   : > { %13356 = vrot.lane.b32.xlu1 %v16595_v38, %s14491_s8  ;;  %v6363_v18 = vpop.permute.xlu1 %6362 }
 0xedd   : > { %12772 = vmatprep.subr.msk.bf16.mxu0 %vm15134_vm1, %v12770_v6 }
 0xede   : > { %12775 = vmatpush3.bf16.xpose.msk.msra.mxu0 %vm15134_vm1, %v12770_v6 }
 0xedf   : > { %v13272_v41 = vpop.permute.xlu0 %13271 }
 0xee0   : > { %v13274_v61 = vunpack.i.h.bf16 %v13272_v41  ;;  %v13273_v63 = vunpack.i.l.bf16 %v13272_v41  ;;  %v13282_v22 = vpop.permute.xlu1 %13281 }
 0xee1   : > { %v13284_v7 = vunpack.i.h.bf16 %v13282_v22  ;;  %v13283_v46 = vunpack.i.l.bf16 %v13282_v22 }
 0xee2   : > { %v12776_v10 = vpack.c.bf16 %v13274_v61, %v13273_v63 }
 0xee3   : > { %v13277_v39 = vpop.permute.xlu0 %13276  ;;  %v12800_v54 = vpack.c.bf16 %v13284_v7, %v13283_v46 }
 0xee4   : > { %12778 = vmatprep.subr.msk.bf16.mxu1 %vm15134_vm1, %v12776_v10  ;;  %v13279_v27 = vunpack.i.h.bf16 %v13277_v39  ;;  %v13278_v33 = vunpack.i.l.bf16 %v13277_v39 }
 0xee5   : > { %12347 = vmatmul.mubr.msk.f32.vlgmr.msra.gmra.mrb[78].mxu0 %vm1620_vm0, %v6359_v50  ;;  %12781 = vmatpush3.bf16.xpose.msk.msra.mxu1 %vm15134_vm1, %v12776_v10 }
 0xee6   : > { %v12794_v62 = vpack.c.bf16 %v13279_v27, %v13278_v33 }
 0xeec   : > { %12354 = vmatmul.mubr.msk.f32.vlgmr.msra.gmra.mrb[82].mxu1 %vm1620_vm0, %v6363_v18 }
 0xef0   : > { %v6365_v15 = vpop.permute.xlu0 %6364 }
 0xef1   : > { %12360 = vmatprep.mubr.msk.f32.mxu0 %vm1620_vm0, %v6365_v15 }
 0xef2   : > { %v6367_v8 = vpop.permute.xlu1 %6366 }
 0xef6   : > { %v13287_v44 = vpop.permute.xlu1 %13286 }
 0xef7   : > { %v13289_v16 = vunpack.i.h.bf16 %v13287_v44  ;;  %v13288_v42 = vunpack.i.l.bf16 %v13287_v44 }
 0xef9   : > { %v12782_v19 = vpack.c.bf16 %v13289_v16, %v13288_v42 }
 0xefb   : > { %12784 = vmatprep.subr.msk.bf16.mxu0 %vm15134_vm1, %v12782_v19 }
 0xefc   : > { %12787 = vmatpush3.bf16.xpose.msk.msra.mxu0 %vm15134_vm1, %v12782_v19 }
 0xefd   : > { %12796 = vmatprep.subr.msk.bf16.mxu0 %vm15134_vm1, %v12794_v62 }
 0xf03   : > { %12361 = vmatmul.mubr.msk.f32.vlgmr.msra.gmra.mrb[80].mxu0 %vm1620_vm0, %v6367_v8 }
 0xf04   : > { %12799 = vmatpush3.bf16.xpose.msk.msra.mxu0 %vm15134_vm1, %v12794_v62 }
 0xf05   : > { %v6369_v45 = vpop.permute.xlu0 %6368 }
 0xf06   : > { %12367 = vmatprep.mubr.msk.f32.mxu1 %vm1620_vm0, %v6369_v45 }
 0xf09   : > { %v13297_v17 = vpop.permute.xlu0 %13296 }
 0xf0a   : > { %v13292_v20 = vpop.permute.xlu1 %13291  ;;  %v13299_v60 = vunpack.i.h.bf16 %v13297_v17  ;;  %v13298_v0 = vunpack.i.l.bf16 %v13297_v17 }
 0xf0b   : > { %v13294_v5 = vunpack.i.h.bf16 %v13292_v20  ;;  %v13293_v57 = vunpack.i.l.bf16 %v13292_v20 }
 0xf0c   : > { %v12806_v32 = vpack.c.bf16 %v13299_v60, %v13298_v0 }
 0xf0d   : > { %v12788_v11 = vpack.c.bf16 %v13294_v5, %v13293_v57  ;;  %v6373_v26 = vpop.permute.xlu0 %6372 }
 0xf0e   : > { %v6371_v2 = vpop.permute.xlu1 %6370  ;;  %12374 = vmatprep.mubr.msk.f32.mxu0 %vm1620_vm0, %v6373_v26  ;;  %12808 = vmatprep.subr.msk.bf16.mxu0 %vm15134_vm1, %v12806_v32 }
 0xf0f   : > { %12790 = vmatprep.subr.msk.bf16.mxu1 %vm15134_vm1, %v12788_v11 }
 0xf10   : > { %12793 = vmatpush3.bf16.xpose.msk.msra.mxu1 %vm15134_vm1, %v12788_v11 }
 0xf11   : > { %12802 = vmatprep.subr.msk.bf16.mxu1 %vm15134_vm1, %v12800_v54  ;;  %v6377_v24 = vpop.permute.xlu0 %6376 }
 0xf12   : > { %v6375_v47 = vpop.permute.xlu1 %6374 }
 0xf13   : > { %12375 = vmatmul.mubr.msk.f32.vlgmr.msra.gmra.mrb[82].mxu0 %vm1620_vm0, %v6375_v47 }
 0xf14   : > { %12811 = vmatpush3.bf16.xpose.msk.msra.mxu0 %vm15134_vm1, %v12806_v32 }
 0xf15   : > { %v13302_v25 = vpop.permute.xlu0 %13301 }
 0xf16   : > { %v6379_v53 = vpop.permute.xlu1 %6378  ;;  %v13304_v29 = vunpack.i.h.bf16 %v13302_v25  ;;  %v13303_v3 = vunpack.i.l.bf16 %v13302_v25  ;;  %v16746_v25 = vld [vmem:[%s14915_s15 + $0x1] ss:$0 sm:$0xff] }
 0xf17   : > { %12368 = vmatmul.mubr.msk.f32.vlgmr.msra.gmra.mrb[84].mxu1 %vm1620_vm0, %v6371_v2 }
 0xf18   : > { %v12818_v21 = vpack.c.bf16 %v13304_v29, %v13303_v3  ;;  %12805 = vmatpush3.bf16.xpose.msk.msra.mxu1 %vm15134_vm1, %v12800_v54  ;;  %12381 = vmatprep.mubr.msk.f32.mxu1 %vm1620_vm0, %v6377_v24 }
 0xf19   : > { %v6381_v50 = vpop.permute.xlu0 %6380 }
 0xf1a   : > { %v13307_v30 = vpop.permute.xlu1 %13306  ;;  %12388 = vmatprep.mubr.msk.f32.mxu0 %vm1620_vm0, %v6381_v50  ;;  %12820 = vmatprep.subr.msk.bf16.mxu0 %vm15134_vm1, %v12818_v21 }
 0xf1b   : > { %v13309_v56 = vunpack.i.h.bf16 %v13307_v30  ;;  %v13308_v23 = vunpack.i.l.bf16 %v13307_v30 }
 0xf1d   : > { %v12812_v40 = vpack.c.bf16 %v13309_v56, %v13308_v23  ;;  %v6385_v6 = vpop.permute.xlu0 %6384 }
 0xf1e   : > { %v13312_v41 = vpop.permute.xlu1 %13311 }
 0xf1f   : > { %v13314_v61 = vunpack.i.h.bf16 %v13312_v41  ;;  %v13313_v63 = vunpack.i.l.bf16 %v13312_v41  ;;  %12382 = vmatmul.mubr.msk.f32.vlgmr.msra.gmra.mrb[86].mxu1 %vm1620_vm0, %v6379_v53  ;;  %12814 = vmatprep.subr.msk.bf16.mxu1 %vm15134_vm1, %v12812_v40 }
 0xf20   : > { %12817 = vmatpush3.bf16.xpose.msk.msra.mxu1 %vm15134_vm1, %v12812_v40  ;;  %12395 = vmatprep.mubr.msk.f32.mxu1 %vm1620_vm0, %v6385_v6  ;;  %v16759_v40 = vld [vmem:[%s14915_s15 + $0x2] ss:$0 sm:$0xff] }
 0xf21   : > { %v12824_v10 = vpack.c.bf16 %v13314_v61, %v13313_v63  ;;  %v6389_v18 = vpop.permute.xlu0 %6388 }
 0xf22   : > { %v6383_v39 = vpop.permute.xlu1 %6382 }
 0xf23   : > { %12389 = vmatmul.mubr.msk.f32.vlgmr.msra.gmra.mrb[84].mxu0 %vm1620_vm0, %v6383_v39  ;;  %12826 = vmatprep.subr.msk.bf16.mxu1 %vm15134_vm1, %v12824_v10 }
 0xf24   : > { %12823 = vmatpush3.bf16.xpose.msk.msra.mxu0 %vm15134_vm1, %v12818_v21  ;;  %12402 = vmatprep.mubr.msk.f32.mxu0 %vm1620_vm0, %v6389_v18 }
 0xf25   : > { %v6393_v22 = vpop.permute.xlu0 %6392 }
 0xf26   : > { %v6387_v15 = vpop.permute.xlu1 %6386 }
 0xf27   : > { %12396 = vmatmul.mubr.msk.f32.vlgmr.msra.gmra.mrb[88].mxu1 %vm1620_vm0, %v6387_v15  ;;  %v16772_v15 = vld [vmem:[%s14915_s15 + $0x3] ss:$0 sm:$0xff]  ;;  %s11239_s15 = sshll.u32 %s14911_s4, 6 }
 0xf28   : > { %12829 = vmatpush3.bf16.xpose.msk.msra.mxu1 %vm15134_vm1, %v12824_v10  ;;  %12409 = vmatprep.mubr.msk.f32.mxu1 %vm1620_vm0, %v6393_v22  ;;  %s17815_s0 = scalar_lea.vmem [#allocation19], %s11239_s15  ;;  %s14495_s15 = smov [#allocation19]  }
 0xf29   : > { %v13317_v8 = vpop.permute.xlu0 %13316 }
 0xf2a   : > { %v6391_v44 = vpop.permute.xlu1 %6390  ;;  %v13319_v27 = vunpack.i.h.bf16 %v13317_v8  ;;  %v13318_v33 = vunpack.i.l.bf16 %v13317_v8 }
 0xf2b   : > { %12403 = vmatmul.mubr.msk.f32.vlgmr.msra.gmra.mrb[86].mxu0 %vm1620_vm0, %v6391_v44 }
 0xf2c   : > { %v12830_v16 = vpack.c.bf16 %v13319_v27, %v13318_v33 }
 0xf2d   : > { %v6397_v42 = vpop.permute.xlu0 %6396 }
 0xf2e   : > { %v6395_v19 = vpop.permute.xlu1 %6394  ;;  %12832 = vmatprep.subr.msk.bf16.mxu0 %vm15134_vm1, %v12830_v16  ;;  %12416 = vmatprep.mubr.msk.f32.mxu0 %vm1620_vm0, %v6397_v42 }
 0xf2f   : > { %12410 = vmatmul.mubr.msk.f32.vlgmr.msra.gmra.mrb[90].mxu1 %vm1620_vm0, %v6395_v19  ;;  %12835 = vmatpush3.bf16.xpose.msk.msra.mxu0 %vm15134_vm1, %v12830_v16 }
 0xf30   : > { %12843 = vmatprep.subr.bf16.mxu0 %v16550_v58 }
 0xf31   : > { %v6401_v62 = vpop.permute.xlu0 %6400 }
 0xf32   : > { %v13322_v45 = vpop.permute.xlu1 %13321  ;;  %12423 = vmatprep.mubr.msk.f32.mxu1 %vm1620_vm0, %v6401_v62 }
 0xf33   : > { %v13324_v17 = vunpack.i.h.bf16 %v13322_v45  ;;  %v13323_v20 = vunpack.i.l.bf16 %v13322_v45 }
 0xf35   : > { %v12836_v60 = vpack.c.bf16 %v13324_v17, %v13323_v20 }
 0xf36   : > { %v6399_v0 = vpop.permute.xlu1 %6398 }
 0xf37   : > { %12417 = vmatmul.mubr.msk.f32.vlgmr.msra.gmra.mrb[88].mxu0 %vm1620_vm0, %v6399_v0  ;;  %12838 = vmatprep.subr.msk.bf16.mxu1 %vm15134_vm1, %v12836_v60 }
 0xf38   : > { %12841 = vmatpush3.bf16.xpose.msk.msra.mxu1 %vm15134_vm1, %v12836_v60  ;;  %12845 = vmatpush3.bf16.msra.mxu0 %v16550_v58 }
 0xf39   : > { %12847 = vmatprep.subr.bf16.mxu1 %v16544_v4  ;;  %12851 = vmatprep.subr.bf16.mxu0 %v16597_v36 }
 0xf3a   : > { %v6403_v7 = vpop.permute.xlu1 %6402 }
 0xf3f   : > { %12424 = vmatmul.mubr.msk.f32.vlgmr.msra.gmra.mrb[92].mxu1 %vm1620_vm0, %v6403_v7 }
 0xf40   : > { %12849 = vmatpush3.bf16.msra.mxu1 %v16544_v4 }
 0xf41   : > { %12855 = vmatprep.subr.bf16.mxu1 %v16592_v28  ;;  %v12320_v46 = vpop.f32.mrb[76].mxu1 }
 0xf42   : > { %v7869_v5 = vmul.f32 0.17677669, %v12320_v46  ;;  %v6614_v57 = vpop.f32.mrb[77].mxu1 }
 0xf43   : > { %v7868_v32 = vmul.f32 0.17677669, %v6614_v57 }
 0xf44   : > { %v16736_v58 = vadd.f32 %v16733_v59, %v7869_v5 }
 0xf45   : > { %v16739_v11 = vadd.f32 %v16733_v59, %v7868_v32 }
 0xf46   : > { %v7935_v26 = vsel %vm3037_vm2, %v16736_v58, -inf }
 0xf47   : > { %7936 = vmax.xlane.f32.xlu1 %v7935_v26  ;;  %v7932_v4 = vsel %vm3037_vm2, %v16739_v11, -inf }
 0xf48   : > { %7933 = vmax.xlane.f32.xlu0 %v7932_v4 }
 0xf49   : > { %v12327_v2 = vpop.f32.mrb[78].mxu1 }
 0xf4a   : > { %v7871_v54 = vmul.f32 0.17677669, %v12327_v2  ;;  %v6697_v24 = vpop.f32.mrb[79].mxu1  ;;  %v16804_v2 = vpop.permute.xlu1 %13326 }
 0xf4b   : > { %v7870_v47 = vmul.f32 0.17677669, %v6697_v24 }
 0xf4c   : > { %v16749_v53 = vadd.f32 %v16746_v25, %v7871_v54 }
 0xf4d   : > { %v16752_v29 = vadd.f32 %v16746_v25, %v7870_v47 }
 0xf4e   : > { %v7941_v3 = vsel %vm3037_vm2, %v16749_v53, -inf }
 0xf4f   : > { %7942 = vmax.xlane.f32.xlu0 %v7941_v3  ;;  %v7938_v21 = vsel %vm3037_vm2, %v16752_v29, -inf }
 0xf53   : > { %7939 = vmax.xlane.f32.xlu0 %v7938_v21  ;;  %v16806_v21 = vpop.permute.xlu1 %13336 }
 0xf5e   : > { %v12334_v50 = vpop.f32.mrb[76].mxu0 }
 0xf5f   : > { %v7873_v30 = vmul.f32 0.17677669, %v12334_v50  ;;  %v6780_v56 = vpop.f32.mrb[77].mxu0 }
 0xf60   : > { %v7872_v23 = vmul.f32 0.17677669, %v6780_v56 }
 0xf61   : > { %v16762_v6 = vadd.f32 %v16759_v40, %v7873_v30 }
 0xf62   : > { %v16765_v41 = vadd.f32 %v16759_v40, %v7872_v23 }
 0xf63   : > { %v7947_v61 = vsel %vm3037_vm2, %v16762_v6, -inf }
 0xf64   : > { %7948 = vmax.xlane.f32.xlu0 %v7947_v61  ;;  %v7944_v63 = vsel %vm3037_vm2, %v16765_v41, -inf  ;;  %v16818_v61 = vpop.permute.xlu1 %13346 }
 0xf65   : > { %7945 = vmax.xlane.f32.xlu1 %v7944_v63  ;;  %v16820_v63 = vpop.permute.xlu0 %13331 }
 0xf73   : > { %v12341_v10 = vpop.f32.mrb[80].mxu1 }
 0xf74   : > { %v7875_v18 = vmul.f32 0.17677669, %v12341_v10  ;;  %v6863_v39 = vpop.f32.mrb[81].mxu1  ;;  %v16822_v10 = vpop.permute.xlu1 %13351 }
 0xf75   : > { %v7874_v22 = vmul.f32 0.17677669, %v6863_v39 }
 0xf76   : > { %v16775_v8 = vadd.f32 %v16772_v15, %v7875_v18  ;;  %v16824_v18 = vpop.permute.xlu0 %13341 }
 0xf77   : > { %v16778_v44 = vadd.f32 %v16772_v15, %v7874_v22 }
 0xf78   : > { %v7953_v27 = vsel %vm3037_vm2, %v16775_v8, -inf }
 0xf79   : > { %7954 = vmax.xlane.f32.xlu0 %v7953_v27  ;;  %v7950_v33 = vsel %vm3037_vm2, %v16778_v44, -inf }
 0xf7a   : > { %7951 = vmax.xlane.f32.xlu1 %v7950_v33  ;;  %v16826_v33 = vpop.permute.xlu1 %13356 }
 0xfb8   : > { %v12348_v16 = vpop.f32.mrb[78].mxu0 }
 0xfb9   : > { %v7877_v42 = vmul.f32 0.17677669, %v12348_v16  ;;  %v6946_v19 = vpop.f32.mrb[79].mxu0 }
 0xfba   : > { %v7876_v62 = vmul.f32 0.17677669, %v6946_v19 }
 0xfbb   : > { %v16785_v45 = vadd.f32 %v16733_v59, %v7877_v42 }
 0xfbc   : > { %v16788_v17 = vadd.f32 %v16733_v59, %v7876_v62  ;;  %v16828_v62 = vpop.permute.xlu0 %13361 }
 0xfbd   : > { %v7959_v20 = vsel %vm3037_vm2, %v16785_v45, -inf }
 0xfbe   : > { %7960 = vmax.xlane.f32.xlu0 %v7959_v20  ;;  %v7956_v60 = vsel %vm3037_vm2, %v16788_v17, -inf }
 0xfbf   : > { %7957 = vmax.xlane.f32.xlu1 %v7956_v60  ;;  %v12355_v0 = vpop.f32.mrb[82].mxu1 }
 0xfc0   : > { %v7879_v7 = vmul.f32 0.17677669, %v12355_v0  ;;  %v7029_v46 = vpop.f32.mrb[83].mxu1 }
 0xfc1   : > { %v7878_v5 = vmul.f32 0.17677669, %v7029_v46 }
 0xfc2   : > { %v16795_v57 = vadd.f32 %v16746_v25, %v7879_v7 }
 0xfc3   : > { %v16798_v32 = vadd.f32 %v16746_v25, %v7878_v5 }
 0xfc4   : > { %v7965_v26 = vsel %vm3037_vm2, %v16795_v57, -inf }
 0xfc5   : > { %7966 = vmax.xlane.f32.xlu0 %v7965_v26  ;;  %v7962_v4 = vsel %vm3037_vm2, %v16798_v32, -inf }
 0xfc6   : > { %7963 = vmax.xlane.f32.xlu1 %v7962_v4 }
 0xfd4   : > { %v7937_v5 = vpop.xlane.xlu1 %7936 }
 0xfd6   : > { %v12362_v54 = vpop.f32.mrb[80].mxu0 }
 0xfd7   : > { %v7881_v24 = vmul.f32 0.17677669, %v12362_v54  ;;  %v7112_v47 = vpop.f32.mrb[81].mxu0  ;;  %v7934_v54 = vpop.xlane.xlu0 %7933 }
 0xfd8   : > { %v7880_v3 = vmul.f32 0.17677669, %v7112_v47  ;;  %v8029_v47 = vsub.f32 %v16736_v58, %v7937_v5 }
 0xfd9   : > { %v16809_v50 = vadd.f32 %v16759_v40, %v7881_v24 }
 0xfda   : > { %v16812_v30 = vadd.f32 %v16759_v40, %v7880_v3 }
 0xfdb   : > { %v7971_v56 = vsel %vm3037_vm2, %v16809_v50, -inf }
 0xfdc   : > { %7972 = vmax.xlane.f32.xlu0 %v7971_v56  ;;  %v7968_v23 = vsel %vm3037_vm2, %v16812_v30, -inf  ;;  %v8028_v56 = vsub.f32 %v16739_v11, %v7934_v54 }
 0xfdd   : > { %7969 = vmax.xlane.f32.xlu1 %v7968_v23 }
 0xfe6   : > { %v12376_v39 = vpop.f32.mrb[82].mxu0 }
 0xfe7   : > { %v7278_v22 = vpop.f32.mrb[83].mxu0  ;;  %v7885_v19 = vmul.f32 0.17677669, %v12376_v39 }
 0xfe8   : > { %v7884_v60 = vmul.f32 0.17677669, %v7278_v22 }
 0xfe9   : > { %v16837_v46 = vadd.f32 %v16733_v59, %v7885_v19  ;;  %v8062_v19 = vmul.f32 1.442695, %v8029_v47 }
 0xfea   : > { %v12369_v27 = vpop.f32.mrb[84].mxu1  ;;  %v16842_v4 = vadd.f32 %v16733_v59, %v7884_v60  ;;  %v8060_v60 = vmul.f32 1.442695, %v8028_v56 }
 0xfeb   : > { %v7883_v16 = vmul.f32 0.17677669, %v12369_v27  ;;  %v7195_v42 = vpop.f32.mrb[85].mxu1  ;;  %v7983_v22 = vsel %vm3037_vm2, %v16837_v46, -inf  ;;  %13853 = vpow2.f32 %v8062_v19 }
 0xfec   : > { %v7882_v20 = vmul.f32 0.17677669, %v7195_v42  ;;  %13855 = vpow2.f32 %v8060_v60 }
 0xfed   : > { %v16831_v0 = vadd.f32 %v16772_v15, %v7883_v16  ;;  %v7980_v16 = vsel %vm3037_vm2, %v16842_v4, -inf }
 0xfee   : > { %v16834_v7 = vadd.f32 %v16772_v15, %v7882_v20  ;;  %v7943_v20 = vpop.xlane.xlu0 %7942 }
 0xfef   : > { %v7977_v26 = vsel %vm3037_vm2, %v16831_v0, -inf  ;;  %v8031_v19 = vsub.f32 %v16749_v53, %v7943_v20 }
 0xff0   : > { %7978 = vmax.xlane.f32.xlu0 %v7977_v26  ;;  %v7974_v24 = vsel %vm3037_vm2, %v16834_v7, -inf }
 0xff1   : > { %7975 = vmax.xlane.f32.xlu1 %v7974_v24  ;;  %v8066_v53 = vmul.f32 1.442695, %v8031_v19 }
 0xff2   : > { %v12383_v3 = vpop.f32.mrb[86].mxu1 }
 0xff3   : > { %v7887_v23 = vmul.f32 0.17677669, %v12383_v3  ;;  %v7361_v39 = vpop.f32.mrb[87].mxu1  ;;  %13857 = vpow2.f32 %v8066_v53 }
 0xff4   : > { %v7886_v27 = vmul.f32 0.17677669, %v7361_v39  ;;  %7984 = vmax.xlane.f32.xlu0 %v7983_v22 }
 0xff5   : > { %v16853_v42 = vadd.f32 %v16746_v25, %v7887_v23  ;;  %7981 = vmax.xlane.f32.xlu1 %v7980_v16  ;;  %v7940_v16 = vpop.xlane.xlu0 %7939 }
 0xff6   : > { %v16856_v58 = vadd.f32 %v16746_v25, %v7886_v27  ;;  %v12390_v11 = vpop.f32.mrb[84].mxu0 }
 0xff7   : > { %v7889_v5 = vmul.f32 0.17677669, %v12390_v11  ;;  %v7444_v26 = vpop.f32.mrb[85].mxu0  ;;  %v7989_v54 = vsel %vm3037_vm2, %v16853_v42, -inf }
 0xff8   : > { %v7888_v24 = vmul.f32 0.17677669, %v7444_v26  ;;  %7990 = vmax.xlane.f32.xlu0 %v7989_v54  ;;  %v7986_v3 = vsel %vm3037_vm2, %v16856_v58, -inf }
 0xff9   : > { %v16863_v23 = vadd.f32 %v16759_v40, %v7889_v5  ;;  %7987 = vmax.xlane.f32.xlu1 %v7986_v3 }
 0xffa   : > { %v16866_v47 = vadd.f32 %v16759_v40, %v7888_v24  ;;  %v12397_v39 = vpop.f32.mrb[88].mxu1  ;;  %v8030_v24 = vsub.f32 %v16752_v29, %v7940_v16 }
 0xffb   : > { %v7891_v56 = vmul.f32 0.17677669, %v12397_v39  ;;  %v7527_v22 = vpop.f32.mrb[89].mxu1  ;;  %v7995_v27 = vsel %vm3037_vm2, %v16863_v23, -inf }
 0xffc   : > { %v7890_v11 = vmul.f32 0.17677669, %v7527_v22  ;;  %7996 = vmax.xlane.f32.xlu0 %v7995_v27  ;;  %v7992_v26 = vsel %vm3037_vm2, %v16866_v47, -inf  ;;  %v8064_v29 = vmul.f32 1.442695, %v8030_v24 }
 0xffd   : > { %v16873_v5 = vadd.f32 %v16772_v15, %v7891_v56  ;;  %7993 = vmax.xlane.f32.xlu1 %v7992_v26 }
 0xffe   : > { %v16877_v54 = vadd.f32 %v16772_v15, %v7890_v11  ;;  %v12404_v60 = vpop.f32.mrb[86].mxu0  ;;  %13859 = vpow2.f32 %v8064_v29 }
 0xfff   : > { %v7893_v3 = vmul.f32 0.17677669, %v12404_v60  ;;  %v7610_v39 = vpop.f32.mrb[87].mxu0  ;;  %v8001_v22 = vsel %vm3037_vm2, %v16873_v5, -inf }
0x1000   : > { %v7892_v27 = vmul.f32 0.17677669, %v7610_v39  ;;  %8002 = vmax.xlane.f32.xlu0 %v8001_v22  ;;  %v7998_v56 = vsel %vm3037_vm2, %v16877_v54, -inf  ;;  %v16892_v39 = vpop.eup %13853 }
0x1001   : > { %v16885_v26 = vadd.f32 %v16733_v59, %v7893_v3  ;;  %7999 = vmax.xlane.f32.xlu1 %v7998_v56  ;;  %v16896_v43 = vpop.eup %13855  ;;  %v8127_v19 = vsel %vm3037_vm2, %v16892_v39, 0.0 }
0x1002   : > { %v16888_v20 = vadd.f32 %v16733_v59, %v7892_v27  ;;  %v12411_v11 = vpop.f32.mrb[90].mxu1 }
0x1003   : > { %v7895_v16 = vmul.f32 0.17677669, %v12411_v11  ;;  %v7693_v60 = vpop.f32.mrb[91].mxu1  ;;  %v8007_v31 = vsel %vm3037_vm2, %v16885_v26, -inf }
0x1004   : > { %v7894_v22 = vmul.f32 0.17677669, %v7693_v60  ;;  %8008 = vmax.xlane.f32.xlu0 %v8007_v31  ;;  %v8004_v3 = vsel %vm3037_vm2, %v16888_v20, -inf  ;;  %v8124_v31 = vsel %vm3037_vm2, %v16896_v43, 0.0 }
0x1005   : > { %8005 = vmax.xlane.f32.xlu1 %v8004_v3  ;;  %v16899_v59 = vadd.f32 %v16746_v25, %v7895_v16  ;;  %v16920_v3 = vpop.eup %13857 }
0x1006   : > { %v16904_v24 = vadd.f32 %v16746_v25, %v7894_v22 }
0x1007   : > { %v8013_v53 = vsel %vm3037_vm2, %v16899_v59, -inf }
0x1008   : > { %8128 = vadd.xlane.f32.xlu0 %v8127_v19  ;;  %v8010_v16 = vsel %vm3037_vm2, %v16904_v24, -inf }
0x1009   : > { %8125 = vadd.xlane.f32.xlu1 %v8124_v31  ;;  %v16924_v31 = vpop.eup %13859 }
0x100a   : > { %v12418_v27 = vpop.f32.mrb[88].mxu0 }
0x100b   : > { %v7897_v56 = vmul.f32 0.17677669, %v12418_v27  ;;  %v7776_v11 = vpop.f32.mrb[89].mxu0 }
0x100c   : > { %v7896_v29 = vmul.f32 0.17677669, %v7776_v11  ;;  %8014 = vmax.xlane.f32.xlu0 %v8013_v53  ;;  %v8133_v53 = vsel %vm3037_vm2, %v16920_v3, 0.0 }
0x100d   : > { %v16913_v60 = vadd.f32 %v16759_v40, %v7897_v56  ;;  %8011 = vmax.xlane.f32.xlu1 %v8010_v16 }
0x100e   : > { %v16916_v25 = vadd.f32 %v16759_v40, %v7896_v29  ;;  %v8130_v29 = vsel %vm3037_vm2, %v16924_v31, 0.0 }
0x100f   : > { %v8019_v22 = vsel %vm3037_vm2, %v16913_v60, -inf }
0x1010   : > { %8020 = vmax.xlane.f32.xlu0 %v8019_v22  ;;  %v8016_v19 = vsel %vm3037_vm2, %v16916_v25, -inf }
0x1011   : > { %8017 = vmax.xlane.f32.xlu1 %v8016_v19 }
0x1012   : > { %v12425_v27 = vpop.f32.mrb[92].mxu1 }
0x1013   : > { %v7899_v11 = vmul.f32 0.17677669, %v12425_v27  ;;  %v7859_v56 = vpop.f32.mrb[93].mxu1 }
0x1014   : > { %v7898_v40 = vmul.f32 0.17677669, %v7859_v56  ;;  %8134 = vadd.xlane.f32.xlu0 %v8133_v53  ;;  %v7946_v56 = vpop.xlane.xlu1 %7945 }
0x1015   : > { %v16931_v16 = vadd.f32 %v16772_v15, %v7899_v11  ;;  %8131 = vadd.xlane.f32.xlu1 %v8130_v29  ;;  %v7949_v11 = vpop.xlane.xlu0 %7948 }
0x1016   : > { %v16934_v22 = vadd.f32 %v16772_v15, %v7898_v40  ;;  %v8033_v53 = vsub.f32 %v16762_v6, %v7949_v11  ;;  %v8032_v15 = vsub.f32 %v16765_v41, %v7946_v56 }
0x1017   : > { %v8025_v19 = vsel %vm3037_vm2, %v16931_v16, -inf }
0x1018   : > { %8026 = vmax.xlane.f32.xlu0 %v8025_v19  ;;  %v8022_v27 = vsel %vm3037_vm2, %v16934_v22, -inf  ;;  %v7952_v29 = vpop.xlane.xlu1 %7951  ;;  %v8070_v34 = vmul.f32 1.442695, %v8033_v53  ;;  %v8068_v52 = vmul.f32 1.442695, %v8032_v15 }
0x1019   : > { %8023 = vmax.xlane.f32.xlu1 %v8022_v27  ;;  %v7955_v40 = vpop.xlane.xlu0 %7954  ;;  %v8034_v27 = vsub.f32 %v16778_v44, %v7952_v29 }
0x101a   : > { %v8035_v19 = vsub.f32 %v16775_v8, %v7955_v40  ;;  %13861 = vpow2.f32 %v8070_v34 }
0x101b   : > { %13863 = vpow2.f32 %v8068_v52 }
0x101c   : > { %v8074_v9 = vmul.f32 1.442695, %v8035_v19 }
0x101e   : > { %13865 = vpow2.f32 %v8074_v9 }
0x102a   : > { %13371 = vrot.lane.b32.xlu1 %v16542_v35, %s14493_s16  ;;  %v8072_v35 = vmul.f32 1.442695, %v8034_v27 }
0x102c   : > { %13867 = vpow2.f32 %v8072_v35 }
0x102e   : > { %13366 = vrot.lane.b32.xlu0 %v16548_v49, %s14493_s16  ;;  %v16948_v49 = vpop.eup %13861 }
0x102f   : > { %v16950_v55 = vpop.eup %13863  ;;  %v8139_v41 = vsel %vm3037_vm2, %v16948_v49, 0.0 }
0x1030   : > { %v16955_v56 = vpop.eup %13865  ;;  %v8136_v52 = vsel %vm3037_vm2, %v16950_v55, 0.0 }
0x1031   : > { %v8145_v15 = vsel %vm3037_vm2, %v16955_v56, 0.0 }
0x1036   : > { %v16960_v34 = vpop.eup %13867 }
0x104b   : > { %v7961_v6 = vpop.xlane.xlu0 %7960 }
0x104c   : > { %v8037_v11 = vsub.f32 %v16785_v45, %v7961_v6  ;;  %v7958_v8 = vpop.xlane.xlu1 %7957  ;;  %v8142_v45 = vsel %vm3037_vm2, %v16960_v34, 0.0 }
0x104d   : > { %8140 = vadd.xlane.f32.xlu0 %v8139_v41  ;;  %v8036_v9 = vsub.f32 %v16788_v17, %v7958_v8 }
0x104e   : > { %8137 = vadd.xlane.f32.xlu1 %v8136_v52  ;;  %v8078_v44 = vmul.f32 1.442695, %v8037_v11 }
0x104f   : > { %v8076_v53 = vmul.f32 1.442695, %v8036_v9 }
0x1050   : > { %13869 = vpow2.f32 %v8078_v44 }
0x1051   : > { %8146 = vadd.xlane.f32.xlu0 %v8145_v15  ;;  %13871 = vpow2.f32 %v8076_v53 }
0x1052   : > { %8143 = vadd.xlane.f32.xlu1 %v8142_v45  ;;  %v7967_v40 = vpop.xlane.xlu0 %7966 }
0x1053   : > { %v8039_v29 = vsub.f32 %v16795_v57, %v7967_v40  ;;  %v7964_v19 = vpop.xlane.xlu1 %7963 }
0x1054   : > { %v8038_v17 = vsub.f32 %v16798_v32, %v7964_v19 }
0x1055   : > { %v8082_v27 = vmul.f32 1.442695, %v8039_v29 }
0x1056   : > { %v8080_v35 = vmul.f32 1.442695, %v8038_v17 }
0x1057   : > { %13873 = vpow2.f32 %v8082_v27 }
0x1058   : > { %13875 = vpow2.f32 %v8080_v35 }
0x105a   : > { %v16968_v6 = vpop.eup %13869 }
0x105b   : > { %v16970_v41 = vpop.eup %13871  ;;  %v8151_v11 = vsel %vm3037_vm2, %v16968_v6, 0.0 }
0x105c   : > { %8152 = vadd.xlane.f32.xlu0 %v8151_v11  ;;  %v8148_v8 = vsel %vm3037_vm2, %v16970_v41, 0.0 }
0x105d   : > { %8149 = vadd.xlane.f32.xlu1 %v8148_v8 }
0x1061   : > { %v16976_v57 = vpop.eup %13873 }
0x1062   : > { %v16978_v52 = vpop.eup %13875  ;;  %v8157_v32 = vsel %vm3037_vm2, %v16976_v57, 0.0 }
0x1063   : > { %8158 = vadd.xlane.f32.xlu0 %v8157_v32  ;;  %v8154_v9 = vsel %vm3037_vm2, %v16978_v52, 0.0 }
0x1064   : > { %8155 = vadd.xlane.f32.xlu1 %v8154_v9 }
0x1069   : > { %v7973_v44 = vpop.xlane.xlu0 %7972 }
0x106a   : > { %v8041_v53 = vsub.f32 %v16809_v50, %v7973_v44  ;;  %v7970_v15 = vpop.xlane.xlu1 %7969 }
0x106b   : > { %v8040_v45 = vsub.f32 %v16812_v30, %v7970_v15 }
0x106c   : > { %v8086_v40 = vmul.f32 1.442695, %v8041_v53 }
0x106d   : > { %v8084_v29 = vmul.f32 1.442695, %v8040_v45 }
0x106e   : > { %13877 = vpow2.f32 %v8086_v40 }
0x106f   : > { %13879 = vpow2.f32 %v8084_v29 }
0x1078   : > { %v16986_v19 = vpop.eup %13877 }
0x1079   : > { %v16988_v17 = vpop.eup %13879  ;;  %v8163_v27 = vsel %vm3037_vm2, %v16986_v19, 0.0 }
0x107a   : > { %8164 = vadd.xlane.f32.xlu0 %v8163_v27  ;;  %v8160_v35 = vsel %vm3037_vm2, %v16988_v17, 0.0 }
0x107b   : > { %8161 = vadd.xlane.f32.xlu1 %v8160_v35 }
0x107d   : > { %v7979_v50 = vpop.xlane.xlu0 %7978 }
0x107e   : > { %v8043_v11 = vsub.f32 %v16831_v0, %v7979_v50  ;;  %v7976_v30 = vpop.xlane.xlu1 %7975 }
0x107f   : > { %v8042_v8 = vsub.f32 %v16834_v7, %v7976_v30 }
0x1080   : > { %v8090_v32 = vmul.f32 1.442695, %v8043_v11 }
0x1081   : > { %v8088_v9 = vmul.f32 1.442695, %v8042_v8  ;;  %v7985_v44 = vpop.xlane.xlu0 %7984 }
0x1082   : > { %13881 = vpow2.f32 %v8090_v32  ;;  %v8045_v53 = vsub.f32 %v16837_v46, %v7985_v44  ;;  %v7982_v15 = vpop.xlane.xlu1 %7981 }
0x1083   : > { %13883 = vpow2.f32 %v8088_v9  ;;  %v8044_v45 = vsub.f32 %v16842_v4, %v7982_v15 }
0x1084   : > { %v8094_v40 = vmul.f32 1.442695, %v8045_v53 }
0x1085   : > { %v8092_v29 = vmul.f32 1.442695, %v8044_v45  ;;  %v7991_v27 = vpop.xlane.xlu0 %7990 }
0x1086   : > { %13885 = vpow2.f32 %v8094_v40  ;;  %v8047_v35 = vsub.f32 %v16853_v42, %v7991_v27  ;;  %v7988_v0 = vpop.xlane.xlu1 %7987 }
0x1087   : > { %13887 = vpow2.f32 %v8092_v29  ;;  %v8046_v7 = vsub.f32 %v16856_v58, %v7988_v0 }
0x1088   : > { %v8098_v50 = vmul.f32 1.442695, %v8047_v35 }
0x1089   : > { %v8096_v11 = vmul.f32 1.442695, %v8046_v7  ;;  %v7997_v30 = vpop.xlane.xlu0 %7996 }
0x108a   : > { %13889 = vpow2.f32 %v8098_v50  ;;  %v8049_v46 = vsub.f32 %v16863_v23, %v7997_v30  ;;  %v7994_v8 = vpop.xlane.xlu1 %7993 }
0x108b   : > { %13891 = vpow2.f32 %v8096_v11  ;;  %v8048_v4 = vsub.f32 %v16866_v47, %v7994_v8 }
0x108c   : > { %v17002_v32 = vpop.eup %13881  ;;  %v8102_v9 = vmul.f32 1.442695, %v8049_v46 }
0x108d   : > { %v17004_v44 = vpop.eup %13883  ;;  %v8100_v42 = vmul.f32 1.442695, %v8048_v4  ;;  %v8003_v53 = vpop.xlane.xlu0 %8002  ;;  %v8169_v58 = vsel %vm3037_vm2, %v17002_v32, 0.0 }
0x108e   : > { %13893 = vpow2.f32 %v8102_v9  ;;  %v8051_v15 = vsub.f32 %v16873_v5, %v8003_v53  ;;  %v8000_v45 = vpop.xlane.xlu1 %7999  ;;  %8170 = vadd.xlane.f32.xlu0 %v8169_v58  ;;  %v8166_v23 = vsel %vm3037_vm2, %v17004_v44, 0.0 }
0x108f   : > { %13895 = vpow2.f32 %v8100_v42  ;;  %v8050_v47 = vsub.f32 %v16877_v54, %v8000_v45  ;;  %8167 = vadd.xlane.f32.xlu1 %v8166_v23 }
0x1090   : > { %v17012_v40 = vpop.eup %13885  ;;  %v8106_v29 = vmul.f32 1.442695, %v8051_v15 }
0x1091   : > { %v17014_v27 = vpop.eup %13887  ;;  %v8104_v35 = vmul.f32 1.442695, %v8050_v47  ;;  %v8009_v0 = vpop.xlane.xlu0 %8008  ;;  %v8175_v7 = vsel %vm3037_vm2, %v17012_v40, 0.0 }
0x1092   : > { %13897 = vpow2.f32 %v8106_v29  ;;  %v8053_v5 = vsub.f32 %v16885_v26, %v8009_v0  ;;  %v8006_v50 = vpop.xlane.xlu1 %8005  ;;  %8176 = vadd.xlane.f32.xlu0 %v8175_v7  ;;  %v8172_v11 = vsel %vm3037_vm2, %v17014_v27, 0.0 }
0x1093   : > { %13899 = vpow2.f32 %v8104_v35  ;;  %v8052_v54 = vsub.f32 %v16888_v20, %v8006_v50  ;;  %8173 = vadd.xlane.f32.xlu1 %v8172_v11 }
0x1094   : > { %v17022_v30 = vpop.eup %13889  ;;  %v8110_v46 = vmul.f32 1.442695, %v8053_v5 }
0x1095   : > { %v17024_v8 = vpop.eup %13891  ;;  %v8108_v4 = vmul.f32 1.442695, %v8052_v54  ;;  %v8129_v9 = vpop.xlane.xlu0 %8128  ;;  %v8181_v42 = vsel %vm3037_vm2, %v17022_v30, 0.0 }
0x1096   : > { %13901 = vpow2.f32 %v8110_v46  ;;  %v8126_v26 = vpop.xlane.xlu1 %8125  ;;  %8182 = vadd.xlane.f32.xlu0 %v8181_v42  ;;  %v8178_v53 = vsel %vm3037_vm2, %v17024_v8, 0.0 }
0x1097   : > { %13903 = vpow2.f32 %v8108_v4  ;;  %8179 = vadd.xlane.f32.xlu1 %v8178_v53 }
0x1098   : > { %v17030_v20 = vpop.eup %13893  ;;  %13905 = vrcp.f32 %v8129_v9 }
0x1099   : > { %v17032_v58 = vpop.eup %13895  ;;  %13907 = vrcp.f32 %v8126_v26  ;;  %v8015_v15 = vpop.xlane.xlu0 %8014  ;;  %v8187_v45 = vsel %vm3037_vm2, %v17030_v20, 0.0 }
0x109a   : > { %v8055_v23 = vsub.f32 %v16899_v59, %v8015_v15  ;;  %v8012_v47 = vpop.xlane.xlu1 %8011  ;;  %8188 = vadd.xlane.f32.xlu0 %v8187_v45  ;;  %v8184_v29 = vsel %vm3037_vm2, %v17032_v58, 0.0 }
0x109b   : > { %v8054_v35 = vsub.f32 %v16904_v24, %v8012_v47  ;;  %8185 = vadd.xlane.f32.xlu1 %v8184_v29  ;;  %v13329_v29 = vunpack.i.h.bf16 %v16804_v2 }
0x109c   : > { %v17040_v0 = vpop.eup %13897  ;;  %v8114_v7 = vmul.f32 1.442695, %v8055_v23 }
0x109d   : > { %v17042_v5 = vpop.eup %13899  ;;  %v8112_v50 = vmul.f32 1.442695, %v8054_v35  ;;  %v8021_v11 = vpop.xlane.xlu0 %8020  ;;  %v8193_v54 = vsel %vm3037_vm2, %v17040_v0, 0.0  ;;  %v13328_v35 = vunpack.i.l.bf16 %v16804_v2 }
0x109e   : > { %13909 = vpow2.f32 %v8114_v7  ;;  %v8057_v59 = vsub.f32 %v16913_v60, %v8021_v11  ;;  %v8018_v46 = vpop.xlane.xlu1 %8017  ;;  %8194 = vadd.xlane.f32.xlu0 %v8193_v54  ;;  %v8190_v4 = vsel %vm3037_vm2, %v17042_v5, 0.0 }
0x109f   : > { %v8056_v24 = vsub.f32 %v16916_v25, %v8018_v46  ;;  %8191 = vadd.xlane.f32.xlu1 %v8190_v4  ;;  %13911 = vpow2.f32 %v8112_v50  ;;  %v17065_v46 = vpack.c.bf16 %v13329_v29, %v13328_v35 }
0x10a0   : > { %v17050_v9 = vpop.eup %13901  ;;  %v8118_v42 = vmul.f32 1.442695, %v8057_v59 }
0x10a1   : > { %v17052_v26 = vpop.eup %13903  ;;  %v8116_v53 = vmul.f32 1.442695, %v8056_v24  ;;  %v8135_v15 = vpop.xlane.xlu0 %8134  ;;  %v8199_v45 = vsel %vm3037_vm2, %v17050_v9, 0.0 }
0x10a2   : > { %v13906_v60 = vpop.eup %13905  ;;  %13913 = vpow2.f32 %v8118_v42  ;;  %v8132_v23 = vpop.xlane.xlu1 %8131  ;;  %8200 = vadd.xlane.f32.xlu0 %v8199_v45  ;;  %v8196_v47 = vsel %vm3037_vm2, %v17052_v26, 0.0 }
0x10a3   : > { %v13908_v25 = vpop.eup %13907  ;;  %13915 = vpow2.f32 %v8116_v53  ;;  %8197 = vadd.xlane.f32.xlu1 %v8196_v47  ;;  %v8253_v50 = vmul.f32 %v13906_v60, %v16892_v39  ;;  %v13334_v60 = vunpack.i.h.bf16 %v16820_v63 }
0x10a4   : > { %13917 = vrcp.f32 %v8135_v15  ;;  %v8252_v7 = vmul.f32 %v13908_v25, %v16896_v43 }
0x10a5   : > { %13919 = vrcp.f32 %v8132_v23  ;;  %v8027_v11 = vpop.xlane.xlu0 %8026  ;;  %v13333_v23 = vunpack.i.l.bf16 %v16820_v63 }
0x10a6   : > { %12430 = vmatprep.mubr.msk.f32.mxu0 %vm3037_vm2, %v8252_v7  ;;  %v8059_v54 = vsub.f32 %v16931_v16, %v8027_v11  ;;  %v8024_v59 = vpop.xlane.xlu1 %8023 }
0x10a7   : > { %12431 = vmatmul.mubr.msk.f32.vlgmr.msra.gmra.mrb[90].mxu0 %vm3037_vm2, %v8253_v50  ;;  %v8058_v2 = vsub.f32 %v16934_v22, %v8024_v59  ;;  %v12862_v35 = vpack.c.bf16 %v13334_v60, %v13333_v23  ;;  %v13339_v60 = vunpack.i.h.bf16 %v16806_v21  ;;  %v13338_v23 = vunpack.i.l.bf16 %v16806_v21 }
0x10a8   : > { %v17068_v4 = vpop.eup %13909  ;;  %12853 = vmatpush3.bf16.msra.mxu0 %v16597_v36  ;;  %v8122_v43 = vmul.f32 1.442695, %v8059_v54 }
0x10a9   : > { %12859 = vmatprep.subr.bf16.mxu0 %v17065_v46  ;;  %v8120_v39 = vmul.f32 1.442695, %v8058_v2  ;;  %v8205_v24 = vsel %vm3037_vm2, %v17068_v4, 0.0  ;;  %v17074_v16 = vpop.eup %13911 }
0x10aa   : > { %13921 = vpow2.f32 %v8122_v43  ;;  %8206 = vadd.xlane.f32.xlu0 %v8205_v24  ;;  %v8202_v29 = vsel %vm3037_vm2, %v17074_v16, 0.0  ;;  %v13359_v24 = vunpack.i.h.bf16 %v16826_v33 }
0x10ab   : > { %13923 = vpow2.f32 %v8120_v39 }
0x10ac   : > { %v17076_v42 = vpop.eup %13913 }
0x10ad   : > { %v17078_v53 = vpop.eup %13915  ;;  %v8211_v22 = vsel %vm3037_vm2, %v17076_v42, 0.0 }
0x10ae   : > { %v13918_v36 = vpop.eup %13917  ;;  %8212 = vadd.xlane.f32.xlu1 %v8211_v22  ;;  %v8208_v15 = vsel %vm3037_vm2, %v17078_v53, 0.0 }
0x10af   : > { %v13920_v45 = vpop.eup %13919  ;;  %8209 = vadd.xlane.f32.xlu0 %v8208_v15  ;;  %v8255_v25 = vmul.f32 %v13918_v36, %v16920_v3 }
0x10b0   : > { %v8254_v47 = vmul.f32 %v13920_v45, %v16924_v31  ;;  %v17105_v31 = vpop.permute.xlu0 %13366 }
0x10b2   : > { %12437 = vmatprep.mubr.msk.f32.mxu1 %vm3037_vm2, %v8254_v47  ;;  %8203 = vadd.xlane.f32.xlu1 %v8202_v29 }
0x10b3   : > { %12438 = vmatmul.mubr.msk.f32.vlgmr.msra.gmra.mrb[94].mxu1 %vm3037_vm2, %v8255_v25 }
0x10b4   : > { %v17092_v7 = vpop.eup %13921  ;;  %12857 = vmatpush3.bf16.msra.mxu1 %v16592_v28  ;;  %v17107_v28 = vpop.permute.xlu1 %13371 }
0x10b5   : > { %v17095_v50 = vpop.eup %13923  ;;  %12863 = vmatprep.subr.bf16.mxu1 %v12862_v35  ;;  %v8217_v63 = vsel %vm3037_vm2, %v17092_v7, 0.0 }
0x10b6   : > { %8218 = vadd.xlane.f32.xlu1 %v8217_v63  ;;  %v8214_v3 = vsel %vm3037_vm2, %v17095_v50, 0.0 }
0x10b7   : > { %8215 = vadd.xlane.f32.xlu0 %v8214_v3 }
0x10c7   : > { %13381 = vrot.lane.b32.xlu1 %v16590_v13, %s14493_s16  ;;  %v13358_v13 = vunpack.i.l.bf16 %v16826_v33 }
0x10c9   : > { %v12866_v47 = vpack.c.bf16 %v13359_v24, %v13358_v13 }
0x10cd   : > { %13376 = vrot.lane.b32.xlu0 %v16595_v38, %s14493_s16 }
0x10da   : > { %v8141_v11 = vpop.xlane.xlu0 %8140 }
0x10db   : > { %13925 = vrcp.f32 %v8141_v11  ;;  %v8138_v54 = vpop.xlane.xlu1 %8137 }
0x10dc   : > { %13927 = vrcp.f32 %v8138_v54 }
0x10de   : > { %v8147_v59 = vpop.xlane.xlu0 %8146 }
0x10df   : > { %13929 = vrcp.f32 %v8147_v59  ;;  %v8144_v2 = vpop.xlane.xlu1 %8143 }
0x10e0   : > { %13931 = vrcp.f32 %v8144_v2  ;;  %v13349_v2 = vunpack.i.h.bf16 %v16818_v61 }
0x10e5   : > { %v13926_v43 = vpop.eup %13925 }
0x10e6   : > { %v13928_v39 = vpop.eup %13927  ;;  %v8257_v22 = vmul.f32 %v13926_v43, %v16948_v49  ;;  %v12870_v49 = vpack.c.bf16 %v13339_v60, %v13338_v23  ;;  %v13348_v43 = vunpack.i.l.bf16 %v16818_v61  ;;  %v13363_v61 = vunpack.i.l.bf16 %v16828_v62 }
0x10e7   : > { %v8256_v38 = vmul.f32 %v13928_v39, %v16950_v55 }
0x10e9   : > { %v13930_v36 = vpop.eup %13929  ;;  %12444 = vmatprep.mubr.msk.f32.mxu0 %vm3037_vm2, %v8256_v38  ;;  %v8153_v15 = vpop.xlane.xlu0 %8152 }
0x10ea   : > { %v13932_v45 = vpop.eup %13931  ;;  %12445 = vmatmul.mubr.msk.f32.vlgmr.msra.gmra.mrb[92].mxu0 %vm3037_vm2, %v8257_v22  ;;  %13933 = vrcp.f32 %v8153_v15  ;;  %v8150_v25 = vpop.xlane.xlu1 %8149  ;;  %v8259_v33 = vmul.f32 %v13930_v36, %v16955_v56  ;;  %v13364_v22 = vunpack.i.h.bf16 %v16828_v62 }
0x10eb   : > { %12861 = vmatpush3.bf16.msra.mxu0 %v17065_v46  ;;  %v8258_v55 = vmul.f32 %v13932_v45, %v16960_v34  ;;  %13935 = vrcp.f32 %v8150_v25  ;;  %v13344_v46 = vunpack.i.h.bf16 %v16824_v18  ;;  %v13343_v34 = vunpack.i.l.bf16 %v16824_v18 }
0x10ec   : > { %12867 = vmatprep.subr.bf16.mxu0 %v12866_v47  ;;  %v12882_v36 = vpack.c.bf16 %v13364_v22, %v13363_v61  ;;  %v13354_v25 = vunpack.i.h.bf16 %v16822_v10 }
0x10ed   : > { %12451 = vmatprep.mubr.msk.f32.mxu1 %vm3037_vm2, %v8258_v55  ;;  %v13353_v55 = vunpack.i.l.bf16 %v16822_v10 }
0x10ee   : > { %12452 = vmatmul.mubr.msk.f32.vlgmr.msra.gmra.mrb[96].mxu1 %vm3037_vm2, %v8259_v33 }
0x10ef   : > { %12865 = vmatpush3.bf16.msra.mxu1 %v12862_v35  ;;  %v12874_v35 = vpack.c.bf16 %v13344_v46, %v13343_v34  ;;  %v13369_v46 = vunpack.i.h.bf16 %v17105_v31  ;;  %v13368_v34 = vunpack.i.l.bf16 %v17105_v31  ;;  %v12886_v10 = vpack.c.bf16 %v13354_v25, %v13353_v55 }
0x10f0   : > { %12871 = vmatprep.subr.bf16.mxu1 %v12870_v49  ;;  %v8159_v21 = vpop.xlane.xlu0 %8158  ;;  %v13374_v31 = vunpack.i.h.bf16 %v17107_v28 }
0x10f1   : > { %13937 = vrcp.f32 %v8159_v21  ;;  %v8156_v29 = vpop.xlane.xlu1 %8155 }
0x10f2   : > { %13939 = vrcp.f32 %v8156_v29 }
0x10f4   : > { %v13934_v63 = vpop.eup %13933 }
0x10f5   : > { %v13936_v3 = vpop.eup %13935  ;;  %v8261_v11 = vmul.f32 %v13934_v63, %v16968_v6  ;;  %v12878_v6 = vpack.c.bf16 %v13349_v2, %v13348_v43  ;;  %v13373_v2 = vunpack.i.l.bf16 %v17107_v28 }
0x10f6   : > { %v8260_v56 = vmul.f32 %v13936_v3, %v16970_v41 }
0x10f8   : > { %12458 = vmatprep.mubr.msk.f32.mxu0 %vm3037_vm2, %v8260_v56 }
0x10f9   : > { %12459 = vmatmul.mubr.msk.f32.vlgmr.msra.gmra.mrb[94].mxu0 %vm3037_vm2, %v8261_v11 }
0x10fa   : > { %12869 = vmatpush3.bf16.msra.mxu0 %v12866_v47 }
0x10fb   : > { %v13938_v54 = vpop.eup %13937  ;;  %12875 = vmatprep.subr.bf16.mxu0 %v12874_v35 }
0x10fc   : > { %v13940_v59 = vpop.eup %13939  ;;  %v8263_v18 = vmul.f32 %v13938_v54, %v16976_v57 }
0x10fd   : > { %v8262_v39 = vmul.f32 %v13940_v59, %v16978_v52  ;;  %v12890_v59 = vpack.c.bf16 %v13369_v46, %v13368_v34 }
0x10ff   : > { %12465 = vmatprep.mubr.msk.f32.mxu1 %vm3037_vm2, %v8262_v39 }
0x1100   : > { %12466 = vmatmul.mubr.msk.f32.vlgmr.msra.gmra.mrb[98].mxu1 %vm3037_vm2, %v8263_v18 }
0x1101   : > { %12873 = vmatpush3.bf16.msra.mxu1 %v12870_v49 }
0x1102   : > { %12879 = vmatprep.subr.bf16.mxu1 %v12878_v6 }
0x1107   : > { %v8165_v41 = vpop.xlane.xlu0 %8164 }
0x1108   : > { %13941 = vrcp.f32 %v8165_v41  ;;  %v8162_v24 = vpop.xlane.xlu1 %8161  ;;  %v12894_v41 = vpack.c.bf16 %v13374_v31, %v13373_v2 }
0x1109   : > { %13943 = vrcp.f32 %v8162_v24 }
0x1112   : > { %v13942_v13 = vpop.eup %13941 }
0x1113   : > { %v13944_v38 = vpop.eup %13943  ;;  %v8265_v57 = vmul.f32 %v13942_v13, %v16986_v19 }
0x1114   : > { %v8264_v52 = vmul.f32 %v13944_v38, %v16988_v17 }
0x1116   : > { %12472 = vmatprep.mubr.msk.f32.mxu0 %vm3037_vm2, %v8264_v52 }
0x1117   : > { %12473 = vmatmul.mubr.msk.f32.vlgmr.msra.gmra.mrb[96].mxu0 %vm3037_vm2, %v8265_v57 }
0x1118   : > { %12877 = vmatpush3.bf16.msra.mxu0 %v12874_v35 }
0x1119   : > { %12883 = vmatprep.subr.bf16.mxu0 %v12882_v36 }
0x111b   : > { %v8171_v15 = vpop.xlane.xlu0 %8170 }
0x111c   : > { %13945 = vrcp.f32 %v8171_v15  ;;  %v8168_v45 = vpop.xlane.xlu1 %8167 }
0x111d   : > { %13947 = vrcp.f32 %v8168_v45 }
0x111f   : > { %v8177_v60 = vpop.xlane.xlu0 %8176 }
0x1120   : > { %13949 = vrcp.f32 %v8177_v60  ;;  %v8174_v23 = vpop.xlane.xlu1 %8173 }
0x1121   : > { %13951 = vrcp.f32 %v8174_v23 }
0x1123   : > { %v8183_v62 = vpop.xlane.xlu0 %8182 }
0x1124   : > { %13953 = vrcp.f32 %v8183_v62  ;;  %v8180_v17 = vpop.xlane.xlu1 %8179 }
0x1125   : > { %13955 = vrcp.f32 %v8180_v17 }
0x1126   : > { %v13946_v19 = vpop.eup %13945 }
0x1127   : > { %v13948_v47 = vpop.eup %13947  ;;  %v8189_v33 = vpop.xlane.xlu0 %8188  ;;  %v8267_v29 = vmul.f32 %v13946_v19, %v17002_v32 }
0x1128   : > { %13957 = vrcp.f32 %v8189_v33  ;;  %v8186_v49 = vpop.xlane.xlu1 %8185  ;;  %v8266_v21 = vmul.f32 %v13948_v47, %v17004_v44 }
0x1129   : > { %13959 = vrcp.f32 %v8186_v49 }
0x112a   : > { %v13950_v63 = vpop.eup %13949  ;;  %12479 = vmatprep.mubr.msk.f32.mxu1 %vm3037_vm2, %v8266_v21 }
0x112b   : > { %v13952_v3 = vpop.eup %13951  ;;  %v8195_v56 = vpop.xlane.xlu0 %8194  ;;  %12480 = vmatmul.mubr.msk.f32.vlgmr.msra.gmra.mrb[100].mxu1 %vm3037_vm2, %v8267_v29  ;;  %v8269_v32 = vmul.f32 %v13950_v63, %v17012_v40 }
0x112c   : > { %13961 = vrcp.f32 %v8195_v56  ;;  %12881 = vmatpush3.bf16.msra.mxu1 %v12878_v6  ;;  %v8192_v11 = vpop.xlane.xlu1 %8191  ;;  %v8268_v44 = vmul.f32 %v13952_v3, %v17014_v27 }
0x112d   : > { %12887 = vmatprep.subr.bf16.mxu1 %v12886_v10  ;;  %13963 = vrcp.f32 %v8192_v11 }
0x112e   : > { %v13954_v35 = vpop.eup %13953  ;;  %12486 = vmatprep.mubr.msk.f32.mxu0 %vm3037_vm2, %v8268_v44 }
0x112f   : > { %v13956_v54 = vpop.eup %13955  ;;  %v8201_v43 = vpop.xlane.xlu0 %8200  ;;  %12487 = vmatmul.mubr.msk.f32.vlgmr.msra.gmra.mrb[98].mxu0 %vm3037_vm2, %v8269_v32  ;;  %v8271_v40 = vmul.f32 %v13954_v35, %v17022_v30 }
0x1130   : > { %13965 = vrcp.f32 %v8201_v43  ;;  %12885 = vmatpush3.bf16.msra.mxu0 %v12882_v36  ;;  %v8198_v39 = vpop.xlane.xlu1 %8197  ;;  %v8270_v27 = vmul.f32 %v13956_v54, %v17024_v8 }
0x1131   : > { %12891 = vmatprep.subr.bf16.mxu0 %v12890_v59  ;;  %13967 = vrcp.f32 %v8198_v39 }
0x1132   : > { %v13958_v18 = vpop.eup %13957  ;;  %12493 = vmatprep.mubr.msk.f32.mxu1 %vm3037_vm2, %v8270_v27 }
0x1133   : > { %v13960_v6 = vpop.eup %13959  ;;  %12494 = vmatmul.mubr.msk.f32.vlgmr.msra.gmra.mrb[102].mxu1 %vm3037_vm2, %v8271_v40  ;;  %v8273_v24 = vmul.f32 %v13958_v18, %v17030_v20  ;;  %v13557_v40 = vld [vmem:[%s18000_s5 + $0x40] sm:$0xff]  }
0x1134   : > { %12889 = vmatpush3.bf16.msra.mxu1 %v12886_v10  ;;  %v8272_v28 = vmul.f32 %v13960_v6, %v17032_v58  ;;  %v13558_v6 = vld [vmem:[%s18000_s5 + $0x48] sm:$0xff]  }
0x1135   : > { %12895 = vmatprep.subr.bf16.mxu1 %v12894_v41 }
0x1136   : > { %v13962_v13 = vpop.eup %13961  ;;  %12500 = vmatprep.mubr.msk.f32.mxu0 %vm3037_vm2, %v8272_v28 }
0x1137   : > { %v13964_v8 = vpop.eup %13963  ;;  %v8207_v30 = vpop.xlane.xlu0 %8206  ;;  %12501 = vmatmul.mubr.msk.f32.vlgmr.msra.gmra.mrb[100].mxu0 %vm3037_vm2, %v8273_v24  ;;  %v8275_v22 = vmul.f32 %v13962_v13, %v17040_v0  ;;  %v13559_v24 = vld [vmem:[%s18000_s5 + $0x50] sm:$0xff]  }
0x1138   : > { %12893 = vmatpush3.bf16.msra.mxu0 %v12890_v59  ;;  %v8274_v38 = vmul.f32 %v13964_v8, %v17042_v5 }
0x113a   : > { %v13966_v61 = vpop.eup %13965  ;;  %12507 = vmatprep.mubr.msk.f32.mxu1 %vm3037_vm2, %v8274_v38 }
0x113b   : > { %v13968_v52 = vpop.eup %13967  ;;  %12508 = vmatmul.mubr.msk.f32.vlgmr.msra.gmra.mrb[104].mxu1 %vm3037_vm2, %v8275_v22  ;;  %v8213_v20 = vpop.xlane.xlu1 %8212  ;;  %v8277_v36 = vmul.f32 %v13966_v61, %v17050_v9  ;;  %v13560_v61 = vld [vmem:[%s18000_s5 + $0x58] sm:$0xff]  }
0x113c   : > { %12897 = vmatpush3.bf16.msra.mxu1 %v12894_v41  ;;  %v8210_v58 = vpop.xlane.xlu0 %8209  ;;  %v8276_v57 = vmul.f32 %v13968_v52, %v17052_v26 }
0x113d   : > { %13969 = vrcp.f32 %v8210_v58 }
0x113e   : > { %12514 = vmatprep.mubr.msk.f32.mxu0 %vm3037_vm2, %v8276_v57  ;;  %13971 = vrcp.f32 %v8207_v30 }
0x113f   : > { %12515 = vmatmul.mubr.msk.f32.vlgmr.msra.gmra.mrb[102].mxu0 %vm3037_vm2, %v8277_v36  ;;  %v8204_v0 = vpop.xlane.xlu1 %8203  ;;  %v13561_v36 = vld [vmem:[%s18000_s5 + $0x60] sm:$0xff]  }
0x1140   : > { %13973 = vrcp.f32 %v8204_v0 }
0x1141   : > { %13975 = vrcp.f32 %v8213_v20 }
0x1143   : > { %v8219_v5 = vpop.xlane.xlu1 %8218 }
0x1144   : > { %13977 = vrcp.f32 %v8219_v5  ;;  %v8216_v15 = vpop.xlane.xlu0 %8215 }
0x1145   : > { %13979 = vrcp.f32 %v8216_v15 }
0x1147   : > { %v13970_v45 = vpop.eup %13969  ;;  %v13382_v60 = vpop.permute.xlu1 %13381 }
0x1148   : > { %v13384_v23 = vunpack.i.h.bf16 %v13382_v60  ;;  %v13383_v62 = vunpack.i.l.bf16 %v13382_v60  ;;  %v13377_v26 = vpop.permute.xlu0 %13376  ;;  %v8280_v9 = vmul.f32 %v13970_v45, %v17078_v53  ;;  %v13972_v17 = vpop.eup %13971  ;;  %v13562_v45 = vld [vmem:[%s18000_s5 + $0x68] sm:$0xff]  }
0x1149   : > { %v13379_v19 = vunpack.i.h.bf16 %v13377_v26  ;;  %v13378_v47 = vunpack.i.l.bf16 %v13377_v26  ;;  %v8279_v29 = vmul.f32 %v13972_v17, %v17068_v4  ;;  %v13564_v26 = vld [vmem:[%s18000_s5 + $0x78] sm:$0xff]  }
0x114a   : > { %v13974_v25 = vpop.eup %13973  ;;  %v12902_v55 = vpack.c.bf16 %v13384_v23, %v13383_v62  ;;  %12528 = vmatprep.mubr.msk.f32.mxu0 %vm3037_vm2, %v8280_v9  ;;  %v13563_v23 = vld [vmem:[%s18000_s5 + $0x70] sm:$0xff]  }
0x114b   : > { %v12898_v33 = vpack.c.bf16 %v13379_v19, %v13378_v47  ;;  %v8278_v49 = vmul.f32 %v13974_v25, %v17074_v16  ;;  %v13976_v21 = vpop.eup %13975 }
0x114c   : > { %12903 = vmatprep.subr.bf16.mxu1 %v12902_v55  ;;  %v8281_v3 = vmul.f32 %v13976_v21, %v17076_v42 }
0x114d   : > { %12521 = vmatprep.mubr.msk.f32.mxu1 %vm3037_vm2, %v8278_v49  ;;  %12899 = vmatprep.subr.bf16.mxu0 %v12898_v33 }
0x114e   : > { %v13978_v63 = vpop.eup %13977  ;;  %12522 = vmatmul.mubr.msk.f32.vlgmr.msra.gmra.mrb[106].mxu1 %vm3037_vm2, %v8279_v29  ;;  %12901 = vmatpush3.bf16.msra.mxu0 %v12898_v33 }
0x114f   : > { %v13980_v53 = vpop.eup %13979  ;;  %12905 = vmatpush3.bf16.msra.mxu1 %v12902_v55  ;;  %v8283_v34 = vmul.f32 %v13978_v63, %v17092_v7  ;;  %12538 = vmatprep.subr.bf16.mxu0 %v13557_v40 }
0x1150   : > { %v8282_v46 = vmul.f32 %v13980_v53, %v17095_v50 }
0x1151   : > { %12529 = vmatmul.mubr.msk.f32.vlgmr.msra.gmra.mrb[104].mxu0 %vm3037_vm2, %v8281_v3 }
0x1152   : > { %12535 = vmatprep.mubr.msk.f32.mxu1 %vm3037_vm2, %v8282_v46  ;;  %12539 = vmatpush3.bf16.msra.mxu0 %v13557_v40 }
0x1153   : > { %12536 = vmatmul.mubr.msk.f32.vlgmr.msra.gmra.mrb[108].mxu1 %vm3037_vm2, %v8283_v34  ;;  %12540 = vmatprep.subr.bf16.mxu0 %v13558_v6 }
0x1154   : > { %10124 = vmatprep.mubr.bf16.mxu1 %v18029_v12 }
0x1156   : > { %12541 = vmatpush3.bf16.msra.mxu0 %v13558_v6 }
0x1157   : > { %12542 = vmatprep.subr.bf16.mxu0 %v13559_v24 }
0x115a   : > { %12543 = vmatpush3.bf16.msra.mxu0 %v13559_v24 }
0x115b   : > { %12544 = vmatprep.subr.bf16.mxu0 %v13560_v61 }
0x115e   : > { %12545 = vmatpush3.bf16.msra.mxu0 %v13560_v61 }
0x115f   : > { %12546 = vmatprep.subr.bf16.mxu0 %v13561_v36 }
0x1162   : > { %12547 = vmatpush3.bf16.msra.mxu0 %v13561_v36 }
0x1163   : > { %12548 = vmatprep.subr.bf16.mxu0 %v13562_v45 }
0x1166   : > { %12549 = vmatpush3.bf16.msra.mxu0 %v13562_v45 }
0x1167   : > { %12550 = vmatprep.subr.bf16.mxu0 %v13563_v23 }
0x116a   : > { %12551 = vmatpush3.bf16.msra.mxu0 %v13563_v23 }
0x116b   : > { %12552 = vmatprep.subr.bf16.mxu0 %v13564_v26 }
0x116e   : > { %12553 = vmatpush3.bf16.msra.mxu0 %v13564_v26 }
0x117a   : > { %v17183_v4 = vpop.f32.mrb[90].mxu0 }
0x117b   : > { %v17185_v16 = vpop.f32.mrb[91].mxu0 }
0x1186   : > { %v17187_v56 = vpop.f32.mrb[94].mxu1 }
0x1187   : > { %v17189_v42 = vpop.f32.mrb[95].mxu1 }
0x11bd   : > { %v17191_v10 = vpop.f32.mrb[92].mxu0 }
0x11be   : > { %v17193_v50 = vpop.f32.mrb[93].mxu0 }
0x11c1   : > { %v17195_v7 = vpop.f32.mrb[96].mxu1 }
0x11c2   : > { %v17197_v11 = vpop.f32.mrb[97].mxu1 }
0x11cc   : > { %v12460_v44 = vpop.f32.mrb[94].mxu0 }
0x11cd   : > { %v8680_v32 = vpop.f32.mrb[95].mxu0 }
0x11ce   : > { %v13385_v35 = vpack.i.bf16 %v12460_v44, %v8680_v32 }
0x11d0   : > { %13386 = vrot.lane.b32.xlu0 %v13385_v35, %s14493_s16 }
0x11d3   : > { %v12467_v54 = vpop.f32.mrb[98].mxu1 }
0x11d4   : > { %v8761_v59 = vpop.f32.mrb[99].mxu1 }
0x11d5   : > { %v13390_v31 = vpack.i.bf16 %v12467_v54, %v8761_v59 }
0x11d7   : > { %13391 = vrot.lane.b32.xlu1 %v13390_v31, %s14493_s16 }
0x11ea   : > { %v12474_v2 = vpop.f32.mrb[96].mxu0 }
0x11eb   : > { %v8842_v43 = vpop.f32.mrb[97].mxu0 }
0x11ec   : > { %v13415_v39 = vpack.i.bf16 %v12474_v2, %v8842_v43 }
0x11fe   : > { %v12481_v27 = vpop.f32.mrb[100].mxu1 }
0x11ff   : > { %v8923_v18 = vpop.f32.mrb[101].mxu1 }
0x1200   : > { %v13420_v41 = vpack.i.bf16 %v12481_v27, %v8923_v18 }
0x1202   : > { %v12488_v28 = vpop.f32.mrb[98].mxu0 }
0x1203   : > { %v9004_v13 = vpop.f32.mrb[99].mxu0 }
0x1204   : > { %v13395_v8 = vpack.i.bf16 %v12488_v28, %v9004_v13 }
0x1206   : > { %13396 = vrot.lane.b32.xlu0 %v13395_v8, %s14492_s26  ;;  %v12495_v30 = vpop.f32.mrb[102].mxu1 }
0x1207   : > { %v9085_v38 = vpop.f32.mrb[103].mxu1 }
0x1208   : > { %v13400_v22 = vpack.i.bf16 %v12495_v30, %v9085_v38 }
0x120a   : > { %13401 = vrot.lane.b32.xlu1 %v13400_v22, %s14492_s26  ;;  %v12502_v52 = vpop.f32.mrb[100].mxu0 }
0x120b   : > { %v9166_v20 = vpop.f32.mrb[101].mxu0 }
0x120c   : > { %v13425_v58 = vpack.i.bf16 %v12502_v52, %v9166_v20 }
0x120e   : > { %v12509_v57 = vpop.f32.mrb[104].mxu1 }
0x120f   : > { %v9247_v0 = vpop.f32.mrb[105].mxu1 }
0x1210   : > { %v13430_v5 = vpack.i.bf16 %v12509_v57, %v9247_v0 }
0x1212   : > { %v12516_v15 = vpop.f32.mrb[102].mxu0 }
0x1213   : > { %v9328_v60 = vpop.f32.mrb[103].mxu0 }
0x1214   : > { %v13405_v62 = vpack.i.bf16 %v12516_v15, %v9328_v60 }
0x1216   : > { %13406 = vrot.lane.b32.xlu0 %v13405_v62, %s14491_s8 }
0x121a   : > { %13416 = vrot.lane.b32.xlu0 %v13415_v39, %s14493_s16 }
0x121e   : > { %13426 = vrot.lane.b32.xlu0 %v13425_v58, %s14492_s26 }
0x1221   : > { %v12523_v9 = vpop.f32.mrb[106].mxu1 }
0x1222   : > { %v9409_v17 = vpop.f32.mrb[107].mxu1 }
0x1223   : > { %v13410_v19 = vpack.i.bf16 %v12523_v9, %v9409_v17 }
0x1224   : > { %v12530_v47 = vpop.f32.mrb[104].mxu0 }
0x1225   : > { %v9490_v25 = vpop.f32.mrb[105].mxu0  ;;  %13411 = vrot.lane.b32.xlu1 %v13410_v19, %s14491_s8 }
0x1226   : > { %v13435_v55 = vpack.i.bf16 %v12530_v47, %v9490_v25  ;;  %v12537_v33 = vpop.f32.mrb[108].mxu1 }
0x1227   : > { %v9571_v49 = vpop.f32.mrb[109].mxu1 }
0x1228   : > { %v13440_v21 = vpack.i.bf16 %v12537_v33, %v9571_v49  ;;  %13436 = vrot.lane.b32.xlu0 %v13435_v55, %s14491_s8 }
0x1229   : > { %13421 = vrot.lane.b32.xlu1 %v13420_v41, %s14493_s16 }
0x122d   : > { %13431 = vrot.lane.b32.xlu1 %v13430_v5, %s14492_s26  ;;  %s11042_s26 = sshll.u32 %s17815_s0, 4  ;;  %s17830_s26 = int_to_ptr.vmem [resolvable:$true] %s11042_s26 }
0x1231   : > { %13441 = vrot.lane.b32.xlu1 %v13440_v21, %s14491_s8  ;;  %s11621_s8 = sshll.u32 %s14614_s1, 10  ;;  %s14379_s1 = scalar_lea.vmem %s17830_s26, 1024 }
0x1232   : > { %s17828_s11 = scalar_lea.hbm %s18061_s20, %s11621_s8  ;;  %p14380_p1 = scmp.ne.s32.totalorder %s17830_s26, %s14379_s1 }
0x1234   : > { %p14381_p8 = pnand %p14380_p1, %p18062_p3 }
0x1236   : > { %p14382_p6 = pneg %p14381_p8 }
0x1242   : > { %v13387_v29 = vpop.permute.xlu0 %13386 }
0x1243   : > { %v13389_v53 = vunpack.i.h.bf16 %v13387_v29  ;;  %v13388_v3 = vunpack.i.l.bf16 %v13387_v29 }
0x1245   : > { %v9677_v32 = vsel %vm1620_vm0, %v17183_v4, %v13389_v53  ;;  %v9676_v35 = vsel %vm1620_vm0, %v17185_v16, %v13388_v3 }
0x1249   : > { %v13392_v40 = vpop.permute.xlu1 %13391 }
0x124a   : > { %v13394_v41 = vunpack.i.h.bf16 %v13392_v40  ;;  %v13393_v4 = vunpack.i.l.bf16 %v13392_v40 }
0x124c   : > { %v9679_v8 = vsel %vm1620_vm0, %v17187_v56, %v13394_v41  ;;  %v9678_v30 = vsel %vm1620_vm0, %v17189_v42, %v13393_v4 }
0x1278   : > { %v13397_v63 = vpop.permute.xlu0 %13396 }
0x1279   : > { %v13399_v46 = vunpack.i.h.bf16 %v13397_v63  ;;  %v13398_v34 = vunpack.i.l.bf16 %v13397_v63 }
0x127b   : > { %v9685_v31 = vsel %vm4790_vm3, %v9677_v32, %v13399_v46  ;;  %v9684_v2 = vsel %vm4790_vm3, %v9676_v35, %v13398_v34 }
0x127c   : > { %v13402_v6 = vpop.permute.xlu1 %13401 }
0x127d   : > { %v13404_v28 = vunpack.i.h.bf16 %v13402_v6  ;;  %v13403_v24 = vunpack.i.l.bf16 %v13402_v6 }
0x127f   : > { %v9686_v57 = vsel %vm4790_vm3, %v9678_v30, %v13403_v24  ;;  %v9687_v36 = vsel %vm4790_vm3, %v9679_v8, %v13404_v28  ;;  %v18039_v28 = vld [vmem:[#allocation35_spill] sm:$0xff]  ;;  %v18042_v8 = vld [vmem:[#allocation36_spill] sm:$0xff] }
0x1288   : > { %v13407_v44 = vpop.permute.xlu0 %13406 }
0x1289   : > { %v13409_v54 = vunpack.i.h.bf16 %v13407_v44  ;;  %v13408_v59 = vunpack.i.l.bf16 %v13407_v44 }
0x128b   : > { %v9692_v43 = vsel %vm4799_vm4, %v9684_v2, %v13408_v59  ;;  %v9693_v39 = vsel %vm4799_vm4, %v9685_v31, %v13409_v54  ;;  %v11564_v54 = vld [vmem:[#allocation13 + $0x1] ss:$0 sm:$0xff] }
0x128c   : > { %v9717_v27 = vpack.c.bf16 %v9693_v39, %v9692_v43  ;;  %v13417_v18 = vpop.permute.xlu0 %13416 }
0x128d   : > { %v13419_v13 = vunpack.i.h.bf16 %v13417_v18  ;;  %v13418_v38 = vunpack.i.l.bf16 %v13417_v18 }
0x128e   : > { %12554 = vmatprep.mubr.bf16.mxu0 %v9717_v27 }
0x128f   : > { %v9681_v0 = vsel %vm1620_vm0, %v17191_v10, %v13419_v13  ;;  %v9680_v42 = vsel %vm1620_vm0, %v17193_v50, %v13418_v38  ;;  %v18041_v13 = vld [vmem:[#allocation34_spill] sm:$0xff] }
0x1290   : > { %v13427_v16 = vpop.permute.xlu0 %13426 }
0x1291   : > { %v13429_v61 = vunpack.i.h.bf16 %v13427_v16  ;;  %v13428_v52 = vunpack.i.l.bf16 %v13427_v16 }
0x1293   : > { %v9688_v26 = vsel %vm4790_vm3, %v9680_v42, %v13428_v52  ;;  %v9689_v9 = vsel %vm4790_vm3, %v9681_v0, %v13429_v61  ;;  %v13565_v61 = vld [vmem:[#allocation16 + $0x80] ss:$8 sps:$4 sm:$0xff]   ;;  %v13567_v52 = vld [vmem:[#allocation16 + $0x84] ss:$8 sps:$4 sm:$0xff]  }
0x1294   : > { %10092 = vmatprep.subr.bf16.mxu1 %v13567_v52 }
0x1295   : > { %10093 = vmatpush1.bf16.msra.mxu1 %v13565_v61 }
0x1297   : > { %v13412_v22 = vpop.permute.xlu1 %13411 }
0x1298   : > { %v13414_v20 = vunpack.i.h.bf16 %v13412_v22  ;;  %v13413_v58 = vunpack.i.l.bf16 %v13412_v22 }
0x129a   : > { %v9695_v5 = vsel %vm4799_vm4, %v9687_v36, %v13414_v20  ;;  %v9694_v56 = vsel %vm4799_vm4, %v9686_v57, %v13413_v58  ;;  %v13437_v15 = vpop.permute.xlu0 %13436  ;;  %v13570_v20 = vld [vmem:[#allocation16 + $0x94] ss:$8 sps:$4 sm:$0xff]   ;;  %v13568_v58 = vld [vmem:[#allocation16 + $0x90] ss:$8 sps:$4 sm:$0xff]  }
0x129b   : > { %v9718_v45 = vpack.c.bf16 %v9695_v5, %v9694_v56  ;;  %v13439_v60 = vunpack.i.h.bf16 %v13437_v15  ;;  %v13438_v23 = vunpack.i.l.bf16 %v13437_v15  ;;  %v13422_v62 = vpop.permute.xlu1 %13421  ;;  %10094 = vmatprep.subr.bf16.mxu1 %v13570_v20 }
0x129c   : > { %v13424_v25 = vunpack.i.h.bf16 %v13422_v62  ;;  %v13423_v55 = vunpack.i.l.bf16 %v13422_v62  ;;  %10095 = vmatpush1.bf16.msra.mxu1 %v13568_v58 }
0x129d   : > { %12555 = vmatmul.mubr.bf16.vlgmr.msra.gmra.mrb[108].mxu0 %v9718_v45  ;;  %v9696_v17 = vsel %vm4799_vm4, %v9688_v26, %v13438_v23  ;;  %v9697_v10 = vsel %vm4799_vm4, %v9689_v9, %v13439_v60 }
0x129e   : > { %v9719_v19 = vpack.c.bf16 %v9697_v10, %v9696_v17  ;;  %v9683_v21 = vsel %vm1620_vm0, %v17195_v7, %v13424_v25  ;;  %v9682_v29 = vsel %vm1620_vm0, %v17197_v11, %v13423_v55 }
0x129f   : > { %v13432_v47 = vpop.permute.xlu1 %13431 }
0x12a0   : > { %12558 = vmatprep.mubr.bf16.mxu0 %v9719_v19  ;;  %v13434_v33 = vunpack.i.h.bf16 %v13432_v47  ;;  %v13433_v50 = vunpack.i.l.bf16 %v13432_v47 }
0x12a2   : > { %v9690_v3 = vsel %vm4790_vm3, %v9682_v29, %v13433_v50  ;;  %v9691_v46 = vsel %vm4790_vm3, %v9683_v21, %v13434_v33 }
0x12a3   : > { %v13442_v49 = vpop.permute.xlu1 %13441 }
0x12a4   : > { %v13444_v63 = vunpack.i.h.bf16 %v13442_v49  ;;  %v13443_v53 = vunpack.i.l.bf16 %v13442_v49 }
0x12a6   : > { %v9698_v34 = vsel %vm4799_vm4, %v9690_v3, %v13443_v53  ;;  %v9699_v44 = vsel %vm4799_vm4, %v9691_v46, %v13444_v63 }
0x12a7   : > { %v9720_v32 = vpack.c.bf16 %v9699_v44, %v9698_v34 }
0x12a9   : > { %12559 = vmatmul.mubr.bf16.gmra.mrb[112].mxu0 %v9720_v32 }
0x1370   : > { %v12556_v35 = vpop.f32.mrb[108].mxu0 }
0x1371   : > { %v9803_v59 = vpop.f32.mrb[109].mxu0  ;;  %v9836_v11 = vadd.f32 %v12556_v35, %v16421_v1 }
0x1372   : > { %v9834_v7 = vadd.f32 %v9803_v59, %v16413_v37  ;;  %v12557_v31 = vpop.f32.mrb[110].mxu0  ;;  %v13571_v59 = vld [vmem:[#allocation16 + $0xa0] ss:$8 sps:$4 sm:$0xff]  }
0x1373   : > { %v9806_v2 = vpop.f32.mrb[111].mxu0  ;;  %v17275_v40 = vadd.f32 %v11564_v54, %v9836_v11  ;;  %v9837_v18 = vadd.f32 %v12557_v31, %v16424_v48  ;;  %v13574_v31 = vld [vmem:[#allocation16 + $0xb0] ss:$8 sps:$4 sm:$0xff]   ;;  %v13577_v11 = vld [vmem:[#allocation16 + $0xc0] ss:$8 sps:$4 sm:$0xff]  }
0x1374   : > { %v17269_v43 = vadd.f32 %v11564_v54, %v9834_v7  ;;  %v9835_v39 = vadd.f32 %v9806_v2, %v16416_v51  ;;  %v13576_v7 = vld [vmem:[#allocation16 + $0xb4] ss:$8 sps:$4 sm:$0xff]   ;;  %v13579_v2 = vld [vmem:[#allocation16 + $0xc4] ss:$8 sps:$4 sm:$0xff]  }
0x1375   : > { %18037 = vst [vmem:[#allocation27_spill] sm:$0xff] %v17275_v40  ;;  %v17280_v37 = vadd.f32 %v11564_v54, %v9837_v18  ;;  %v13580_v18 = vld [vmem:[#allocation16 + $0xd0] ss:$8 sps:$4 sm:$0xff]  }
0x1376   : > { %18035 = vst [vmem:[#allocation37_spill] sm:$0xff] %v17269_v43  ;;  %v17272_v27 = vadd.f32 %v11564_v54, %v9835_v39  ;;  %9862 = vadd.xlane.f32.xlu0 %v17269_v43  ;;  %v13582_v39 = vld [vmem:[#allocation16 + $0xd4] ss:$8 sps:$4 sm:$0xff]  }
0x1377   : > { %18038 = vst [vmem:[#allocation28_spill] sm:$0xff] %v17280_v37 }
0x1378   : > { %18036 = vst [vmem:[#allocation29_spill] sm:$0xff] %v17272_v27  ;;  %9864 = vadd.xlane.f32.xlu1 %v17272_v27 }
0x137a   : > { %9866 = vadd.xlane.f32.xlu0 %v17275_v40 }
0x137c   : > { %v12560_v6 = vpop.f32.mrb[112].mxu0 }
0x137d   : > { %v9819_v1 = vpop.f32.mrb[113].mxu0  ;;  %v9840_v24 = vadd.f32 %v12560_v6, %v18039_v28  ;;  %v13585_v6 = vld [vmem:[#allocation16 + $0xe4] ss:$8 sps:$4 sm:$0xff]  }
0x137e   : > { %v9838_v41 = vadd.f32 %v9819_v1, %v16429_v14  ;;  %9868 = vadd.xlane.f32.xlu0 %v17280_v37  ;;  %v12561_v51 = vpop.f32.mrb[114].mxu0  ;;  %v13583_v1 = vld [vmem:[#allocation16 + $0xe0] ss:$8 sps:$4 sm:$0xff]  }
0x137f   : > { %v9822_v4 = vpop.f32.mrb[115].mxu0  ;;  %v9841_v30 = vadd.f32 %v12561_v51, %v18042_v8  ;;  %v17292_v22 = vadd.f32 %v11564_v54, %v9840_v24  ;;  %v13588_v51 = vld [vmem:[#allocation16 + $0xf4] ss:$8 sps:$4 sm:$0xff]  }
0x1380   : > { %v17285_v16 = vadd.f32 %v11564_v54, %v9838_v41  ;;  %v9839_v48 = vadd.f32 %v9822_v4, %v18041_v13  ;;  %v13586_v41 = vld [vmem:[#allocation16 + $0xf0] ss:$8 sps:$4 sm:$0xff]  }
0x1381   : > { %18044 = vst [vmem:[#allocation33_spill] sm:$0xff] %v17292_v22  ;;  %v17295_v14 = vadd.f32 %v11564_v54, %v9841_v30 }
0x1382   : > { %18040 = vst [vmem:[#allocation38_spill] sm:$0xff] %v17285_v16  ;;  %v17289_v38 = vadd.f32 %v11564_v54, %v9839_v48  ;;  %9870 = vadd.xlane.f32.xlu1 %v17285_v16  ;;  %v13573_v54 = vld [vmem:[#allocation16 + $0xa4] ss:$8 sps:$4 sm:$0xff]  }
0x1383   : > { %18045 = vst [vmem:[#allocation35_spill] sm:$0xff] %v17295_v14  ;;  %10096 = vmatprep.subr.bf16.mxu1 %v13573_v54 }
0x1384   : > { %18043 = vst [vmem:[#allocation30_spill] sm:$0xff] %v17289_v38  ;;  %9872 = vadd.xlane.f32.xlu0 %v17289_v38  ;;  %10097 = vmatpush1.bf16.msra.mxu1 %v13571_v59 }
0x1385   : > { %10098 = vmatprep.subr.bf16.mxu1 %v13576_v7 }
0x1386   : > { %9874 = vadd.xlane.f32.xlu1 %v17292_v22 }
0x1388   : > { %9876 = vadd.xlane.f32.xlu0 %v17295_v14  ;;  %10099 = vmatpush1.bf16.msra.mxu1 %v13574_v31 }
0x1389   : > { %10100 = vmatprep.subr.bf16.mxu1 %v13579_v2 }
0x138c   : > { %10101 = vmatpush1.bf16.msra.mxu1 %v13577_v11 }
0x138d   : > { %10102 = vmatprep.subr.bf16.mxu1 %v13582_v39 }
0x1390   : > { %10103 = vmatpush1.bf16.msra.mxu1 %v13580_v18 }
0x1391   : > { %10104 = vmatprep.subr.bf16.mxu1 %v13585_v6 }
0x1394   : > { %10105 = vmatpush1.bf16.msra.mxu1 %v13583_v1 }
0x1395   : > { %10106 = vmatprep.subr.bf16.mxu1 %v13588_v51 }
0x1398   : > { %10107 = vmatpush1.bf16.msra.mxu1 %v13586_v41 }
0x1403   : > { %v9863_v57 = vpop.xlane.xlu0 %9862 }
0x1404   : > { %v9878_v36 = vmul.f32 0.0078125, %v9863_v57 }
0x1405   : > { %v9865_v0 = vpop.xlane.xlu1 %9864 }
0x1406   : > { %v17300_v5 = vsub.f32 %v17269_v43, %v9878_v36  ;;  %v9879_v56 = vmul.f32 0.0078125, %v9865_v0 }
0x1407   : > { %v9867_v15 = vpop.xlane.xlu0 %9866 }
0x1408   : > { %v17303_v42 = vsub.f32 %v17272_v27, %v9879_v56  ;;  %v9880_v45 = vmul.f32 0.0078125, %v9867_v15  ;;  %v9894_v60 = vmul.f32 %v17300_v5, %v17300_v5 }
0x140a   : > { %v17308_v23 = vsub.f32 %v17275_v40, %v9880_v45  ;;  %9902 = vadd.xlane.f32.xlu1 %v9894_v60  ;;  %v9895_v62 = vmul.f32 %v17303_v42, %v17303_v42 }
0x140b   : > { %v9869_v26 = vpop.xlane.xlu0 %9868 }
0x140c   : > { %v9881_v9 = vmul.f32 0.0078125, %v9869_v26  ;;  %9904 = vadd.xlane.f32.xlu0 %v9895_v62  ;;  %v9896_v17 = vmul.f32 %v17308_v23, %v17308_v23  ;;  %v11566_v62 = vld [vmem:[#allocation14 + $0x1] ss:$0 sm:$0xff] }
0x140e   : > { %v17315_v10 = vsub.f32 %v17280_v37, %v9881_v9  ;;  %9906 = vadd.xlane.f32.xlu1 %v9896_v17 }
0x140f   : > { %v9871_v19 = vpop.xlane.xlu1 %9870 }
0x1410   : > { %v9882_v47 = vmul.f32 0.0078125, %v9871_v19  ;;  %v9897_v25 = vmul.f32 %v17315_v10, %v17315_v10 }
0x1411   : > { %v9873_v55 = vpop.xlane.xlu0 %9872 }
0x1412   : > { %v17320_v33 = vsub.f32 %v17285_v16, %v9882_v47  ;;  %v9883_v50 = vmul.f32 0.0078125, %v9873_v55  ;;  %9908 = vadd.xlane.f32.xlu0 %v9897_v25 }
0x1413   : > { %v9875_v49 = vpop.xlane.xlu1 %9874 }
0x1414   : > { %v17323_v21 = vsub.f32 %v17289_v38, %v9883_v50  ;;  %v9884_v29 = vmul.f32 0.0078125, %v9875_v49  ;;  %v9898_v63 = vmul.f32 %v17320_v33, %v17320_v33 }
0x1415   : > { %v9877_v53 = vpop.xlane.xlu0 %9876 }
0x1416   : > { %v17328_v3 = vsub.f32 %v17292_v22, %v9884_v29  ;;  %v9885_v46 = vmul.f32 0.0078125, %v9877_v53  ;;  %9910 = vadd.xlane.f32.xlu1 %v9898_v63  ;;  %v9899_v34 = vmul.f32 %v17323_v21, %v17323_v21  ;;  %v11567_v63 = vld [vmem:[%s18012_s23 + $0x1] ss:$0 sm:$0xff] }
0x1418   : > { %v17333_v44 = vsub.f32 %v17295_v14, %v9885_v46  ;;  %9912 = vadd.xlane.f32.xlu0 %v9899_v34  ;;  %v9900_v32 = vmul.f32 %v17328_v3, %v17328_v3 }
0x141a   : > { %9914 = vadd.xlane.f32.xlu1 %v9900_v32  ;;  %v9901_v35 = vmul.f32 %v17333_v44, %v17333_v44 }
0x141c   : > { %9916 = vadd.xlane.f32.xlu0 %v9901_v35 }
0x1497   : > { %v9903_v4 = vpop.xlane.xlu1 %9902 }
0x1498   : > { %v9918_v28 = vmul.f32 0.0078125, %v9903_v4 }
0x1499   : > { %v9905_v24 = vpop.xlane.xlu0 %9904 }
0x149a   : > { %v9926_v13 = vadd.f32 1e-12, %v9918_v28  ;;  %v9919_v48 = vmul.f32 0.0078125, %v9905_v24 }
0x149b   : > { %v9907_v8 = vpop.xlane.xlu1 %9906 }
0x149c   : > { %13981 = vrsqrt.f32 %v9926_v13  ;;  %v9927_v30 = vadd.f32 1e-12, %v9919_v48  ;;  %v9920_v61 = vmul.f32 0.0078125, %v9907_v8 }
0x149e   : > { %13983 = vrsqrt.f32 %v9927_v30  ;;  %v9928_v52 = vadd.f32 1e-12, %v9920_v61 }
0x149f   : > { %v9909_v20 = vpop.xlane.xlu0 %9908 }
0x14a0   : > { %13985 = vrsqrt.f32 %v9928_v52  ;;  %v9921_v58 = vmul.f32 0.0078125, %v9909_v20  ;;  %v13589_v20 = vld [vmem:[#allocation17 + $0xc0] sm:$0xff]  }
0x14a1   : > { %11966 = vmatprep.subr.bf16.mxu0 %v13589_v20 }
0x14a2   : > { %v9929_v57 = vadd.f32 1e-12, %v9921_v58  ;;  %v13590_v58 = vld [vmem:[#allocation17 + $0x80] sm:$0xff]  }
0x14a3   : > { %v9911_v36 = vpop.xlane.xlu1 %9910  ;;  %11967 = vmatpush3.bf16.msra.mxu0 %v13590_v58 }
0x14a4   : > { %13987 = vrsqrt.f32 %v9929_v57  ;;  %v9922_v0 = vmul.f32 0.0078125, %v9911_v36  ;;  %v13591_v57 = vld [vmem:[#allocation17 + $0xc8] sm:$0xff]  }
0x14a5   : > { %v9913_v56 = vpop.xlane.xlu0 %9912  ;;  %v13592_v36 = vld [vmem:[#allocation17 + $0x88] sm:$0xff]   ;;  %11968 = vmatprep.subr.bf16.mxu0 %v13591_v57 }
0x14a6   : > { %v13982_v15 = vpop.eup %13981  ;;  %v9930_v45 = vadd.f32 1e-12, %v9922_v0  ;;  %v9923_v60 = vmul.f32 0.0078125, %v9913_v56  ;;  %v13595_v0 = vld [vmem:[#allocation17 + $0xd8] sm:$0xff]  }
0x14a7   : > { %v9942_v26 = vmul.f32 %v13982_v15, %v17300_v5  ;;  %v9915_v9 = vpop.xlane.xlu1 %9914  ;;  %11969 = vmatpush3.bf16.msra.mxu0 %v13592_v36  ;;  %v13596_v56 = vld [vmem:[#allocation17 + $0x98] sm:$0xff]   ;;  %v13598_v15 = vld [vmem:[#allocation17 + $0xa0] sm:$0xff]  }
0x14a8   : > { %v13984_v17 = vpop.eup %13983  ;;  %13989 = vrsqrt.f32 %v9930_v45  ;;  %v9931_v19 = vadd.f32 1e-12, %v9923_v60  ;;  %v9924_v47 = vmul.f32 0.0078125, %v9915_v9  ;;  %v13599_v45 = vld [vmem:[#allocation17 + $0xe8] sm:$0xff]   ;;  %v13603_v9 = vld [vmem:[#allocation17 + $0xf8] sm:$0xff]  }
0x14a9   : > { %v9943_v25 = vmul.f32 %v13984_v17, %v17303_v42  ;;  %v9917_v55 = vpop.xlane.xlu0 %9916  ;;  %v9956_v50 = vmul.f32 %v11566_v62, %v9942_v26  ;;  %v13600_v60 = vld [vmem:[#allocation17 + $0xa8] sm:$0xff]   ;;  %v13602_v26 = vld [vmem:[#allocation17 + $0xb0] sm:$0xff]   ;;  %v13604_v17 = vld [vmem:[#allocation17 + $0xb8] sm:$0xff]  }
0x14aa   : > { %v13986_v49 = vpop.eup %13985  ;;  %13991 = vrsqrt.f32 %v9931_v19  ;;  %v9925_v29 = vmul.f32 0.0078125, %v9917_v55  ;;  %v9932_v46 = vadd.f32 1e-12, %v9924_v47  ;;  %v11568_v19 = vld [vmem:[%s18013_s2 + $0x2] sm:$0x3]  ;;  %v18046_v47 = vld [vmem:[#allocation31_spill] sm:$0xff] }
0x14ab   : > { %v9957_v53 = vmul.f32 %v11566_v62, %v9943_v25  ;;  %v9970_v5 = vadd.f32 %v11567_v63, %v9956_v50  ;;  %v9944_v35 = vmul.f32 %v13986_v49, %v17308_v23  ;;  %v17357_v25 = vrot.slane %v11568_v19, %v18046_v47  ;;  %v18047_v55 = vld [vmem:[#allocation32_spill] sm:$0xff]  ;;  %s14383_s2 = sshll.u32 %s14495_s15, 4  ;;  %s14384_s2 = int_to_ptr.vmem [resolvable:$false] %s14383_s2 }
0x14ac   : > { %v9933_v34 = vadd.f32 1e-12, %v9925_v29  ;;  %v17360_v50 = vrot.slane %v11568_v19, %v18047_v55  ;;  %s14385_s16 = scalar_lea.vmem %s14384_s2, 2048  ;;  %p14386_p0 = scmp.lt.s32.totalorder %s17830_s26, %s14384_s2 }
0x14ad   : > { %v9971_v32 = vadd.f32 %v11567_v63, %v9957_v53  ;;  %v9958_v7 = vmul.f32 %v11566_v62, %v9944_v35  ;;  %p14387_p2 = scmp.lt.s32.totalorder %s14385_s16, %s14379_s1 }
0x14ae   : > { %v13988_v54 = vpop.eup %13987  ;;  %13993 = vrsqrt.f32 %v9933_v34 }
0x14af   : > { %v9995_v59 = vpack.c.bf16 %v9971_v32, %v9970_v5  ;;  %v9945_v42 = vmul.f32 %v13988_v54, %v17315_v10  ;;  %13995 = vrsqrt.f32 %v9932_v46  ;;  %v9972_v18 = vadd.f32 %v11567_v63, %v9958_v7  ;;  %p14388_p9 = por %p14387_p2, %p14386_p0 }
0x14b1   : > { %10125 = vmatmul.mubr.bf16.vlgmr.msra.gmra.mrb[112].mxu1 %v9995_v59  ;;  %v9959_v31 = vmul.f32 %v11566_v62, %v9945_v42  ;;  %p14389_p10 = pnand %p14388_p9, %p14382_p6 }
0x14b2   : > { %v13990_v2 = vpop.eup %13989  ;;  %10134 = vmatprep.mubr.bf16.mxu1 %v18029_v12 }
0x14b3   : > { %v9973_v11 = vadd.f32 %v11567_v63, %v9959_v31  ;;  %v9946_v6 = vmul.f32 %v13990_v2, %v17320_v33 }
0x14b4   : > { %v13992_v39 = vpop.eup %13991 }
0x14b5   : > { %v9947_v1 = vmul.f32 %v13992_v39, %v17323_v21  ;;  %v9996_v23 = vpack.c.bf16 %v9973_v11, %v9972_v18  ;;  %v9960_v4 = vmul.f32 %v11566_v62, %v9946_v6 }
0x14b7   : > { %v9961_v41 = vmul.f32 %v11566_v62, %v9947_v1  ;;  %v9974_v13 = vadd.f32 %v11567_v63, %v9960_v4  ;;  %v13605_v1 = vld [vmem:[%s18048_s3] sm:$0xff]  }
0x14b8   : > { %v13994_v51 = vpop.eup %13993  ;;  %12562 = vmatprep.subr.bf16.mxu1 %v13605_v1 }
0x14b9   : > { %10135 = vmatmul.mubr.bf16.gmra.mrb[116].mxu1 %v9996_v23  ;;  %v13996_v10 = vpop.eup %13995  ;;  %v9975_v28 = vadd.f32 %v11567_v63, %v9961_v41  ;;  %v9949_v24 = vmul.f32 %v13994_v51, %v17333_v44  ;;  %v13593_v44 = vld [vmem:[#allocation17 + $0xd0] sm:$0xff]  }
0x14ba   : > { %10144 = vmatprep.mubr.bf16.mxu1 %v18029_v12  ;;  %v9948_v48 = vmul.f32 %v13996_v10, %v17328_v3  ;;  %v13594_v3 = vld [vmem:[#allocation17 + $0x90] sm:$0xff]   ;;  %11970 = vmatprep.subr.bf16.mxu0 %v13593_v44 }
0x14bb   : > { %v9997_v8 = vpack.c.bf16 %v9975_v28, %v9974_v13  ;;  %v9963_v30 = vmul.f32 %v11566_v62, %v9949_v24  ;;  %11971 = vmatpush3.bf16.msra.mxu0 %v13594_v3  ;;  %v13606_v23 = vld [vmem:[%s18048_s3 + $0x8] sm:$0xff]   ;;  %12563 = vmatpush3.bf16.msra.mxu1 %v13605_v1 }
0x14bc   : > { %v9962_v33 = vmul.f32 %v11566_v62, %v9948_v48  ;;  %11972 = vmatprep.subr.bf16.mxu0 %v13595_v0  ;;  %v13601_v62 = vld [vmem:[#allocation17 + $0xf0] sm:$0xff]   ;;  %12564 = vmatprep.subr.bf16.mxu1 %v13606_v23 }
0x14bd   : > { %v9977_v21 = vadd.f32 %v11567_v63, %v9963_v30 }
0x14be   : > { %v9976_v61 = vadd.f32 %v11567_v63, %v9962_v33 }
0x14bf   : > { %11973 = vmatpush3.bf16.msra.mxu0 %v13596_v56  ;;  %12565 = vmatpush3.bf16.msra.mxu1 %v13606_v23 }
0x14c0   : > { %v9998_v52 = vpack.c.bf16 %v9977_v21, %v9976_v61 }
0x14c1   : > { %10145 = vmatmul.mubr.bf16.gmra.mrb[120].mxu1 %v9997_v8  ;;  %v13607_v8 = vld [vmem:[%s18048_s3 + $0x10] sm:$0xff]  }
0x14c2   : > { %10154 = vmatprep.mubr.bf16.mxu1 %v18029_v12  ;;  %v13597_v12 = vld [vmem:[#allocation17 + $0xe0] sm:$0xff]   ;;  %12566 = vmatprep.subr.bf16.mxu1 %v13607_v8 }
0x14c3   : > { %11974 = vmatprep.subr.bf16.mxu0 %v13597_v12  ;;  %12567 = vmatpush3.bf16.msra.mxu1 %v13607_v8 }
0x14c4   : > { %11975 = vmatpush3.bf16.msra.mxu0 %v13598_v15 }
0x14c5   : > { %11976 = vmatprep.subr.bf16.mxu0 %v13599_v45 }
0x14c8   : > { %11977 = vmatpush3.bf16.msra.mxu0 %v13600_v60 }
0x14c9   : > { %10155 = vmatmul.mubr.bf16.gmra.mrb[124].mxu1 %v9998_v52  ;;  %11978 = vmatprep.subr.bf16.mxu0 %v13601_v62 }
0x14cc   : > { %11979 = vmatpush3.bf16.msra.mxu0 %v13602_v26 }
0x14cd   : > { %11980 = vmatprep.subr.bf16.mxu0 %v13603_v9 }
0x14d0   : > { %11981 = vmatpush3.bf16.msra.mxu0 %v13604_v17 }
0x1584   : > { %v10126_v49 = vpop.f32.mrb[112].mxu1 }
0x1585   : > { %v17363_v29 = vadd.f32 %v10126_v49, %v17357_v25  ;;  %v10128_v63 = vpop.f32.mrb[113].mxu1 }
0x1586   : > { %v17366_v53 = vadd.f32 %v10128_v63, %v17360_v50  ;;  %v10130_v46 = vpop.f32.mrb[114].mxu1 }
0x1587   : > { %v17369_v34 = vmul.f32 0.70710677, %v17363_v29  ;;  %v17372_v5 = vadd.f32 %v10130_v46, %v17357_v25  ;;  %v10132_v32 = vpop.f32.mrb[115].mxu1 }
0x1588   : > { %v17375_v35 = vmul.f32 0.70710677, %v17366_v53  ;;  %v17382_v42 = vadd.f32 %v10132_v32, %v17360_v50 }
0x1589   : > { %v10229_v54 = vand.u32 2147483647, %v17369_v34  ;;  %v17379_v59 = vmul.f32 0.70710677, %v17372_v5  ;;  %vm10197_vm0 = vcmp.ge.f32.partialorder %v17369_v34, 0.0 }
0x158a   : > { %v10230_v7 = vand.u32 2147483647, %v17375_v35  ;;  %v17387_v18 = vmul.f32 0.70710677, %v17382_v42  ;;  %vm10198_vm2 = vcmp.ge.f32.partialorder %v17375_v35, 0.0 }
0x158b   : > { %v10245_v31 = vmul.f32 0.3275911, %v10229_v54  ;;  %v10231_v11 = vand.u32 2147483647, %v17379_v59  ;;  %v10437_v52 = vsub.f32 0.0, %v10229_v54  ;;  %vm10199_vm1 = vcmp.ge.f32.partialorder %v17379_v59, 0.0 }
0x158c   : > { %v10246_v2 = vmul.f32 0.3275911, %v10230_v7  ;;  %v10136_v6 = vpop.f32.mrb[116].mxu1  ;;  %v17396_v10 = vand.u32 2147483647, %v17387_v18  ;;  %v10438_v45 = vsub.f32 0.0, %v10230_v7 }
0x158d   : > { %v10261_v39 = vadd.f32 1.0, %v10245_v31  ;;  %v10247_v51 = vmul.f32 0.3275911, %v10231_v11  ;;  %v10138_v4 = vpop.f32.mrb[117].mxu1  ;;  %v17403_v30 = vadd.f32 %v10136_v6, %v17357_v25  ;;  %v10453_v15 = vmul.f32 %v10437_v52, %v10229_v54 }
0x158e   : > { %v10262_v41 = vadd.f32 1.0, %v10246_v2  ;;  %v10140_v28 = vpop.f32.mrb[118].mxu1  ;;  %v10248_v48 = vmul.f32 0.3275911, %v17396_v10  ;;  %v17406_v33 = vadd.f32 %v10138_v4, %v17360_v50  ;;  %v10439_v26 = vsub.f32 0.0, %v10231_v11 }
0x158f   : > { %13997 = vrcp.f32 %v10261_v39  ;;  %v10263_v24 = vadd.f32 1.0, %v10247_v51  ;;  %v10142_v13 = vpop.f32.mrb[119].mxu1  ;;  %v17409_v61 = vadd.f32 %v10140_v28, %v17357_v25  ;;  %v17412_v20 = vmul.f32 0.70710677, %v17403_v30 }
0x1590   : > { %13999 = vrcp.f32 %v10262_v41  ;;  %v10264_v21 = vadd.f32 1.0, %v10248_v48  ;;  %v17417_v57 = vmul.f32 0.70710677, %v17406_v33  ;;  %v17447_v32 = vadd.f32 %v10142_v13, %v17360_v50 }
0x1591   : > { %14001 = vrcp.f32 %v10263_v24  ;;  %v17422_v44 = vand.u32 2147483647, %v17412_v20  ;;  %v17425_v3 = vmul.f32 0.70710677, %v17409_v61  ;;  %v10469_v31 = vmul.f32 1.442695, %v10453_v15 }
0x1592   : > { %14003 = vrcp.f32 %v10264_v21  ;;  %v17430_v56 = vand.u32 2147483647, %v17417_v57  ;;  %v10454_v2 = vmul.f32 %v10438_v45, %v10230_v7  ;;  %v10455_v23 = vmul.f32 %v10439_v26, %v10231_v11 }
0x1593   : > { %v10249_v60 = vmul.f32 0.3275911, %v17422_v44  ;;  %v17439_v17 = vand.u32 2147483647, %v17425_v3  ;;  %v17456_v4 = vmul.f32 0.5, %v17363_v29  ;;  %v17460_v24 = vmul.f32 0.5, %v17366_v53 }
0x1594   : > { %v17414_v58 = vpop.f32.mrb[120].mxu1  ;;  %v10250_v9 = vmul.f32 0.3275911, %v17430_v56  ;;  %v17471_v29 = vmul.f32 0.70710677, %v17447_v32  ;;  %v17477_v45 = vmul.f32 0.5, %v17372_v5 }
0x1595   : > { %v17419_v36 = vpop.f32.mrb[121].mxu1  ;;  %v10265_v55 = vadd.f32 1.0, %v10249_v60  ;;  %v10251_v46 = vmul.f32 0.3275911, %v17439_v17  ;;  %v10471_v15 = vmul.f32 1.442695, %v10454_v2 }
0x1596   : > { %v17427_v0 = vpop.f32.mrb[122].mxu1  ;;  %v10266_v63 = vadd.f32 1.0, %v10250_v9  ;;  %v10473_v60 = vmul.f32 1.442695, %v10455_v23  ;;  %v17491_v5 = vmul.f32 0.5, %v17382_v42  ;;  %vm10200_vm3 = vcmp.ge.f32.partialorder %v17387_v18, 0.0 }
0x1597   : > { %v17432_v12 = vpop.f32.mrb[123].mxu1  ;;  %14005 = vrcp.f32 %v10265_v55  ;;  %v10267_v41 = vadd.f32 1.0, %v10251_v46  ;;  %v10440_v55 = vsub.f32 0.0, %v17396_v10  ;;  %vm10201_vm4 = vcmp.ge.f32.partialorder %v17412_v20, 0.0 }
0x1598   : > { %14007 = vrcp.f32 %v10266_v63  ;;  %vm10202_vm10 = vcmp.ge.f32.partialorder %v17417_v57, 0.0  ;;  %vm10203_vm11 = vcmp.ge.f32.partialorder %v17425_v3, 0.0  ;;  %vm10204_vm12 = vcmp.ge.f32.partialorder %v17471_v29, 0.0 }
0x1599   : > { %v17435_v62 = vpop.eup %13997  ;;  %14009 = vrcp.f32 %v10267_v41  ;;  %v17500_v41 = vadd.f32 %v17414_v58, %v17357_v25 }
0x159a   : > { %v17441_v19 = vpop.eup %13999  ;;  %v10293_v47 = vmul.f32 1.0614054, %v17435_v62  ;;  %14011 = vpow2.f32 %v10469_v31 }
0x159b   : > { %v10294_v49 = vmul.f32 1.0614054, %v17441_v19  ;;  %v17451_v6 = vpop.eup %14001  ;;  %14013 = vpow2.f32 %v10473_v60  ;;  %18050 = vst [vmem:[#allocation34_spill] sm:$0xff] %v17500_v41 }
0x159c   : > { %v10309_v54 = vadd.f32 -1.4531521, %v10293_v47  ;;  %v17449_v39 = vpop.f32.mrb[124].mxu1  ;;  %v10295_v7 = vmul.f32 1.0614054, %v17451_v6  ;;  %v17465_v48 = vpop.eup %14003  ;;  %14015 = vpow2.f32 %v10471_v15 }
0x159d   : > { %v10310_v1 = vadd.f32 -1.4531521, %v10294_v49  ;;  %v17453_v51 = vpop.f32.mrb[125].mxu1  ;;  %v10296_v52 = vmul.f32 1.0614054, %v17465_v48  ;;  %v18049_v49 = vmov -1.0  }
0x159e   : > { %v10325_v28 = vmul.f32 %v17435_v62, %v10309_v54  ;;  %v17463_v13 = vpop.f32.mrb[126].mxu1  ;;  %v10311_v53 = vadd.f32 -1.4531521, %v10295_v7  ;;  %v10213_v63 = vsel %vm10197_vm0, 1.0, %v18049_v49  ;;  %v17488_v46 = vsel %vm10199_vm1, 1.0, %v18049_v49 }
0x159f   : > { %v10326_v11 = vmul.f32 %v17441_v19, %v10310_v1  ;;  %v17473_v8 = vpop.f32.mrb[127].mxu1  ;;  %v10312_v47 = vadd.f32 -1.4531521, %v10296_v52  ;;  %v17494_v54 = vand.u32 2147483647, %v17471_v29  ;;  %v10456_v7 = vmul.f32 %v10440_v55, %v17396_v10 }
0x15a0   : > { %v10341_v21 = vadd.f32 1.4214138, %v10325_v28  ;;  %v10327_v9 = vmul.f32 %v17451_v6, %v10311_v53  ;;  %v10441_v53 = vsub.f32 0.0, %v17422_v44  ;;  %v10442_v52 = vsub.f32 0.0, %v17430_v56 }
0x15a1   : > { %v10342_v2 = vadd.f32 1.4214138, %v10326_v11  ;;  %v10328_v23 = vmul.f32 %v17465_v48, %v10312_v47  ;;  %v10252_v34 = vmul.f32 0.3275911, %v17494_v54  ;;  %v17502_v59 = vpop.eup %14005  ;;  %v17515_v10 = vmul.f32 0.70710677, %v17500_v41 }
0x15a2   : > { %v10357_v26 = vmul.f32 %v17435_v62, %v10341_v21  ;;  %v10343_v1 = vadd.f32 1.4214138, %v10327_v9  ;;  %v17507_v11 = vpop.eup %14007  ;;  %v10297_v21 = vmul.f32 1.0614054, %v17502_v59  ;;  %v10475_v22 = vmul.f32 1.442695, %v10456_v7 }
0x15a3   : > { %v10268_v60 = vadd.f32 1.0, %v10252_v34  ;;  %v10298_v47 = vmul.f32 1.0614054, %v17507_v11  ;;  %v10344_v15 = vadd.f32 1.4214138, %v10328_v23  ;;  %v17517_v55 = vpop.eup %14009  ;;  %v10458_v23 = vmul.f32 %v10442_v52, %v17430_v56 }
0x15a4   : > { %v10373_v31 = vadd.f32 -0.28449672, %v10357_v26  ;;  %v10359_v28 = vmul.f32 %v17451_v6, %v10343_v1  ;;  %v10358_v26 = vmul.f32 %v17441_v19, %v10342_v2  ;;  %v17528_v7 = vand.u32 2147483647, %v17515_v10 }
0x15a5   : > { %14017 = vrcp.f32 %v10268_v60  ;;  %v10314_v34 = vadd.f32 -1.4531521, %v10298_v47  ;;  %v10443_v56 = vsub.f32 0.0, %v17439_v17  ;;  %v10479_v43 = vmul.f32 1.442695, %v10458_v23 }
0x15a6   : > { %v10389_v42 = vmul.f32 %v17435_v62, %v10373_v31  ;;  %v10375_v9 = vadd.f32 -0.28449672, %v10359_v28  ;;  %v10313_v31 = vadd.f32 -1.4531521, %v10297_v21  ;;  %v10457_v28 = vmul.f32 %v10441_v53, %v17422_v44 }
0x15a7   : > { %v10299_v21 = vmul.f32 1.0614054, %v17517_v55  ;;  %v10374_v38 = vadd.f32 -0.28449672, %v10358_v26  ;;  %v10330_v37 = vmul.f32 %v17507_v11, %v10314_v34  ;;  %v10444_v26 = vsub.f32 0.0, %v17494_v54 }
0x15a8   : > { %v10405_v58 = vadd.f32 0.2548296, %v10389_v42  ;;  %v10391_v14 = vmul.f32 %v17451_v6, %v10375_v9  ;;  %v14012_v42 = vpop.eup %14011  ;;  %v10329_v2 = vmul.f32 %v17502_v59, %v10313_v31  ;;  %14019 = vpow2.f32 %v10475_v22 }
0x15a9   : > { %v10315_v9 = vadd.f32 -1.4531521, %v10299_v21  ;;  %v10346_v44 = vadd.f32 1.4214138, %v10330_v37  ;;  %v14014_v53 = vpop.eup %14013  ;;  %vm10205_vm13 = vcmp.ge.f32.partialorder %v17515_v10, 0.0 }
0x15aa   : > { %v10421_v1 = vmul.f32 %v17435_v62, %v10405_v58  ;;  %v10407_v16 = vadd.f32 0.2548296, %v10391_v14  ;;  %v10360_v62 = vmul.f32 %v17465_v48, %v10344_v15  ;;  %v10345_v58 = vadd.f32 1.4214138, %v10329_v2 }
0x15ab   : > { %v10331_v52 = vmul.f32 %v17517_v55, %v10315_v9  ;;  %v10253_v15 = vmul.f32 0.3275911, %v17528_v7  ;;  %v10362_v37 = vmul.f32 %v17507_v11, %v10346_v44  ;;  %v10459_v9 = vmul.f32 %v10443_v56, %v17439_v17 }
0x15ac   : > { %v10501_v60 = vmul.f32 %v14012_v42, %v10421_v1  ;;  %v10423_v31 = vmul.f32 %v17451_v6, %v10407_v16  ;;  %v10361_v14 = vmul.f32 %v17502_v59, %v10345_v58  ;;  %v14016_v1 = vpop.eup %14015  ;;  %v10390_v42 = vmul.f32 %v17441_v19, %v10374_v38 }
0x15ad   : > { %v10376_v16 = vadd.f32 -0.28449672, %v10360_v62  ;;  %v10347_v6 = vadd.f32 1.4214138, %v10331_v52  ;;  %v10269_v21 = vadd.f32 1.0, %v10253_v15  ;;  %v17549_v17 = vadd.f32 %v17419_v36, %v17360_v50 }
0x15ae   : > { %v10517_v47 = vsub.f32 1.0, %v10501_v60  ;;  %v10503_v2 = vmul.f32 %v14014_v53, %v10423_v31  ;;  %v10377_v40 = vadd.f32 -0.28449672, %v10361_v14  ;;  %v10477_v58 = vmul.f32 1.442695, %v10457_v28 }
0x15af   : > { %v17540_v27 = vpop.eup %14017  ;;  %v10363_v41 = vmul.f32 %v17517_v55, %v10347_v6  ;;  %14021 = vrcp.f32 %v10269_v21  ;;  %v10378_v22 = vadd.f32 -0.28449672, %v10362_v37  ;;  %v10392_v31 = vmul.f32 %v17465_v48, %v10376_v16 }
0x15b0   : > { %v10533_v34 = vmul.f32 %v10517_v47, %v10213_v63  ;;  %v10519_v60 = vsub.f32 1.0, %v10503_v2  ;;  %v10460_v63 = vmul.f32 %v10444_v26, %v17494_v54  ;;  %v10406_v47 = vadd.f32 0.2548296, %v10390_v42 }
0x15b1   : > { %v10379_v44 = vadd.f32 -0.28449672, %v10363_v41  ;;  %v10300_v28 = vmul.f32 1.0614054, %v17540_v27  ;;  %v10393_v56 = vmul.f32 %v17502_v59, %v10377_v40  ;;  %14023 = vpow2.f32 %v10477_v58 }
0x15b2   : > { %v10549_v38 = vadd.f32 1.0, %v10533_v34  ;;  %v10535_v62 = vmul.f32 %v10519_v60, %v17488_v46  ;;  %v10481_v54 = vmul.f32 1.442695, %v10459_v9  ;;  %14025 = vpow2.f32 %v10479_v43 }
0x15b3   : > { %v10316_v53 = vadd.f32 -1.4531521, %v10300_v28  ;;  %v10483_v46 = vmul.f32 1.442695, %v10460_v63  ;;  %v10422_v41 = vmul.f32 %v17441_v19, %v10406_v47  ;;  %v10394_v36 = vmul.f32 %v17507_v11, %v10378_v22 }
0x15b4   : > { %v10551_v23 = vadd.f32 1.0, %v10535_v62  ;;  %v17554_v14 = vmul.f32 %v10549_v38, %v17456_v4  ;;  %v10408_v26 = vadd.f32 0.2548296, %v10392_v31  ;;  %v10395_v40 = vmul.f32 %v17517_v55, %v10379_v44 }
0x15b5   : > { %v10332_v15 = vmul.f32 %v17540_v27, %v10316_v53  ;;  %v17564_v34 = vmul.f32 0.70710677, %v17549_v17  ;;  %v10214_v43 = vsel %vm10198_vm2, 1.0, %v18049_v49  ;;  %v10409_v4 = vadd.f32 0.2548296, %v10393_v56 }
0x15b6   : > { %v17558_v52 = vmul.f32 %v10551_v23, %v17477_v45  ;;  %14027 = vpow2.f32 %v10481_v54  ;;  %v14020_v45 = vpop.eup %14019  ;;  %v10216_v42 = vsel %vm10200_vm3, 1.0, %v18049_v49  ;;  %v17575_v2 = vmul.f32 0.5, %v17403_v30 }
0x15b7   : > { %v10348_v37 = vadd.f32 1.4214138, %v10332_v15  ;;  %v10502_v16 = vmul.f32 %v14016_v1, %v10422_v41  ;;  %v10410_v6 = vadd.f32 0.2548296, %v10394_v36  ;;  %14029 = vpow2.f32 %v10483_v46 }
0x15b8   : > { %v10614_v19 = vpack.c.bf16 %v17558_v52, %v17554_v14  ;;  %v17579_v35 = vand.u32 2147483647, %v17564_v34  ;;  %v10424_v60 = vmul.f32 %v17465_v48, %v10408_v26  ;;  %v10411_v58 = vadd.f32 0.2548296, %v10395_v40  ;;  %v18051_v14 = vld [vmem:[#allocation34_spill] sm:$0xff] }
0x15b9   : > { %v17581_v21 = vpop.eup %14021  ;;  %v10364_v18 = vmul.f32 %v17540_v27, %v10348_v37  ;;  %v17587_v30 = vadd.f32 %v17427_v0, %v17357_v25  ;;  %v10425_v20 = vmul.f32 %v17502_v59, %v10409_v4  ;;  %v17591_v1 = vmul.f32 0.5, %v17406_v33 }
0x15ba   : > { %v10301_v9 = vmul.f32 1.0614054, %v17581_v21  ;;  %v10254_v63 = vmul.f32 0.3275911, %v17579_v35  ;;  %v10217_v38 = vsel %vm10201_vm4, 1.0, %v18049_v49  ;;  %v17598_v48 = vmul.f32 0.5, %v17409_v61 }
0x15bb   : > { %v10380_v47 = vadd.f32 -0.28449672, %v10364_v18  ;;  %v14024_v62 = vpop.eup %14023  ;;  %v10518_v0 = vsub.f32 1.0, %v10502_v16  ;;  %v10426_v22 = vmul.f32 %v17507_v11, %v10410_v6  ;;  %v10504_v44 = vmul.f32 %v14020_v45, %v10424_v60 }
0x15bc   : > { %v10317_v59 = vadd.f32 -1.4531521, %v10301_v9  ;;  %v10270_v31 = vadd.f32 1.0, %v10254_v63  ;;  %v14026_v33 = vpop.eup %14025  ;;  %v10427_v28 = vmul.f32 %v17517_v55, %v10411_v58  ;;  %v17604_v56 = vmul.f32 0.70710677, %v17587_v30 }
0x15bd   : > { %v10396_v23 = vmul.f32 %v17540_v27, %v10380_v47  ;;  %v10505_v57 = vmul.f32 %v14024_v62, %v10425_v20  ;;  %v10218_v61 = vsel %vm10202_vm10, 1.0, %v18049_v49  ;;  %v10445_v53 = vsub.f32 0.0, %v17528_v7 }
0x15be   : > { %v10333_v54 = vmul.f32 %v17581_v21, %v10317_v59  ;;  %14031 = vrcp.f32 %v10270_v31  ;;  %v17611_v46 = vand.u32 2147483647, %v17604_v56  ;;  %v10534_v41 = vmul.f32 %v10518_v0, %v10214_v43 }
0x15bf   : > { %v10412_v11 = vadd.f32 0.2548296, %v10396_v23  ;;  %v10506_v36 = vmul.f32 %v14026_v33, %v10426_v22  ;;  %v17615_v40 = vadd.f32 %v17432_v12, %v17360_v50  ;;  %v10520_v15 = vsub.f32 1.0, %v10504_v44 }
0x15c0   : > { %v14028_v55 = vpop.eup %14027  ;;  %v10349_v26 = vadd.f32 1.4214138, %v10333_v54  ;;  %v10255_v3 = vmul.f32 0.3275911, %v17611_v46  ;;  %v10521_v16 = vsub.f32 1.0, %v10505_v57  ;;  %v10219_v6 = vsel %vm10203_vm11, 1.0, %v18049_v49 }
0x15c1   : > { %v10507_v4 = vmul.f32 %v14028_v55, %v10427_v28  ;;  %v10428_v45 = vmul.f32 %v17540_v27, %v10412_v11  ;;  %v14030_v37 = vpop.eup %14029  ;;  %v17621_v60 = vmul.f32 0.70710677, %v17615_v40  ;;  %v17625_v43 = vadd.f32 %v17449_v39, %v17357_v25 }
0x15c2   : > { %v10461_v58 = vmul.f32 %v10445_v53, %v17528_v7  ;;  %v10271_v18 = vadd.f32 1.0, %v10255_v3  ;;  %v10522_v27 = vsub.f32 1.0, %v10506_v36  ;;  %v10365_v20 = vmul.f32 %v17581_v21, %v10349_v26 }
0x15c3   : > { %v10508_v12 = vmul.f32 %v14030_v37, %v10428_v45  ;;  %v17631_v9 = vand.u32 2147483647, %v17621_v60  ;;  %v17635_v63 = vadd.f32 %v17453_v51, %v17360_v50  ;;  %v10550_v47 = vadd.f32 1.0, %v10534_v41 }
0x15c4   : > { %v10536_v62 = vmul.f32 %v10520_v15, %v10216_v42  ;;  %v10523_v39 = vsub.f32 1.0, %v10507_v4  ;;  %14033 = vrcp.f32 %v10271_v18  ;;  %v10537_v0 = vmul.f32 %v10521_v16, %v10217_v38 }
0x15c5   : > { %v10524_v22 = vsub.f32 1.0, %v10508_v12  ;;  %v10256_v59 = vmul.f32 0.3275911, %v17631_v9  ;;  %v17639_v7 = vmul.f32 0.70710677, %v17625_v43  ;;  %v10172_v31 = vmul.f32 0.5, %v17447_v32 }
0x15c6   : > { %v10220_v33 = vsel %vm10204_vm12, 1.0, %v18049_v49  ;;  %v10485_v44 = vmul.f32 1.442695, %v10461_v58  ;;  %v10446_v51 = vsub.f32 0.0, %v17579_v35  ;;  %v10538_v42 = vmul.f32 %v10522_v27, %v10218_v61 }
0x15c7   : > { %v10381_v23 = vadd.f32 -0.28449672, %v10365_v20  ;;  %v10272_v38 = vadd.f32 1.0, %v10256_v59  ;;  %v17649_v57 = vmul.f32 0.70710677, %v17635_v63  ;;  %v10566_v54 = vmul.f32 %v10550_v47, %v17460_v24 }
0x15c8   : > { %v17646_v28 = vpop.eup %14031  ;;  %v10539_v11 = vmul.f32 %v10523_v39, %v10219_v6  ;;  %v17654_v53 = vand.u32 2147483647, %v17639_v7  ;;  %v10552_v29 = vadd.f32 1.0, %v10536_v62  ;;  %v10553_v55 = vadd.f32 1.0, %v10537_v0 }
0x15c9   : > { %v10302_v32 = vmul.f32 1.0614054, %v17646_v28  ;;  %v10540_v41 = vmul.f32 %v10524_v22, %v10220_v33  ;;  %14035 = vrcp.f32 %v10272_v38  ;;  %v10462_v61 = vmul.f32 %v10446_v51, %v17579_v35 }
0x15ca   : > { %v10447_v26 = vsub.f32 0.0, %v17611_v46  ;;  %v10257_v15 = vmul.f32 0.3275911, %v17654_v53  ;;  %v10554_v4 = vadd.f32 1.0, %v10538_v42  ;;  %v10397_v24 = vmul.f32 %v17581_v21, %v10381_v23 }
0x15cb   : > { %v10318_v36 = vadd.f32 -1.4531521, %v10302_v32  ;;  %14037 = vpow2.f32 %v10485_v44  ;;  %v17661_v45 = vand.u32 2147483647, %v17649_v57  ;;  %v10555_v3 = vadd.f32 1.0, %v10539_v11 }
0x15cc   : > { %v10273_v16 = vadd.f32 1.0, %v10257_v15  ;;  %v17666_v6 = vadd.f32 %v17463_v13, %v17357_v25  ;;  %v10568_v35 = vmul.f32 %v10552_v29, %v17491_v5  ;;  %v17670_v12 = vmul.f32 %v10553_v55, %v17575_v2 }
0x15cd   : > { %v10334_v37 = vmul.f32 %v17646_v28, %v10318_v36  ;;  %v10556_v58 = vadd.f32 1.0, %v10540_v41  ;;  %v10258_v18 = vmul.f32 0.3275911, %v17661_v45  ;;  %vm10206_vm14 = vcmp.ge.f32.partialorder %v17564_v34, 0.0 }
0x15ce   : > { %v17674_v27 = vpop.eup %14033  ;;  %v10487_v47 = vmul.f32 1.442695, %v10462_v61  ;;  %v10463_v62 = vmul.f32 %v10447_v26, %v17611_v46  ;;  %14039 = vrcp.f32 %v10273_v16  ;;  %v10413_v25 = vadd.f32 0.2548296, %v10397_v24 }
0x15cf   : > { %v10350_v20 = vadd.f32 1.4214138, %v10334_v37  ;;  %v10303_v13 = vmul.f32 1.0614054, %v17674_v27  ;;  %v10448_v5 = vsub.f32 0.0, %v17631_v9  ;;  %v10274_v2 = vadd.f32 1.0, %v10258_v18 }
0x15d0   : > { %v10570_v39 = vmul.f32 %v10554_v4, %v17591_v1  ;;  %v17682_v0 = vmul.f32 %v10555_v3, %v17598_v48  ;;  %v17686_v59 = vmul.f32 0.70710677, %v17666_v6  ;;  %v10572_v33 = vmul.f32 %v10556_v58, %v10172_v31 }
0x15d1   : > { %v10366_v22 = vmul.f32 %v17646_v28, %v10350_v20  ;;  %v10319_v44 = vadd.f32 -1.4531521, %v10303_v13  ;;  %14041 = vrcp.f32 %v10274_v2  ;;  %v17690_v46 = vadd.f32 %v17473_v8, %v17360_v50 }
0x15d2   : > { %v10489_v42 = vmul.f32 1.442695, %v10463_v62  ;;  %v17693_v23 = vand.u32 2147483647, %v17686_v59  ;;  %v10615_v1 = vpack.c.bf16 %v10568_v35, %v10566_v54  ;;  %v10429_v38 = vmul.f32 %v17581_v21, %v10413_v25 }
0x15d3   : > { %v10382_v51 = vadd.f32 -0.28449672, %v10366_v22  ;;  %v17695_v48 = vpop.eup %14035  ;;  %14043 = vpow2.f32 %v10487_v47  ;;  %v10335_v11 = vmul.f32 %v17674_v27, %v10319_v44  ;;  %v10464_v31 = vmul.f32 %v10448_v5, %v17631_v9 }
0x15d4   : > { %v10304_v50 = vmul.f32 1.0614054, %v17695_v48  ;;  %v10449_v8 = vsub.f32 0.0, %v17654_v53  ;;  %v10259_v29 = vmul.f32 0.3275911, %v17693_v23  ;;  %10750 = vmatprep.mubr.bf16.mxu0 %v10615_v1  ;;  %v10617_v21 = vpack.c.bf16 %v10572_v33, %v10570_v39 }
0x15d5   : > { %v10398_v32 = vmul.f32 %v17646_v28, %v10382_v51  ;;  %v14038_v55 = vpop.eup %14037  ;;  %v10351_v54 = vadd.f32 1.4214138, %v10335_v11  ;;  %v17705_v41 = vmul.f32 0.70710677, %v17690_v46  ;;  %10751 = vmatmul.mubr.bf16.vlgmr.msra.gmra.mrb[116].mxu0 %v10614_v19  ;;  %v10616_v9 = vpack.c.bf16 %v17682_v0, %v17670_v12 }
0x15d6   : > { %14045 = vpow2.f32 %v10489_v42  ;;  %v10320_v61 = vadd.f32 -1.4531521, %v10304_v50  ;;  %v10275_v26 = vadd.f32 1.0, %v10259_v29  ;;  %v10509_v15 = vmul.f32 %v14038_v55, %v10429_v38  ;;  %10758 = vmatprep.mubr.bf16.mxu0 %v10617_v21 }
0x15d7   : > { %v10414_v36 = vadd.f32 0.2548296, %v10398_v32  ;;  %v10367_v4 = vmul.f32 %v17674_v27, %v10351_v54  ;;  %v10491_v24 = vmul.f32 1.442695, %v10464_v31  ;;  %v17714_v3 = vand.u32 2147483647, %v17705_v41 }
0x15d8   : > { %v17716_v37 = vpop.eup %14039  ;;  %v17719_v52 = vmul.f32 0.5, %v18051_v14  ;;  %v10221_v19 = vsel %vm10205_vm13, 1.0, %v18049_v49  ;;  %v10336_v16 = vmul.f32 %v17695_v48, %v10320_v61  ;;  %14047 = vrcp.f32 %v10275_v26 }
0x15d9   : > { %v10222_v35 = vsel %vm10206_vm14, 1.0, %v18049_v49  ;;  %v10383_v12 = vadd.f32 -0.28449672, %v10367_v4  ;;  %v10305_v58 = vmul.f32 1.0614054, %v17716_v37  ;;  %v10465_v18 = vmul.f32 %v10449_v8, %v17654_v53 }
0x15da   : > { %v10430_v20 = vmul.f32 %v17646_v28, %v10414_v36  ;;  %vm10207_vm15 = vcmp.ge.f32.partialorder %v17604_v56, 0.0  ;;  %v10352_v47 = vadd.f32 1.4214138, %v10336_v16  ;;  %v10260_v10 = vmul.f32 0.3275911, %v17714_v3 }
0x15db   : > { %v17733_v62 = vpop.eup %14041  ;;  %v10525_v25 = vsub.f32 1.0, %v10509_v15  ;;  %v10399_v13 = vmul.f32 %v17674_v27, %v10383_v12  ;;  %14049 = vpow2.f32 %v10491_v24  ;;  %v10321_v34 = vadd.f32 -1.4531521, %v10305_v58 }
0x15dc   : > { %v10368_v5 = vmul.f32 %v17695_v48, %v10352_v47  ;;  %v10306_v2 = vmul.f32 1.0614054, %v17733_v62  ;;  %v10450_v53 = vsub.f32 0.0, %v17661_v45  ;;  %v10276_v39 = vadd.f32 1.0, %v10260_v10 }
0x15dd   : > { %v14044_v28 = vpop.eup %14043  ;;  %v10415_v0 = vadd.f32 0.2548296, %v10399_v13  ;;  %v10337_v22 = vmul.f32 %v17716_v37, %v10321_v34  ;;  %v10493_v33 = vmul.f32 1.442695, %v10465_v18  ;;  %v10451_v44 = vsub.f32 0.0, %v17693_v23  ;;  %10759 = vmatmul.mubr.bf16.gmra.mrb[120].mxu0 %v10616_v9 }
0x15de   : > { %v10510_v51 = vmul.f32 %v14044_v28, %v10430_v20  ;;  %v10384_v42 = vadd.f32 -0.28449672, %v10368_v5  ;;  %v10322_v1 = vadd.f32 -1.4531521, %v10306_v2  ;;  %14051 = vrcp.f32 %v10276_v39 }
0x15df   : > { %v10541_v38 = vmul.f32 %v10525_v25, %v10221_v19  ;;  %v10175_v11 = vmul.f32 0.5, %v17587_v30  ;;  %v10431_v31 = vmul.f32 %v17674_v27, %v10415_v0  ;;  %v10353_v32 = vadd.f32 1.4214138, %v10337_v22 }
0x15e0   : > { %v14046_v50 = vpop.eup %14045  ;;  %v10223_v8 = vsel %vm10207_vm15, 1.0, %v18049_v49  ;;  %v10400_v29 = vmul.f32 %v17695_v48, %v10384_v42  ;;  %v10338_v55 = vmul.f32 %v17733_v62, %v10322_v1  ;;  %v10466_v54 = vmul.f32 %v10450_v53, %v17661_v45 }
0x15e1   : > { %v10511_v21 = vmul.f32 %v14046_v50, %v10431_v31  ;;  %vm10208_vm5 = vcmp.ge.f32.partialorder %v17621_v60, 0.0  ;;  %v10369_v9 = vmul.f32 %v17716_v37, %v10353_v32  ;;  %14053 = vpow2.f32 %v10493_v33 }
0x15e2   : > { %v17751_v30 = vpop.eup %14047  ;;  %v10526_v27 = vsub.f32 1.0, %v10510_v51  ;;  %v10416_v36 = vadd.f32 0.2548296, %v10400_v29  ;;  %v10354_v61 = vadd.f32 1.4214138, %v10338_v55  ;;  %v10467_v56 = vmul.f32 %v10451_v44, %v17693_v23 }
0x15e3   : > { %v10557_v26 = vadd.f32 1.0, %v10541_v38  ;;  %v10527_v15 = vsub.f32 1.0, %v10511_v21  ;;  %v10385_v4 = vadd.f32 -0.28449672, %v10369_v9  ;;  %v10307_v24 = vmul.f32 1.0614054, %v17751_v30 }
0x15e4   : > { %v10432_v45 = vmul.f32 %v17695_v48, %v10416_v36  ;;  %v10370_v14 = vmul.f32 %v17733_v62, %v10354_v61  ;;  %v10495_v19 = vmul.f32 1.442695, %v10466_v54  ;;  %v10452_v16 = vsub.f32 0.0, %v17714_v3 }
0x15e5   : > { %v14050_v12 = vpop.eup %14049  ;;  %v10543_v58 = vmul.f32 %v10527_v15, %v10223_v8  ;;  %v10224_v18 = vsel %vm10208_vm5, 1.0, %v18049_v49  ;;  %v10401_v23 = vmul.f32 %v17716_v37, %v10385_v4  ;;  %v10323_v20 = vadd.f32 -1.4531521, %v10307_v24 }
0x15e6   : > { %v10542_v47 = vmul.f32 %v10526_v27, %v10222_v35  ;;  %v10512_v10 = vmul.f32 %v14050_v12, %v10432_v45  ;;  %v10386_v25 = vadd.f32 -0.28449672, %v10370_v14  ;;  %v10497_v13 = vmul.f32 1.442695, %v10467_v56 }
0x15e7   : > { %v10573_v48 = vmul.f32 %v10557_v26, %v17719_v52  ;;  %v10559_v34 = vadd.f32 1.0, %v10543_v58  ;;  %v10417_v5 = vadd.f32 0.2548296, %v10401_v23  ;;  %v10339_v2 = vmul.f32 %v17751_v30, %v10323_v20 }
0x15e8   : > { %v14052_v53 = vpop.eup %14051  ;;  %v10528_v39 = vsub.f32 1.0, %v10512_v10  ;;  %v10402_v28 = vmul.f32 %v17733_v62, %v10386_v25  ;;  %14055 = vpow2.f32 %v10495_v19  ;;  %v10468_v60 = vmul.f32 %v10452_v16, %v17714_v3 }
0x15e9   : > { %v10575_v0 = vmul.f32 %v10559_v34, %v10175_v11  ;;  %v10433_v22 = vmul.f32 %v17716_v37, %v10417_v5  ;;  %v10355_v35 = vadd.f32 1.4214138, %v10339_v2  ;;  %v10308_v33 = vmul.f32 1.0614054, %v14052_v53 }
0x15ea   : > { %v10558_v44 = vadd.f32 1.0, %v10542_v47  ;;  %v10544_v51 = vmul.f32 %v10528_v39, %v10224_v18  ;;  %14057 = vpow2.f32 %v10497_v13  ;;  %v10418_v42 = vadd.f32 0.2548296, %v10402_v28 }
0x15eb   : > { %v14054_v52 = vpop.eup %14053  ;;  %v10371_v1 = vmul.f32 %v17751_v30, %v10355_v35  ;;  %v10324_v38 = vadd.f32 -1.4531521, %v10308_v33  ;;  %v10618_v31 = vpack.c.bf16 %v10575_v0, %v10573_v48  ;;  %v10174_v32 = vmul.f32 0.5, %v17549_v17  ;;  %v13612_v33 = vld [vmem:[%s18048_s3 + $0x38] sm:$0xff]  }
0x15ec   : > { %v10176_v50 = vmul.f32 0.5, %v17615_v40  ;;  %v10560_v8 = vadd.f32 1.0, %v10544_v51  ;;  %v10499_v3 = vmul.f32 1.442695, %v10468_v60  ;;  %v10513_v11 = vmul.f32 %v14054_v52, %v10433_v22 }
0x15ed   : > { %v10387_v29 = vadd.f32 -0.28449672, %v10371_v1  ;;  %v10340_v37 = vmul.f32 %v14052_v53, %v10324_v38  ;;  %v10574_v55 = vmul.f32 %v10558_v44, %v10174_v32  ;;  %v10434_v21 = vmul.f32 %v17733_v62, %v10418_v42  ;;  %v18052_v38 = vld [vmem:[#allocation37_spill] sm:$0xff] }
0x15ee   : > { %v10576_v54 = vmul.f32 %v10560_v8, %v10176_v50  ;;  %14059 = vpow2.f32 %v10499_v3  ;;  %vm10209_vm6 = vcmp.ge.f32.partialorder %v17639_v7, 0.0  ;;  %v10529_v61 = vsub.f32 1.0, %v10513_v11  ;;  %v11602_v50 = vld [vmem:[%s18017_s19 + $0x1] ss:$0 sm:$0xff]  ;;  %v18053_v8 = vld [vmem:[#allocation29_spill] sm:$0xff] }
0x15ef   : > { %v10403_v9 = vmul.f32 %v17751_v30, %v10387_v29  ;;  %v10356_v27 = vadd.f32 1.4214138, %v10340_v37  ;;  %v10225_v62 = vsel %vm10209_vm6, 1.0, %v18049_v49  ;;  %vm10211_vm7 = vcmp.ge.f32.partialorder %v17686_v59, 0.0 }
0x15f0   : > { %v10619_v36 = vpack.c.bf16 %v10576_v54, %v10574_v55  ;;  %v10545_v45 = vmul.f32 %v10529_v61, %v10225_v62  ;;  %vm10210_vm8 = vcmp.ge.f32.partialorder %v17649_v57, 0.0  ;;  %v10227_v58 = vsel %vm10211_vm7, 1.0, %v18049_v49 }
0x15f1   : > { %v10419_v17 = vadd.f32 0.2548296, %v10403_v9  ;;  %v10372_v56 = vmul.f32 %v14052_v53, %v10356_v27  ;;  %v10177_v47 = vmul.f32 0.5, %v17625_v43  ;;  %v10226_v10 = vsel %vm10210_vm8, 1.0, %v18049_v49 }
0x15f2   : > { %v14056_v40 = vpop.eup %14055  ;;  %10766 = vmatprep.mubr.bf16.mxu0 %v10619_v36  ;;  %v10561_v18 = vadd.f32 1.0, %v10545_v45  ;;  %v10179_v25 = vmul.f32 0.5, %v17666_v6  ;;  %vm10212_vm9 = vcmp.ge.f32.partialorder %v17705_v41, 0.0  ;;  %v10178_v60 = vmul.f32 0.5, %v17635_v63  ;;  %v13608_v41 = vld [vmem:[%s18048_s3 + $0x18] sm:$0xff]   ;;  %v13610_v63 = vld [vmem:[%s18048_s3 + $0x28] sm:$0xff]  }
0x15f3   : > { %v10514_v26 = vmul.f32 %v14056_v40, %v10434_v21  ;;  %v10435_v15 = vmul.f32 %v17751_v30, %v10419_v17  ;;  %v10388_v4 = vadd.f32 -0.28449672, %v10372_v56  ;;  %10767 = vmatmul.mubr.bf16.gmra.mrb[124].mxu0 %v10618_v31  ;;  %v10228_v2 = vsel %vm10212_vm9, 1.0, %v18049_v49  ;;  %12568 = vmatprep.subr.bf16.mxu1 %v13608_v41  ;;  %v13609_v49 = vld [vmem:[%s18048_s3 + $0x20] sm:$0xff]  }
0x15f4   : > { %v14058_v24 = vpop.eup %14057  ;;  %v10577_v48 = vmul.f32 %v10561_v18, %v10177_v47  ;;  %v10180_v43 = vmul.f32 0.5, %v17690_v46  ;;  %12569 = vmatpush3.bf16.msra.mxu1 %v13608_v41  ;;  %v13611_v46 = vld [vmem:[%s18048_s3 + $0x30] sm:$0xff]   ;;  %v18054_v36 = vld [vmem:[#allocation27_spill] sm:$0xff]  ;;  %v18055_v56 = vld [vmem:[#allocation28_spill] sm:$0xff] }
0x15f5   : > { %v10515_v14 = vmul.f32 %v14058_v24, %v10435_v15  ;;  %v10404_v19 = vmul.f32 %v14052_v53, %v10388_v4  ;;  %v10530_v7 = vsub.f32 1.0, %v10514_v26  ;;  %12570 = vmatprep.subr.bf16.mxu1 %v13609_v49 }
0x15f7   : > { %v10531_v16 = vsub.f32 1.0, %v10515_v14  ;;  %v10420_v12 = vadd.f32 0.2548296, %v10404_v19  ;;  %v10546_v59 = vmul.f32 %v10530_v7, %v10226_v10  ;;  %v18056_v7 = vld [vmem:[#allocation38_spill] sm:$0xff] }
0x15f8   : > { %v14060_v20 = vpop.eup %14059  ;;  %12571 = vmatpush3.bf16.msra.mxu1 %v13609_v49 }
0x15f9   : > { %v10547_v23 = vmul.f32 %v10531_v16, %v10227_v58  ;;  %v10436_v30 = vmul.f32 %v14052_v53, %v10420_v12  ;;  %v10562_v39 = vadd.f32 1.0, %v10546_v59  ;;  %12572 = vmatprep.subr.bf16.mxu1 %v13610_v63  ;;  %v18057_v58 = vld [vmem:[#allocation30_spill] sm:$0xff] }
0x15fb   : > { %v10563_v13 = vadd.f32 1.0, %v10547_v23  ;;  %v10516_v57 = vmul.f32 %v14060_v20, %v10436_v30  ;;  %v10578_v22 = vmul.f32 %v10562_v39, %v10178_v60  ;;  %v11603_v60 = vld [vmem:[%s18060_s13] ss:$0 sm:$0xff] }
0x15fc   : > { %12573 = vmatpush3.bf16.msra.mxu1 %v13610_v63 }
0x15fd   : > { %v10579_v34 = vmul.f32 %v10563_v13, %v10179_v25  ;;  %v10532_v5 = vsub.f32 1.0, %v10516_v57  ;;  %12574 = vmatprep.subr.bf16.mxu1 %v13611_v46  ;;  %v18058_v57 = vld [vmem:[#allocation33_spill] sm:$0xff] }
0x15ff   : > { %v10548_v28 = vmul.f32 %v10532_v5, %v10228_v2  ;;  %v10620_v53 = vpack.c.bf16 %v10579_v34, %v10577_v48  ;;  %v18059_v5 = vld [vmem:[#allocation35_spill] sm:$0xff] }
0x1600   : > { %12575 = vmatpush3.bf16.msra.mxu1 %v13611_v46 }
0x1601   : > { %v10564_v0 = vadd.f32 1.0, %v10548_v28  ;;  %12576 = vmatprep.subr.bf16.mxu1 %v13612_v33 }
0x1603   : > { %v10580_v6 = vmul.f32 %v10564_v0, %v10180_v43 }
0x1604   : > { %12577 = vmatpush3.bf16.msra.mxu1 %v13612_v33 }
0x1605   : > { %v10621_v35 = vpack.c.bf16 %v10580_v6, %v10578_v22 }
0x1607   : > { %10774 = vmatprep.mubr.bf16.mxu0 %v10621_v35 }
0x1608   : > { %10775 = vmatmul.mubr.bf16.gmra.mrb[128].mxu0 %v10620_v53 }
0x16a8   : > { %v11982_v44 = vpop.f32.mrb[116].mxu0 }
0x16a9   : > { %v11983_v51 = vpop.f32.mrb[117].mxu0 }
0x16aa   : > { %v11984_v52 = vadd.f32 %v11983_v51, %v11982_v44  ;;  %v11985_v42 = vpop.f32.mrb[118].mxu0 }
0x16ab   : > { %v11986_v1 = vpop.f32.mrb[119].mxu0 }
0x16ac   : > { %v10783_v31 = vadd.f32 %v11984_v52, %v18052_v38  ;;  %v11987_v32 = vadd.f32 %v11986_v1, %v11985_v42 }
0x16ae   : > { %v10784_v3 = vadd.f32 %v11987_v32, %v18053_v8  ;;  %v10799_v11 = vadd.f32 %v11602_v50, %v10783_v31 }
0x16b0   : > { %v10800_v29 = vadd.f32 %v11602_v50, %v10784_v3  ;;  %v11988_v37 = vpop.f32.mrb[120].mxu0 }
0x16b1   : > { %v11989_v55 = vpop.f32.mrb[121].mxu0 }
0x16b2   : > { %v11990_v54 = vadd.f32 %v11989_v55, %v11988_v37  ;;  %v11991_v21 = vpop.f32.mrb[122].mxu0  ;;  %v10823_v9 = vpack.c.bf16 %v10800_v29, %v10799_v11 }
0x16b3   : > { %v11992_v27 = vpop.f32.mrb[123].mxu0 }
0x16b4   : > { %v10785_v61 = vadd.f32 %v11990_v54, %v18054_v36  ;;  %v11993_v17 = vadd.f32 %v11992_v27, %v11991_v21  ;;  %12578 = vmatprep.mubr.bf16.mxu1 %v10823_v9 }
0x16b6   : > { %v10786_v40 = vadd.f32 %v11993_v17, %v18055_v56  ;;  %v10801_v26 = vadd.f32 %v11602_v50, %v10785_v61 }
0x16b8   : > { %v10802_v15 = vadd.f32 %v11602_v50, %v10786_v40 }
0x16ba   : > { %v10824_v4 = vpack.c.bf16 %v10802_v15, %v10801_v26 }
0x16bc   : > { %12579 = vmatmul.mubr.bf16.vlgmr.msra.gmra.mrb[128].mxu1 %v10824_v4 }
0x16c6   : > { %v11994_v24 = vpop.f32.mrb[124].mxu0 }
0x16c7   : > { %v11995_v62 = vpop.f32.mrb[125].mxu0 }
0x16c8   : > { %v11996_v45 = vadd.f32 %v11995_v62, %v11994_v24  ;;  %v11997_v14 = vpop.f32.mrb[126].mxu0 }
0x16c9   : > { %v11998_v19 = vpop.f32.mrb[127].mxu0 }
0x16ca   : > { %v10787_v16 = vadd.f32 %v11996_v45, %v18056_v7  ;;  %v11999_v12 = vadd.f32 %v11998_v19, %v11997_v14 }
0x16cc   : > { %v10788_v18 = vadd.f32 %v11999_v12, %v18057_v58  ;;  %v10803_v23 = vadd.f32 %v11602_v50, %v10787_v16 }
0x16ce   : > { %v10804_v30 = vadd.f32 %v11602_v50, %v10788_v18 }
0x16d0   : > { %v10825_v20 = vpack.c.bf16 %v10804_v30, %v10803_v23 }
0x16d2   : > { %12582 = vmatprep.mubr.bf16.mxu1 %v10825_v20 }
0x16db   : > { %v12000_v47 = vpop.f32.mrb[128].mxu0 }
0x16dc   : > { %v12001_v10 = vpop.f32.mrb[129].mxu0 }
0x16dd   : > { %v12002_v25 = vadd.f32 %v12001_v10, %v12000_v47  ;;  %v12003_v59 = vpop.f32.mrb[130].mxu0 }
0x16de   : > { %v12004_v13 = vpop.f32.mrb[131].mxu0 }
0x16df   : > { %v10789_v48 = vadd.f32 %v12002_v25, %v18058_v57  ;;  %v12005_v34 = vadd.f32 %v12004_v13, %v12003_v59 }
0x16e1   : > { %v10790_v2 = vadd.f32 %v12005_v34, %v18059_v5  ;;  %v10805_v39 = vadd.f32 %v11602_v50, %v10789_v48 }
0x16e3   : > { %v10806_v28 = vadd.f32 %v11602_v50, %v10790_v2 }
0x16e5   : > { %v10826_v53 = vpack.c.bf16 %v10806_v28, %v10805_v39 }
0x16e7   : > { %12583 = vmatmul.mubr.bf16.gmra.mrb[132].mxu1 %v10826_v53 }
0x178f   : > { %v12580_v43 = vpop.f32.mrb[128].mxu1 }
0x1790   : > { %v10925_v0 = vadd.f32 %v12580_v43, %v11603_v60  ;;  %v10916_v22 = vpop.f32.mrb[129].mxu1 }
0x1791   : > { %v12581_v6 = vpop.f32.mrb[130].mxu1  ;;  %v10917_v49 = vadd.f32 %v11603_v60, %v10916_v22 }
0x1792   : > { %v10928_v35 = vadd.f32 %v12581_v6, %v11603_v60  ;;  %10951 = vmax.xlane.f32.xlu1 %v10925_v0  ;;  %v10919_v41 = vpop.f32.mrb[131].mxu1 }
0x1793   : > { %v10920_v63 = vadd.f32 %v11603_v60, %v10919_v41 }
0x1794   : > { %10953 = vmax.xlane.f32.xlu0 %v10928_v35 }
0x1796   : > { %10947 = vmax.xlane.f32.xlu1 %v10917_v49 }
0x1798   : > { %10949 = vmax.xlane.f32.xlu0 %v10920_v63 }
0x17ba   : > { %v12584_v46 = vpop.f32.mrb[132].mxu1 }
0x17bb   : > { %v10932_v33 = vpop.f32.mrb[133].mxu1  ;;  %v10941_v1 = vadd.f32 %v12584_v46, %v11603_v60 }
0x17bc   : > { %v10933_v44 = vadd.f32 %v11603_v60, %v10932_v33  ;;  %v12585_v51 = vpop.f32.mrb[134].mxu1 }
0x17bd   : > { %v10935_v52 = vpop.f32.mrb[135].mxu1  ;;  %v10944_v38 = vadd.f32 %v12585_v51, %v11603_v60 }
0x17be   : > { %v10936_v42 = vadd.f32 %v11603_v60, %v10935_v52  ;;  %10955 = vmax.xlane.f32.xlu1 %v10933_v44 }
0x17c0   : > { %10957 = vmax.xlane.f32.xlu0 %v10936_v42 }
0x17c2   : > { %10959 = vmax.xlane.f32.xlu1 %v10941_v1 }
0x17c4   : > { %10961 = vmax.xlane.f32.xlu0 %v10944_v38 }
0x181f   : > { %v10952_v31 = vpop.xlane.xlu1 %10951 }
0x1820   : > { %v10965_v32 = vsub.f32 %v10925_v0, %v10952_v31 }
0x1821   : > { %v10954_v50 = vpop.xlane.xlu0 %10953 }
0x1822   : > { %v10975_v8 = vmul.f32 1.442695, %v10965_v32  ;;  %v10966_v3 = vsub.f32 %v10928_v35, %v10954_v50 }
0x1823   : > { %v10948_v11 = vpop.xlane.xlu1 %10947 }
0x1824   : > { %14061 = vpow2.f32 %v10975_v8  ;;  %v10977_v29 = vmul.f32 1.442695, %v10966_v3  ;;  %v10963_v37 = vsub.f32 %v10917_v49, %v10948_v11 }
0x1825   : > { %v10950_v55 = vpop.xlane.xlu0 %10949 }
0x1826   : > { %14063 = vpow2.f32 %v10977_v29  ;;  %v10971_v54 = vmul.f32 1.442695, %v10963_v37  ;;  %v10964_v21 = vsub.f32 %v10920_v63, %v10950_v55 }
0x1828   : > { %14065 = vpow2.f32 %v10971_v54  ;;  %v10973_v9 = vmul.f32 1.442695, %v10964_v21 }
0x182a   : > { %14067 = vpow2.f32 %v10973_v9 }
0x182e   : > { %v14062_v27 = vpop.eup %14061 }
0x182f   : > { %10991 = vadd.xlane.f32.xlu1 %v14062_v27 }
0x1830   : > { %v14064_v36 = vpop.eup %14063 }
0x1831   : > { %10993 = vadd.xlane.f32.xlu0 %v14064_v36 }
0x1832   : > { %v14066_v61 = vpop.eup %14065 }
0x1833   : > { %10987 = vadd.xlane.f32.xlu1 %v14066_v61 }
0x1834   : > { %v14068_v17 = vpop.eup %14067 }
0x1835   : > { %10989 = vadd.xlane.f32.xlu0 %v14068_v17 }
0x184b   : > { %v10956_v56 = vpop.xlane.xlu1 %10955 }
0x184c   : > { %v10967_v40 = vsub.f32 %v10933_v44, %v10956_v56 }
0x184d   : > { %v10958_v26 = vpop.xlane.xlu0 %10957 }
0x184e   : > { %v10979_v15 = vmul.f32 1.442695, %v10967_v40  ;;  %v10968_v4 = vsub.f32 %v10936_v42, %v10958_v26 }
0x184f   : > { %v10960_v24 = vpop.xlane.xlu1 %10959 }
0x1850   : > { %14069 = vpow2.f32 %v10979_v15  ;;  %v10981_v62 = vmul.f32 1.442695, %v10968_v4  ;;  %v10969_v45 = vsub.f32 %v10941_v1, %v10960_v24 }
0x1851   : > { %v10962_v14 = vpop.xlane.xlu0 %10961 }
0x1852   : > { %14071 = vpow2.f32 %v10981_v62  ;;  %v10983_v19 = vmul.f32 1.442695, %v10969_v45  ;;  %v10970_v7 = vsub.f32 %v10944_v38, %v10962_v14 }
0x1854   : > { %14073 = vpow2.f32 %v10983_v19  ;;  %v10985_v16 = vmul.f32 1.442695, %v10970_v7 }
0x1856   : > { %14075 = vpow2.f32 %v10985_v16 }
0x185a   : > { %v14070_v12 = vpop.eup %14069 }
0x185b   : > { %10995 = vadd.xlane.f32.xlu1 %v14070_v12 }
0x185c   : > { %v14072_v58 = vpop.eup %14071 }
0x185d   : > { %10997 = vadd.xlane.f32.xlu0 %v14072_v58 }
0x185e   : > { %v14074_v18 = vpop.eup %14073 }
0x185f   : > { %10999 = vadd.xlane.f32.xlu1 %v14074_v18 }
0x1860   : > { %v14076_v23 = vpop.eup %14075 }
0x1861   : > { %11001 = vadd.xlane.f32.xlu0 %v14076_v23 }
0x18bc   : > { %v10992_v30 = vpop.xlane.xlu1 %10991 }
0x18bd   : > { %14077 = vrcp.f32 %v10992_v30 }
0x18be   : > { %v10994_v20 = vpop.xlane.xlu0 %10993 }
0x18bf   : > { %14079 = vrcp.f32 %v10994_v20 }
0x18c0   : > { %v10988_v47 = vpop.xlane.xlu1 %10987 }
0x18c1   : > { %14081 = vrcp.f32 %v10988_v47 }
0x18c2   : > { %v10990_v10 = vpop.xlane.xlu0 %10989 }
0x18c3   : > { %14083 = vrcp.f32 %v10990_v10 }
0x18c7   : > { %v14078_v25 = vpop.eup %14077 }
0x18c8   : > { %v11008_v59 = vmul.f32 %v14078_v25, %v14062_v27 }
0x18c9   : > { %v14080_v13 = vpop.eup %14079 }
0x18ca   : > { %11021 = vst [vmem:[%s17815_s0 + $0x10] sm:$0xff] %v11008_v59  ;;  %v11010_v57 = vmul.f32 %v14080_v13, %v14064_v36 }
0x18cb   : > { %v14082_v48 = vpop.eup %14081 }
0x18cc   : > { %11022 = vst [vmem:[%s17815_s0 + $0x18] sm:$0xff] %v11010_v57  ;;  %v11004_v34 = vmul.f32 %v14082_v48, %v14066_v61 }
0x18cd   : > { %v14084_v5 = vpop.eup %14083 }
0x18ce   : > { %11019 = vst [vmem:[%s17815_s0] sm:$0xff] %v11004_v34  ;;  %v11006_v2 = vmul.f32 %v14084_v5, %v14068_v17 }
0x18d0   : > { %11020 = vst [vmem:[%s17815_s0 + $0x8] sm:$0xff] %v11006_v2 }
0x18e8   : > { %v10996_v39 = vpop.xlane.xlu1 %10995 }
0x18e9   : > { %14085 = vrcp.f32 %v10996_v39 }
0x18ea   : > { %v10998_v28 = vpop.xlane.xlu0 %10997 }
0x18eb   : > { %14087 = vrcp.f32 %v10998_v28 }
0x18ec   : > { %v11000_v53 = vpop.xlane.xlu1 %10999 }
0x18ed   : > { %14089 = vrcp.f32 %v11000_v53 }
0x18ee   : > { %v11002_v60 = vpop.xlane.xlu0 %11001 }
0x18ef   : > { %14091 = vrcp.f32 %v11002_v60 }
0x18f3   : > { %v14086_v43 = vpop.eup %14085 }
0x18f4   : > { %v11012_v0 = vmul.f32 %v14086_v43, %v14070_v12 }
0x18f5   : > { %v14088_v22 = vpop.eup %14087 }
0x18f6   : > { %11023 = vst [vmem:[%s17815_s0 + $0x20] sm:$0xff] %v11012_v0  ;;  %v11014_v6 = vmul.f32 %v14088_v22, %v14072_v58 }
0x18f7   : > { %v14090_v35 = vpop.eup %14089 }
0x18f8   : > { %11024 = vst [vmem:[%s17815_s0 + $0x28] sm:$0xff] %v11014_v6  ;;  %v11016_v41 = vmul.f32 %v14090_v35, %v14074_v18 }
0x18f9   : > { %v14092_v49 = vpop.eup %14091 }
0x18fa   : > { %11025 = vst [vmem:[%s17815_s0 + $0x30] sm:$0xff] %v11016_v41  ;;  %v11018_v63 = vmul.f32 %v14092_v49, %v14076_v23 }
0x18fc   : > { %11026 = vst [vmem:[%s17815_s0 + $0x38] sm:$0xff] %v11018_v63 }
0x18fd   : > { %14392 = shalt.err (!%p14389_p10)
}
0x18fe   : > { %s14393_s0 = scalar_lea.hbm %s17828_s11, 1024  ;;  %s14397_s15 = scalar_lea.hbm %s18061_s20, 2048 }
0x18ff   : > { %p14394_p12 = scmp.ne.s32.totalorder %s17828_s11, %s14393_s0  ;;  %p14398_p5 = scmp.lt.u32.totalorder %s17828_s11, %s18061_s20 }
0x1900   : > { %p14399_p7 = scmp.lt.u32.totalorder %s14397_s15, %s14393_s0  ;;  %p14401_p1 = scmp.lt.u32.totalorder %s14393_s0, %s17828_s11 }
0x1901   : > { %p14395_p11 = pnand %p14394_p12, %p18062_p3 }
0x1902   : > { %p14400_p4 = por %p14399_p7, %p14398_p5 }
0x1903   : > { %p14396_p13 = pneg %p14395_p11 }
0x1904   : > { %p14402_p8 = por %p14401_p1, %p14400_p4 }
0x1906   : > { %p14403_p6 = pnand %p14402_p8, %p14396_p13 }
0x1908   : > { %14406 = shalt.err (!%p14403_p6)
}
0x1909   : > { %s14496_s1 = smov 128   ;;  %s14497_s16 = smov 8  }
0x190a   : > { %s18063_s3 = scalar_lea.sflag [#allocation4], %s14911_s4 }
0x190b   : > { %12944 = dma.vmem_to_hbm [thread:$0]  (%p18062_p3), %s17830_s26, 1024, %s17828_s11, %s18063_s3, %s14496_s1, %s14496_s1, %s14497_s16  }
0x190c PF: > { %s11057_s13 = sand.u32 1, %s14453_s27   ;;  %p18064_p0 = scmp.ne.s32.totalorder %s17974_s18, 0 }
0x190d   : > { %p18065_p2 = scmp.ge.s32.totalorder %s14465_s30, 2  ;;  %s11058_s0 = scalar_lea.sflag [#allocation4], %s11057_s13 }
0x190f   : > { %p12979_p9 = pnand %p18065_p2, %p18064_p0 }
0x1911   : > { %14448 = dma.done.wait (!%p12979_p9), %s11058_s0, 1024  }
0x1912   : > { %14450 = vsyncadd (!%p12979_p9), %s11058_s0, 4294966272  ;;  %p36_p10 = scmp.ge.s32.totalorder %s14835_s22, 4   ;;  %s18066_s27 = smov %s14457_s28 }
0x1913   : > { %s18067_s28 = smov %s14461_s29  ;;  %s18068_s29 = smov %s14847_s17 }
0x1914   : > { %s18069_s30 = smov %s14835_s22  ;;  %38 = sbr.rel (!%p36_p10) target bundleno = 24 (0x18), region = 188 }
0x191b   :  { %11063 = vsyncpa [#allocation3], 1 }
0x191c   :  { %11065 = vsyncpa [#allocation3 + $0x1], 1 }
0x191d   :  { %11066 = vsyncpa [#allocation6], 1 }
0x191e   :  { %11067 = vsyncpa [#allocation9], 1 }
0x191f   :  { %11068 = vsyncpa [#allocation12], 1 }
0x1920   :  { %11069 = vsyncpa [#allocation15], 1 }
0x1921   :  { %11070 = vsyncpa [#allocation18], 1 }
0x1922   :  { %11071 = vsyncpa [#allocation4], 1 }
0x1923   :  { %11073 = vsyncpa [#allocation4 + $0x1], 1 }

</bundles_post_ra>
